<compile_context>
chip_gen: v7x
topology: tpu7x:2x2x1
jax: 0.10.0
libtpu: 0.0.40
codegen_flags: <defaults>
</compile_context>

<pallas_src>
import functools
import numpy as np

import jax
import jax.numpy as jnp
from jax.experimental import pallas as pl
from jax.experimental.pallas import tpu as pltpu


# ----------------------------------------------------------------------------
# The fused kernel
# ----------------------------------------------------------------------------

def _fastnet_kernel(xp_ref, w1_ref, b1_ref, w2_ref, b2_ref, wh_ref, bh_ref,
                    mw_ref, o_ref, s1p_ref, t_ref, s_ref,
                    *, B, H, W, Cin, C, NC, padw, h_lo, h_hi, h_wt):
    Hs = H // 2
    HW = H * W

    # Zero the padded scratch once; only its interior is (re)written per batch,
    # so the zero border provides the conv2 padding for every image.
    s1p_ref[...] = jnp.zeros_like(s1p_ref)

    xs = []   # thresholded heatmaps, one (NC, H*W) slab per image
    ms = []   # per-image per-channel maxima (NC, 1)

    for b in range(B):                       # small B -> unrolled in-kernel
        # ---- pool2: Conv3x3(Cin -> C), pad=1, no activation (output = s1) ----
        acc1 = jnp.zeros((HW, C), jnp.float32)
        for di in range(3):
            for dj in range(3):
                patch = xp_ref[b, pl.ds(di, H), pl.ds(dj, W), :]        # (H, W, Cin)
                patch = patch.reshape(HW, Cin).astype(jnp.bfloat16)
                acc1 = acc1 + jnp.dot(patch, w1_ref[3 * di + dj],
                                      preferred_element_type=jnp.float32)
        s1_b = acc1 + b1_ref[...]                                        # (HW, C) f32

        # ---- pool3 leading ReLU, applied once; store into zero-padded tile ----
        s1p_ref[pl.ds(1, H), pl.ds(padw, W), :] = \
            jnp.maximum(s1_b, 0.0).reshape(H, W, C)

        # ---- pool3 Conv3x3(C -> C), pad=1, then ReLU ----
        acc2 = jnp.zeros((HW, C), jnp.float32)
        for di in range(3):
            for dj in range(3):
                patch = s1p_ref[pl.ds(di, H), pl.ds(padw - 1 + dj, W), :]
                patch = patch.reshape(HW, C).astype(jnp.bfloat16)
                acc2 = acc2 + jnp.dot(patch, w2_ref[3 * di + dj],
                                      preferred_element_type=jnp.float32)
        t = jnp.maximum(acc2 + b2_ref[...], 0.0)                         # (HW, C)

        # ---- fused 2x2 max-pool + separable bilinear x2 upsample ----
        t_ref[...] = t.reshape(H, W, C)
        # adjacent max along W (even indices of wmax are the W-pooled values)
        wmax = jnp.maximum(t_ref[:, pl.ds(0, W - 1), :],
                           t_ref[:, pl.ds(1, W - 1), :])                 # (H, W-1, C)
        # W-direction interpolation: mw already selects the even columns only.
        u1 = []
        for hs in range(Hs):
            slab = jnp.maximum(wmax[2 * hs], wmax[2 * hs + 1])           # (W-1, C)
            u1.append(jnp.dot(mw_ref[...], slab,
                              preferred_element_type=jnp.float32))       # (W, C)
        # H-direction interpolation: each output row blends two pooled rows
        # (static indices/weights), then add the s1 residual and stage s.
        for h in range(H):
            s2u_h = (1.0 - h_wt[h]) * u1[h_lo[h]] + h_wt[h] * u1[h_hi[h]]
            s_ref[pl.ds(h * W, W), :] = s1_b[h * W:(h + 1) * W, :] + s2u_h

        # ---- heatmap 1x1 conv, produced channel-major -> lane-dense (NC, HW) ----
        ht = jax.lax.dot_general(
            wh_ref[...], s_ref[...].astype(jnp.bfloat16),
            dimension_numbers=(((1,), (1,)), ((), ())),
            preferred_element_type=jnp.float32) + bh_ref[...]            # (NC, HW)

        x_b = jnp.where(ht > 0.6, ht, 0.0)
        xs.append(x_b)
        ms.append(jnp.max(x_b, axis=1, keepdims=True))                   # (NC, 1)

    # ---- channel_maxmization over the whole batch, then normalize ----
    m = ms[0]
    for b in range(1, B):
        m = jnp.maximum(m, ms[b])
    inv = pl.reciprocal(m + 1e-9, approx=True)                           # (NC, 1)
    for b in range(B):
        o_ref[b] = xs[b] * inv                                           # (NC, HW)


# ----------------------------------------------------------------------------
# Wrapper (layout plumbing only: transpose/pad input, build interp tables)
# ----------------------------------------------------------------------------

def _bilinear_lut(n_in, n_out):
    """Source indices / weights matching F.interpolate(bilinear, align_corners=True)."""
    src = np.arange(n_out, dtype=np.float64) * (n_in - 1) / max(n_out - 1, 1)
    lo = np.floor(src).astype(np.int64)
    hi = np.minimum(lo + 1, n_in - 1)
    wt = src - lo
    return lo, hi, wt


def fastnet_forward(x_nchw, params):
    w1, b1, w2, b2, wh, bh = params
    B, Cin, H, W = x_nchw.shape
    C = w1.shape[-1]
    NC = wh.shape[0]
    Hs, Ws = H // 2, W // 2
    Hp = H + 2
    PADW = 8                      # sublane-aligned left padding for the conv2 tile
    W2p = W + 2 * PADW

    x = jnp.transpose(x_nchw, (0, 2, 3, 1))             # NCHW -> NHWC (C on lanes)
    xp = jnp.pad(x, ((0, 0), (1, 1), (1, 1), (0, 0)))   # (B, Hp, W+2, Cin)

    # Separable bilinear x2 tables (align_corners=True).
    h_lo, h_hi, h_wt = _bilinear_lut(Hs, H)
    w_lo, w_hi, w_wt = _bilinear_lut(Ws, W)
    # W interpolation matrix acting on the adjacent-max vector of length W-1;
    # only its even columns (= the pooled values) carry weight.
    mw = np.zeros((W, W - 1), np.float32)
    for wo in range(W):
        mw[wo, 2 * int(w_lo[wo])] += 1.0 - float(w_wt[wo])
        mw[wo, 2 * int(w_hi[wo])] += float(w_wt[wo])
    mw = jnp.asarray(mw)

    kernel = functools.partial(
        _fastnet_kernel,
        B=B, H=H, W=W, Cin=Cin, C=C, NC=NC, padw=PADW,
        h_lo=tuple(int(v) for v in h_lo),
        h_hi=tuple(int(v) for v in h_hi),
        h_wt=tuple(float(v) for v in h_wt))

    out = pl.pallas_call(
        kernel,
        out_shape=jax.ShapeDtypeStruct((B, NC, H * W), jnp.float32),
        in_specs=[pl.BlockSpec(memory_space=pltpu.MemorySpace.VMEM)] * 8,
        out_specs=pl.BlockSpec(memory_space=pltpu.MemorySpace.VMEM),
        scratch_shapes=[
            pltpu.VMEM((Hp, W2p, C), jnp.float32),   # zero-padded relu(s1)
            pltpu.VMEM((H, W, C), jnp.float32),      # conv2 output tile
            pltpu.VMEM((H * W, C), jnp.float32),     # s = s1 + upsample(s2)
        ],
        compiler_params=pltpu.CompilerParams(vmem_limit_bytes=32 * 1024 * 1024),
    )(xp,
      w1.astype(jnp.bfloat16), b1,
      w2.astype(jnp.bfloat16), b2,
      wh.astype(jnp.bfloat16), bh,
      mw)

    return out.reshape(B, NC, H, W)   # free reshape; matches PyTorch NCHW output


# ----------------------------------------------------------------------------
# Main
# ----------------------------------------------------------------------------

if __name__ == "__main__":
    B, Cin, H, W = 2, 4, 16, 16      # input (B, C, H, W), NCHW like PyTorch
    C, NUM_CLASS = 8, 10             # in_channels of heatmap, num_class

    key = jax.random.PRNGKey(0)
    kx, k1, k2, kh = jax.random.split(key, 4)

    x = jax.random.normal(kx, (B, Cin, H, W), jnp.float32)

    # kaiming_normal_(mode='fan_out', nonlinearity='relu'): std = sqrt(2/(k*k*Cout));
    # biases initialized to 0 (matching _initialize_weights).
    w1 = jax.random.normal(k1, (9, Cin, C), jnp.float32) * np.sqrt(2.0 / (9 * C))
    b1 = jnp.zeros((1, C), jnp.float32)
    w2 = jax.random.normal(k2, (9, C, C), jnp.float32) * np.sqrt(2.0 / (9 * C))
    b2 = jnp.zeros((1, C), jnp.float32)
    wh = jax.random.normal(kh, (NUM_CLASS, C), jnp.float32) * np.sqrt(2.0 / NUM_CLASS)
    bh = jnp.zeros((NUM_CLASS, 1), jnp.float32)
    params = (w1, b1, w2, b2, wh, bh)

    out = jax.jit(fastnet_forward)(x, params)
    out = jax.block_until_ready(out)

    assert out.shape == (B, NUM_CLASS, H, W), out.shape
    assert bool(jnp.all(jnp.isfinite(out)))
    print("KERNEL_OK")
</pallas_src>

<mosaic_0001>
module attributes {stable_mosaic.version = 11 : i64} {
  func.func @_fastnet_kernel(%arg0: memref<2x18x18x4xf32, #tpu.memory_space<vmem>>, %arg1: memref<9x4x8xbf16, #tpu.memory_space<vmem>>, %arg2: memref<1x8xf32, #tpu.memory_space<vmem>>, %arg3: memref<9x8x8xbf16, #tpu.memory_space<vmem>>, %arg4: memref<1x8xf32, #tpu.memory_space<vmem>>, %arg5: memref<10x8xbf16, #tpu.memory_space<vmem>>, %arg6: memref<10x1xf32, #tpu.memory_space<vmem>>, %arg7: memref<16x15xf32, #tpu.memory_space<vmem>>, %arg8: memref<2x10x256xf32, #tpu.memory_space<vmem>>, %arg9: memref<18x32x8xf32, #tpu.memory_space<vmem>>, %arg10: memref<16x16x8xf32, #tpu.memory_space<vmem>>, %arg11: memref<256x8xf32, #tpu.memory_space<vmem>>) attributes {dimension_semantics = [], scalar_prefetch = 0 : i64, scratch_operands = 3 : i64, tpu.core_type = #tpu.core_type<tc>} {
    %cst = arith.constant 0.000000e+00 : f32
    %0 = vector.broadcast %cst : f32 to vector<18x32x8xf32>
    %c0 = arith.constant 0 : index
    %c0_0 = arith.constant 0 : index
    %c0_1 = arith.constant 0 : index
    %1 = vector.load %arg9[%c0, %c0_0, %c0_1] : memref<18x32x8xf32, #tpu.memory_space<vmem>>, vector<18x32x8xf32>
    tpu.vector_store %arg9[%c0, %c0_0, %c0_1], %0 {strides = array<i32>} : memref<18x32x8xf32, #tpu.memory_space<vmem>>, vector<18x32x8xf32>,
    %cst_2 = arith.constant 0.000000e+00 : f32
    %2 = vector.broadcast %cst_2 : f32 to vector<256x8xf32>
    %c0_3 = arith.constant 0 : index
    %c0_4 = arith.constant 0 : index
    %c0_5 = arith.constant 0 : index
    %c0_6 = arith.constant 0 : index
    %3 = vector.load %arg0[%c0_3, %c0_4, %c0_5, %c0_6] : memref<2x18x18x4xf32, #tpu.memory_space<vmem>>, vector<1x16x16x4xf32>
    %4 = vector.shape_cast %3 : vector<1x16x16x4xf32> to vector<16x16x4xf32>
    %5 = vector.shape_cast %4 : vector<16x16x4xf32> to vector<256x4xf32>
    %6 = arith.truncf %5 : vector<256x4xf32> to vector<256x4xbf16>
    %c0_7 = arith.constant 0 : index
    %c0_8 = arith.constant 0 : index
    %c0_9 = arith.constant 0 : index
    %7 = vector.load %arg1[%c0_7, %c0_8, %c0_9] : memref<9x4x8xbf16, #tpu.memory_space<vmem>>, vector<1x4x8xbf16>
    %8 = vector.shape_cast %7 : vector<1x4x8xbf16> to vector<4x8xbf16>
    %cst_10 = arith.constant dense<0.000000e+00> : vector<256x8xf32>
    %9 = tpu.matmul %6, %8, %cst_10 {dimension_numbers = #tpu.dot_dimension_numbers<[1], [0], [0], [1], [0, 0, 1, 1], [], []>} : vector<256x4xbf16>, vector<4x8xbf16>, vector<256x8xf32> -> vector<256x8xf32>
    %10 = arith.addf %2, %9 : vector<256x8xf32>
    %c0_11 = arith.constant 0 : index
    %c0_12 = arith.constant 0 : index
    %c1 = arith.constant 1 : index
    %c0_13 = arith.constant 0 : index
    %11 = vector.load %arg0[%c0_11, %c0_12, %c1, %c0_13] : memref<2x18x18x4xf32, #tpu.memory_space<vmem>>, vector<1x16x16x4xf32>
    %12 = vector.shape_cast %11 : vector<1x16x16x4xf32> to vector<16x16x4xf32>
    %13 = vector.shape_cast %12 : vector<16x16x4xf32> to vector<256x4xf32>
    %14 = arith.truncf %13 : vector<256x4xf32> to vector<256x4xbf16>
    %c1_14 = arith.constant 1 : index
    %c0_15 = arith.constant 0 : index
    %c0_16 = arith.constant 0 : index
    %15 = vector.load %arg1[%c1_14, %c0_15, %c0_16] : memref<9x4x8xbf16, #tpu.memory_space<vmem>>, vector<1x4x8xbf16>
    %16 = vector.shape_cast %15 : vector<1x4x8xbf16> to vector<4x8xbf16>
    %cst_17 = arith.constant dense<0.000000e+00> : vector<256x8xf32>
    %17 = tpu.matmul %14, %16, %cst_17 {dimension_numbers = #tpu.dot_dimension_numbers<[1], [0], [0], [1], [0, 0, 1, 1], [], []>} : vector<256x4xbf16>, vector<4x8xbf16>, vector<256x8xf32> -> vector<256x8xf32>
    %18 = arith.addf %10, %17 : vector<256x8xf32>
    %c0_18 = arith.constant 0 : index
    %c0_19 = arith.constant 0 : index
    %c2 = arith.constant 2 : index
    %c0_20 = arith.constant 0 : index
    %19 = vector.load %arg0[%c0_18, %c0_19, %c2, %c0_20] : memref<2x18x18x4xf32, #tpu.memory_space<vmem>>, vector<1x16x16x4xf32>
    %20 = vector.shape_cast %19 : vector<1x16x16x4xf32> to vector<16x16x4xf32>
    %21 = vector.shape_cast %20 : vector<16x16x4xf32> to vector<256x4xf32>
    %22 = arith.truncf %21 : vector<256x4xf32> to vector<256x4xbf16>
    %c2_21 = arith.constant 2 : index
    %c0_22 = arith.constant 0 : index
    %c0_23 = arith.constant 0 : index
    %23 = vector.load %arg1[%c2_21, %c0_22, %c0_23] : memref<9x4x8xbf16, #tpu.memory_space<vmem>>, vector<1x4x8xbf16>
    %24 = vector.shape_cast %23 : vector<1x4x8xbf16> to vector<4x8xbf16>
    %cst_24 = arith.constant dense<0.000000e+00> : vector<256x8xf32>
    %25 = tpu.matmul %22, %24, %cst_24 {dimension_numbers = #tpu.dot_dimension_numbers<[1], [0], [0], [1], [0, 0, 1, 1], [], []>} : vector<256x4xbf16>, vector<4x8xbf16>, vector<256x8xf32> -> vector<256x8xf32>
    %26 = arith.addf %18, %25 : vector<256x8xf32>
    %c0_25 = arith.constant 0 : index
    %c1_26 = arith.constant 1 : index
    %c0_27 = arith.constant 0 : index
    %c0_28 = arith.constant 0 : index
    %27 = vector.load %arg0[%c0_25, %c1_26, %c0_27, %c0_28] : memref<2x18x18x4xf32, #tpu.memory_space<vmem>>, vector<1x16x16x4xf32>
    %28 = vector.shape_cast %27 : vector<1x16x16x4xf32> to vector<16x16x4xf32>
    %29 = vector.shape_cast %28 : vector<16x16x4xf32> to vector<256x4xf32>
    %30 = arith.truncf %29 : vector<256x4xf32> to vector<256x4xbf16>
    %c3 = arith.constant 3 : index
    %c0_29 = arith.constant 0 : index
    %c0_30 = arith.constant 0 : index
    %31 = vector.load %arg1[%c3, %c0_29, %c0_30] : memref<9x4x8xbf16, #tpu.memory_space<vmem>>, vector<1x4x8xbf16>
    %32 = vector.shape_cast %31 : vector<1x4x8xbf16> to vector<4x8xbf16>
    %cst_31 = arith.constant dense<0.000000e+00> : vector<256x8xf32>
    %33 = tpu.matmul %30, %32, %cst_31 {dimension_numbers = #tpu.dot_dimension_numbers<[1], [0], [0], [1], [0, 0, 1, 1], [], []>} : vector<256x4xbf16>, vector<4x8xbf16>, vector<256x8xf32> -> vector<256x8xf32>
    %34 = arith.addf %26, %33 : vector<256x8xf32>
    %c0_32 = arith.constant 0 : index
    %c1_33 = arith.constant 1 : index
    %c1_34 = arith.constant 1 : index
    %c0_35 = arith.constant 0 : index
    %35 = vector.load %arg0[%c0_32, %c1_33, %c1_34, %c0_35] : memref<2x18x18x4xf32, #tpu.memory_space<vmem>>, vector<1x16x16x4xf32>
    %36 = vector.shape_cast %35 : vector<1x16x16x4xf32> to vector<16x16x4xf32>
    %37 = vector.shape_cast %36 : vector<16x16x4xf32> to vector<256x4xf32>
    %38 = arith.truncf %37 : vector<256x4xf32> to vector<256x4xbf16>
    %c4 = arith.constant 4 : index
    %c0_36 = arith.constant 0 : index
    %c0_37 = arith.constant 0 : index
    %39 = vector.load %arg1[%c4, %c0_36, %c0_37] : memref<9x4x8xbf16, #tpu.memory_space<vmem>>, vector<1x4x8xbf16>
    %40 = vector.shape_cast %39 : vector<1x4x8xbf16> to vector<4x8xbf16>
    %cst_38 = arith.constant dense<0.000000e+00> : vector<256x8xf32>
    %41 = tpu.matmul %38, %40, %cst_38 {dimension_numbers = #tpu.dot_dimension_numbers<[1], [0], [0], [1], [0, 0, 1, 1], [], []>} : vector<256x4xbf16>, vector<4x8xbf16>, vector<256x8xf32> -> vector<256x8xf32>
    %42 = arith.addf %34, %41 : vector<256x8xf32>
    %c0_39 = arith.constant 0 : index
    %c1_40 = arith.constant 1 : index
    %c2_41 = arith.constant 2 : index
    %c0_42 = arith.constant 0 : index
    %43 = vector.load %arg0[%c0_39, %c1_40, %c2_41, %c0_42] : memref<2x18x18x4xf32, #tpu.memory_space<vmem>>, vector<1x16x16x4xf32>
    %44 = vector.shape_cast %43 : vector<1x16x16x4xf32> to vector<16x16x4xf32>
    %45 = vector.shape_cast %44 : vector<16x16x4xf32> to vector<256x4xf32>
    %46 = arith.truncf %45 : vector<256x4xf32> to vector<256x4xbf16>
    %c5 = arith.constant 5 : index
    %c0_43 = arith.constant 0 : index
    %c0_44 = arith.constant 0 : index
    %47 = vector.load %arg1[%c5, %c0_43, %c0_44] : memref<9x4x8xbf16, #tpu.memory_space<vmem>>, vector<1x4x8xbf16>
    %48 = vector.shape_cast %47 : vector<1x4x8xbf16> to vector<4x8xbf16>
    %cst_45 = arith.constant dense<0.000000e+00> : vector<256x8xf32>
    %49 = tpu.matmul %46, %48, %cst_45 {dimension_numbers = #tpu.dot_dimension_numbers<[1], [0], [0], [1], [0, 0, 1, 1], [], []>} : vector<256x4xbf16>, vector<4x8xbf16>, vector<256x8xf32> -> vector<256x8xf32>
    %50 = arith.addf %42, %49 : vector<256x8xf32>
    %c0_46 = arith.constant 0 : index
    %c2_47 = arith.constant 2 : index
    %c0_48 = arith.constant 0 : index
    %c0_49 = arith.constant 0 : index
    %51 = vector.load %arg0[%c0_46, %c2_47, %c0_48, %c0_49] : memref<2x18x18x4xf32, #tpu.memory_space<vmem>>, vector<1x16x16x4xf32>
    %52 = vector.shape_cast %51 : vector<1x16x16x4xf32> to vector<16x16x4xf32>
    %53 = vector.shape_cast %52 : vector<16x16x4xf32> to vector<256x4xf32>
    %54 = arith.truncf %53 : vector<256x4xf32> to vector<256x4xbf16>
    %c6 = arith.constant 6 : index
    %c0_50 = arith.constant 0 : index
    %c0_51 = arith.constant 0 : index
    %55 = vector.load %arg1[%c6, %c0_50, %c0_51] : memref<9x4x8xbf16, #tpu.memory_space<vmem>>, vector<1x4x8xbf16>
    %56 = vector.shape_cast %55 : vector<1x4x8xbf16> to vector<4x8xbf16>
    %cst_52 = arith.constant dense<0.000000e+00> : vector<256x8xf32>
    %57 = tpu.matmul %54, %56, %cst_52 {dimension_numbers = #tpu.dot_dimension_numbers<[1], [0], [0], [1], [0, 0, 1, 1], [], []>} : vector<256x4xbf16>, vector<4x8xbf16>, vector<256x8xf32> -> vector<256x8xf32>
    %58 = arith.addf %50, %57 : vector<256x8xf32>
    %c0_53 = arith.constant 0 : index
    %c2_54 = arith.constant 2 : index
    %c1_55 = arith.constant 1 : index
    %c0_56 = arith.constant 0 : index
    %59 = vector.load %arg0[%c0_53, %c2_54, %c1_55, %c0_56] : memref<2x18x18x4xf32, #tpu.memory_space<vmem>>, vector<1x16x16x4xf32>
    %60 = vector.shape_cast %59 : vector<1x16x16x4xf32> to vector<16x16x4xf32>
    %61 = vector.shape_cast %60 : vector<16x16x4xf32> to vector<256x4xf32>
    %62 = arith.truncf %61 : vector<256x4xf32> to vector<256x4xbf16>
    %c7 = arith.constant 7 : index
    %c0_57 = arith.constant 0 : index
    %c0_58 = arith.constant 0 : index
    %63 = vector.load %arg1[%c7, %c0_57, %c0_58] : memref<9x4x8xbf16, #tpu.memory_space<vmem>>, vector<1x4x8xbf16>
    %64 = vector.shape_cast %63 : vector<1x4x8xbf16> to vector<4x8xbf16>
    %cst_59 = arith.constant dense<0.000000e+00> : vector<256x8xf32>
    %65 = tpu.matmul %62, %64, %cst_59 {dimension_numbers = #tpu.dot_dimension_numbers<[1], [0], [0], [1], [0, 0, 1, 1], [], []>} : vector<256x4xbf16>, vector<4x8xbf16>, vector<256x8xf32> -> vector<256x8xf32>
    %66 = arith.addf %58, %65 : vector<256x8xf32>
    %c0_60 = arith.constant 0 : index
    %c2_61 = arith.constant 2 : index
    %c2_62 = arith.constant 2 : index
    %c0_63 = arith.constant 0 : index
    %67 = vector.load %arg0[%c0_60, %c2_61, %c2_62, %c0_63] : memref<2x18x18x4xf32, #tpu.memory_space<vmem>>, vector<1x16x16x4xf32>
    %68 = vector.shape_cast %67 : vector<1x16x16x4xf32> to vector<16x16x4xf32>
    %69 = vector.shape_cast %68 : vector<16x16x4xf32> to vector<256x4xf32>
    %70 = arith.truncf %69 : vector<256x4xf32> to vector<256x4xbf16>
    %c8 = arith.constant 8 : index
    %c0_64 = arith.constant 0 : index
    %c0_65 = arith.constant 0 : index
    %71 = vector.load %arg1[%c8, %c0_64, %c0_65] : memref<9x4x8xbf16, #tpu.memory_space<vmem>>, vector<1x4x8xbf16>
    %72 = vector.shape_cast %71 : vector<1x4x8xbf16> to vector<4x8xbf16>
    %cst_66 = arith.constant dense<0.000000e+00> : vector<256x8xf32>
    %73 = tpu.matmul %70, %72, %cst_66 {dimension_numbers = #tpu.dot_dimension_numbers<[1], [0], [0], [1], [0, 0, 1, 1], [], []>} : vector<256x4xbf16>, vector<4x8xbf16>, vector<256x8xf32> -> vector<256x8xf32>
    %74 = arith.addf %66, %73 : vector<256x8xf32>
    %c0_67 = arith.constant 0 : index
    %c0_68 = arith.constant 0 : index
    %75 = vector.load %arg2[%c0_67, %c0_68] : memref<1x8xf32, #tpu.memory_space<vmem>>, vector<1x8xf32>
    %76 = vector.broadcast %75 : vector<1x8xf32> to vector<256x8xf32>
    %77 = arith.addf %74, %76 : vector<256x8xf32>
    %cst_69 = arith.constant 0.000000e+00 : f32
    %78 = vector.broadcast %cst_69 : f32 to vector<256x8xf32>
    %79 = arith.maximumf %77, %78 : vector<256x8xf32>
    %80 = vector.shape_cast %79 : vector<256x8xf32> to vector<16x16x8xf32>
    %c1_70 = arith.constant 1 : index
    %c8_71 = arith.constant 8 : index
    %c0_72 = arith.constant 0 : index
    %81 = vector.load %arg9[%c1_70, %c8_71, %c0_72] : memref<18x32x8xf32, #tpu.memory_space<vmem>>, vector<16x16x8xf32>
    tpu.vector_store %arg9[%c1_70, %c8_71, %c0_72], %80 {strides = array<i32>} : memref<18x32x8xf32, #tpu.memory_space<vmem>>, vector<16x16x8xf32>,
    %cst_73 = arith.constant 0.000000e+00 : f32
    %82 = vector.broadcast %cst_73 : f32 to vector<256x8xf32>
    %c0_74 = arith.constant 0 : index
    %c7_75 = arith.constant 7 : index
    %c0_76 = arith.constant 0 : index
    %83 = vector.load %arg9[%c0_74, %c7_75, %c0_76] : memref<18x32x8xf32, #tpu.memory_space<vmem>>, vector<16x16x8xf32>
    %84 = vector.shape_cast %83 : vector<16x16x8xf32> to vector<256x8xf32>
    %85 = arith.truncf %84 : vector<256x8xf32> to vector<256x8xbf16>
    %c0_77 = arith.constant 0 : index
    %c0_78 = arith.constant 0 : index
    %c0_79 = arith.constant 0 : index
    %86 = vector.load %arg3[%c0_77, %c0_78, %c0_79] : memref<9x8x8xbf16, #tpu.memory_space<vmem>>, vector<1x8x8xbf16>
    %87 = vector.shape_cast %86 : vector<1x8x8xbf16> to vector<8x8xbf16>
    %cst_80 = arith.constant dense<0.000000e+00> : vector<256x8xf32>
    %88 = tpu.matmul %85, %87, %cst_80 {dimension_numbers = #tpu.dot_dimension_numbers<[1], [0], [0], [1], [0, 0, 1, 1], [], []>} : vector<256x8xbf16>, vector<8x8xbf16>, vector<256x8xf32> -> vector<256x8xf32>
    %89 = arith.addf %82, %88 : vector<256x8xf32>
    %c0_81 = arith.constant 0 : index
    %c8_82 = arith.constant 8 : index
    %c0_83 = arith.constant 0 : index
    %90 = vector.load %arg9[%c0_81, %c8_82, %c0_83] : memref<18x32x8xf32, #tpu.memory_space<vmem>>, vector<16x16x8xf32>
    %91 = vector.shape_cast %90 : vector<16x16x8xf32> to vector<256x8xf32>
    %92 = arith.truncf %91 : vector<256x8xf32> to vector<256x8xbf16>
    %c1_84 = arith.constant 1 : index
    %c0_85 = arith.constant 0 : index
    %c0_86 = arith.constant 0 : index
    %93 = vector.load %arg3[%c1_84, %c0_85, %c0_86] : memref<9x8x8xbf16, #tpu.memory_space<vmem>>, vector<1x8x8xbf16>
    %94 = vector.shape_cast %93 : vector<1x8x8xbf16> to vector<8x8xbf16>
    %cst_87 = arith.constant dense<0.000000e+00> : vector<256x8xf32>
    %95 = tpu.matmul %92, %94, %cst_87 {dimension_numbers = #tpu.dot_dimension_numbers<[1], [0], [0], [1], [0, 0, 1, 1], [], []>} : vector<256x8xbf16>, vector<8x8xbf16>, vector<256x8xf32> -> vector<256x8xf32>
    %96 = arith.addf %89, %95 : vector<256x8xf32>
    %c0_88 = arith.constant 0 : index
    %c9 = arith.constant 9 : index
    %c0_89 = arith.constant 0 : index
    %97 = vector.load %arg9[%c0_88, %c9, %c0_89] : memref<18x32x8xf32, #tpu.memory_space<vmem>>, vector<16x16x8xf32>
    %98 = vector.shape_cast %97 : vector<16x16x8xf32> to vector<256x8xf32>
    %99 = arith.truncf %98 : vector<256x8xf32> to vector<256x8xbf16>
    %c2_90 = arith.constant 2 : index
    %c0_91 = arith.constant 0 : index
    %c0_92 = arith.constant 0 : index
    %100 = vector.load %arg3[%c2_90, %c0_91, %c0_92] : memref<9x8x8xbf16, #tpu.memory_space<vmem>>, vector<1x8x8xbf16>
    %101 = vector.shape_cast %100 : vector<1x8x8xbf16> to vector<8x8xbf16>
    %cst_93 = arith.constant dense<0.000000e+00> : vector<256x8xf32>
    %102 = tpu.matmul %99, %101, %cst_93 {dimension_numbers = #tpu.dot_dimension_numbers<[1], [0], [0], [1], [0, 0, 1, 1], [], []>} : vector<256x8xbf16>, vector<8x8xbf16>, vector<256x8xf32> -> vector<256x8xf32>
    %103 = arith.addf %96, %102 : vector<256x8xf32>
    %c1_94 = arith.constant 1 : index
    %c7_95 = arith.constant 7 : index
    %c0_96 = arith.constant 0 : index
    %104 = vector.load %arg9[%c1_94, %c7_95, %c0_96] : memref<18x32x8xf32, #tpu.memory_space<vmem>>, vector<16x16x8xf32>
    %105 = vector.shape_cast %104 : vector<16x16x8xf32> to vector<256x8xf32>
    %106 = arith.truncf %105 : vector<256x8xf32> to vector<256x8xbf16>
    %c3_97 = arith.constant 3 : index
    %c0_98 = arith.constant 0 : index
    %c0_99 = arith.constant 0 : index
    %107 = vector.load %arg3[%c3_97, %c0_98, %c0_99] : memref<9x8x8xbf16, #tpu.memory_space<vmem>>, vector<1x8x8xbf16>
    %108 = vector.shape_cast %107 : vector<1x8x8xbf16> to vector<8x8xbf16>
    %cst_100 = arith.constant dense<0.000000e+00> : vector<256x8xf32>
    %109 = tpu.matmul %106, %108, %cst_100 {dimension_numbers = #tpu.dot_dimension_numbers<[1], [0], [0], [1], [0, 0, 1, 1], [], []>} : vector<256x8xbf16>, vector<8x8xbf16>, vector<256x8xf32> -> vector<256x8xf32>
    %110 = arith.addf %103, %109 : vector<256x8xf32>
    %c1_101 = arith.constant 1 : index
    %c8_102 = arith.constant 8 : index
    %c0_103 = arith.constant 0 : index
    %111 = vector.load %arg9[%c1_101, %c8_102, %c0_103] : memref<18x32x8xf32, #tpu.memory_space<vmem>>, vector<16x16x8xf32>
    %112 = vector.shape_cast %111 : vector<16x16x8xf32> to vector<256x8xf32>
    %113 = arith.truncf %112 : vector<256x8xf32> to vector<256x8xbf16>
    %c4_104 = arith.constant 4 : index
    %c0_105 = arith.constant 0 : index
    %c0_106 = arith.constant 0 : index
    %114 = vector.load %arg3[%c4_104, %c0_105, %c0_106] : memref<9x8x8xbf16, #tpu.memory_space<vmem>>, vector<1x8x8xbf16>
    %115 = vector.shape_cast %114 : vector<1x8x8xbf16> to vector<8x8xbf16>
    %cst_107 = arith.constant dense<0.000000e+00> : vector<256x8xf32>
    %116 = tpu.matmul %113, %115, %cst_107 {dimension_numbers = #tpu.dot_dimension_numbers<[1], [0], [0], [1], [0, 0, 1, 1], [], []>} : vector<256x8xbf16>, vector<8x8xbf16>, vector<256x8xf32> -> vector<256x8xf32>
    %117 = arith.addf %110, %116 : vector<256x8xf32>
    %c1_108 = arith.constant 1 : index
    %c9_109 = arith.constant 9 : index
    %c0_110 = arith.constant 0 : index
    %118 = vector.load %arg9[%c1_108, %c9_109, %c0_110] : memref<18x32x8xf32, #tpu.memory_space<vmem>>, vector<16x16x8xf32>
    %119 = vector.shape_cast %118 : vector<16x16x8xf32> to vector<256x8xf32>
    %120 = arith.truncf %119 : vector<256x8xf32> to vector<256x8xbf16>
    %c5_111 = arith.constant 5 : index
    %c0_112 = arith.constant 0 : index
    %c0_113 = arith.constant 0 : index
    %121 = vector.load %arg3[%c5_111, %c0_112, %c0_113] : memref<9x8x8xbf16, #tpu.memory_space<vmem>>, vector<1x8x8xbf16>
    %122 = vector.shape_cast %121 : vector<1x8x8xbf16> to vector<8x8xbf16>
    %cst_114 = arith.constant dense<0.000000e+00> : vector<256x8xf32>
    %123 = tpu.matmul %120, %122, %cst_114 {dimension_numbers = #tpu.dot_dimension_numbers<[1], [0], [0], [1], [0, 0, 1, 1], [], []>} : vector<256x8xbf16>, vector<8x8xbf16>, vector<256x8xf32> -> vector<256x8xf32>
    %124 = arith.addf %117, %123 : vector<256x8xf32>
    %c2_115 = arith.constant 2 : index
    %c7_116 = arith.constant 7 : index
    %c0_117 = arith.constant 0 : index
    %125 = vector.load %arg9[%c2_115, %c7_116, %c0_117] : memref<18x32x8xf32, #tpu.memory_space<vmem>>, vector<16x16x8xf32>
    %126 = vector.shape_cast %125 : vector<16x16x8xf32> to vector<256x8xf32>
    %127 = arith.truncf %126 : vector<256x8xf32> to vector<256x8xbf16>
    %c6_118 = arith.constant 6 : index
    %c0_119 = arith.constant 0 : index
    %c0_120 = arith.constant 0 : index
    %128 = vector.load %arg3[%c6_118, %c0_119, %c0_120] : memref<9x8x8xbf16, #tpu.memory_space<vmem>>, vector<1x8x8xbf16>
    %129 = vector.shape_cast %128 : vector<1x8x8xbf16> to vector<8x8xbf16>
    %cst_121 = arith.constant dense<0.000000e+00> : vector<256x8xf32>
    %130 = tpu.matmul %127, %129, %cst_121 {dimension_numbers = #tpu.dot_dimension_numbers<[1], [0], [0], [1], [0, 0, 1, 1], [], []>} : vector<256x8xbf16>, vector<8x8xbf16>, vector<256x8xf32> -> vector<256x8xf32>
    %131 = arith.addf %124, %130 : vector<256x8xf32>
    %c2_122 = arith.constant 2 : index
    %c8_123 = arith.constant 8 : index
    %c0_124 = arith.constant 0 : index
    %132 = vector.load %arg9[%c2_122, %c8_123, %c0_124] : memref<18x32x8xf32, #tpu.memory_space<vmem>>, vector<16x16x8xf32>
    %133 = vector.shape_cast %132 : vector<16x16x8xf32> to vector<256x8xf32>
    %134 = arith.truncf %133 : vector<256x8xf32> to vector<256x8xbf16>
    %c7_125 = arith.constant 7 : index
    %c0_126 = arith.constant 0 : index
    %c0_127 = arith.constant 0 : index
    %135 = vector.load %arg3[%c7_125, %c0_126, %c0_127] : memref<9x8x8xbf16, #tpu.memory_space<vmem>>, vector<1x8x8xbf16>
    %136 = vector.shape_cast %135 : vector<1x8x8xbf16> to vector<8x8xbf16>
    %cst_128 = arith.constant dense<0.000000e+00> : vector<256x8xf32>
    %137 = tpu.matmul %134, %136, %cst_128 {dimension_numbers = #tpu.dot_dimension_numbers<[1], [0], [0], [1], [0, 0, 1, 1], [], []>} : vector<256x8xbf16>, vector<8x8xbf16>, vector<256x8xf32> -> vector<256x8xf32>
    %138 = arith.addf %131, %137 : vector<256x8xf32>
    %c2_129 = arith.constant 2 : index
    %c9_130 = arith.constant 9 : index
    %c0_131 = arith.constant 0 : index
    %139 = vector.load %arg9[%c2_129, %c9_130, %c0_131] : memref<18x32x8xf32, #tpu.memory_space<vmem>>, vector<16x16x8xf32>
    %140 = vector.shape_cast %139 : vector<16x16x8xf32> to vector<256x8xf32>
    %141 = arith.truncf %140 : vector<256x8xf32> to vector<256x8xbf16>
    %c8_132 = arith.constant 8 : index
    %c0_133 = arith.constant 0 : index
    %c0_134 = arith.constant 0 : index
    %142 = vector.load %arg3[%c8_132, %c0_133, %c0_134] : memref<9x8x8xbf16, #tpu.memory_space<vmem>>, vector<1x8x8xbf16>
    %143 = vector.shape_cast %142 : vector<1x8x8xbf16> to vector<8x8xbf16>
    %cst_135 = arith.constant dense<0.000000e+00> : vector<256x8xf32>
    %144 = tpu.matmul %141, %143, %cst_135 {dimension_numbers = #tpu.dot_dimension_numbers<[1], [0], [0], [1], [0, 0, 1, 1], [], []>} : vector<256x8xbf16>, vector<8x8xbf16>, vector<256x8xf32> -> vector<256x8xf32>
    %145 = arith.addf %138, %144 : vector<256x8xf32>
    %c0_136 = arith.constant 0 : index
    %c0_137 = arith.constant 0 : index
    %146 = vector.load %arg4[%c0_136, %c0_137] : memref<1x8xf32, #tpu.memory_space<vmem>>, vector<1x8xf32>
    %147 = vector.broadcast %146 : vector<1x8xf32> to vector<256x8xf32>
    %148 = arith.addf %145, %147 : vector<256x8xf32>
    %cst_138 = arith.constant 0.000000e+00 : f32
    %149 = vector.broadcast %cst_138 : f32 to vector<256x8xf32>
    %150 = arith.maximumf %148, %149 : vector<256x8xf32>
    %151 = vector.shape_cast %150 : vector<256x8xf32> to vector<16x16x8xf32>
    %c0_139 = arith.constant 0 : index
    %c0_140 = arith.constant 0 : index
    %c0_141 = arith.constant 0 : index
    %152 = vector.load %arg10[%c0_139, %c0_140, %c0_141] : memref<16x16x8xf32, #tpu.memory_space<vmem>>, vector<16x16x8xf32>
    tpu.vector_store %arg10[%c0_139, %c0_140, %c0_141], %151 {strides = array<i32>} : memref<16x16x8xf32, #tpu.memory_space<vmem>>, vector<16x16x8xf32>,
    %c0_142 = arith.constant 0 : index
    %c0_143 = arith.constant 0 : index
    %c0_144 = arith.constant 0 : index
    %153 = vector.load %arg10[%c0_142, %c0_143, %c0_144] : memref<16x16x8xf32, #tpu.memory_space<vmem>>, vector<16x15x8xf32>
    %c0_145 = arith.constant 0 : index
    %c1_146 = arith.constant 1 : index
    %c0_147 = arith.constant 0 : index
    %154 = vector.load %arg10[%c0_145, %c1_146, %c0_147] : memref<16x16x8xf32, #tpu.memory_space<vmem>>, vector<16x15x8xf32>
    %155 = arith.maximumf %153, %154 : vector<16x15x8xf32>
    %156 = vector.extract_strided_slice %155 {offsets = [0, 0, 0], sizes = [1, 15, 8], strides = [1, 1, 1]} : vector<16x15x8xf32> to vector<1x15x8xf32>
    %157 = vector.shape_cast %156 : vector<1x15x8xf32> to vector<15x8xf32>
    %158 = vector.extract_strided_slice %155 {offsets = [1, 0, 0], sizes = [1, 15, 8], strides = [1, 1, 1]} : vector<16x15x8xf32> to vector<1x15x8xf32>
    %159 = vector.shape_cast %158 : vector<1x15x8xf32> to vector<15x8xf32>
    %160 = arith.maximumf %157, %159 : vector<15x8xf32>
    %c0_148 = arith.constant 0 : index
    %c0_149 = arith.constant 0 : index
    %161 = vector.load %arg7[%c0_148, %c0_149] : memref<16x15xf32, #tpu.memory_space<vmem>>, vector<16x15xf32>
    %cst_150 = arith.constant dense<0.000000e+00> : vector<16x8xf32>
    %162 = tpu.matmul %161, %160, %cst_150 {dimension_numbers = #tpu.dot_dimension_numbers<[1], [0], [0], [1], [0, 0, 1, 1], [], []>} : vector<16x15xf32>, vector<15x8xf32>, vector<16x8xf32> -> vector<16x8xf32>
    %163 = vector.extract_strided_slice %155 {offsets = [2, 0, 0], sizes = [1, 15, 8], strides = [1, 1, 1]} : vector<16x15x8xf32> to vector<1x15x8xf32>
    %164 = vector.shape_cast %163 : vector<1x15x8xf32> to vector<15x8xf32>
    %165 = vector.extract_strided_slice %155 {offsets = [3, 0, 0], sizes = [1, 15, 8], strides = [1, 1, 1]} : vector<16x15x8xf32> to vector<1x15x8xf32>
    %166 = vector.shape_cast %165 : vector<1x15x8xf32> to vector<15x8xf32>
    %167 = arith.maximumf %164, %166 : vector<15x8xf32>
    %c0_151 = arith.constant 0 : index
    %c0_152 = arith.constant 0 : index
    %168 = vector.load %arg7[%c0_151, %c0_152] : memref<16x15xf32, #tpu.memory_space<vmem>>, vector<16x15xf32>
    %cst_153 = arith.constant dense<0.000000e+00> : vector<16x8xf32>
    %169 = tpu.matmul %168, %167, %cst_153 {dimension_numbers = #tpu.dot_dimension_numbers<[1], [0], [0], [1], [0, 0, 1, 1], [], []>} : vector<16x15xf32>, vector<15x8xf32>, vector<16x8xf32> -> vector<16x8xf32>
    %170 = vector.extract_strided_slice %155 {offsets = [4, 0, 0], sizes = [1, 15, 8], strides = [1, 1, 1]} : vector<16x15x8xf32> to vector<1x15x8xf32>
    %171 = vector.shape_cast %170 : vector<1x15x8xf32> to vector<15x8xf32>
    %172 = vector.extract_strided_slice %155 {offsets = [5, 0, 0], sizes = [1, 15, 8], strides = [1, 1, 1]} : vector<16x15x8xf32> to vector<1x15x8xf32>
    %173 = vector.shape_cast %172 : vector<1x15x8xf32> to vector<15x8xf32>
    %174 = arith.maximumf %171, %173 : vector<15x8xf32>
    %c0_154 = arith.constant 0 : index
    %c0_155 = arith.constant 0 : index
    %175 = vector.load %arg7[%c0_154, %c0_155] : memref<16x15xf32, #tpu.memory_space<vmem>>, vector<16x15xf32>
    %cst_156 = arith.constant dense<0.000000e+00> : vector<16x8xf32>
    %176 = tpu.matmul %175, %174, %cst_156 {dimension_numbers = #tpu.dot_dimension_numbers<[1], [0], [0], [1], [0, 0, 1, 1], [], []>} : vector<16x15xf32>, vector<15x8xf32>, vector<16x8xf32> -> vector<16x8xf32>
    %177 = vector.extract_strided_slice %155 {offsets = [6, 0, 0], sizes = [1, 15, 8], strides = [1, 1, 1]} : vector<16x15x8xf32> to vector<1x15x8xf32>
    %178 = vector.shape_cast %177 : vector<1x15x8xf32> to vector<15x8xf32>
    %179 = vector.extract_strided_slice %155 {offsets = [7, 0, 0], sizes = [1, 15, 8], strides = [1, 1, 1]} : vector<16x15x8xf32> to vector<1x15x8xf32>
    %180 = vector.shape_cast %179 : vector<1x15x8xf32> to vector<15x8xf32>
    %181 = arith.maximumf %178, %180 : vector<15x8xf32>
    %c0_157 = arith.constant 0 : index
    %c0_158 = arith.constant 0 : index
    %182 = vector.load %arg7[%c0_157, %c0_158] : memref<16x15xf32, #tpu.memory_space<vmem>>, vector<16x15xf32>
    %cst_159 = arith.constant dense<0.000000e+00> : vector<16x8xf32>
    %183 = tpu.matmul %182, %181, %cst_159 {dimension_numbers = #tpu.dot_dimension_numbers<[1], [0], [0], [1], [0, 0, 1, 1], [], []>} : vector<16x15xf32>, vector<15x8xf32>, vector<16x8xf32> -> vector<16x8xf32>
    %184 = vector.extract_strided_slice %155 {offsets = [8, 0, 0], sizes = [1, 15, 8], strides = [1, 1, 1]} : vector<16x15x8xf32> to vector<1x15x8xf32>
    %185 = vector.shape_cast %184 : vector<1x15x8xf32> to vector<15x8xf32>
    %186 = vector.extract_strided_slice %155 {offsets = [9, 0, 0], sizes = [1, 15, 8], strides = [1, 1, 1]} : vector<16x15x8xf32> to vector<1x15x8xf32>
    %187 = vector.shape_cast %186 : vector<1x15x8xf32> to vector<15x8xf32>
    %188 = arith.maximumf %185, %187 : vector<15x8xf32>
    %c0_160 = arith.constant 0 : index
    %c0_161 = arith.constant 0 : index
    %189 = vector.load %arg7[%c0_160, %c0_161] : memref<16x15xf32, #tpu.memory_space<vmem>>, vector<16x15xf32>
    %cst_162 = arith.constant dense<0.000000e+00> : vector<16x8xf32>
    %190 = tpu.matmul %189, %188, %cst_162 {dimension_numbers = #tpu.dot_dimension_numbers<[1], [0], [0], [1], [0, 0, 1, 1], [], []>} : vector<16x15xf32>, vector<15x8xf32>, vector<16x8xf32> -> vector<16x8xf32>
    %191 = vector.extract_strided_slice %155 {offsets = [10, 0, 0], sizes = [1, 15, 8], strides = [1, 1, 1]} : vector<16x15x8xf32> to vector<1x15x8xf32>
    %192 = vector.shape_cast %191 : vector<1x15x8xf32> to vector<15x8xf32>
    %193 = vector.extract_strided_slice %155 {offsets = [11, 0, 0], sizes = [1, 15, 8], strides = [1, 1, 1]} : vector<16x15x8xf32> to vector<1x15x8xf32>
    %194 = vector.shape_cast %193 : vector<1x15x8xf32> to vector<15x8xf32>
    %195 = arith.maximumf %192, %194 : vector<15x8xf32>
    %c0_163 = arith.constant 0 : index
    %c0_164 = arith.constant 0 : index
    %196 = vector.load %arg7[%c0_163, %c0_164] : memref<16x15xf32, #tpu.memory_space<vmem>>, vector<16x15xf32>
    %cst_165 = arith.constant dense<0.000000e+00> : vector<16x8xf32>
    %197 = tpu.matmul %196, %195, %cst_165 {dimension_numbers = #tpu.dot_dimension_numbers<[1], [0], [0], [1], [0, 0, 1, 1], [], []>} : vector<16x15xf32>, vector<15x8xf32>, vector<16x8xf32> -> vector<16x8xf32>
    %198 = vector.extract_strided_slice %155 {offsets = [12, 0, 0], sizes = [1, 15, 8], strides = [1, 1, 1]} : vector<16x15x8xf32> to vector<1x15x8xf32>
    %199 = vector.shape_cast %198 : vector<1x15x8xf32> to vector<15x8xf32>
    %200 = vector.extract_strided_slice %155 {offsets = [13, 0, 0], sizes = [1, 15, 8], strides = [1, 1, 1]} : vector<16x15x8xf32> to vector<1x15x8xf32>
    %201 = vector.shape_cast %200 : vector<1x15x8xf32> to vector<15x8xf32>
    %202 = arith.maximumf %199, %201 : vector<15x8xf32>
    %c0_166 = arith.constant 0 : index
    %c0_167 = arith.constant 0 : index
    %203 = vector.load %arg7[%c0_166, %c0_167] : memref<16x15xf32, #tpu.memory_space<vmem>>, vector<16x15xf32>
    %cst_168 = arith.constant dense<0.000000e+00> : vector<16x8xf32>
    %204 = tpu.matmul %203, %202, %cst_168 {dimension_numbers = #tpu.dot_dimension_numbers<[1], [0], [0], [1], [0, 0, 1, 1], [], []>} : vector<16x15xf32>, vector<15x8xf32>, vector<16x8xf32> -> vector<16x8xf32>
    %205 = vector.extract_strided_slice %155 {offsets = [14, 0, 0], sizes = [1, 15, 8], strides = [1, 1, 1]} : vector<16x15x8xf32> to vector<1x15x8xf32>
    %206 = vector.shape_cast %205 : vector<1x15x8xf32> to vector<15x8xf32>
    %207 = vector.extract_strided_slice %155 {offsets = [15, 0, 0], sizes = [1, 15, 8], strides = [1, 1, 1]} : vector<16x15x8xf32> to vector<1x15x8xf32>
    %208 = vector.shape_cast %207 : vector<1x15x8xf32> to vector<15x8xf32>
    %209 = arith.maximumf %206, %208 : vector<15x8xf32>
    %c0_169 = arith.constant 0 : index
    %c0_170 = arith.constant 0 : index
    %210 = vector.load %arg7[%c0_169, %c0_170] : memref<16x15xf32, #tpu.memory_space<vmem>>, vector<16x15xf32>
    %cst_171 = arith.constant dense<0.000000e+00> : vector<16x8xf32>
    %211 = tpu.matmul %210, %209, %cst_171 {dimension_numbers = #tpu.dot_dimension_numbers<[1], [0], [0], [1], [0, 0, 1, 1], [], []>} : vector<16x15xf32>, vector<15x8xf32>, vector<16x8xf32> -> vector<16x8xf32>
    %cst_172 = arith.constant 1.000000e+00 : f32
    %212 = vector.broadcast %cst_172 : f32 to vector<16x8xf32>
    %213 = arith.mulf %212, %162 : vector<16x8xf32>
    %cst_173 = arith.constant 0.000000e+00 : f32
    %214 = vector.broadcast %cst_173 : f32 to vector<16x8xf32>
    %215 = arith.mulf %214, %169 : vector<16x8xf32>
    %216 = arith.addf %213, %215 : vector<16x8xf32>
    %217 = vector.extract_strided_slice %77 {offsets = [0, 0], sizes = [16, 8], strides = [1, 1]} : vector<256x8xf32> to vector<16x8xf32>
    %218 = arith.addf %217, %216 : vector<16x8xf32>
    %c0_174 = arith.constant 0 : index
    %c0_175 = arith.constant 0 : index
    %219 = vector.load %arg11[%c0_174, %c0_175] : memref<256x8xf32, #tpu.memory_space<vmem>>, vector<16x8xf32>
    tpu.vector_store %arg11[%c0_174, %c0_175], %218 {strides = array<i32>} : memref<256x8xf32, #tpu.memory_space<vmem>>, vector<16x8xf32>,
    %cst_176 = arith.constant 0.533333361 : f32
    %220 = vector.broadcast %cst_176 : f32 to vector<16x8xf32>
    %221 = arith.mulf %220, %162 : vector<16x8xf32>
    %cst_177 = arith.constant 0.466666669 : f32
    %222 = vector.broadcast %cst_177 : f32 to vector<16x8xf32>
    %223 = arith.mulf %222, %169 : vector<16x8xf32>
    %224 = arith.addf %221, %223 : vector<16x8xf32>
    %225 = vector.extract_strided_slice %77 {offsets = [16, 0], sizes = [16, 8], strides = [1, 1]} : vector<256x8xf32> to vector<16x8xf32>
    %226 = arith.addf %225, %224 : vector<16x8xf32>
    %c16 = arith.constant 16 : index
    %c0_178 = arith.constant 0 : index
    %227 = vector.load %arg11[%c16, %c0_178] : memref<256x8xf32, #tpu.memory_space<vmem>>, vector<16x8xf32>
    tpu.vector_store %arg11[%c16, %c0_178], %226 {strides = array<i32>} : memref<256x8xf32, #tpu.memory_space<vmem>>, vector<16x8xf32>,
    %cst_179 = arith.constant 0.0666666701 : f32
    %228 = vector.broadcast %cst_179 : f32 to vector<16x8xf32>
    %229 = arith.mulf %228, %162 : vector<16x8xf32>
    %cst_180 = arith.constant 0.933333337 : f32
    %230 = vector.broadcast %cst_180 : f32 to vector<16x8xf32>
    %231 = arith.mulf %230, %169 : vector<16x8xf32>
    %232 = arith.addf %229, %231 : vector<16x8xf32>
    %233 = vector.extract_strided_slice %77 {offsets = [32, 0], sizes = [16, 8], strides = [1, 1]} : vector<256x8xf32> to vector<16x8xf32>
    %234 = arith.addf %233, %232 : vector<16x8xf32>
    %c32 = arith.constant 32 : index
    %c0_181 = arith.constant 0 : index
    %235 = vector.load %arg11[%c32, %c0_181] : memref<256x8xf32, #tpu.memory_space<vmem>>, vector<16x8xf32>
    tpu.vector_store %arg11[%c32, %c0_181], %234 {strides = array<i32>} : memref<256x8xf32, #tpu.memory_space<vmem>>, vector<16x8xf32>,
    %cst_182 = arith.constant 6.000000e-01 : f32
    %236 = vector.broadcast %cst_182 : f32 to vector<16x8xf32>
    %237 = arith.mulf %236, %169 : vector<16x8xf32>
    %cst_183 = arith.constant 4.000000e-01 : f32
    %238 = vector.broadcast %cst_183 : f32 to vector<16x8xf32>
    %239 = arith.mulf %238, %176 : vector<16x8xf32>
    %240 = arith.addf %237, %239 : vector<16x8xf32>
    %241 = vector.extract_strided_slice %77 {offsets = [48, 0], sizes = [16, 8], strides = [1, 1]} : vector<256x8xf32> to vector<16x8xf32>
    %242 = arith.addf %241, %240 : vector<16x8xf32>
    %c48 = arith.constant 48 : index
    %c0_184 = arith.constant 0 : index
    %243 = vector.load %arg11[%c48, %c0_184] : memref<256x8xf32, #tpu.memory_space<vmem>>, vector<16x8xf32>
    tpu.vector_store %arg11[%c48, %c0_184], %242 {strides = array<i32>} : memref<256x8xf32, #tpu.memory_space<vmem>>, vector<16x8xf32>,
    %cst_185 = arith.constant 0.13333334 : f32
    %244 = vector.broadcast %cst_185 : f32 to vector<16x8xf32>
    %245 = arith.mulf %244, %169 : vector<16x8xf32>
    %cst_186 = arith.constant 0.866666674 : f32
    %246 = vector.broadcast %cst_186 : f32 to vector<16x8xf32>
    %247 = arith.mulf %246, %176 : vector<16x8xf32>
    %248 = arith.addf %245, %247 : vector<16x8xf32>
    %249 = vector.extract_strided_slice %77 {offsets = [64, 0], sizes = [16, 8], strides = [1, 1]} : vector<256x8xf32> to vector<16x8xf32>
    %250 = arith.addf %249, %248 : vector<16x8xf32>
    %c64 = arith.constant 64 : index
    %c0_187 = arith.constant 0 : index
    %251 = vector.load %arg11[%c64, %c0_187] : memref<256x8xf32, #tpu.memory_space<vmem>>, vector<16x8xf32>
    tpu.vector_store %arg11[%c64, %c0_187], %250 {strides = array<i32>} : memref<256x8xf32, #tpu.memory_space<vmem>>, vector<16x8xf32>,
    %cst_188 = arith.constant 0.666666686 : f32
    %252 = vector.broadcast %cst_188 : f32 to vector<16x8xf32>
    %253 = arith.mulf %252, %176 : vector<16x8xf32>
    %cst_189 = arith.constant 0.333333343 : f32
    %254 = vector.broadcast %cst_189 : f32 to vector<16x8xf32>
    %255 = arith.mulf %254, %183 : vector<16x8xf32>
    %256 = arith.addf %253, %255 : vector<16x8xf32>
    %257 = vector.extract_strided_slice %77 {offsets = [80, 0], sizes = [16, 8], strides = [1, 1]} : vector<256x8xf32> to vector<16x8xf32>
    %258 = arith.addf %257, %256 : vector<16x8xf32>
    %c80 = arith.constant 80 : index
    %c0_190 = arith.constant 0 : index
    %259 = vector.load %arg11[%c80, %c0_190] : memref<256x8xf32, #tpu.memory_space<vmem>>, vector<16x8xf32>
    tpu.vector_store %arg11[%c80, %c0_190], %258 {strides = array<i32>} : memref<256x8xf32, #tpu.memory_space<vmem>>, vector<16x8xf32>,
    %cst_191 = arith.constant 2.000000e-01 : f32
    %260 = vector.broadcast %cst_191 : f32 to vector<16x8xf32>
    %261 = arith.mulf %260, %176 : vector<16x8xf32>
    %cst_192 = arith.constant 8.000000e-01 : f32
    %262 = vector.broadcast %cst_192 : f32 to vector<16x8xf32>
    %263 = arith.mulf %262, %183 : vector<16x8xf32>
    %264 = arith.addf %261, %263 : vector<16x8xf32>
    %265 = vector.extract_strided_slice %77 {offsets = [96, 0], sizes = [16, 8], strides = [1, 1]} : vector<256x8xf32> to vector<16x8xf32>
    %266 = arith.addf %265, %264 : vector<16x8xf32>
    %c96 = arith.constant 96 : index
    %c0_193 = arith.constant 0 : index
    %267 = vector.load %arg11[%c96, %c0_193] : memref<256x8xf32, #tpu.memory_space<vmem>>, vector<16x8xf32>
    tpu.vector_store %arg11[%c96, %c0_193], %266 {strides = array<i32>} : memref<256x8xf32, #tpu.memory_space<vmem>>, vector<16x8xf32>,
    %cst_194 = arith.constant 0.733333349 : f32
    %268 = vector.broadcast %cst_194 : f32 to vector<16x8xf32>
    %269 = arith.mulf %268, %183 : vector<16x8xf32>
    %cst_195 = arith.constant 0.266666681 : f32
    %270 = vector.broadcast %cst_195 : f32 to vector<16x8xf32>
    %271 = arith.mulf %270, %190 : vector<16x8xf32>
    %272 = arith.addf %269, %271 : vector<16x8xf32>
    %273 = vector.extract_strided_slice %77 {offsets = [112, 0], sizes = [16, 8], strides = [1, 1]} : vector<256x8xf32> to vector<16x8xf32>
    %274 = arith.addf %273, %272 : vector<16x8xf32>
    %c112 = arith.constant 112 : index
    %c0_196 = arith.constant 0 : index
    %275 = vector.load %arg11[%c112, %c0_196] : memref<256x8xf32, #tpu.memory_space<vmem>>, vector<16x8xf32>
    tpu.vector_store %arg11[%c112, %c0_196], %274 {strides = array<i32>} : memref<256x8xf32, #tpu.memory_space<vmem>>, vector<16x8xf32>,
    %cst_197 = arith.constant 0.266666681 : f32
    %276 = vector.broadcast %cst_197 : f32 to vector<16x8xf32>
    %277 = arith.mulf %276, %183 : vector<16x8xf32>
    %cst_198 = arith.constant 0.733333349 : f32
    %278 = vector.broadcast %cst_198 : f32 to vector<16x8xf32>
    %279 = arith.mulf %278, %190 : vector<16x8xf32>
    %280 = arith.addf %277, %279 : vector<16x8xf32>
    %281 = vector.extract_strided_slice %77 {offsets = [128, 0], sizes = [16, 8], strides = [1, 1]} : vector<256x8xf32> to vector<16x8xf32>
    %282 = arith.addf %281, %280 : vector<16x8xf32>
    %c128 = arith.constant 128 : index
    %c0_199 = arith.constant 0 : index
    %283 = vector.load %arg11[%c128, %c0_199] : memref<256x8xf32, #tpu.memory_space<vmem>>, vector<16x8xf32>
    tpu.vector_store %arg11[%c128, %c0_199], %282 {strides = array<i32>} : memref<256x8xf32, #tpu.memory_space<vmem>>, vector<16x8xf32>,
    %cst_200 = arith.constant 8.000000e-01 : f32
    %284 = vector.broadcast %cst_200 : f32 to vector<16x8xf32>
    %285 = arith.mulf %284, %190 : vector<16x8xf32>
    %cst_201 = arith.constant 2.000000e-01 : f32
    %286 = vector.broadcast %cst_201 : f32 to vector<16x8xf32>
    %287 = arith.mulf %286, %197 : vector<16x8xf32>
    %288 = arith.addf %285, %287 : vector<16x8xf32>
    %289 = vector.extract_strided_slice %77 {offsets = [144, 0], sizes = [16, 8], strides = [1, 1]} : vector<256x8xf32> to vector<16x8xf32>
    %290 = arith.addf %289, %288 : vector<16x8xf32>
    %c144 = arith.constant 144 : index
    %c0_202 = arith.constant 0 : index
    %291 = vector.load %arg11[%c144, %c0_202] : memref<256x8xf32, #tpu.memory_space<vmem>>, vector<16x8xf32>
    tpu.vector_store %arg11[%c144, %c0_202], %290 {strides = array<i32>} : memref<256x8xf32, #tpu.memory_space<vmem>>, vector<16x8xf32>,
    %cst_203 = arith.constant 0.333333343 : f32
    %292 = vector.broadcast %cst_203 : f32 to vector<16x8xf32>
    %293 = arith.mulf %292, %190 : vector<16x8xf32>
    %cst_204 = arith.constant 0.666666686 : f32
    %294 = vector.broadcast %cst_204 : f32 to vector<16x8xf32>
    %295 = arith.mulf %294, %197 : vector<16x8xf32>
    %296 = arith.addf %293, %295 : vector<16x8xf32>
    %297 = vector.extract_strided_slice %77 {offsets = [160, 0], sizes = [16, 8], strides = [1, 1]} : vector<256x8xf32> to vector<16x8xf32>
    %298 = arith.addf %297, %296 : vector<16x8xf32>
    %c160 = arith.constant 160 : index
    %c0_205 = arith.constant 0 : index
    %299 = vector.load %arg11[%c160, %c0_205] : memref<256x8xf32, #tpu.memory_space<vmem>>, vector<16x8xf32>
    tpu.vector_store %arg11[%c160, %c0_205], %298 {strides = array<i32>} : memref<256x8xf32, #tpu.memory_space<vmem>>, vector<16x8xf32>,
    %cst_206 = arith.constant 0.866666674 : f32
    %300 = vector.broadcast %cst_206 : f32 to vector<16x8xf32>
    %301 = arith.mulf %300, %197 : vector<16x8xf32>
    %cst_207 = arith.constant 0.13333334 : f32
    %302 = vector.broadcast %cst_207 : f32 to vector<16x8xf32>
    %303 = arith.mulf %302, %204 : vector<16x8xf32>
    %304 = arith.addf %301, %303 : vector<16x8xf32>
    %305 = vector.extract_strided_slice %77 {offsets = [176, 0], sizes = [16, 8], strides = [1, 1]} : vector<256x8xf32> to vector<16x8xf32>
    %306 = arith.addf %305, %304 : vector<16x8xf32>
    %c176 = arith.constant 176 : index
    %c0_208 = arith.constant 0 : index
    %307 = vector.load %arg11[%c176, %c0_208] : memref<256x8xf32, #tpu.memory_space<vmem>>, vector<16x8xf32>
    tpu.vector_store %arg11[%c176, %c0_208], %306 {strides = array<i32>} : memref<256x8xf32, #tpu.memory_space<vmem>>, vector<16x8xf32>,
    %cst_209 = arith.constant 4.000000e-01 : f32
    %308 = vector.broadcast %cst_209 : f32 to vector<16x8xf32>
    %309 = arith.mulf %308, %197 : vector<16x8xf32>
    %cst_210 = arith.constant 6.000000e-01 : f32
    %310 = vector.broadcast %cst_210 : f32 to vector<16x8xf32>
    %311 = arith.mulf %310, %204 : vector<16x8xf32>
    %312 = arith.addf %309, %311 : vector<16x8xf32>
    %313 = vector.extract_strided_slice %77 {offsets = [192, 0], sizes = [16, 8], strides = [1, 1]} : vector<256x8xf32> to vector<16x8xf32>
    %314 = arith.addf %313, %312 : vector<16x8xf32>
    %c192 = arith.constant 192 : index
    %c0_211 = arith.constant 0 : index
    %315 = vector.load %arg11[%c192, %c0_211] : memref<256x8xf32, #tpu.memory_space<vmem>>, vector<16x8xf32>
    tpu.vector_store %arg11[%c192, %c0_211], %314 {strides = array<i32>} : memref<256x8xf32, #tpu.memory_space<vmem>>, vector<16x8xf32>,
    %cst_212 = arith.constant 0.933333337 : f32
    %316 = vector.broadcast %cst_212 : f32 to vector<16x8xf32>
    %317 = arith.mulf %316, %204 : vector<16x8xf32>
    %cst_213 = arith.constant 0.0666666701 : f32
    %318 = vector.broadcast %cst_213 : f32 to vector<16x8xf32>
    %319 = arith.mulf %318, %211 : vector<16x8xf32>
    %320 = arith.addf %317, %319 : vector<16x8xf32>
    %321 = vector.extract_strided_slice %77 {offsets = [208, 0], sizes = [16, 8], strides = [1, 1]} : vector<256x8xf32> to vector<16x8xf32>
    %322 = arith.addf %321, %320 : vector<16x8xf32>
    %c208 = arith.constant 208 : index
    %c0_214 = arith.constant 0 : index
    %323 = vector.load %arg11[%c208, %c0_214] : memref<256x8xf32, #tpu.memory_space<vmem>>, vector<16x8xf32>
    tpu.vector_store %arg11[%c208, %c0_214], %322 {strides = array<i32>} : memref<256x8xf32, #tpu.memory_space<vmem>>, vector<16x8xf32>,
    %cst_215 = arith.constant 0.466666669 : f32
    %324 = vector.broadcast %cst_215 : f32 to vector<16x8xf32>
    %325 = arith.mulf %324, %204 : vector<16x8xf32>
    %cst_216 = arith.constant 0.533333361 : f32
    %326 = vector.broadcast %cst_216 : f32 to vector<16x8xf32>
    %327 = arith.mulf %326, %211 : vector<16x8xf32>
    %328 = arith.addf %325, %327 : vector<16x8xf32>
    %329 = vector.extract_strided_slice %77 {offsets = [224, 0], sizes = [16, 8], strides = [1, 1]} : vector<256x8xf32> to vector<16x8xf32>
    %330 = arith.addf %329, %328 : vector<16x8xf32>
    %c224 = arith.constant 224 : index
    %c0_217 = arith.constant 0 : index
    %331 = vector.load %arg11[%c224, %c0_217] : memref<256x8xf32, #tpu.memory_space<vmem>>, vector<16x8xf32>
    tpu.vector_store %arg11[%c224, %c0_217], %330 {strides = array<i32>} : memref<256x8xf32, #tpu.memory_space<vmem>>, vector<16x8xf32>,
    %cst_218 = arith.constant 1.000000e+00 : f32
    %332 = vector.broadcast %cst_218 : f32 to vector<16x8xf32>
    %333 = arith.mulf %332, %211 : vector<16x8xf32>
    %cst_219 = arith.constant 0.000000e+00 : f32
    %334 = vector.broadcast %cst_219 : f32 to vector<16x8xf32>
    %335 = arith.mulf %334, %211 : vector<16x8xf32>
    %336 = arith.addf %333, %335 : vector<16x8xf32>
    %337 = vector.extract_strided_slice %77 {offsets = [240, 0], sizes = [16, 8], strides = [1, 1]} : vector<256x8xf32> to vector<16x8xf32>
    %338 = arith.addf %337, %336 : vector<16x8xf32>
    %c240 = arith.constant 240 : index
    %c0_220 = arith.constant 0 : index
    %339 = vector.load %arg11[%c240, %c0_220] : memref<256x8xf32, #tpu.memory_space<vmem>>, vector<16x8xf32>
    tpu.vector_store %arg11[%c240, %c0_220], %338 {strides = array<i32>} : memref<256x8xf32, #tpu.memory_space<vmem>>, vector<16x8xf32>,
    %c0_221 = arith.constant 0 : index
    %c0_222 = arith.constant 0 : index
    %340 = vector.load %arg5[%c0_221, %c0_222] : memref<10x8xbf16, #tpu.memory_space<vmem>>, vector<10x8xbf16>
    %c0_223 = arith.constant 0 : index
    %c0_224 = arith.constant 0 : index
    %341 = vector.load %arg11[%c0_223, %c0_224] : memref<256x8xf32, #tpu.memory_space<vmem>>, vector<256x8xf32>
    %342 = arith.truncf %341 : vector<256x8xf32> to vector<256x8xbf16>
    %cst_225 = arith.constant dense<0.000000e+00> : vector<10x256xf32>
    %343 = tpu.matmul %340, %342, %cst_225 {dimension_numbers = #tpu.dot_dimension_numbers<[1], [1], [0], [0], [0, 0, 1, 0], [], []>} : vector<10x8xbf16>, vector<256x8xbf16>, vector<10x256xf32> -> vector<10x256xf32>
    %c0_226 = arith.constant 0 : index
    %c0_227 = arith.constant 0 : index
    %344 = vector.load %arg6[%c0_226, %c0_227] : memref<10x1xf32, #tpu.memory_space<vmem>>, vector<10x1xf32>
    %345 = vector.broadcast %344 : vector<10x1xf32> to vector<10x256xf32>
    %346 = arith.addf %343, %345 : vector<10x256xf32>
    %cst_228 = arith.constant 6.000000e-01 : f32
    %347 = vector.broadcast %cst_228 : f32 to vector<10x256xf32>
    %348 = arith.cmpf ogt, %346, %347 : vector<10x256xf32>
    %cst_229 = arith.constant 0.000000e+00 : f32
    %349 = vector.broadcast %cst_229 : f32 to vector<10x256xf32>
    %350 = arith.select %348, %346, %349 : vector<10x256xi1>, vector<10x256xf32>
    %cst_230 = arith.constant dense<0xFF800000> : vector<10xf32>
    %351 = vector.multi_reduction <maximumf>, %350, %cst_230 [1] : vector<10x256xf32> to vector<10xf32>
    %352 = vector.shape_cast %351 : vector<10xf32> to vector<10x1xf32>
    %cst_231 = arith.constant 0.000000e+00 : f32
    %353 = vector.broadcast %cst_231 : f32 to vector<256x8xf32>
    %c1_232 = arith.constant 1 : index
    %c0_233 = arith.constant 0 : index
    %c0_234 = arith.constant 0 : index
    %c0_235 = arith.constant 0 : index
    %354 = vector.load %arg0[%c1_232, %c0_233, %c0_234, %c0_235] : memref<2x18x18x4xf32, #tpu.memory_space<vmem>>, vector<1x16x16x4xf32>
    %355 = vector.shape_cast %354 : vector<1x16x16x4xf32> to vector<16x16x4xf32>
    %356 = vector.shape_cast %355 : vector<16x16x4xf32> to vector<256x4xf32>
    %357 = arith.truncf %356 : vector<256x4xf32> to vector<256x4xbf16>
    %c0_236 = arith.constant 0 : index
    %c0_237 = arith.constant 0 : index
    %c0_238 = arith.constant 0 : index
    %358 = vector.load %arg1[%c0_236, %c0_237, %c0_238] : memref<9x4x8xbf16, #tpu.memory_space<vmem>>, vector<1x4x8xbf16>
    %359 = vector.shape_cast %358 : vector<1x4x8xbf16> to vector<4x8xbf16>
    %cst_239 = arith.constant dense<0.000000e+00> : vector<256x8xf32>
    %360 = tpu.matmul %357, %359, %cst_239 {dimension_numbers = #tpu.dot_dimension_numbers<[1], [0], [0], [1], [0, 0, 1, 1], [], []>} : vector<256x4xbf16>, vector<4x8xbf16>, vector<256x8xf32> -> vector<256x8xf32>
    %361 = arith.addf %353, %360 : vector<256x8xf32>
    %c1_240 = arith.constant 1 : index
    %c0_241 = arith.constant 0 : index
    %c1_242 = arith.constant 1 : index
    %c0_243 = arith.constant 0 : index
    %362 = vector.load %arg0[%c1_240, %c0_241, %c1_242, %c0_243] : memref<2x18x18x4xf32, #tpu.memory_space<vmem>>, vector<1x16x16x4xf32>
    %363 = vector.shape_cast %362 : vector<1x16x16x4xf32> to vector<16x16x4xf32>
    %364 = vector.shape_cast %363 : vector<16x16x4xf32> to vector<256x4xf32>
    %365 = arith.truncf %364 : vector<256x4xf32> to vector<256x4xbf16>
    %c1_244 = arith.constant 1 : index
    %c0_245 = arith.constant 0 : index
    %c0_246 = arith.constant 0 : index
    %366 = vector.load %arg1[%c1_244, %c0_245, %c0_246] : memref<9x4x8xbf16, #tpu.memory_space<vmem>>, vector<1x4x8xbf16>
    %367 = vector.shape_cast %366 : vector<1x4x8xbf16> to vector<4x8xbf16>
    %cst_247 = arith.constant dense<0.000000e+00> : vector<256x8xf32>
    %368 = tpu.matmul %365, %367, %cst_247 {dimension_numbers = #tpu.dot_dimension_numbers<[1], [0], [0], [1], [0, 0, 1, 1], [], []>} : vector<256x4xbf16>, vector<4x8xbf16>, vector<256x8xf32> -> vector<256x8xf32>
    %369 = arith.addf %361, %368 : vector<256x8xf32>
    %c1_248 = arith.constant 1 : index
    %c0_249 = arith.constant 0 : index
    %c2_250 = arith.constant 2 : index
    %c0_251 = arith.constant 0 : index
    %370 = vector.load %arg0[%c1_248, %c0_249, %c2_250, %c0_251] : memref<2x18x18x4xf32, #tpu.memory_space<vmem>>, vector<1x16x16x4xf32>
    %371 = vector.shape_cast %370 : vector<1x16x16x4xf32> to vector<16x16x4xf32>
    %372 = vector.shape_cast %371 : vector<16x16x4xf32> to vector<256x4xf32>
    %373 = arith.truncf %372 : vector<256x4xf32> to vector<256x4xbf16>
    %c2_252 = arith.constant 2 : index
    %c0_253 = arith.constant 0 : index
    %c0_254 = arith.constant 0 : index
    %374 = vector.load %arg1[%c2_252, %c0_253, %c0_254] : memref<9x4x8xbf16, #tpu.memory_space<vmem>>, vector<1x4x8xbf16>
    %375 = vector.shape_cast %374 : vector<1x4x8xbf16> to vector<4x8xbf16>
    %cst_255 = arith.constant dense<0.000000e+00> : vector<256x8xf32>
    %376 = tpu.matmul %373, %375, %cst_255 {dimension_numbers = #tpu.dot_dimension_numbers<[1], [0], [0], [1], [0, 0, 1, 1], [], []>} : vector<256x4xbf16>, vector<4x8xbf16>, vector<256x8xf32> -> vector<256x8xf32>
    %377 = arith.addf %369, %376 : vector<256x8xf32>
    %c1_256 = arith.constant 1 : index
    %c1_257 = arith.constant 1 : index
    %c0_258 = arith.constant 0 : index
    %c0_259 = arith.constant 0 : index
    %378 = vector.load %arg0[%c1_256, %c1_257, %c0_258, %c0_259] : memref<2x18x18x4xf32, #tpu.memory_space<vmem>>, vector<1x16x16x4xf32>
    %379 = vector.shape_cast %378 : vector<1x16x16x4xf32> to vector<16x16x4xf32>
    %380 = vector.shape_cast %379 : vector<16x16x4xf32> to vector<256x4xf32>
    %381 = arith.truncf %380 : vector<256x4xf32> to vector<256x4xbf16>
    %c3_260 = arith.constant 3 : index
    %c0_261 = arith.constant 0 : index
    %c0_262 = arith.constant 0 : index
    %382 = vector.load %arg1[%c3_260, %c0_261, %c0_262] : memref<9x4x8xbf16, #tpu.memory_space<vmem>>, vector<1x4x8xbf16>
    %383 = vector.shape_cast %382 : vector<1x4x8xbf16> to vector<4x8xbf16>
    %cst_263 = arith.constant dense<0.000000e+00> : vector<256x8xf32>
    %384 = tpu.matmul %381, %383, %cst_263 {dimension_numbers = #tpu.dot_dimension_numbers<[1], [0], [0], [1], [0, 0, 1, 1], [], []>} : vector<256x4xbf16>, vector<4x8xbf16>, vector<256x8xf32> -> vector<256x8xf32>
    %385 = arith.addf %377, %384 : vector<256x8xf32>
    %c1_264 = arith.constant 1 : index
    %c1_265 = arith.constant 1 : index
    %c1_266 = arith.constant 1 : index
    %c0_267 = arith.constant 0 : index
    %386 = vector.load %arg0[%c1_264, %c1_265, %c1_266, %c0_267] : memref<2x18x18x4xf32, #tpu.memory_space<vmem>>, vector<1x16x16x4xf32>
    %387 = vector.shape_cast %386 : vector<1x16x16x4xf32> to vector<16x16x4xf32>
    %388 = vector.shape_cast %387 : vector<16x16x4xf32> to vector<256x4xf32>
    %389 = arith.truncf %388 : vector<256x4xf32> to vector<256x4xbf16>
    %c4_268 = arith.constant 4 : index
    %c0_269 = arith.constant 0 : index
    %c0_270 = arith.constant 0 : index
    %390 = vector.load %arg1[%c4_268, %c0_269, %c0_270] : memref<9x4x8xbf16, #tpu.memory_space<vmem>>, vector<1x4x8xbf16>
    %391 = vector.shape_cast %390 : vector<1x4x8xbf16> to vector<4x8xbf16>
    %cst_271 = arith.constant dense<0.000000e+00> : vector<256x8xf32>
    %392 = tpu.matmul %389, %391, %cst_271 {dimension_numbers = #tpu.dot_dimension_numbers<[1], [0], [0], [1], [0, 0, 1, 1], [], []>} : vector<256x4xbf16>, vector<4x8xbf16>, vector<256x8xf32> -> vector<256x8xf32>
    %393 = arith.addf %385, %392 : vector<256x8xf32>
    %c1_272 = arith.constant 1 : index
    %c1_273 = arith.constant 1 : index
    %c2_274 = arith.constant 2 : index
    %c0_275 = arith.constant 0 : index
    %394 = vector.load %arg0[%c1_272, %c1_273, %c2_274, %c0_275] : memref<2x18x18x4xf32, #tpu.memory_space<vmem>>, vector<1x16x16x4xf32>
    %395 = vector.shape_cast %394 : vector<1x16x16x4xf32> to vector<16x16x4xf32>
    %396 = vector.shape_cast %395 : vector<16x16x4xf32> to vector<256x4xf32>
    %397 = arith.truncf %396 : vector<256x4xf32> to vector<256x4xbf16>
    %c5_276 = arith.constant 5 : index
    %c0_277 = arith.constant 0 : index
    %c0_278 = arith.constant 0 : index
    %398 = vector.load %arg1[%c5_276, %c0_277, %c0_278] : memref<9x4x8xbf16, #tpu.memory_space<vmem>>, vector<1x4x8xbf16>
    %399 = vector.shape_cast %398 : vector<1x4x8xbf16> to vector<4x8xbf16>
    %cst_279 = arith.constant dense<0.000000e+00> : vector<256x8xf32>
    %400 = tpu.matmul %397, %399, %cst_279 {dimension_numbers = #tpu.dot_dimension_numbers<[1], [0], [0], [1], [0, 0, 1, 1], [], []>} : vector<256x4xbf16>, vector<4x8xbf16>, vector<256x8xf32> -> vector<256x8xf32>
    %401 = arith.addf %393, %400 : vector<256x8xf32>
    %c1_280 = arith.constant 1 : index
    %c2_281 = arith.constant 2 : index
    %c0_282 = arith.constant 0 : index
    %c0_283 = arith.constant 0 : index
    %402 = vector.load %arg0[%c1_280, %c2_281, %c0_282, %c0_283] : memref<2x18x18x4xf32, #tpu.memory_space<vmem>>, vector<1x16x16x4xf32>
    %403 = vector.shape_cast %402 : vector<1x16x16x4xf32> to vector<16x16x4xf32>
    %404 = vector.shape_cast %403 : vector<16x16x4xf32> to vector<256x4xf32>
    %405 = arith.truncf %404 : vector<256x4xf32> to vector<256x4xbf16>
    %c6_284 = arith.constant 6 : index
    %c0_285 = arith.constant 0 : index
    %c0_286 = arith.constant 0 : index
    %406 = vector.load %arg1[%c6_284, %c0_285, %c0_286] : memref<9x4x8xbf16, #tpu.memory_space<vmem>>, vector<1x4x8xbf16>
    %407 = vector.shape_cast %406 : vector<1x4x8xbf16> to vector<4x8xbf16>
    %cst_287 = arith.constant dense<0.000000e+00> : vector<256x8xf32>
    %408 = tpu.matmul %405, %407, %cst_287 {dimension_numbers = #tpu.dot_dimension_numbers<[1], [0], [0], [1], [0, 0, 1, 1], [], []>} : vector<256x4xbf16>, vector<4x8xbf16>, vector<256x8xf32> -> vector<256x8xf32>
    %409 = arith.addf %401, %408 : vector<256x8xf32>
    %c1_288 = arith.constant 1 : index
    %c2_289 = arith.constant 2 : index
    %c1_290 = arith.constant 1 : index
    %c0_291 = arith.constant 0 : index
    %410 = vector.load %arg0[%c1_288, %c2_289, %c1_290, %c0_291] : memref<2x18x18x4xf32, #tpu.memory_space<vmem>>, vector<1x16x16x4xf32>
    %411 = vector.shape_cast %410 : vector<1x16x16x4xf32> to vector<16x16x4xf32>
    %412 = vector.shape_cast %411 : vector<16x16x4xf32> to vector<256x4xf32>
    %413 = arith.truncf %412 : vector<256x4xf32> to vector<256x4xbf16>
    %c7_292 = arith.constant 7 : index
    %c0_293 = arith.constant 0 : index
    %c0_294 = arith.constant 0 : index
    %414 = vector.load %arg1[%c7_292, %c0_293, %c0_294] : memref<9x4x8xbf16, #tpu.memory_space<vmem>>, vector<1x4x8xbf16>
    %415 = vector.shape_cast %414 : vector<1x4x8xbf16> to vector<4x8xbf16>
    %cst_295 = arith.constant dense<0.000000e+00> : vector<256x8xf32>
    %416 = tpu.matmul %413, %415, %cst_295 {dimension_numbers = #tpu.dot_dimension_numbers<[1], [0], [0], [1], [0, 0, 1, 1], [], []>} : vector<256x4xbf16>, vector<4x8xbf16>, vector<256x8xf32> -> vector<256x8xf32>
    %417 = arith.addf %409, %416 : vector<256x8xf32>
    %c1_296 = arith.constant 1 : index
    %c2_297 = arith.constant 2 : index
    %c2_298 = arith.constant 2 : index
    %c0_299 = arith.constant 0 : index
    %418 = vector.load %arg0[%c1_296, %c2_297, %c2_298, %c0_299] : memref<2x18x18x4xf32, #tpu.memory_space<vmem>>, vector<1x16x16x4xf32>
    %419 = vector.shape_cast %418 : vector<1x16x16x4xf32> to vector<16x16x4xf32>
    %420 = vector.shape_cast %419 : vector<16x16x4xf32> to vector<256x4xf32>
    %421 = arith.truncf %420 : vector<256x4xf32> to vector<256x4xbf16>
    %c8_300 = arith.constant 8 : index
    %c0_301 = arith.constant 0 : index
    %c0_302 = arith.constant 0 : index
    %422 = vector.load %arg1[%c8_300, %c0_301, %c0_302] : memref<9x4x8xbf16, #tpu.memory_space<vmem>>, vector<1x4x8xbf16>
    %423 = vector.shape_cast %422 : vector<1x4x8xbf16> to vector<4x8xbf16>
    %cst_303 = arith.constant dense<0.000000e+00> : vector<256x8xf32>
    %424 = tpu.matmul %421, %423, %cst_303 {dimension_numbers = #tpu.dot_dimension_numbers<[1], [0], [0], [1], [0, 0, 1, 1], [], []>} : vector<256x4xbf16>, vector<4x8xbf16>, vector<256x8xf32> -> vector<256x8xf32>
    %425 = arith.addf %417, %424 : vector<256x8xf32>
    %c0_304 = arith.constant 0 : index
    %c0_305 = arith.constant 0 : index
    %426 = vector.load %arg2[%c0_304, %c0_305] : memref<1x8xf32, #tpu.memory_space<vmem>>, vector<1x8xf32>
    %427 = vector.broadcast %426 : vector<1x8xf32> to vector<256x8xf32>
    %428 = arith.addf %425, %427 : vector<256x8xf32>
    %cst_306 = arith.constant 0.000000e+00 : f32
    %429 = vector.broadcast %cst_306 : f32 to vector<256x8xf32>
    %430 = arith.maximumf %428, %429 : vector<256x8xf32>
    %431 = vector.shape_cast %430 : vector<256x8xf32> to vector<16x16x8xf32>
    %c1_307 = arith.constant 1 : index
    %c8_308 = arith.constant 8 : index
    %c0_309 = arith.constant 0 : index
    %432 = vector.load %arg9[%c1_307, %c8_308, %c0_309] : memref<18x32x8xf32, #tpu.memory_space<vmem>>, vector<16x16x8xf32>
    tpu.vector_store %arg9[%c1_307, %c8_308, %c0_309], %431 {strides = array<i32>} : memref<18x32x8xf32, #tpu.memory_space<vmem>>, vector<16x16x8xf32>,
    %cst_310 = arith.constant 0.000000e+00 : f32
    %433 = vector.broadcast %cst_310 : f32 to vector<256x8xf32>
    %c0_311 = arith.constant 0 : index
    %c7_312 = arith.constant 7 : index
    %c0_313 = arith.constant 0 : index
    %434 = vector.load %arg9[%c0_311, %c7_312, %c0_313] : memref<18x32x8xf32, #tpu.memory_space<vmem>>, vector<16x16x8xf32>
    %435 = vector.shape_cast %434 : vector<16x16x8xf32> to vector<256x8xf32>
    %436 = arith.truncf %435 : vector<256x8xf32> to vector<256x8xbf16>
    %c0_314 = arith.constant 0 : index
    %c0_315 = arith.constant 0 : index
    %c0_316 = arith.constant 0 : index
    %437 = vector.load %arg3[%c0_314, %c0_315, %c0_316] : memref<9x8x8xbf16, #tpu.memory_space<vmem>>, vector<1x8x8xbf16>
    %438 = vector.shape_cast %437 : vector<1x8x8xbf16> to vector<8x8xbf16>
    %cst_317 = arith.constant dense<0.000000e+00> : vector<256x8xf32>
    %439 = tpu.matmul %436, %438, %cst_317 {dimension_numbers = #tpu.dot_dimension_numbers<[1], [0], [0], [1], [0, 0, 1, 1], [], []>} : vector<256x8xbf16>, vector<8x8xbf16>, vector<256x8xf32> -> vector<256x8xf32>
    %440 = arith.addf %433, %439 : vector<256x8xf32>
    %c0_318 = arith.constant 0 : index
    %c8_319 = arith.constant 8 : index
    %c0_320 = arith.constant 0 : index
    %441 = vector.load %arg9[%c0_318, %c8_319, %c0_320] : memref<18x32x8xf32, #tpu.memory_space<vmem>>, vector<16x16x8xf32>
    %442 = vector.shape_cast %441 : vector<16x16x8xf32> to vector<256x8xf32>
    %443 = arith.truncf %442 : vector<256x8xf32> to vector<256x8xbf16>
    %c1_321 = arith.constant 1 : index
    %c0_322 = arith.constant 0 : index
    %c0_323 = arith.constant 0 : index
    %444 = vector.load %arg3[%c1_321, %c0_322, %c0_323] : memref<9x8x8xbf16, #tpu.memory_space<vmem>>, vector<1x8x8xbf16>
    %445 = vector.shape_cast %444 : vector<1x8x8xbf16> to vector<8x8xbf16>
    %cst_324 = arith.constant dense<0.000000e+00> : vector<256x8xf32>
    %446 = tpu.matmul %443, %445, %cst_324 {dimension_numbers = #tpu.dot_dimension_numbers<[1], [0], [0], [1], [0, 0, 1, 1], [], []>} : vector<256x8xbf16>, vector<8x8xbf16>, vector<256x8xf32> -> vector<256x8xf32>
    %447 = arith.addf %440, %446 : vector<256x8xf32>
    %c0_325 = arith.constant 0 : index
    %c9_326 = arith.constant 9 : index
    %c0_327 = arith.constant 0 : index
    %448 = vector.load %arg9[%c0_325, %c9_326, %c0_327] : memref<18x32x8xf32, #tpu.memory_space<vmem>>, vector<16x16x8xf32>
    %449 = vector.shape_cast %448 : vector<16x16x8xf32> to vector<256x8xf32>
    %450 = arith.truncf %449 : vector<256x8xf32> to vector<256x8xbf16>
    %c2_328 = arith.constant 2 : index
    %c0_329 = arith.constant 0 : index
    %c0_330 = arith.constant 0 : index
    %451 = vector.load %arg3[%c2_328, %c0_329, %c0_330] : memref<9x8x8xbf16, #tpu.memory_space<vmem>>, vector<1x8x8xbf16>
    %452 = vector.shape_cast %451 : vector<1x8x8xbf16> to vector<8x8xbf16>
    %cst_331 = arith.constant dense<0.000000e+00> : vector<256x8xf32>
    %453 = tpu.matmul %450, %452, %cst_331 {dimension_numbers = #tpu.dot_dimension_numbers<[1], [0], [0], [1], [0, 0, 1, 1], [], []>} : vector<256x8xbf16>, vector<8x8xbf16>, vector<256x8xf32> -> vector<256x8xf32>
    %454 = arith.addf %447, %453 : vector<256x8xf32>
    %c1_332 = arith.constant 1 : index
    %c7_333 = arith.constant 7 : index
    %c0_334 = arith.constant 0 : index
    %455 = vector.load %arg9[%c1_332, %c7_333, %c0_334] : memref<18x32x8xf32, #tpu.memory_space<vmem>>, vector<16x16x8xf32>
    %456 = vector.shape_cast %455 : vector<16x16x8xf32> to vector<256x8xf32>
    %457 = arith.truncf %456 : vector<256x8xf32> to vector<256x8xbf16>
    %c3_335 = arith.constant 3 : index
    %c0_336 = arith.constant 0 : index
    %c0_337 = arith.constant 0 : index
    %458 = vector.load %arg3[%c3_335, %c0_336, %c0_337] : memref<9x8x8xbf16, #tpu.memory_space<vmem>>, vector<1x8x8xbf16>
    %459 = vector.shape_cast %458 : vector<1x8x8xbf16> to vector<8x8xbf16>
    %cst_338 = arith.constant dense<0.000000e+00> : vector<256x8xf32>
    %460 = tpu.matmul %457, %459, %cst_338 {dimension_numbers = #tpu.dot_dimension_numbers<[1], [0], [0], [1], [0, 0, 1, 1], [], []>} : vector<256x8xbf16>, vector<8x8xbf16>, vector<256x8xf32> -> vector<256x8xf32>
    %461 = arith.addf %454, %460 : vector<256x8xf32>
    %c1_339 = arith.constant 1 : index
    %c8_340 = arith.constant 8 : index
    %c0_341 = arith.constant 0 : index
    %462 = vector.load %arg9[%c1_339, %c8_340, %c0_341] : memref<18x32x8xf32, #tpu.memory_space<vmem>>, vector<16x16x8xf32>
    %463 = vector.shape_cast %462 : vector<16x16x8xf32> to vector<256x8xf32>
    %464 = arith.truncf %463 : vector<256x8xf32> to vector<256x8xbf16>
    %c4_342 = arith.constant 4 : index
    %c0_343 = arith.constant 0 : index
    %c0_344 = arith.constant 0 : index
    %465 = vector.load %arg3[%c4_342, %c0_343, %c0_344] : memref<9x8x8xbf16, #tpu.memory_space<vmem>>, vector<1x8x8xbf16>
    %466 = vector.shape_cast %465 : vector<1x8x8xbf16> to vector<8x8xbf16>
    %cst_345 = arith.constant dense<0.000000e+00> : vector<256x8xf32>
    %467 = tpu.matmul %464, %466, %cst_345 {dimension_numbers = #tpu.dot_dimension_numbers<[1], [0], [0], [1], [0, 0, 1, 1], [], []>} : vector<256x8xbf16>, vector<8x8xbf16>, vector<256x8xf32> -> vector<256x8xf32>
    %468 = arith.addf %461, %467 : vector<256x8xf32>
    %c1_346 = arith.constant 1 : index
    %c9_347 = arith.constant 9 : index
    %c0_348 = arith.constant 0 : index
    %469 = vector.load %arg9[%c1_346, %c9_347, %c0_348] : memref<18x32x8xf32, #tpu.memory_space<vmem>>, vector<16x16x8xf32>
    %470 = vector.shape_cast %469 : vector<16x16x8xf32> to vector<256x8xf32>
    %471 = arith.truncf %470 : vector<256x8xf32> to vector<256x8xbf16>
    %c5_349 = arith.constant 5 : index
    %c0_350 = arith.constant 0 : index
    %c0_351 = arith.constant 0 : index
    %472 = vector.load %arg3[%c5_349, %c0_350, %c0_351] : memref<9x8x8xbf16, #tpu.memory_space<vmem>>, vector<1x8x8xbf16>
    %473 = vector.shape_cast %472 : vector<1x8x8xbf16> to vector<8x8xbf16>
    %cst_352 = arith.constant dense<0.000000e+00> : vector<256x8xf32>
    %474 = tpu.matmul %471, %473, %cst_352 {dimension_numbers = #tpu.dot_dimension_numbers<[1], [0], [0], [1], [0, 0, 1, 1], [], []>} : vector<256x8xbf16>, vector<8x8xbf16>, vector<256x8xf32> -> vector<256x8xf32>
    %475 = arith.addf %468, %474 : vector<256x8xf32>
    %c2_353 = arith.constant 2 : index
    %c7_354 = arith.constant 7 : index
    %c0_355 = arith.constant 0 : index
    %476 = vector.load %arg9[%c2_353, %c7_354, %c0_355] : memref<18x32x8xf32, #tpu.memory_space<vmem>>, vector<16x16x8xf32>
    %477 = vector.shape_cast %476 : vector<16x16x8xf32> to vector<256x8xf32>
    %478 = arith.truncf %477 : vector<256x8xf32> to vector<256x8xbf16>
    %c6_356 = arith.constant 6 : index
    %c0_357 = arith.constant 0 : index
    %c0_358 = arith.constant 0 : index
    %479 = vector.load %arg3[%c6_356, %c0_357, %c0_358] : memref<9x8x8xbf16, #tpu.memory_space<vmem>>, vector<1x8x8xbf16>
    %480 = vector.shape_cast %479 : vector<1x8x8xbf16> to vector<8x8xbf16>
    %cst_359 = arith.constant dense<0.000000e+00> : vector<256x8xf32>
    %481 = tpu.matmul %478, %480, %cst_359 {dimension_numbers = #tpu.dot_dimension_numbers<[1], [0], [0], [1], [0, 0, 1, 1], [], []>} : vector<256x8xbf16>, vector<8x8xbf16>, vector<256x8xf32> -> vector<256x8xf32>
    %482 = arith.addf %475, %481 : vector<256x8xf32>
    %c2_360 = arith.constant 2 : index
    %c8_361 = arith.constant 8 : index
    %c0_362 = arith.constant 0 : index
    %483 = vector.load %arg9[%c2_360, %c8_361, %c0_362] : memref<18x32x8xf32, #tpu.memory_space<vmem>>, vector<16x16x8xf32>
    %484 = vector.shape_cast %483 : vector<16x16x8xf32> to vector<256x8xf32>
    %485 = arith.truncf %484 : vector<256x8xf32> to vector<256x8xbf16>
    %c7_363 = arith.constant 7 : index
    %c0_364 = arith.constant 0 : index
    %c0_365 = arith.constant 0 : index
    %486 = vector.load %arg3[%c7_363, %c0_364, %c0_365] : memref<9x8x8xbf16, #tpu.memory_space<vmem>>, vector<1x8x8xbf16>
    %487 = vector.shape_cast %486 : vector<1x8x8xbf16> to vector<8x8xbf16>
    %cst_366 = arith.constant dense<0.000000e+00> : vector<256x8xf32>
    %488 = tpu.matmul %485, %487, %cst_366 {dimension_numbers = #tpu.dot_dimension_numbers<[1], [0], [0], [1], [0, 0, 1, 1], [], []>} : vector<256x8xbf16>, vector<8x8xbf16>, vector<256x8xf32> -> vector<256x8xf32>
    %489 = arith.addf %482, %488 : vector<256x8xf32>
    %c2_367 = arith.constant 2 : index
    %c9_368 = arith.constant 9 : index
    %c0_369 = arith.constant 0 : index
    %490 = vector.load %arg9[%c2_367, %c9_368, %c0_369] : memref<18x32x8xf32, #tpu.memory_space<vmem>>, vector<16x16x8xf32>
    %491 = vector.shape_cast %490 : vector<16x16x8xf32> to vector<256x8xf32>
    %492 = arith.truncf %491 : vector<256x8xf32> to vector<256x8xbf16>
    %c8_370 = arith.constant 8 : index
    %c0_371 = arith.constant 0 : index
    %c0_372 = arith.constant 0 : index
    %493 = vector.load %arg3[%c8_370, %c0_371, %c0_372] : memref<9x8x8xbf16, #tpu.memory_space<vmem>>, vector<1x8x8xbf16>
    %494 = vector.shape_cast %493 : vector<1x8x8xbf16> to vector<8x8xbf16>
    %cst_373 = arith.constant dense<0.000000e+00> : vector<256x8xf32>
    %495 = tpu.matmul %492, %494, %cst_373 {dimension_numbers = #tpu.dot_dimension_numbers<[1], [0], [0], [1], [0, 0, 1, 1], [], []>} : vector<256x8xbf16>, vector<8x8xbf16>, vector<256x8xf32> -> vector<256x8xf32>
    %496 = arith.addf %489, %495 : vector<256x8xf32>
    %c0_374 = arith.constant 0 : index
    %c0_375 = arith.constant 0 : index
    %497 = vector.load %arg4[%c0_374, %c0_375] : memref<1x8xf32, #tpu.memory_space<vmem>>, vector<1x8xf32>
    %498 = vector.broadcast %497 : vector<1x8xf32> to vector<256x8xf32>
    %499 = arith.addf %496, %498 : vector<256x8xf32>
    %cst_376 = arith.constant 0.000000e+00 : f32
    %500 = vector.broadcast %cst_376 : f32 to vector<256x8xf32>
    %501 = arith.maximumf %499, %500 : vector<256x8xf32>
    %502 = vector.shape_cast %501 : vector<256x8xf32> to vector<16x16x8xf32>
    %c0_377 = arith.constant 0 : index
    %c0_378 = arith.constant 0 : index
    %c0_379 = arith.constant 0 : index
    %503 = vector.load %arg10[%c0_377, %c0_378, %c0_379] : memref<16x16x8xf32, #tpu.memory_space<vmem>>, vector<16x16x8xf32>
    tpu.vector_store %arg10[%c0_377, %c0_378, %c0_379], %502 {strides = array<i32>} : memref<16x16x8xf32, #tpu.memory_space<vmem>>, vector<16x16x8xf32>,
    %c0_380 = arith.constant 0 : index
    %c0_381 = arith.constant 0 : index
    %c0_382 = arith.constant 0 : index
    %504 = vector.load %arg10[%c0_380, %c0_381, %c0_382] : memref<16x16x8xf32, #tpu.memory_space<vmem>>, vector<16x15x8xf32>
    %c0_383 = arith.constant 0 : index
    %c1_384 = arith.constant 1 : index
    %c0_385 = arith.constant 0 : index
    %505 = vector.load %arg10[%c0_383, %c1_384, %c0_385] : memref<16x16x8xf32, #tpu.memory_space<vmem>>, vector<16x15x8xf32>
    %506 = arith.maximumf %504, %505 : vector<16x15x8xf32>
    %507 = vector.extract_strided_slice %506 {offsets = [0, 0, 0], sizes = [1, 15, 8], strides = [1, 1, 1]} : vector<16x15x8xf32> to vector<1x15x8xf32>
    %508 = vector.shape_cast %507 : vector<1x15x8xf32> to vector<15x8xf32>
    %509 = vector.extract_strided_slice %506 {offsets = [1, 0, 0], sizes = [1, 15, 8], strides = [1, 1, 1]} : vector<16x15x8xf32> to vector<1x15x8xf32>
    %510 = vector.shape_cast %509 : vector<1x15x8xf32> to vector<15x8xf32>
    %511 = arith.maximumf %508, %510 : vector<15x8xf32>
    %c0_386 = arith.constant 0 : index
    %c0_387 = arith.constant 0 : index
    %512 = vector.load %arg7[%c0_386, %c0_387] : memref<16x15xf32, #tpu.memory_space<vmem>>, vector<16x15xf32>
    %cst_388 = arith.constant dense<0.000000e+00> : vector<16x8xf32>
    %513 = tpu.matmul %512, %511, %cst_388 {dimension_numbers = #tpu.dot_dimension_numbers<[1], [0], [0], [1], [0, 0, 1, 1], [], []>} : vector<16x15xf32>, vector<15x8xf32>, vector<16x8xf32> -> vector<16x8xf32>
    %514 = vector.extract_strided_slice %506 {offsets = [2, 0, 0], sizes = [1, 15, 8], strides = [1, 1, 1]} : vector<16x15x8xf32> to vector<1x15x8xf32>
    %515 = vector.shape_cast %514 : vector<1x15x8xf32> to vector<15x8xf32>
    %516 = vector.extract_strided_slice %506 {offsets = [3, 0, 0], sizes = [1, 15, 8], strides = [1, 1, 1]} : vector<16x15x8xf32> to vector<1x15x8xf32>
    %517 = vector.shape_cast %516 : vector<1x15x8xf32> to vector<15x8xf32>
    %518 = arith.maximumf %515, %517 : vector<15x8xf32>
    %c0_389 = arith.constant 0 : index
    %c0_390 = arith.constant 0 : index
    %519 = vector.load %arg7[%c0_389, %c0_390] : memref<16x15xf32, #tpu.memory_space<vmem>>, vector<16x15xf32>
    %cst_391 = arith.constant dense<0.000000e+00> : vector<16x8xf32>
    %520 = tpu.matmul %519, %518, %cst_391 {dimension_numbers = #tpu.dot_dimension_numbers<[1], [0], [0], [1], [0, 0, 1, 1], [], []>} : vector<16x15xf32>, vector<15x8xf32>, vector<16x8xf32> -> vector<16x8xf32>
    %521 = vector.extract_strided_slice %506 {offsets = [4, 0, 0], sizes = [1, 15, 8], strides = [1, 1, 1]} : vector<16x15x8xf32> to vector<1x15x8xf32>
    %522 = vector.shape_cast %521 : vector<1x15x8xf32> to vector<15x8xf32>
    %523 = vector.extract_strided_slice %506 {offsets = [5, 0, 0], sizes = [1, 15, 8], strides = [1, 1, 1]} : vector<16x15x8xf32> to vector<1x15x8xf32>
    %524 = vector.shape_cast %523 : vector<1x15x8xf32> to vector<15x8xf32>
    %525 = arith.maximumf %522, %524 : vector<15x8xf32>
    %c0_392 = arith.constant 0 : index
    %c0_393 = arith.constant 0 : index
    %526 = vector.load %arg7[%c0_392, %c0_393] : memref<16x15xf32, #tpu.memory_space<vmem>>, vector<16x15xf32>
    %cst_394 = arith.constant dense<0.000000e+00> : vector<16x8xf32>
    %527 = tpu.matmul %526, %525, %cst_394 {dimension_numbers = #tpu.dot_dimension_numbers<[1], [0], [0], [1], [0, 0, 1, 1], [], []>} : vector<16x15xf32>, vector<15x8xf32>, vector<16x8xf32> -> vector<16x8xf32>
    %528 = vector.extract_strided_slice %506 {offsets = [6, 0, 0], sizes = [1, 15, 8], strides = [1, 1, 1]} : vector<16x15x8xf32> to vector<1x15x8xf32>
    %529 = vector.shape_cast %528 : vector<1x15x8xf32> to vector<15x8xf32>
    %530 = vector.extract_strided_slice %506 {offsets = [7, 0, 0], sizes = [1, 15, 8], strides = [1, 1, 1]} : vector<16x15x8xf32> to vector<1x15x8xf32>
    %531 = vector.shape_cast %530 : vector<1x15x8xf32> to vector<15x8xf32>
    %532 = arith.maximumf %529, %531 : vector<15x8xf32>
    %c0_395 = arith.constant 0 : index
    %c0_396 = arith.constant 0 : index
    %533 = vector.load %arg7[%c0_395, %c0_396] : memref<16x15xf32, #tpu.memory_space<vmem>>, vector<16x15xf32>
    %cst_397 = arith.constant dense<0.000000e+00> : vector<16x8xf32>
    %534 = tpu.matmul %533, %532, %cst_397 {dimension_numbers = #tpu.dot_dimension_numbers<[1], [0], [0], [1], [0, 0, 1, 1], [], []>} : vector<16x15xf32>, vector<15x8xf32>, vector<16x8xf32> -> vector<16x8xf32>
    %535 = vector.extract_strided_slice %506 {offsets = [8, 0, 0], sizes = [1, 15, 8], strides = [1, 1, 1]} : vector<16x15x8xf32> to vector<1x15x8xf32>
    %536 = vector.shape_cast %535 : vector<1x15x8xf32> to vector<15x8xf32>
    %537 = vector.extract_strided_slice %506 {offsets = [9, 0, 0], sizes = [1, 15, 8], strides = [1, 1, 1]} : vector<16x15x8xf32> to vector<1x15x8xf32>
    %538 = vector.shape_cast %537 : vector<1x15x8xf32> to vector<15x8xf32>
    %539 = arith.maximumf %536, %538 : vector<15x8xf32>
    %c0_398 = arith.constant 0 : index
    %c0_399 = arith.constant 0 : index
    %540 = vector.load %arg7[%c0_398, %c0_399] : memref<16x15xf32, #tpu.memory_space<vmem>>, vector<16x15xf32>
    %cst_400 = arith.constant dense<0.000000e+00> : vector<16x8xf32>
    %541 = tpu.matmul %540, %539, %cst_400 {dimension_numbers = #tpu.dot_dimension_numbers<[1], [0], [0], [1], [0, 0, 1, 1], [], []>} : vector<16x15xf32>, vector<15x8xf32>, vector<16x8xf32> -> vector<16x8xf32>
    %542 = vector.extract_strided_slice %506 {offsets = [10, 0, 0], sizes = [1, 15, 8], strides = [1, 1, 1]} : vector<16x15x8xf32> to vector<1x15x8xf32>
    %543 = vector.shape_cast %542 : vector<1x15x8xf32> to vector<15x8xf32>
    %544 = vector.extract_strided_slice %506 {offsets = [11, 0, 0], sizes = [1, 15, 8], strides = [1, 1, 1]} : vector<16x15x8xf32> to vector<1x15x8xf32>
    %545 = vector.shape_cast %544 : vector<1x15x8xf32> to vector<15x8xf32>
    %546 = arith.maximumf %543, %545 : vector<15x8xf32>
    %c0_401 = arith.constant 0 : index
    %c0_402 = arith.constant 0 : index
    %547 = vector.load %arg7[%c0_401, %c0_402] : memref<16x15xf32, #tpu.memory_space<vmem>>, vector<16x15xf32>
    %cst_403 = arith.constant dense<0.000000e+00> : vector<16x8xf32>
    %548 = tpu.matmul %547, %546, %cst_403 {dimension_numbers = #tpu.dot_dimension_numbers<[1], [0], [0], [1], [0, 0, 1, 1], [], []>} : vector<16x15xf32>, vector<15x8xf32>, vector<16x8xf32> -> vector<16x8xf32>
    %549 = vector.extract_strided_slice %506 {offsets = [12, 0, 0], sizes = [1, 15, 8], strides = [1, 1, 1]} : vector<16x15x8xf32> to vector<1x15x8xf32>
    %550 = vector.shape_cast %549 : vector<1x15x8xf32> to vector<15x8xf32>
    %551 = vector.extract_strided_slice %506 {offsets = [13, 0, 0], sizes = [1, 15, 8], strides = [1, 1, 1]} : vector<16x15x8xf32> to vector<1x15x8xf32>
    %552 = vector.shape_cast %551 : vector<1x15x8xf32> to vector<15x8xf32>
    %553 = arith.maximumf %550, %552 : vector<15x8xf32>
    %c0_404 = arith.constant 0 : index
    %c0_405 = arith.constant 0 : index
    %554 = vector.load %arg7[%c0_404, %c0_405] : memref<16x15xf32, #tpu.memory_space<vmem>>, vector<16x15xf32>
    %cst_406 = arith.constant dense<0.000000e+00> : vector<16x8xf32>
    %555 = tpu.matmul %554, %553, %cst_406 {dimension_numbers = #tpu.dot_dimension_numbers<[1], [0], [0], [1], [0, 0, 1, 1], [], []>} : vector<16x15xf32>, vector<15x8xf32>, vector<16x8xf32> -> vector<16x8xf32>
    %556 = vector.extract_strided_slice %506 {offsets = [14, 0, 0], sizes = [1, 15, 8], strides = [1, 1, 1]} : vector<16x15x8xf32> to vector<1x15x8xf32>
    %557 = vector.shape_cast %556 : vector<1x15x8xf32> to vector<15x8xf32>
    %558 = vector.extract_strided_slice %506 {offsets = [15, 0, 0], sizes = [1, 15, 8], strides = [1, 1, 1]} : vector<16x15x8xf32> to vector<1x15x8xf32>
    %559 = vector.shape_cast %558 : vector<1x15x8xf32> to vector<15x8xf32>
    %560 = arith.maximumf %557, %559 : vector<15x8xf32>
    %c0_407 = arith.constant 0 : index
    %c0_408 = arith.constant 0 : index
    %561 = vector.load %arg7[%c0_407, %c0_408] : memref<16x15xf32, #tpu.memory_space<vmem>>, vector<16x15xf32>
    %cst_409 = arith.constant dense<0.000000e+00> : vector<16x8xf32>
    %562 = tpu.matmul %561, %560, %cst_409 {dimension_numbers = #tpu.dot_dimension_numbers<[1], [0], [0], [1], [0, 0, 1, 1], [], []>} : vector<16x15xf32>, vector<15x8xf32>, vector<16x8xf32> -> vector<16x8xf32>
    %cst_410 = arith.constant 1.000000e+00 : f32
    %563 = vector.broadcast %cst_410 : f32 to vector<16x8xf32>
    %564 = arith.mulf %563, %513 : vector<16x8xf32>
    %cst_411 = arith.constant 0.000000e+00 : f32
    %565 = vector.broadcast %cst_411 : f32 to vector<16x8xf32>
    %566 = arith.mulf %565, %520 : vector<16x8xf32>
    %567 = arith.addf %564, %566 : vector<16x8xf32>
    %568 = vector.extract_strided_slice %428 {offsets = [0, 0], sizes = [16, 8], strides = [1, 1]} : vector<256x8xf32> to vector<16x8xf32>
    %569 = arith.addf %568, %567 : vector<16x8xf32>
    %c0_412 = arith.constant 0 : index
    %c0_413 = arith.constant 0 : index
    %570 = vector.load %arg11[%c0_412, %c0_413] : memref<256x8xf32, #tpu.memory_space<vmem>>, vector<16x8xf32>
    tpu.vector_store %arg11[%c0_412, %c0_413], %569 {strides = array<i32>} : memref<256x8xf32, #tpu.memory_space<vmem>>, vector<16x8xf32>,
    %cst_414 = arith.constant 0.533333361 : f32
    %571 = vector.broadcast %cst_414 : f32 to vector<16x8xf32>
    %572 = arith.mulf %571, %513 : vector<16x8xf32>
    %cst_415 = arith.constant 0.466666669 : f32
    %573 = vector.broadcast %cst_415 : f32 to vector<16x8xf32>
    %574 = arith.mulf %573, %520 : vector<16x8xf32>
    %575 = arith.addf %572, %574 : vector<16x8xf32>
    %576 = vector.extract_strided_slice %428 {offsets = [16, 0], sizes = [16, 8], strides = [1, 1]} : vector<256x8xf32> to vector<16x8xf32>
    %577 = arith.addf %576, %575 : vector<16x8xf32>
    %c16_416 = arith.constant 16 : index
    %c0_417 = arith.constant 0 : index
    %578 = vector.load %arg11[%c16_416, %c0_417] : memref<256x8xf32, #tpu.memory_space<vmem>>, vector<16x8xf32>
    tpu.vector_store %arg11[%c16_416, %c0_417], %577 {strides = array<i32>} : memref<256x8xf32, #tpu.memory_space<vmem>>, vector<16x8xf32>,
    %cst_418 = arith.constant 0.0666666701 : f32
    %579 = vector.broadcast %cst_418 : f32 to vector<16x8xf32>
    %580 = arith.mulf %579, %513 : vector<16x8xf32>
    %cst_419 = arith.constant 0.933333337 : f32
    %581 = vector.broadcast %cst_419 : f32 to vector<16x8xf32>
    %582 = arith.mulf %581, %520 : vector<16x8xf32>
    %583 = arith.addf %580, %582 : vector<16x8xf32>
    %584 = vector.extract_strided_slice %428 {offsets = [32, 0], sizes = [16, 8], strides = [1, 1]} : vector<256x8xf32> to vector<16x8xf32>
    %585 = arith.addf %584, %583 : vector<16x8xf32>
    %c32_420 = arith.constant 32 : index
    %c0_421 = arith.constant 0 : index
    %586 = vector.load %arg11[%c32_420, %c0_421] : memref<256x8xf32, #tpu.memory_space<vmem>>, vector<16x8xf32>
    tpu.vector_store %arg11[%c32_420, %c0_421], %585 {strides = array<i32>} : memref<256x8xf32, #tpu.memory_space<vmem>>, vector<16x8xf32>,
    %cst_422 = arith.constant 6.000000e-01 : f32
    %587 = vector.broadcast %cst_422 : f32 to vector<16x8xf32>
    %588 = arith.mulf %587, %520 : vector<16x8xf32>
    %cst_423 = arith.constant 4.000000e-01 : f32
    %589 = vector.broadcast %cst_423 : f32 to vector<16x8xf32>
    %590 = arith.mulf %589, %527 : vector<16x8xf32>
    %591 = arith.addf %588, %590 : vector<16x8xf32>
    %592 = vector.extract_strided_slice %428 {offsets = [48, 0], sizes = [16, 8], strides = [1, 1]} : vector<256x8xf32> to vector<16x8xf32>
    %593 = arith.addf %592, %591 : vector<16x8xf32>
    %c48_424 = arith.constant 48 : index
    %c0_425 = arith.constant 0 : index
    %594 = vector.load %arg11[%c48_424, %c0_425] : memref<256x8xf32, #tpu.memory_space<vmem>>, vector<16x8xf32>
    tpu.vector_store %arg11[%c48_424, %c0_425], %593 {strides = array<i32>} : memref<256x8xf32, #tpu.memory_space<vmem>>, vector<16x8xf32>,
    %cst_426 = arith.constant 0.13333334 : f32
    %595 = vector.broadcast %cst_426 : f32 to vector<16x8xf32>
    %596 = arith.mulf %595, %520 : vector<16x8xf32>
    %cst_427 = arith.constant 0.866666674 : f32
    %597 = vector.broadcast %cst_427 : f32 to vector<16x8xf32>
    %598 = arith.mulf %597, %527 : vector<16x8xf32>
    %599 = arith.addf %596, %598 : vector<16x8xf32>
    %600 = vector.extract_strided_slice %428 {offsets = [64, 0], sizes = [16, 8], strides = [1, 1]} : vector<256x8xf32> to vector<16x8xf32>
    %601 = arith.addf %600, %599 : vector<16x8xf32>
    %c64_428 = arith.constant 64 : index
    %c0_429 = arith.constant 0 : index
    %602 = vector.load %arg11[%c64_428, %c0_429] : memref<256x8xf32, #tpu.memory_space<vmem>>, vector<16x8xf32>
    tpu.vector_store %arg11[%c64_428, %c0_429], %601 {strides = array<i32>} : memref<256x8xf32, #tpu.memory_space<vmem>>, vector<16x8xf32>,
    %cst_430 = arith.constant 0.666666686 : f32
    %603 = vector.broadcast %cst_430 : f32 to vector<16x8xf32>
    %604 = arith.mulf %603, %527 : vector<16x8xf32>
    %cst_431 = arith.constant 0.333333343 : f32
    %605 = vector.broadcast %cst_431 : f32 to vector<16x8xf32>
    %606 = arith.mulf %605, %534 : vector<16x8xf32>
    %607 = arith.addf %604, %606 : vector<16x8xf32>
    %608 = vector.extract_strided_slice %428 {offsets = [80, 0], sizes = [16, 8], strides = [1, 1]} : vector<256x8xf32> to vector<16x8xf32>
    %609 = arith.addf %608, %607 : vector<16x8xf32>
    %c80_432 = arith.constant 80 : index
    %c0_433 = arith.constant 0 : index
    %610 = vector.load %arg11[%c80_432, %c0_433] : memref<256x8xf32, #tpu.memory_space<vmem>>, vector<16x8xf32>
    tpu.vector_store %arg11[%c80_432, %c0_433], %609 {strides = array<i32>} : memref<256x8xf32, #tpu.memory_space<vmem>>, vector<16x8xf32>,
    %cst_434 = arith.constant 2.000000e-01 : f32
    %611 = vector.broadcast %cst_434 : f32 to vector<16x8xf32>
    %612 = arith.mulf %611, %527 : vector<16x8xf32>
    %cst_435 = arith.constant 8.000000e-01 : f32
    %613 = vector.broadcast %cst_435 : f32 to vector<16x8xf32>
    %614 = arith.mulf %613, %534 : vector<16x8xf32>
    %615 = arith.addf %612, %614 : vector<16x8xf32>
    %616 = vector.extract_strided_slice %428 {offsets = [96, 0], sizes = [16, 8], strides = [1, 1]} : vector<256x8xf32> to vector<16x8xf32>
    %617 = arith.addf %616, %615 : vector<16x8xf32>
    %c96_436 = arith.constant 96 : index
    %c0_437 = arith.constant 0 : index
    %618 = vector.load %arg11[%c96_436, %c0_437] : memref<256x8xf32, #tpu.memory_space<vmem>>, vector<16x8xf32>
    tpu.vector_store %arg11[%c96_436, %c0_437], %617 {strides = array<i32>} : memref<256x8xf32, #tpu.memory_space<vmem>>, vector<16x8xf32>,
    %cst_438 = arith.constant 0.733333349 : f32
    %619 = vector.broadcast %cst_438 : f32 to vector<16x8xf32>
    %620 = arith.mulf %619, %534 : vector<16x8xf32>
    %cst_439 = arith.constant 0.266666681 : f32
    %621 = vector.broadcast %cst_439 : f32 to vector<16x8xf32>
    %622 = arith.mulf %621, %541 : vector<16x8xf32>
    %623 = arith.addf %620, %622 : vector<16x8xf32>
    %624 = vector.extract_strided_slice %428 {offsets = [112, 0], sizes = [16, 8], strides = [1, 1]} : vector<256x8xf32> to vector<16x8xf32>
    %625 = arith.addf %624, %623 : vector<16x8xf32>
    %c112_440 = arith.constant 112 : index
    %c0_441 = arith.constant 0 : index
    %626 = vector.load %arg11[%c112_440, %c0_441] : memref<256x8xf32, #tpu.memory_space<vmem>>, vector<16x8xf32>
    tpu.vector_store %arg11[%c112_440, %c0_441], %625 {strides = array<i32>} : memref<256x8xf32, #tpu.memory_space<vmem>>, vector<16x8xf32>,
    %cst_442 = arith.constant 0.266666681 : f32
    %627 = vector.broadcast %cst_442 : f32 to vector<16x8xf32>
    %628 = arith.mulf %627, %534 : vector<16x8xf32>
    %cst_443 = arith.constant 0.733333349 : f32
    %629 = vector.broadcast %cst_443 : f32 to vector<16x8xf32>
    %630 = arith.mulf %629, %541 : vector<16x8xf32>
    %631 = arith.addf %628, %630 : vector<16x8xf32>
    %632 = vector.extract_strided_slice %428 {offsets = [128, 0], sizes = [16, 8], strides = [1, 1]} : vector<256x8xf32> to vector<16x8xf32>
    %633 = arith.addf %632, %631 : vector<16x8xf32>
    %c128_444 = arith.constant 128 : index
    %c0_445 = arith.constant 0 : index
    %634 = vector.load %arg11[%c128_444, %c0_445] : memref<256x8xf32, #tpu.memory_space<vmem>>, vector<16x8xf32>
    tpu.vector_store %arg11[%c128_444, %c0_445], %633 {strides = array<i32>} : memref<256x8xf32, #tpu.memory_space<vmem>>, vector<16x8xf32>,
    %cst_446 = arith.constant 8.000000e-01 : f32
    %635 = vector.broadcast %cst_446 : f32 to vector<16x8xf32>
    %636 = arith.mulf %635, %541 : vector<16x8xf32>
    %cst_447 = arith.constant 2.000000e-01 : f32
    %637 = vector.broadcast %cst_447 : f32 to vector<16x8xf32>
    %638 = arith.mulf %637, %548 : vector<16x8xf32>
    %639 = arith.addf %636, %638 : vector<16x8xf32>
    %640 = vector.extract_strided_slice %428 {offsets = [144, 0], sizes = [16, 8], strides = [1, 1]} : vector<256x8xf32> to vector<16x8xf32>
    %641 = arith.addf %640, %639 : vector<16x8xf32>
    %c144_448 = arith.constant 144 : index
    %c0_449 = arith.constant 0 : index
    %642 = vector.load %arg11[%c144_448, %c0_449] : memref<256x8xf32, #tpu.memory_space<vmem>>, vector<16x8xf32>
    tpu.vector_store %arg11[%c144_448, %c0_449], %641 {strides = array<i32>} : memref<256x8xf32, #tpu.memory_space<vmem>>, vector<16x8xf32>,
    %cst_450 = arith.constant 0.333333343 : f32
    %643 = vector.broadcast %cst_450 : f32 to vector<16x8xf32>
    %644 = arith.mulf %643, %541 : vector<16x8xf32>
    %cst_451 = arith.constant 0.666666686 : f32
    %645 = vector.broadcast %cst_451 : f32 to vector<16x8xf32>
    %646 = arith.mulf %645, %548 : vector<16x8xf32>
    %647 = arith.addf %644, %646 : vector<16x8xf32>
    %648 = vector.extract_strided_slice %428 {offsets = [160, 0], sizes = [16, 8], strides = [1, 1]} : vector<256x8xf32> to vector<16x8xf32>
    %649 = arith.addf %648, %647 : vector<16x8xf32>
    %c160_452 = arith.constant 160 : index
    %c0_453 = arith.constant 0 : index
    %650 = vector.load %arg11[%c160_452, %c0_453] : memref<256x8xf32, #tpu.memory_space<vmem>>, vector<16x8xf32>
    tpu.vector_store %arg11[%c160_452, %c0_453], %649 {strides = array<i32>} : memref<256x8xf32, #tpu.memory_space<vmem>>, vector<16x8xf32>,
    %cst_454 = arith.constant 0.866666674 : f32
    %651 = vector.broadcast %cst_454 : f32 to vector<16x8xf32>
    %652 = arith.mulf %651, %548 : vector<16x8xf32>
    %cst_455 = arith.constant 0.13333334 : f32
    %653 = vector.broadcast %cst_455 : f32 to vector<16x8xf32>
    %654 = arith.mulf %653, %555 : vector<16x8xf32>
    %655 = arith.addf %652, %654 : vector<16x8xf32>
    %656 = vector.extract_strided_slice %428 {offsets = [176, 0], sizes = [16, 8], strides = [1, 1]} : vector<256x8xf32> to vector<16x8xf32>
    %657 = arith.addf %656, %655 : vector<16x8xf32>
    %c176_456 = arith.constant 176 : index
    %c0_457 = arith.constant 0 : index
    %658 = vector.load %arg11[%c176_456, %c0_457] : memref<256x8xf32, #tpu.memory_space<vmem>>, vector<16x8xf32>
    tpu.vector_store %arg11[%c176_456, %c0_457], %657 {strides = array<i32>} : memref<256x8xf32, #tpu.memory_space<vmem>>, vector<16x8xf32>,
    %cst_458 = arith.constant 4.000000e-01 : f32
    %659 = vector.broadcast %cst_458 : f32 to vector<16x8xf32>
    %660 = arith.mulf %659, %548 : vector<16x8xf32>
    %cst_459 = arith.constant 6.000000e-01 : f32
    %661 = vector.broadcast %cst_459 : f32 to vector<16x8xf32>
    %662 = arith.mulf %661, %555 : vector<16x8xf32>
    %663 = arith.addf %660, %662 : vector<16x8xf32>
    %664 = vector.extract_strided_slice %428 {offsets = [192, 0], sizes = [16, 8], strides = [1, 1]} : vector<256x8xf32> to vector<16x8xf32>
    %665 = arith.addf %664, %663 : vector<16x8xf32>
    %c192_460 = arith.constant 192 : index
    %c0_461 = arith.constant 0 : index
    %666 = vector.load %arg11[%c192_460, %c0_461] : memref<256x8xf32, #tpu.memory_space<vmem>>, vector<16x8xf32>
    tpu.vector_store %arg11[%c192_460, %c0_461], %665 {strides = array<i32>} : memref<256x8xf32, #tpu.memory_space<vmem>>, vector<16x8xf32>,
    %cst_462 = arith.constant 0.933333337 : f32
    %667 = vector.broadcast %cst_462 : f32 to vector<16x8xf32>
    %668 = arith.mulf %667, %555 : vector<16x8xf32>
    %cst_463 = arith.constant 0.0666666701 : f32
    %669 = vector.broadcast %cst_463 : f32 to vector<16x8xf32>
    %670 = arith.mulf %669, %562 : vector<16x8xf32>
    %671 = arith.addf %668, %670 : vector<16x8xf32>
    %672 = vector.extract_strided_slice %428 {offsets = [208, 0], sizes = [16, 8], strides = [1, 1]} : vector<256x8xf32> to vector<16x8xf32>
    %673 = arith.addf %672, %671 : vector<16x8xf32>
    %c208_464 = arith.constant 208 : index
    %c0_465 = arith.constant 0 : index
    %674 = vector.load %arg11[%c208_464, %c0_465] : memref<256x8xf32, #tpu.memory_space<vmem>>, vector<16x8xf32>
    tpu.vector_store %arg11[%c208_464, %c0_465], %673 {strides = array<i32>} : memref<256x8xf32, #tpu.memory_space<vmem>>, vector<16x8xf32>,
    %cst_466 = arith.constant 0.466666669 : f32
    %675 = vector.broadcast %cst_466 : f32 to vector<16x8xf32>
    %676 = arith.mulf %675, %555 : vector<16x8xf32>
    %cst_467 = arith.constant 0.533333361 : f32
    %677 = vector.broadcast %cst_467 : f32 to vector<16x8xf32>
    %678 = arith.mulf %677, %562 : vector<16x8xf32>
    %679 = arith.addf %676, %678 : vector<16x8xf32>
    %680 = vector.extract_strided_slice %428 {offsets = [224, 0], sizes = [16, 8], strides = [1, 1]} : vector<256x8xf32> to vector<16x8xf32>
    %681 = arith.addf %680, %679 : vector<16x8xf32>
    %c224_468 = arith.constant 224 : index
    %c0_469 = arith.constant 0 : index
    %682 = vector.load %arg11[%c224_468, %c0_469] : memref<256x8xf32, #tpu.memory_space<vmem>>, vector<16x8xf32>
    tpu.vector_store %arg11[%c224_468, %c0_469], %681 {strides = array<i32>} : memref<256x8xf32, #tpu.memory_space<vmem>>, vector<16x8xf32>,
    %cst_470 = arith.constant 1.000000e+00 : f32
    %683 = vector.broadcast %cst_470 : f32 to vector<16x8xf32>
    %684 = arith.mulf %683, %562 : vector<16x8xf32>
    %cst_471 = arith.constant 0.000000e+00 : f32
    %685 = vector.broadcast %cst_471 : f32 to vector<16x8xf32>
    %686 = arith.mulf %685, %562 : vector<16x8xf32>
    %687 = arith.addf %684, %686 : vector<16x8xf32>
    %688 = vector.extract_strided_slice %428 {offsets = [240, 0], sizes = [16, 8], strides = [1, 1]} : vector<256x8xf32> to vector<16x8xf32>
    %689 = arith.addf %688, %687 : vector<16x8xf32>
    %c240_472 = arith.constant 240 : index
    %c0_473 = arith.constant 0 : index
    %690 = vector.load %arg11[%c240_472, %c0_473] : memref<256x8xf32, #tpu.memory_space<vmem>>, vector<16x8xf32>
    tpu.vector_store %arg11[%c240_472, %c0_473], %689 {strides = array<i32>} : memref<256x8xf32, #tpu.memory_space<vmem>>, vector<16x8xf32>,
    %c0_474 = arith.constant 0 : index
    %c0_475 = arith.constant 0 : index
    %691 = vector.load %arg5[%c0_474, %c0_475] : memref<10x8xbf16, #tpu.memory_space<vmem>>, vector<10x8xbf16>
    %c0_476 = arith.constant 0 : index
    %c0_477 = arith.constant 0 : index
    %692 = vector.load %arg11[%c0_476, %c0_477] : memref<256x8xf32, #tpu.memory_space<vmem>>, vector<256x8xf32>
    %693 = arith.truncf %692 : vector<256x8xf32> to vector<256x8xbf16>
    %cst_478 = arith.constant dense<0.000000e+00> : vector<10x256xf32>
    %694 = tpu.matmul %691, %693, %cst_478 {dimension_numbers = #tpu.dot_dimension_numbers<[1], [1], [0], [0], [0, 0, 1, 0], [], []>} : vector<10x8xbf16>, vector<256x8xbf16>, vector<10x256xf32> -> vector<10x256xf32>
    %c0_479 = arith.constant 0 : index
    %c0_480 = arith.constant 0 : index
    %695 = vector.load %arg6[%c0_479, %c0_480] : memref<10x1xf32, #tpu.memory_space<vmem>>, vector<10x1xf32>
    %696 = vector.broadcast %695 : vector<10x1xf32> to vector<10x256xf32>
    %697 = arith.addf %694, %696 : vector<10x256xf32>
    %cst_481 = arith.constant 6.000000e-01 : f32
    %698 = vector.broadcast %cst_481 : f32 to vector<10x256xf32>
    %699 = arith.cmpf ogt, %697, %698 : vector<10x256xf32>
    %cst_482 = arith.constant 0.000000e+00 : f32
    %700 = vector.broadcast %cst_482 : f32 to vector<10x256xf32>
    %701 = arith.select %699, %697, %700 : vector<10x256xi1>, vector<10x256xf32>
    %cst_483 = arith.constant dense<0xFF800000> : vector<10xf32>
    %702 = vector.multi_reduction <maximumf>, %701, %cst_483 [1] : vector<10x256xf32> to vector<10xf32>
    %703 = vector.shape_cast %702 : vector<10xf32> to vector<10x1xf32>
    %704 = arith.maximumf %352, %703 : vector<10x1xf32>
    %cst_484 = arith.constant 9.99999971E-10 : f32
    %705 = vector.broadcast %cst_484 : f32 to vector<10x1xf32>
    %706 = arith.addf %704, %705 : vector<10x1xf32>
    %707 = tpu.reciprocal %706 {approx = true} : vector<10x1xf32> -> vector<10x1xf32>
    %708 = vector.broadcast %707 : vector<10x1xf32> to vector<10x256xf32>
    %709 = arith.mulf %350, %708 : vector<10x256xf32>
    %c0_485 = arith.constant 0 : index
    %c0_486 = arith.constant 0 : index
    %c0_487 = arith.constant 0 : index
    %710 = vector.load %arg8[%c0_485, %c0_486, %c0_487] : memref<2x10x256xf32, #tpu.memory_space<vmem>>, vector<1x10x256xf32>
    %711 = vector.shape_cast %710 : vector<1x10x256xf32> to vector<10x256xf32>
    %712 = vector.shape_cast %709 : vector<10x256xf32> to vector<1x10x256xf32>
    tpu.vector_store %arg8[%c0_485, %c0_486, %c0_487], %712 {strides = array<i32>} : memref<2x10x256xf32, #tpu.memory_space<vmem>>, vector<1x10x256xf32>,
    %713 = vector.broadcast %707 : vector<10x1xf32> to vector<10x256xf32>
    %714 = arith.mulf %701, %713 : vector<10x256xf32>
    %c1_488 = arith.constant 1 : index
    %c0_489 = arith.constant 0 : index
    %c0_490 = arith.constant 0 : index
    %715 = vector.load %arg8[%c1_488, %c0_489, %c0_490] : memref<2x10x256xf32, #tpu.memory_space<vmem>>, vector<1x10x256xf32>
    %716 = vector.shape_cast %715 : vector<1x10x256xf32> to vector<10x256xf32>
    %717 = vector.shape_cast %714 : vector<10x256xf32> to vector<1x10x256xf32>
    tpu.vector_store %arg8[%c1_488, %c0_489, %c0_490], %717 {strides = array<i32>} : memref<2x10x256xf32, #tpu.memory_space<vmem>>, vector<1x10x256xf32>,
    return
  }
}

</mosaic_0001>

<bundles_post_ra>
// kernel: fastnet_forward.1
= control target key start
LH: loop header
LB: loop body
LE: loop exit
PB: predicated region body
PF: predicated region fallthrough
CT: control target
= control target key end

     0   :  { %vm251_vm0 = vcmask 1041408   ;;  %vm202_vm1 = vcmask 31744   ;;  %vm30_vm2 = vcmask 64512   ;;  %vm2939_vm3 = vcmask 1043456   ;;  %s21044_s1 = inlined_call_operand.vmem [shape: bf16[9,4,8], index: 1, kind: input, shape index: {}]   ;;  %s21045_s0 = inlined_call_operand.vmem [shape: f32[2,18,18,4], index: 0, kind: input, shape index: {}]   ;;  %s21046_s3 = inlined_call_operand.vmem [shape: bf16[9,8,8], index: 3, kind: input, shape index: {}]   ;;  %s21047_s2 = inlined_call_operand.vmem [shape: f32[1,8], index: 2, kind: input, shape index: {}]   ;;  %s21048_s7 = inlined_call_operand.vmem [shape: f32[16,15], index: 7, kind: input, shape index: {}]   ;;  %s21049_s4 = inlined_call_operand.vmem [shape: f32[1,8], index: 4, kind: input, shape index: {}]   ;;  %s21050_s5 = inlined_call_operand.vmem [shape: bf16[10,8], index: 5, kind: input, shape index: {}]   ;;  %s21051_s6 = inlined_call_operand.vmem [shape: f32[10,1], index: 6, kind: input, shape index: {}]   ;;  %s21052_s8 = inlined_call_operand.vmem [shape: f32[2,10,256], index: 8, kind: output, shape index: {}]  }
   0x1   :  { %v13016_v0 = vld [vmem:[%s21044_s1 + $0x2] sm:$0x3]  ;;  %v153_v2 = vld [vmem:[%s21045_s0 + $0x9] sm:$0xff]  ;;  %v154_v5 = vld [vmem:[%s21045_s0 + $0x19] sm:$0xff]  ;;  %vm5578_vm4 = vcmask 121856   ;;  %vm5585_vm5 = vcmask 1046528  }
   0x2   :  { %v152_v1 = vld [vmem:[%s21045_s0 + $0x1] sm:$0xff]  ;;  %17334 = vmatprep.subr.msk.bf16.mxu0 %vm251_vm0, %v13016_v0  ;;  %v253_v3 = vsel %vm251_vm0, %v13016_v0, 0  ;;  %v156_v7 = vld [vmem:[%s21045_s0 + $0x31] sm:$0xff]  ;;  %17335 = vmatprep.subr.msk.bf16.mxu1 %vm251_vm0, %v13016_v0  ;;  %v157_v9 = vld [vmem:[%s21045_s0 + $0x39] sm:$0xff]  ;;  %vm17399_vm6 = vmmov 1  }
   0x3   :  { %v184_v4 = vpack.c.bf16 %v153_v2, %v152_v1  ;;  %v155_v6 = vld [vmem:[%s21045_s0 + $0x21] sm:$0xff]  ;;  %14877 = vmatpush3.bf16.msra.mxu0 %v253_v3  ;;  %16309 = vmatpush3.bf16.msra.mxu1 %v253_v3  ;;  %v17473_v10 = vpack.c.bf16 %v157_v9, %v156_v7  ;;  %v158_v11 = vld [vmem:[%s21045_s0 + $0x49] sm:$0xff]  ;;  %v159_v12 = vld [vmem:[%s21045_s0 + $0x51] sm:$0xff] }
   0x4   :  { %v17467_v8 = vpack.c.bf16 %v155_v6, %v154_v5  ;;  %v160_v13 = vld [vmem:[%s21045_s0 + $0x61] sm:$0xff]  ;;  %v161_v14 = vld [vmem:[%s21045_s0 + $0x69] sm:$0xff]  ;;  %v17494_v16 = vpack.c.bf16 %v159_v12, %v158_v11  ;;  %v162_v19 = vld [vmem:[%s21045_s0 + $0x79] sm:$0xff] }
   0x5   :  { %14878 = vmatprep.mubr.msk.bf16.mxu0 %vm202_vm1, %v184_v4  ;;  %v151_v15 = vld [vmem:[%s21044_s1] sm:$0x3]  ;;  %v17498_v18 = vpack.c.bf16 %v161_v14, %v160_v13  ;;  %v164_v21 = vld [vmem:[%s21045_s0 + $0x91] sm:$0xff]  ;;  %v13049_v23 = vld [vmem:[%s21044_s1 + $0x4] sm:$0x3] }
   0x6   :  { %14879 = vmatmul.mubr.msk.bf16.vlgmr.msra.gmra.mrb[0].mxu0 %vm202_vm1, %v17467_v8  ;;  %17336 = vmatprep.subr.msk.bf16.mxu0 %vm251_vm0, %v151_v15  ;;  %v465_v17 = vsel %vm251_vm0, %v151_v15, 0  ;;  %v163_v20 = vld [vmem:[%s21045_s0 + $0x81] sm:$0xff]  ;;  %v165_v22 = vld [vmem:[%s21045_s0 + $0x99] sm:$0xff]  ;;  %v166_v26 = vld [vmem:[%s21045_s0 + $0xa9] sm:$0xff]  ;;  %v727_v50 = vsel %vm251_vm0, %v13049_v23, 0 }
   0x7   :  { %14882 = vmatprep.mubr.msk.bf16.mxu0 %vm202_vm1, %v17473_v10  ;;  %14911 = vmatpush3.bf16.msra.mxu0 %v465_v17  ;;  %v17519_v24 = vpack.c.bf16 %v163_v20, %v162_v19  ;;  %v17522_v25 = vpack.c.bf16 %v165_v22, %v164_v21  ;;  %v167_v27 = vld [vmem:[%s21045_s0 + $0xb1] sm:$0xff]  ;;  %v168_v28 = vld [vmem:[%s21045_s0 + $0xc1] sm:$0xff]  ;;  %v169_v29 = vld [vmem:[%s21045_s0 + $0xc9] sm:$0xff] }
   0x8   :  { %17337 = vmatprep.subr.msk.bf16.mxu0 %vm251_vm0, %v13049_v23  ;;  %v17540_v30 = vpack.c.bf16 %v167_v27, %v166_v26  ;;  %v17542_v31 = vpack.c.bf16 %v169_v29, %v168_v28  ;;  %v170_v32 = vld [vmem:[%s21045_s0 + $0xd9] sm:$0xff]  ;;  %v171_v33 = vld [vmem:[%s21045_s0 + $0xe1] sm:$0xff]  ;;  %v172_v34 = vld [vmem:[%s21045_s0 + $0xf1] sm:$0xff] }
   0x9   :  { %v173_v35 = vld [vmem:[%s21045_s0 + $0xf9] sm:$0xff]  ;;  %v17560_v36 = vpack.c.bf16 %v171_v33, %v170_v32  ;;  %v174_v38 = vld [vmem:[%s21045_s0 + $0x109] sm:$0xff]  ;;  %v175_v39 = vld [vmem:[%s21045_s0 + $0x111] sm:$0xff] }
   0xa   :  { %v17562_v37 = vpack.c.bf16 %v173_v35, %v172_v34  ;;  %v103_v40 = vld [vmem:[%s21045_s0] sm:$0xff]  ;;  %v104_v41 = vld [vmem:[%s21045_s0 + $0x8] sm:$0xff]  ;;  %v17580_v42 = vpack.c.bf16 %v175_v39, %v174_v38  ;;  %v105_v44 = vld [vmem:[%s21045_s0 + $0x18] sm:$0xff] }
   0xb   :  { %v135_v43 = vpack.c.bf16 %v104_v41, %v103_v40  ;;  %v106_v45 = vld [vmem:[%s21045_s0 + $0x20] sm:$0xff]  ;;  %v107_v46 = vld [vmem:[%s21045_s0 + $0x30] sm:$0xff]  ;;  %v108_v47 = vld [vmem:[%s21045_s0 + $0x38] sm:$0xff] }
   0xc   :  { %v17597_v48 = vpack.c.bf16 %v106_v45, %v105_v44  ;;  %v17599_v49 = vpack.c.bf16 %v108_v47, %v107_v46  ;;  %v17605_v51 = vld [vmem:[%s21044_s1 + $0x6] sm:$0x3]  ;;  %v109_v52 = vld [vmem:[%s21045_s0 + $0x48] sm:$0xff]  ;;  %v110_v53 = vld [vmem:[%s21045_s0 + $0x50] sm:$0xff] }
   0xd   :  { %v111_v54 = vld [vmem:[%s21045_s0 + $0x60] sm:$0xff]  ;;  %v112_v55 = vld [vmem:[%s21045_s0 + $0x68] sm:$0xff]  ;;  %v17625_v56 = vpack.c.bf16 %v110_v53, %v109_v52  ;;  %v113_v58 = vld [vmem:[%s21045_s0 + $0x78] sm:$0xff]  ;;  %v1022_v47 = vsel %vm251_vm0, %v17605_v51, 0 }
   0xe   :  { %14883 = vmatmul.mubr.msk.bf16.gmra.mrb[4].mxu0 %vm202_vm1, %v17494_v16  ;;  %v17627_v57 = vpack.c.bf16 %v112_v55, %v111_v54  ;;  %v114_v59 = vld [vmem:[%s21045_s0 + $0x80] sm:$0xff]  ;;  %v115_v60 = vld [vmem:[%s21045_s0 + $0x90] sm:$0xff]  ;;  %v116_v61 = vld [vmem:[%s21045_s0 + $0x98] sm:$0xff] }
   0xf   :  { %14886 = vmatprep.mubr.msk.bf16.mxu0 %vm202_vm1, %v17498_v18  ;;  %v17645_v62 = vpack.c.bf16 %v114_v59, %v113_v58  ;;  %v17647_v63 = vpack.c.bf16 %v116_v61, %v115_v60  ;;  %v117_v0 = vld [vmem:[%s21045_s0 + $0xa8] sm:$0xff]  ;;  %v118_v1 = vld [vmem:[%s21045_s0 + $0xb0] sm:$0xff]  ;;  %v119_v2 = vld [vmem:[%s21045_s0 + $0xc0] sm:$0xff] }
  0x10   :  { %v120_v3 = vld [vmem:[%s21045_s0 + $0xc8] sm:$0xff]  ;;  %v17665_v4 = vpack.c.bf16 %v118_v1, %v117_v0  ;;  %v121_v6 = vld [vmem:[%s21045_s0 + $0xd8] sm:$0xff]  ;;  %v122_v7 = vld [vmem:[%s21045_s0 + $0xe0] sm:$0xff] }
  0x11   :  { %v17667_v5 = vpack.c.bf16 %v120_v3, %v119_v2  ;;  %v123_v9 = vld [vmem:[%s21045_s0 + $0xf0] sm:$0xff]  ;;  %v124_v11 = vld [vmem:[%s21045_s0 + $0xf8] sm:$0xff]  ;;  %v17685_v12 = vpack.c.bf16 %v122_v7, %v121_v6  ;;  %v125_v14 = vld [vmem:[%s21045_s0 + $0x108] sm:$0xff] }
  0x12   :  { %v17687_v13 = vpack.c.bf16 %v124_v11, %v123_v9  ;;  %v126_v15 = vld [vmem:[%s21045_s0 + $0x110] sm:$0xff]  ;;  %v127_v17 = vld [vmem:[%s21045_s0 + $0x120] sm:$0xff]  ;;  %v128_v19 = vld [vmem:[%s21045_s0 + $0x128] sm:$0xff] }
  0x13   :  { %v17705_v20 = vpack.c.bf16 %v126_v15, %v125_v14  ;;  %v17707_v21 = vpack.c.bf16 %v128_v19, %v127_v17  ;;  %v129_v22 = vld [vmem:[%s21045_s0 + $0x138] sm:$0xff]  ;;  %v130_v23 = vld [vmem:[%s21045_s0 + $0x140] sm:$0xff]  ;;  %v131_v26 = vld [vmem:[%s21045_s0 + $0x150] sm:$0xff] }
  0x14   :  { %v132_v27 = vld [vmem:[%s21045_s0 + $0x158] sm:$0xff]  ;;  %v17725_v28 = vpack.c.bf16 %v130_v23, %v129_v22  ;;  %v133_v32 = vld [vmem:[%s21045_s0 + $0x168] sm:$0xff]  ;;  %v134_v33 = vld [vmem:[%s21045_s0 + $0x170] sm:$0xff] }
  0x15   :  { %v17727_v29 = vpack.c.bf16 %v132_v27, %v131_v26  ;;  %v628_v34 = vld [vmem:[%s21045_s0 + $0x2] sm:$0xff]  ;;  %v629_v35 = vld [vmem:[%s21045_s0 + $0xa] sm:$0xff]  ;;  %v17745_v38 = vpack.c.bf16 %v134_v33, %v133_v32  ;;  %v630_v40 = vld [vmem:[%s21045_s0 + $0x1a] sm:$0xff] }
  0x16   :  { %14887 = vmatmul.mubr.msk.bf16.gmra.mrb[8].mxu0 %vm202_vm1, %v17519_v24  ;;  %v660_v39 = vpack.c.bf16 %v629_v35, %v628_v34  ;;  %v631_v41 = vld [vmem:[%s21045_s0 + $0x22] sm:$0xff]  ;;  %v633_v44 = vld [vmem:[%s21045_s0 + $0x3a] sm:$0xff]  ;;  %v634_v52 = vld [vmem:[%s21045_s0 + $0x4a] sm:$0xff] }
  0x17   :  { %14890 = vmatprep.mubr.msk.bf16.mxu0 %vm202_vm1, %v17522_v25  ;;  %v17762_v45 = vpack.c.bf16 %v631_v41, %v630_v40  ;;  %v635_v53 = vld [vmem:[%s21045_s0 + $0x52] sm:$0xff]  ;;  %v637_v54 = vld [vmem:[%s21045_s0 + $0x6a] sm:$0xff]  ;;  %v638_v59 = vld [vmem:[%s21045_s0 + $0x7a] sm:$0xff] }
  0x18   :  { %v17791_v55 = vpack.c.bf16 %v635_v53, %v634_v52  ;;  %v639_v60 = vld [vmem:[%s21045_s0 + $0x82] sm:$0xff]  ;;  %v640_v61 = vld [vmem:[%s21045_s0 + $0x92] sm:$0xff]  ;;  %v641_v0 = vld [vmem:[%s21045_s0 + $0x9a] sm:$0xff] }
  0x19   :  { %v17811_v1 = vpack.c.bf16 %v639_v60, %v638_v59  ;;  %v17813_v2 = vpack.c.bf16 %v641_v0, %v640_v61  ;;  %v642_v3 = vld [vmem:[%s21045_s0 + $0xaa] sm:$0xff]  ;;  %v643_v6 = vld [vmem:[%s21045_s0 + $0xb2] sm:$0xff]  ;;  %v644_v7 = vld [vmem:[%s21045_s0 + $0xc2] sm:$0xff] }
  0x1a   :  { %v645_v9 = vld [vmem:[%s21045_s0 + $0xca] sm:$0xff]  ;;  %v17831_v11 = vpack.c.bf16 %v643_v6, %v642_v3  ;;  %v646_v15 = vld [vmem:[%s21045_s0 + $0xda] sm:$0xff]  ;;  %v647_v17 = vld [vmem:[%s21045_s0 + $0xe2] sm:$0xff] }
  0x1b   :  { %v17833_v14 = vpack.c.bf16 %v645_v9, %v644_v7  ;;  %v648_v19 = vld [vmem:[%s21045_s0 + $0xf2] sm:$0xff]  ;;  %v649_v22 = vld [vmem:[%s21045_s0 + $0xfa] sm:$0xff]  ;;  %v17851_v23 = vpack.c.bf16 %v647_v17, %v646_v15  ;;  %v650_v27 = vld [vmem:[%s21045_s0 + $0x10a] sm:$0xff] }
  0x1c   :  { %v17853_v26 = vpack.c.bf16 %v649_v22, %v648_v19  ;;  %v651_v32 = vld [vmem:[%s21045_s0 + $0x112] sm:$0xff]  ;;  %v13137_v33 = vld [vmem:[%s21045_s0 + $0x121] sm:$0xff]  ;;  %v13138_v34 = vld [vmem:[%s21045_s0 + $0x129] sm:$0xff] }
  0x1d   :  { %v652_v35 = vld [vmem:[%s21045_s0 + $0x122] sm:$0xff]  ;;  %v17877_v40 = vpack.c.bf16 %v13138_v34, %v13137_v33  ;;  %v17879_v41 = vpack.c.bf16 %v651_v32, %v650_v27  ;;  %v13142_v59 = vld [vmem:[%s21045_s0 + $0x159] sm:$0xff]  ;;  %v13144_v9 = vld [vmem:[%s21045_s0 + $0x171] sm:$0xff] }
  0x1e   :  { %14891 = vmatmul.mubr.msk.bf16.gmra.mrb[12].mxu0 %vm202_vm1, %v17540_v30  ;;  %v13140_v52 = vld [vmem:[%s21045_s0 + $0x141] sm:$0xff]  ;;  %v656_v60 = vld [vmem:[%s21045_s0 + $0x152] sm:$0xff]  ;;  %v13143_v7 = vld [vmem:[%s21045_s0 + $0x169] sm:$0xff] }
  0x1f   :  { %14894 = vmatprep.mubr.msk.bf16.mxu0 %vm202_vm1, %v17542_v31  ;;  %14902 = vmatprep.mubr.msk.bf16.mxu1 %vm202_vm1, %v17877_v40  ;;  %v655_v53 = vld [vmem:[%s21045_s0 + $0x142] sm:$0xff]  ;;  %v657_v61 = vld [vmem:[%s21045_s0 + $0x15a] sm:$0xff]  ;;  %v658_v15 = vld [vmem:[%s21045_s0 + $0x16a] sm:$0xff]  ;;  %v17941_v19 = vpack.c.bf16 %v13144_v9, %v13143_v7 }
  0x20   :  { %v17923_v6 = vpack.c.bf16 %v657_v61, %v656_v60  ;;  %v659_v17 = vld [vmem:[%s21045_s0 + $0x172] sm:$0xff]  ;;  %v13196_v32 = vld [vmem:[%s21044_s1 + $0xa] sm:$0x3]  ;;  %v18091_v60 = vld [vmem:[%s21044_s1 + $0x10] sm:$0x3] }
  0x21   :  { %v17945_v22 = vpack.c.bf16 %v659_v17, %v658_v15  ;;  %v1610_v34 = vsel %vm251_vm0, %v13196_v32, 0  ;;  %vm18996_vm7 = vmpackc.low %vm5585_vm5, %vm17399_vm6 }
  0x26   :  { %14895 = vmatmul.mubr.msk.bf16.gmra.mrb[16].mxu0 %vm202_vm1, %v17560_v36 }
  0x27   :  { %14898 = vmatprep.mubr.msk.bf16.mxu0 %vm202_vm1, %v17562_v37 }
  0x2e   :  { %14899 = vmatmul.mubr.msk.bf16.gmra.mrb[20].mxu0 %vm202_vm1, %v17580_v42 }
  0x2f   :  { %14912 = vmatprep.mubr.msk.bf16.mxu0 %vm202_vm1, %v135_v43  ;;  %v632_v43 = vld [vmem:[%s21045_s0 + $0x32] sm:$0xff] }
  0x30   :  { %v17764_v46 = vpack.c.bf16 %v633_v44, %v632_v43  ;;  %v654_v44 = vld [vmem:[%s21045_s0 + $0x13a] sm:$0xff] }
  0x31   :  { %v17919_v3 = vpack.c.bf16 %v655_v53, %v654_v44  ;;  %v13195_v53 = vld [vmem:[%s21045_s0 + $0x18a] sm:$0xff] }
  0x36   :  { %14913 = vmatmul.mubr.msk.bf16.vlgmr.msra.gmra.mrb[0].mxu0 %vm202_vm1, %v17597_v48 }
  0x37   :  { %14916 = vmatprep.mubr.msk.bf16.mxu0 %vm202_vm1, %v17599_v49  ;;  %14945 = vmatpush3.bf16.msra.mxu0 %v727_v50  ;;  %v17771_v50 = vld [vmem:[%s21044_s1 + $0x8] sm:$0x3] }
  0x38   :  { %17338 = vmatprep.subr.msk.bf16.mxu0 %vm251_vm0, %v17605_v51  ;;  %v636_v51 = vld [vmem:[%s21045_s0 + $0x62] sm:$0xff]  ;;  %v1316_v27 = vsel %vm251_vm0, %v17771_v50, 0 }
  0x39   :  { %v17793_v58 = vpack.c.bf16 %v637_v54, %v636_v51  ;;  %v13141_v54 = vld [vmem:[%s21045_s0 + $0x151] sm:$0xff] }
  0x3a   :  { %v17915_v0 = vpack.c.bf16 %v13142_v59, %v13141_v54 }
  0x3e   :  { %14917 = vmatmul.mubr.msk.bf16.gmra.mrb[4].mxu0 %vm202_vm1, %v17625_v56 }
  0x3f   :  { %14920 = vmatprep.mubr.msk.bf16.mxu0 %vm202_vm1, %v17627_v57 }
  0x46   :  { %14921 = vmatmul.mubr.msk.bf16.gmra.mrb[8].mxu0 %vm202_vm1, %v17645_v62 }
  0x47   :  { %14924 = vmatprep.mubr.msk.bf16.mxu0 %vm202_vm1, %v17647_v63 }
  0x4e   :  { %14925 = vmatmul.mubr.msk.bf16.gmra.mrb[12].mxu0 %vm202_vm1, %v17665_v4 }
  0x4f   :  { %14928 = vmatprep.mubr.msk.bf16.mxu0 %vm202_vm1, %v17667_v5 }
  0x56   :  { %14929 = vmatmul.mubr.msk.bf16.gmra.mrb[16].mxu0 %vm202_vm1, %v17685_v12 }
  0x57   :  { %14932 = vmatprep.mubr.msk.bf16.mxu0 %vm202_vm1, %v17687_v13 }
  0x5e   :  { %14933 = vmatmul.mubr.msk.bf16.gmra.mrb[20].mxu0 %vm202_vm1, %v17705_v20 }
  0x5f   :  { %14936 = vmatprep.mubr.msk.bf16.mxu0 %vm202_vm1, %v17707_v21 }
  0x66   :  { %14937 = vmatmul.mubr.msk.bf16.gmra.mrb[24].mxu0 %vm202_vm1, %v17725_v28 }
  0x67   :  { %14940 = vmatprep.mubr.msk.bf16.mxu0 %vm202_vm1, %v17727_v29 }
  0x6e   :  { %14941 = vmatmul.mubr.msk.bf16.gmra.mrb[28].mxu0 %vm202_vm1, %v17745_v38 }
  0x6f   :  { %14946 = vmatprep.mubr.msk.bf16.mxu0 %vm202_vm1, %v660_v39  ;;  %v653_v39 = vld [vmem:[%s21045_s0 + $0x12a] sm:$0xff] }
  0x70   :  { %v17883_v43 = vpack.c.bf16 %v653_v39, %v652_v35  ;;  %v13245_v35 = vld [vmem:[%s21044_s1 + $0xc] sm:$0x3] }
  0x71   :  { %v13146_v39 = vld [vmem:[%s21045_s0 + $0x189] sm:$0xff] }
  0x76   :  { %14947 = vmatmul.mubr.msk.bf16.vlgmr.msra.gmra.mrb[0].mxu0 %vm202_vm1, %v17762_v45 }
  0x77   :  { %14950 = vmatprep.mubr.msk.bf16.mxu0 %vm202_vm1, %v17764_v46  ;;  %14979 = vmatpush3.bf16.msra.mxu0 %v1022_v47  ;;  %v13139_v47 = vld [vmem:[%s21045_s0 + $0x139] sm:$0xff] }
  0x78   :  { %17339 = vmatprep.subr.msk.bf16.mxu0 %vm251_vm0, %v17771_v50  ;;  %v17901_v51 = vpack.c.bf16 %v13140_v52, %v13139_v47  ;;  %v13097_v50 = vld [vmem:[%s21045_s0 + $0x188] sm:$0xff]  ;;  %v1905_v47 = vsel %vm251_vm0, %v13245_v35, 0 }
  0x79   :  { %v13294_v52 = vld [vmem:[%s21044_s1 + $0xe] sm:$0x3] }
  0x7a   :  { %14903 = vmatmul.mubr.msk.bf16.vlgmr.msra.gmra.mrb[0].mxu1 %vm202_vm1, %v17901_v51  ;;  %v2199_v59 = vsel %vm251_vm0, %v13294_v52, 0 }
  0x7b   :  { %14906 = vmatprep.mubr.msk.bf16.mxu1 %vm202_vm1, %v17915_v0 }
  0x7e   :  { %14951 = vmatmul.mubr.msk.bf16.gmra.mrb[4].mxu0 %vm202_vm1, %v17791_v55 }
  0x7f   :  { %14954 = vmatprep.mubr.msk.bf16.mxu0 %vm202_vm1, %v17793_v58 }
  0x82   :  { %14907 = vmatmul.mubr.msk.bf16.gmra.mrb[4].mxu1 %vm202_vm1, %v17941_v19 }
  0x86   :  { %14955 = vmatmul.mubr.msk.bf16.gmra.mrb[8].mxu0 %vm202_vm1, %v17811_v1 }
  0x87   :  { %14958 = vmatprep.mubr.msk.bf16.mxu0 %vm202_vm1, %v17813_v2 }
  0x8e   :  { %14959 = vmatmul.mubr.msk.bf16.gmra.mrb[12].mxu0 %vm202_vm1, %v17831_v11 }
  0x8f   :  { %14962 = vmatprep.mubr.msk.bf16.mxu0 %vm202_vm1, %v17833_v14 }
  0x96   :  { %14963 = vmatmul.mubr.msk.bf16.gmra.mrb[16].mxu0 %vm202_vm1, %v17851_v23 }
  0x97   :  { %14966 = vmatprep.mubr.msk.bf16.mxu0 %vm202_vm1, %v17853_v26 }
  0x9e   :  { %14967 = vmatmul.mubr.msk.bf16.gmra.mrb[20].mxu0 %vm202_vm1, %v17879_v41 }
  0x9f   :  { %14970 = vmatprep.mubr.msk.bf16.mxu0 %vm202_vm1, %v17883_v43 }
  0xa6   :  { %14971 = vmatmul.mubr.msk.bf16.gmra.mrb[24].mxu0 %vm202_vm1, %v17919_v3 }
  0xa7   :  { %14974 = vmatprep.mubr.msk.bf16.mxu0 %vm202_vm1, %v17923_v6 }
  0xae   :  { %14975 = vmatmul.mubr.msk.bf16.gmra.mrb[28].mxu0 %vm202_vm1, %v17945_v22 }
  0xaf   :  { %14980 = vmatprep.mubr.msk.bf16.mxu0 %vm202_vm1, %v17597_v48  ;;  %v13096_v48 = vld [vmem:[%s21045_s0 + $0x180] sm:$0xff] }
  0xb0   :  { %v17991_v33 = vpack.c.bf16 %v13097_v50, %v13096_v48 }
  0xb6   :  { %14981 = vmatmul.mubr.msk.bf16.vlgmr.msra.gmra.mrb[0].mxu0 %vm202_vm1, %v17599_v49 }
  0xb7   :  { %14984 = vmatprep.mubr.msk.bf16.mxu0 %vm202_vm1, %v17625_v56  ;;  %15013 = vmatpush3.bf16.msra.mxu0 %v1316_v27 }
  0xb8   :  { %17340 = vmatprep.subr.msk.bf16.mxu0 %vm251_vm0, %v13196_v32 }
  0xbe   :  { %14985 = vmatmul.mubr.msk.bf16.gmra.mrb[4].mxu0 %vm202_vm1, %v17627_v57 }
  0xbf   :  { %14988 = vmatprep.mubr.msk.bf16.mxu0 %vm202_vm1, %v17645_v62 }
  0xc6   :  { %14989 = vmatmul.mubr.msk.bf16.gmra.mrb[8].mxu0 %vm202_vm1, %v17647_v63 }
  0xc7   :  { %14992 = vmatprep.mubr.msk.bf16.mxu0 %vm202_vm1, %v17665_v4 }
  0xce   :  { %14993 = vmatmul.mubr.msk.bf16.gmra.mrb[12].mxu0 %vm202_vm1, %v17667_v5 }
  0xcf   :  { %14996 = vmatprep.mubr.msk.bf16.mxu0 %vm202_vm1, %v17685_v12 }
  0xd6   :  { %14997 = vmatmul.mubr.msk.bf16.gmra.mrb[16].mxu0 %vm202_vm1, %v17687_v13 }
  0xd7   :  { %15000 = vmatprep.mubr.msk.bf16.mxu0 %vm202_vm1, %v17705_v20 }
  0xde   :  { %15001 = vmatmul.mubr.msk.bf16.gmra.mrb[20].mxu0 %vm202_vm1, %v17707_v21 }
  0xdf   :  { %15004 = vmatprep.mubr.msk.bf16.mxu0 %vm202_vm1, %v17725_v28 }
  0xe6   :  { %15005 = vmatmul.mubr.msk.bf16.gmra.mrb[24].mxu0 %vm202_vm1, %v17727_v29 }
  0xe7   :  { %15008 = vmatprep.mubr.msk.bf16.mxu0 %vm202_vm1, %v17745_v38 }
  0xee   :  { %15009 = vmatmul.mubr.msk.bf16.gmra.mrb[28].mxu0 %vm202_vm1, %v17991_v33 }
  0xef   :  { %15014 = vmatprep.mubr.msk.bf16.mxu0 %vm202_vm1, %v17467_v8  ;;  %v13145_v8 = vld [vmem:[%s21045_s0 + $0x181] sm:$0xff] }
  0xf0   :  { %v18036_v44 = vpack.c.bf16 %v13146_v39, %v13145_v8 }
  0xf6   :  { %15015 = vmatmul.mubr.msk.bf16.vlgmr.msra.gmra.mrb[0].mxu0 %vm202_vm1, %v17473_v10 }
  0xf7   :  { %15018 = vmatprep.mubr.msk.bf16.mxu0 %vm202_vm1, %v17494_v16  ;;  %15047 = vmatpush3.bf16.msra.mxu0 %v1610_v34 }
  0xf8   :  { %17341 = vmatprep.subr.msk.bf16.mxu0 %vm251_vm0, %v13245_v35 }
  0xfe   :  { %15019 = vmatmul.mubr.msk.bf16.gmra.mrb[4].mxu0 %vm202_vm1, %v17498_v18 }
  0xff   :  { %15022 = vmatprep.mubr.msk.bf16.mxu0 %vm202_vm1, %v17519_v24 }
 0x106   :  { %15023 = vmatmul.mubr.msk.bf16.gmra.mrb[8].mxu0 %vm202_vm1, %v17522_v25 }
 0x107   :  { %15026 = vmatprep.mubr.msk.bf16.mxu0 %vm202_vm1, %v17540_v30 }
 0x10e   :  { %15027 = vmatmul.mubr.msk.bf16.gmra.mrb[12].mxu0 %vm202_vm1, %v17542_v31 }
 0x10f   :  { %15030 = vmatprep.mubr.msk.bf16.mxu0 %vm202_vm1, %v17560_v36 }
 0x116   :  { %15031 = vmatmul.mubr.msk.bf16.gmra.mrb[16].mxu0 %vm202_vm1, %v17562_v37 }
 0x117   :  { %15034 = vmatprep.mubr.msk.bf16.mxu0 %vm202_vm1, %v17580_v42 }
 0x11e   :  { %15035 = vmatmul.mubr.msk.bf16.gmra.mrb[20].mxu0 %vm202_vm1, %v17877_v40 }
 0x11f   :  { %15038 = vmatprep.mubr.msk.bf16.mxu0 %vm202_vm1, %v17901_v51 }
 0x126   :  { %15039 = vmatmul.mubr.msk.bf16.gmra.mrb[24].mxu0 %vm202_vm1, %v17915_v0 }
 0x127   :  { %15042 = vmatprep.mubr.msk.bf16.mxu0 %vm202_vm1, %v17941_v19 }
 0x12e   :  { %15043 = vmatmul.mubr.msk.bf16.gmra.mrb[28].mxu0 %vm202_vm1, %v18036_v44 }
 0x12f   :  { %15048 = vmatprep.mubr.msk.bf16.mxu0 %vm202_vm1, %v17762_v45  ;;  %v13194_v45 = vld [vmem:[%s21045_s0 + $0x182] sm:$0xff] }
 0x130   :  { %v18081_v54 = vpack.c.bf16 %v13195_v53, %v13194_v45  ;;  %v18432_v53 = vld [vmem:[%s21046_s3 + $0x8] sm:$0xf] }
 0x136   :  { %15049 = vmatmul.mubr.msk.bf16.vlgmr.msra.gmra.mrb[0].mxu0 %vm202_vm1, %v17764_v46 }
 0x137   :  { %15052 = vmatprep.mubr.msk.bf16.mxu0 %vm202_vm1, %v17791_v55  ;;  %15081 = vmatpush3.bf16.msra.mxu0 %v1905_v47 }
 0x138   :  { %17342 = vmatprep.subr.msk.bf16.mxu0 %vm251_vm0, %v13294_v52 }
 0x13e   :  { %15053 = vmatmul.mubr.msk.bf16.gmra.mrb[4].mxu0 %vm202_vm1, %v17793_v58 }
 0x13f   :  { %15056 = vmatprep.mubr.msk.bf16.mxu0 %vm202_vm1, %v17811_v1 }
 0x146   :  { %15057 = vmatmul.mubr.msk.bf16.gmra.mrb[8].mxu0 %vm202_vm1, %v17813_v2 }
 0x147   :  { %15060 = vmatprep.mubr.msk.bf16.mxu0 %vm202_vm1, %v17831_v11 }
 0x14e   :  { %15061 = vmatmul.mubr.msk.bf16.gmra.mrb[12].mxu0 %vm202_vm1, %v17833_v14 }
 0x14f   :  { %15064 = vmatprep.mubr.msk.bf16.mxu0 %vm202_vm1, %v17851_v23 }
 0x156   :  { %15065 = vmatmul.mubr.msk.bf16.gmra.mrb[16].mxu0 %vm202_vm1, %v17853_v26 }
 0x157   :  { %15068 = vmatprep.mubr.msk.bf16.mxu0 %vm202_vm1, %v17879_v41 }
 0x15e   :  { %15069 = vmatmul.mubr.msk.bf16.gmra.mrb[20].mxu0 %vm202_vm1, %v17883_v43 }
 0x15f   :  { %15072 = vmatprep.mubr.msk.bf16.mxu0 %vm202_vm1, %v17919_v3 }
 0x166   :  { %15073 = vmatmul.mubr.msk.bf16.gmra.mrb[24].mxu0 %vm202_vm1, %v17923_v6 }
 0x167   :  { %15076 = vmatprep.mubr.msk.bf16.mxu0 %vm202_vm1, %v17945_v22 }
 0x16e   :  { %15077 = vmatmul.mubr.msk.bf16.gmra.mrb[28].mxu0 %vm202_vm1, %v18081_v54 }
 0x16f   :  { %15082 = vmatprep.mubr.msk.bf16.mxu0 %vm202_vm1, %v17599_v49  ;;  %v13243_v49 = vld [vmem:[%s21045_s0 + $0x198] sm:$0xff] }
 0x176   :  { %15083 = vmatmul.mubr.msk.bf16.vlgmr.msra.gmra.mrb[0].mxu0 %vm202_vm1, %v17625_v56  ;;  %v13244_v56 = vld [vmem:[%s21045_s0 + $0x1a0] sm:$0xff] }
 0x177   :  { %15086 = vmatprep.mubr.msk.bf16.mxu0 %vm202_vm1, %v17627_v57  ;;  %15115 = vmatpush3.bf16.msra.mxu0 %v2199_v59  ;;  %v1853_v57 = vpack.c.bf16 %v13244_v56, %v13243_v49 }
 0x178   :  { %17343 = vmatprep.subr.msk.bf16.mxu0 %vm251_vm0, %v18091_v60 }
 0x17e   :  { %15087 = vmatmul.mubr.msk.bf16.gmra.mrb[4].mxu0 %vm202_vm1, %v17645_v62  ;;  %v17398_v62 = vmov 0.0  }
 0x17f   :  { %15090 = vmatprep.mubr.msk.bf16.mxu0 %vm202_vm1, %v17647_v63  ;;  %40 = vst.msk [vmem:[#allocation2 + $0x48] sm:$0xff] %vm30_vm2, %v17398_v62  ;;  %31 = vst.msk [vmem:[#allocation2] sm:$0xff] %vm30_vm2, %v17398_v62 }
 0x180   :  { %32 = vst.msk [vmem:[#allocation2 + $0x8] sm:$0xff] %vm30_vm2, %v17398_v62  ;;  %33 = vst.msk [vmem:[#allocation2 + $0x10] sm:$0xff] %vm30_vm2, %v17398_v62 }
 0x181   :  { %34 = vst.msk [vmem:[#allocation2 + $0x18] sm:$0xff] %vm30_vm2, %v17398_v62  ;;  %35 = vst.msk [vmem:[#allocation2 + $0x20] sm:$0xff] %vm30_vm2, %v17398_v62 }
 0x182   :  { %36 = vst.msk [vmem:[#allocation2 + $0x28] sm:$0xff] %vm30_vm2, %v17398_v62  ;;  %37 = vst.msk [vmem:[#allocation2 + $0x30] sm:$0xff] %vm30_vm2, %v17398_v62 }
 0x183   :  { %38 = vst.msk [vmem:[#allocation2 + $0x38] sm:$0xff] %vm30_vm2, %v17398_v62  ;;  %39 = vst.msk [vmem:[#allocation2 + $0x40] sm:$0xff] %vm30_vm2, %v17398_v62 }
 0x184   :  { %41 = vst.msk [vmem:[#allocation2 + $0x50] sm:$0xff] %vm30_vm2, %v17398_v62  ;;  %42 = vst.msk [vmem:[#allocation2 + $0x58] sm:$0xff] %vm30_vm2, %v17398_v62 }
 0x185   :  { %43 = vst.msk [vmem:[#allocation2 + $0x60] sm:$0xff] %vm30_vm2, %v17398_v62  ;;  %44 = vst.msk [vmem:[#allocation2 + $0x68] sm:$0xff] %vm30_vm2, %v17398_v62 }
 0x186   :  { %15091 = vmatmul.mubr.msk.bf16.gmra.mrb[8].mxu0 %vm202_vm1, %v17665_v4  ;;  %45 = vst.msk [vmem:[#allocation2 + $0x70] sm:$0xff] %vm30_vm2, %v17398_v62  ;;  %46 = vst.msk [vmem:[#allocation2 + $0x78] sm:$0xff] %vm30_vm2, %v17398_v62 }
 0x187   :  { %15094 = vmatprep.mubr.msk.bf16.mxu0 %vm202_vm1, %v17667_v5  ;;  %47 = vst.msk [vmem:[#allocation2 + $0x80] sm:$0xff] %vm30_vm2, %v17398_v62  ;;  %48 = vst.msk [vmem:[#allocation2 + $0x88] sm:$0xff] %vm30_vm2, %v17398_v62  ;;  %v2842_v63 = vld [vmem:[#allocation2 + $0x10] sm:$0xff]  ;;  %v18356_v5 = vpop.f32.mrb[0].mxu1 }
 0x188   :  { %49 = vst.msk [vmem:[#allocation2 + $0x90] sm:$0xff] %vm30_vm2, %v17398_v62  ;;  %50 = vst.msk [vmem:[#allocation2 + $0x98] sm:$0xff] %vm30_vm2, %v17398_v62 }
 0x189   :  { %51 = vst.msk [vmem:[#allocation2 + $0xa0] sm:$0xff] %vm30_vm2, %v17398_v62  ;;  %52 = vst.msk [vmem:[#allocation2 + $0xa8] sm:$0xff] %vm30_vm2, %v17398_v62 }
 0x18a   :  { %53 = vst.msk [vmem:[#allocation2 + $0xb0] sm:$0xff] %vm30_vm2, %v17398_v62  ;;  %54 = vst.msk [vmem:[#allocation2 + $0xb8] sm:$0xff] %vm30_vm2, %v17398_v62 }
 0x18b   :  { %55 = vst.msk [vmem:[#allocation2 + $0xc0] sm:$0xff] %vm30_vm2, %v17398_v62  ;;  %56 = vst.msk [vmem:[#allocation2 + $0xc8] sm:$0xff] %vm30_vm2, %v17398_v62 }
 0x18c   :  { %57 = vst.msk [vmem:[#allocation2 + $0xd0] sm:$0xff] %vm30_vm2, %v17398_v62  ;;  %58 = vst.msk [vmem:[#allocation2 + $0xd8] sm:$0xff] %vm30_vm2, %v17398_v62 }
 0x18d   :  { %59 = vst.msk [vmem:[#allocation2 + $0xe0] sm:$0xff] %vm30_vm2, %v17398_v62  ;;  %60 = vst.msk [vmem:[#allocation2 + $0xe8] sm:$0xff] %vm30_vm2, %v17398_v62 }
 0x18e   :  { %15095 = vmatmul.mubr.msk.bf16.gmra.mrb[12].mxu0 %vm202_vm1, %v17685_v12  ;;  %61 = vst.msk [vmem:[#allocation2 + $0xf0] sm:$0xff] %vm30_vm2, %v17398_v62  ;;  %62 = vst.msk [vmem:[#allocation2 + $0xf8] sm:$0xff] %vm30_vm2, %v17398_v62  ;;  %v18358_v12 = vpop.f32.mrb[1].mxu1 }
 0x18f   :  { %15098 = vmatprep.mubr.msk.bf16.mxu0 %vm202_vm1, %v17687_v13  ;;  %63 = vst.msk [vmem:[#allocation2 + $0x100] sm:$0xff] %vm30_vm2, %v17398_v62  ;;  %64 = vst.msk [vmem:[#allocation2 + $0x108] sm:$0xff] %vm30_vm2, %v17398_v62  ;;  %v18360_v13 = vpop.f32.mrb[2].mxu1 }
 0x190   :  { %65 = vst.msk [vmem:[#allocation2 + $0x110] sm:$0xff] %vm30_vm2, %v17398_v62  ;;  %66 = vst.msk [vmem:[#allocation2 + $0x118] sm:$0xff] %vm30_vm2, %v17398_v62 }
 0x191   :  { %67 = vst.msk [vmem:[#allocation2 + $0x120] sm:$0xff] %vm30_vm2, %v17398_v62  ;;  %68 = vst.msk [vmem:[#allocation2 + $0x128] sm:$0xff] %vm30_vm2, %v17398_v62 }
 0x192   :  { %69 = vst.msk [vmem:[#allocation2 + $0x130] sm:$0xff] %vm30_vm2, %v17398_v62  ;;  %70 = vst.msk [vmem:[#allocation2 + $0x138] sm:$0xff] %vm30_vm2, %v17398_v62 }
 0x193   :  { %71 = vst.msk [vmem:[#allocation2 + $0x140] sm:$0xff] %vm30_vm2, %v17398_v62  ;;  %72 = vst.msk [vmem:[#allocation2 + $0x148] sm:$0xff] %vm30_vm2, %v17398_v62 }
 0x194   :  { %73 = vst.msk [vmem:[#allocation2 + $0x150] sm:$0xff] %vm30_vm2, %v17398_v62  ;;  %74 = vst.msk [vmem:[#allocation2 + $0x158] sm:$0xff] %vm30_vm2, %v17398_v62 }
 0x195   :  { %75 = vst.msk [vmem:[#allocation2 + $0x160] sm:$0xff] %vm30_vm2, %v17398_v62  ;;  %76 = vst.msk [vmem:[#allocation2 + $0x168] sm:$0xff] %vm30_vm2, %v17398_v62 }
 0x196   :  { %15099 = vmatmul.mubr.msk.bf16.gmra.mrb[16].mxu0 %vm202_vm1, %v17705_v20  ;;  %77 = vst.msk [vmem:[#allocation2 + $0x170] sm:$0xff] %vm30_vm2, %v17398_v62  ;;  %78 = vst.msk [vmem:[#allocation2 + $0x178] sm:$0xff] %vm30_vm2, %v17398_v62  ;;  %v18362_v20 = vpop.f32.mrb[3].mxu1 }
 0x197   :  { %15102 = vmatprep.mubr.msk.bf16.mxu0 %vm202_vm1, %v17707_v21  ;;  %79 = vst.msk [vmem:[#allocation2 + $0x180] sm:$0xff] %vm30_vm2, %v17398_v62  ;;  %80 = vst.msk [vmem:[#allocation2 + $0x188] sm:$0xff] %vm30_vm2, %v17398_v62  ;;  %v18364_v21 = vpop.f32.mrb[4].mxu1 }
 0x198   :  { %81 = vst.msk [vmem:[#allocation2 + $0x190] sm:$0xff] %vm30_vm2, %v17398_v62  ;;  %82 = vst.msk [vmem:[#allocation2 + $0x198] sm:$0xff] %vm30_vm2, %v17398_v62 }
 0x199   :  { %83 = vst.msk [vmem:[#allocation2 + $0x1a0] sm:$0xff] %vm30_vm2, %v17398_v62  ;;  %84 = vst.msk [vmem:[#allocation2 + $0x1a8] sm:$0xff] %vm30_vm2, %v17398_v62 }
 0x19a   :  { %85 = vst.msk [vmem:[#allocation2 + $0x1b0] sm:$0xff] %vm30_vm2, %v17398_v62  ;;  %86 = vst.msk [vmem:[#allocation2 + $0x1b8] sm:$0xff] %vm30_vm2, %v17398_v62 }
 0x19b   :  { %87 = vst.msk [vmem:[#allocation2 + $0x1c0] sm:$0xff] %vm30_vm2, %v17398_v62  ;;  %88 = vst.msk [vmem:[#allocation2 + $0x1c8] sm:$0xff] %vm30_vm2, %v17398_v62 }
 0x19c   :  { %89 = vst.msk [vmem:[#allocation2 + $0x1d0] sm:$0xff] %vm30_vm2, %v17398_v62  ;;  %90 = vst.msk [vmem:[#allocation2 + $0x1d8] sm:$0xff] %vm30_vm2, %v17398_v62 }
 0x19d   :  { %91 = vst.msk [vmem:[#allocation2 + $0x1e0] sm:$0xff] %vm30_vm2, %v17398_v62  ;;  %92 = vst.msk [vmem:[#allocation2 + $0x1e8] sm:$0xff] %vm30_vm2, %v17398_v62 }
 0x19e   :  { %15103 = vmatmul.mubr.msk.bf16.gmra.mrb[20].mxu0 %vm202_vm1, %v17725_v28  ;;  %93 = vst.msk [vmem:[#allocation2 + $0x1f0] sm:$0xff] %vm30_vm2, %v17398_v62  ;;  %94 = vst.msk [vmem:[#allocation2 + $0x1f8] sm:$0xff] %vm30_vm2, %v17398_v62  ;;  %v18366_v28 = vpop.f32.mrb[5].mxu1 }
 0x19f   :  { %15106 = vmatprep.mubr.msk.bf16.mxu0 %vm202_vm1, %v17727_v29  ;;  %95 = vst.msk [vmem:[#allocation2 + $0x200] sm:$0xff] %vm30_vm2, %v17398_v62  ;;  %96 = vst.msk [vmem:[#allocation2 + $0x208] sm:$0xff] %vm30_vm2, %v17398_v62  ;;  %v18368_v29 = vpop.f32.mrb[6].mxu1 }
 0x1a0   :  { %97 = vst.msk [vmem:[#allocation2 + $0x210] sm:$0xff] %vm30_vm2, %v17398_v62  ;;  %98 = vst.msk [vmem:[#allocation2 + $0x218] sm:$0xff] %vm30_vm2, %v17398_v62 }
 0x1a1   :  { %99 = vst.msk [vmem:[#allocation2 + $0x220] sm:$0xff] %vm30_vm2, %v17398_v62  ;;  %100 = vst.msk [vmem:[#allocation2 + $0x228] sm:$0xff] %vm30_vm2, %v17398_v62 }
 0x1a2   :  { %101 = vst.msk [vmem:[#allocation2 + $0x230] sm:$0xff] %vm30_vm2, %v17398_v62  ;;  %102 = vst.msk [vmem:[#allocation2 + $0x238] sm:$0xff] %vm30_vm2, %v17398_v62 }
 0x1a6   :  { %15107 = vmatmul.mubr.msk.bf16.gmra.mrb[24].mxu0 %vm202_vm1, %v17745_v38  ;;  %v18370_v38 = vpop.f32.mrb[7].mxu1 }
 0x1a7   :  { %15110 = vmatprep.mubr.msk.bf16.mxu0 %vm202_vm1, %v17991_v33 }
 0x1ae   :  { %15111 = vmatmul.mubr.msk.bf16.gmra.mrb[28].mxu0 %vm202_vm1, %v1853_v57 }
 0x1af   :  { %15116 = vmatprep.mubr.msk.bf16.mxu0 %vm202_vm1, %v17473_v10  ;;  %v2493_v10 = vsel %vm251_vm0, %v18091_v60, 0 }
 0x1b6   :  { %15117 = vmatmul.mubr.msk.bf16.vlgmr.msra.gmra.mrb[0].mxu0 %vm202_vm1, %v17494_v16  ;;  %v13292_v16 = vld [vmem:[%s21045_s0 + $0x199] sm:$0xff] }
 0x1b7   :  { %15120 = vmatprep.mubr.msk.bf16.mxu0 %vm202_vm1, %v17498_v18  ;;  %15149 = vmatpush3.bf16.msra.mxu0 %v2493_v10  ;;  %v13293_v18 = vld [vmem:[%s21045_s0 + $0x1a1] sm:$0xff] }
 0x1be   :  { %15121 = vmatmul.mubr.msk.bf16.gmra.mrb[4].mxu0 %vm202_vm1, %v17519_v24  ;;  %v2147_v24 = vpack.c.bf16 %v13293_v18, %v13292_v16 }
 0x1bf   :  { %15124 = vmatprep.mubr.msk.bf16.mxu0 %vm202_vm1, %v17522_v25  ;;  %v13341_v25 = vld [vmem:[%s21045_s0 + $0x19a] sm:$0xff] }
 0x1c6   :  { %15125 = vmatmul.mubr.msk.bf16.gmra.mrb[8].mxu0 %vm202_vm1, %v17540_v30  ;;  %v13342_v30 = vld [vmem:[%s21045_s0 + $0x1a2] sm:$0xff] }
 0x1c7   :  { %15128 = vmatprep.mubr.msk.bf16.mxu0 %vm202_vm1, %v17542_v31  ;;  %v2441_v31 = vpack.c.bf16 %v13342_v30, %v13341_v25 }
 0x1ce   :  { %15129 = vmatmul.mubr.msk.bf16.gmra.mrb[12].mxu0 %vm202_vm1, %v17560_v36  ;;  %v13361_v36 = vld [vmem:[%s21046_s3 + $0x4] sm:$0xf] }
 0x1cf   :  { %15132 = vmatprep.mubr.msk.bf16.mxu0 %vm202_vm1, %v17562_v37  ;;  %17344 = vmatprep.subr.msk.bf16.mxu1 %vm2939_vm3, %v13361_v36  ;;  %v2941_v37 = vsel %vm2939_vm3, %v13361_v36, 0 }
 0x1d0   :  { %15183 = vmatpush3.bf16.msra.mxu1 %v2941_v37 }
 0x1d6   :  { %15133 = vmatmul.mubr.msk.bf16.gmra.mrb[16].mxu0 %vm202_vm1, %v17580_v42  ;;  %v2841_v42 = vld [vmem:[#allocation2 + $0x8] sm:$0xff] }
 0x1d7   :  { %15136 = vmatprep.mubr.msk.bf16.mxu0 %vm202_vm1, %v17877_v40  ;;  %v2873_v4 = vpack.c.bf16 %v2842_v63, %v2841_v42 }
 0x1d9   :  { %15184 = vmatprep.mubr.msk.bf16.mxu1 %vm30_vm2, %v2873_v4 }
 0x1de   :  { %15137 = vmatmul.mubr.msk.bf16.gmra.mrb[20].mxu0 %vm202_vm1, %v17901_v51 }
 0x1df   :  { %15140 = vmatprep.mubr.msk.bf16.mxu0 %vm202_vm1, %v17915_v0 }
 0x1e6   :  { %15141 = vmatmul.mubr.msk.bf16.gmra.mrb[24].mxu0 %vm202_vm1, %v17941_v19 }
 0x1e7   :  { %15144 = vmatprep.mubr.msk.bf16.mxu0 %vm202_vm1, %v18036_v44 }
 0x1ee   :  { %15145 = vmatmul.mubr.msk.bf16.gmra.mrb[28].mxu0 %vm202_vm1, %v2147_v24 }
 0x1ef   :  { %15150 = vmatprep.mubr.msk.bf16.mxu0 %vm202_vm1, %v17764_v46  ;;  %v2840_v46 = vld [vmem:[%s21046_s3] sm:$0xf] }
 0x1f0   :  { %17345 = vmatprep.subr.msk.bf16.mxu1 %vm2939_vm3, %v2840_v46  ;;  %v3153_v44 = vsel %vm2939_vm3, %v2840_v46, 0 }
 0x1f6   :  { %15151 = vmatmul.mubr.msk.bf16.vlgmr.msra.gmra.mrb[0].mxu0 %vm202_vm1, %v17791_v55  ;;  %v18379_v55 = vld [vmem:[%s21047_s2] ss:$0 sm:$0xff] }
 0x1f7   :  { %15154 = vmatprep.mubr.msk.bf16.mxu0 %vm202_vm1, %v17793_v58 }
 0x1fe   :  { %15155 = vmatmul.mubr.msk.bf16.gmra.mrb[4].mxu0 %vm202_vm1, %v17811_v1 }
 0x1ff   :  { %15158 = vmatprep.mubr.msk.bf16.mxu0 %vm202_vm1, %v17813_v2 }
 0x206   :  { %15159 = vmatmul.mubr.msk.bf16.gmra.mrb[8].mxu0 %vm202_vm1, %v17831_v11 }
 0x207   :  { %15162 = vmatprep.mubr.msk.bf16.mxu0 %vm202_vm1, %v17833_v14 }
 0x20e   :  { %15163 = vmatmul.mubr.msk.bf16.gmra.mrb[12].mxu0 %vm202_vm1, %v17851_v23 }
 0x20f   :  { %15166 = vmatprep.mubr.msk.bf16.mxu0 %vm202_vm1, %v17853_v26 }
 0x216   :  { %15167 = vmatmul.mubr.msk.bf16.gmra.mrb[16].mxu0 %vm202_vm1, %v17879_v41 }
 0x217   :  { %15170 = vmatprep.mubr.msk.bf16.mxu0 %vm202_vm1, %v17883_v43 }
 0x21e   :  { %15171 = vmatmul.mubr.msk.bf16.gmra.mrb[20].mxu0 %vm202_vm1, %v17919_v3 }
 0x21f   :  { %15174 = vmatprep.mubr.msk.bf16.mxu0 %vm202_vm1, %v17923_v6 }
 0x226   :  { %15175 = vmatmul.mubr.msk.bf16.gmra.mrb[24].mxu0 %vm202_vm1, %v17945_v22 }
 0x227   :  { %15178 = vmatprep.mubr.msk.bf16.mxu0 %vm202_vm1, %v18081_v54 }
 0x22e   :  { %15179 = vmatmul.mubr.msk.bf16.gmra.mrb[28].mxu0 %vm202_vm1, %v2441_v31 }
 0x2c9   :  { %v15152_v58 = vpop.f32.mrb[0].mxu0 }
 0x2ca   :  { %v18382_v1 = vadd.f32 %v15152_v58, %v18379_v55  ;;  %v2529_v2 = vpop.f32.mrb[1].mxu0 }
 0x2cb   :  { %v18385_v11 = vadd.f32 %v18379_v55, %v2529_v2  ;;  %v15153_v14 = vpop.f32.mrb[2].mxu0 }
 0x2cc   :  { %v2729_v23 = vmax.f32 %v18382_v1, 0.0  ;;  %v18389_v26 = vadd.f32 %v15153_v14, %v18379_v55  ;;  %v2532_v40 = vpop.f32.mrb[3].mxu0 }
 0x2cd   :  { %v2727_v41 = vmax.f32 %v18385_v11, 0.0  ;;  %v18393_v43 = vadd.f32 %v18379_v55, %v2532_v40 }
 0x2ce   :  { %2762 = vst.msk [vmem:[#allocation2 + $0x48] sm:$0xff] %vm30_vm2, %v2729_v23  ;;  %v2730_v51 = vmax.f32 %v18389_v26, 0.0 }
 0x2cf   :  { %2760 = vst.msk [vmem:[#allocation2 + $0x28] sm:$0xff] %vm30_vm2, %v2727_v41  ;;  %v2728_v61 = vmax.f32 %v18393_v43, 0.0 }
 0x2d0   :  { %2763 = vst.msk [vmem:[#allocation2 + $0x50] sm:$0xff] %vm30_vm2, %v2730_v51 }
 0x2d1   :  { %2761 = vst.msk [vmem:[#allocation2 + $0x30] sm:$0xff] %vm30_vm2, %v2728_v61  ;;  %v15156_v0 = vpop.f32.mrb[4].mxu0 }
 0x2d2   :  { %v18402_v3 = vadd.f32 %v15156_v0, %v18379_v55  ;;  %v2545_v6 = vpop.f32.mrb[5].mxu0 }
 0x2d3   :  { %v18405_v7 = vadd.f32 %v18379_v55, %v2545_v6  ;;  %v15157_v9 = vpop.f32.mrb[6].mxu0 }
 0x2d4   :  { %v2733_v15 = vmax.f32 %v18402_v3, 0.0  ;;  %v18409_v17 = vadd.f32 %v15157_v9, %v18379_v55  ;;  %v2548_v19 = vpop.f32.mrb[7].mxu0 }
 0x2d5   :  { %v2731_v22 = vmax.f32 %v18405_v7, 0.0  ;;  %v18413_v27 = vadd.f32 %v18379_v55, %v2548_v19  ;;  %v2845_v39 = vld [vmem:[#allocation2 + $0x48] sm:$0xff] }
 0x2d6   :  { %2766 = vst.msk [vmem:[#allocation2 + $0x88] sm:$0xff] %vm30_vm2, %v2733_v15  ;;  %v2734_v32 = vmax.f32 %v18409_v17, 0.0  ;;  %v2843_v33 = vld [vmem:[#allocation2 + $0x28] sm:$0xff] }
 0x2d7   :  { %2764 = vst.msk [vmem:[#allocation2 + $0x68] sm:$0xff] %vm30_vm2, %v2731_v22  ;;  %v2732_v48 = vmax.f32 %v18413_v27, 0.0  ;;  %v2846_v50 = vld [vmem:[#allocation2 + $0x50] sm:$0xff] }
 0x2d8   :  { %2767 = vst.msk [vmem:[#allocation2 + $0x90] sm:$0xff] %vm30_vm2, %v2734_v32  ;;  %v2844_v34 = vld [vmem:[#allocation2 + $0x30] sm:$0xff]  ;;  %v18427_v45 = vpack.c.bf16 %v2846_v50, %v2845_v39 }
 0x2d9   :  { %2765 = vst.msk [vmem:[#allocation2 + $0x70] sm:$0xff] %vm30_vm2, %v2732_v48  ;;  %v15160_v35 = vpop.f32.mrb[8].mxu0  ;;  %v18421_v8 = vpack.c.bf16 %v2844_v34, %v2843_v33 }
 0x2da   :  { %v18425_v47 = vadd.f32 %v15160_v35, %v18379_v55  ;;  %v2561_v52 = vpop.f32.mrb[9].mxu0 }
 0x2db   :  { %v18435_v54 = vadd.f32 %v18379_v55, %v2561_v52  ;;  %v15161_v59 = vpop.f32.mrb[10].mxu0  ;;  %15185 = vmatmul.mubr.msk.bf16.vlgmr.msra.gmra.mrb[8].mxu1 %vm30_vm2, %v18421_v8 }
 0x2dc   :  { %21114 = vst [vmem:[#allocation5_spill] sm:$0xff] %v18425_v47  ;;  %v2737_v60 = vmax.f32 %v18425_v47, 0.0  ;;  %v18441_v49 = vadd.f32 %v15161_v59, %v18379_v55  ;;  %v2564_v56 = vpop.f32.mrb[11].mxu0  ;;  %15188 = vmatprep.mubr.msk.bf16.mxu1 %vm30_vm2, %v18427_v45  ;;  %15217 = vmatpush3.bf16.msra.mxu1 %v3153_v44 }
 0x2dd   :  { %v2735_v57 = vmax.f32 %v18435_v54, 0.0  ;;  %v18447_v62 = vadd.f32 %v18379_v55, %v2564_v56  ;;  %17346 = vmatprep.subr.msk.bf16.mxu1 %vm2939_vm3, %v18432_v53  ;;  %v2849_v36 = vld [vmem:[#allocation2 + $0x88] sm:$0xff] }
 0x2de   :  { %2770 = vst.msk [vmem:[#allocation2 + $0xc8] sm:$0xff] %vm30_vm2, %v2737_v60  ;;  %v2738_v10 = vmax.f32 %v18441_v49, 0.0  ;;  %v2847_v24 = vld [vmem:[#allocation2 + $0x68] sm:$0xff] }
 0x2df   :  { %2768 = vst.msk [vmem:[#allocation2 + $0xa8] sm:$0xff] %vm30_vm2, %v2735_v57  ;;  %v2736_v16 = vmax.f32 %v18447_v62, 0.0  ;;  %v2850_v18 = vld [vmem:[#allocation2 + $0x90] sm:$0xff] }
 0x2e0   :  { %2771 = vst.msk [vmem:[#allocation2 + $0xd0] sm:$0xff] %vm30_vm2, %v2738_v10  ;;  %v2848_v25 = vld [vmem:[#allocation2 + $0x70] sm:$0xff]  ;;  %v18462_v63 = vpack.c.bf16 %v2850_v18, %v2849_v36 }
 0x2e1   :  { %2769 = vst.msk [vmem:[#allocation2 + $0xb0] sm:$0xff] %vm30_vm2, %v2736_v16  ;;  %v15164_v30 = vpop.f32.mrb[12].mxu0  ;;  %v18457_v31 = vpack.c.bf16 %v2848_v25, %v2847_v24 }
 0x2e2   :  { %v18460_v37 = vadd.f32 %v15164_v30, %v18379_v55  ;;  %v2577_v42 = vpop.f32.mrb[13].mxu0 }
 0x2e3   :  { %v18465_v4 = vadd.f32 %v18379_v55, %v2577_v42  ;;  %v15165_v46 = vpop.f32.mrb[14].mxu0  ;;  %15189 = vmatmul.mubr.msk.bf16.gmra.mrb[12].mxu1 %vm30_vm2, %v18457_v31 }
 0x2e4   :  { %21115 = vst [vmem:[#allocation6_spill] sm:$0xff] %v18460_v37  ;;  %v2741_v58 = vmax.f32 %v18460_v37, 0.0  ;;  %v18471_v2 = vadd.f32 %v15165_v46, %v18379_v55  ;;  %v2580_v14 = vpop.f32.mrb[15].mxu0  ;;  %15192 = vmatprep.mubr.msk.bf16.mxu1 %vm30_vm2, %v18462_v63 }
 0x2e5   :  { %21116 = vst [vmem:[#allocation7_spill] sm:$0xff] %v18465_v4  ;;  %v2739_v23 = vmax.f32 %v18465_v4, 0.0  ;;  %v18477_v40 = vadd.f32 %v18379_v55, %v2580_v14  ;;  %v2853_v19 = vld [vmem:[#allocation2 + $0xc8] sm:$0xff] }
 0x2e6   :  { %21117 = vst [vmem:[#allocation8_spill] sm:$0xff] %v18471_v2  ;;  %2774 = vst.msk [vmem:[#allocation2 + $0x108] sm:$0xff] %vm30_vm2, %v2741_v58  ;;  %v2742_v41 = vmax.f32 %v18471_v2, 0.0  ;;  %v2851_v0 = vld [vmem:[#allocation2 + $0xa8] sm:$0xff] }
 0x2e7   :  { %21118 = vst [vmem:[#allocation9_spill] sm:$0xff] %v18477_v40  ;;  %2772 = vst.msk [vmem:[#allocation2 + $0xe8] sm:$0xff] %vm30_vm2, %v2739_v23  ;;  %v2740_v51 = vmax.f32 %v18477_v40, 0.0  ;;  %v2854_v61 = vld [vmem:[#allocation2 + $0xd0] sm:$0xff] }
 0x2e8   :  { %2775 = vst.msk [vmem:[#allocation2 + $0x110] sm:$0xff] %vm30_vm2, %v2742_v41  ;;  %v2852_v6 = vld [vmem:[#allocation2 + $0xb0] sm:$0xff]  ;;  %v18490_v48 = vpack.c.bf16 %v2854_v61, %v2853_v19 }
 0x2e9   :  { %2773 = vst.msk [vmem:[#allocation2 + $0xf0] sm:$0xff] %vm30_vm2, %v2740_v51  ;;  %v15168_v9 = vpop.f32.mrb[16].mxu0  ;;  %v18485_v15 = vpack.c.bf16 %v2852_v6, %v2851_v0 }
 0x2ea   :  { %v18488_v22 = vadd.f32 %v15168_v9, %v18379_v55  ;;  %v2593_v32 = vpop.f32.mrb[17].mxu0 }
 0x2eb   :  { %v18493_v50 = vadd.f32 %v18379_v55, %v2593_v32  ;;  %v15169_v33 = vpop.f32.mrb[18].mxu0  ;;  %15193 = vmatmul.mubr.msk.bf16.gmra.mrb[16].mxu1 %vm30_vm2, %v18485_v15 }
 0x2ec   :  { %21119 = vst [vmem:[#allocation10_spill] sm:$0xff] %v18488_v22  ;;  %v2745_v34 = vmax.f32 %v18488_v22, 0.0  ;;  %v18499_v35 = vadd.f32 %v15169_v33, %v18379_v55  ;;  %v2596_v39 = vpop.f32.mrb[19].mxu0  ;;  %15196 = vmatprep.mubr.msk.bf16.mxu1 %vm30_vm2, %v18490_v48 }
 0x2ed   :  { %21120 = vst [vmem:[#allocation11_spill] sm:$0xff] %v18493_v50  ;;  %v2743_v44 = vmax.f32 %v18493_v50, 0.0  ;;  %v18505_v52 = vadd.f32 %v18379_v55, %v2596_v39  ;;  %v2857_v24 = vld [vmem:[#allocation2 + $0x108] sm:$0xff] }
 0x2ee   :  { %21121 = vst [vmem:[#allocation12_spill] sm:$0xff] %v18499_v35  ;;  %2778 = vst.msk [vmem:[#allocation2 + $0x148] sm:$0xff] %vm30_vm2, %v2745_v34  ;;  %v2746_v59 = vmax.f32 %v18499_v35, 0.0  ;;  %v2855_v57 = vld [vmem:[#allocation2 + $0xe8] sm:$0xff] }
 0x2ef   :  { %21122 = vst [vmem:[#allocation13_spill] sm:$0xff] %v18505_v52  ;;  %2776 = vst.msk [vmem:[#allocation2 + $0x128] sm:$0xff] %vm30_vm2, %v2743_v44  ;;  %v2744_v60 = vmax.f32 %v18505_v52, 0.0  ;;  %v2858_v56 = vld [vmem:[#allocation2 + $0x110] sm:$0xff] }
 0x2f0   :  { %2779 = vst.msk [vmem:[#allocation2 + $0x150] sm:$0xff] %vm30_vm2, %v2746_v59  ;;  %v2856_v10 = vld [vmem:[#allocation2 + $0xf0] sm:$0xff]  ;;  %v18518_v36 = vpack.c.bf16 %v2858_v56, %v2857_v24 }
 0x2f1   :  { %2777 = vst.msk [vmem:[#allocation2 + $0x130] sm:$0xff] %vm30_vm2, %v2744_v60  ;;  %v15172_v16 = vpop.f32.mrb[20].mxu0  ;;  %v18513_v18 = vpack.c.bf16 %v2856_v10, %v2855_v57 }
 0x2f2   :  { %v18516_v25 = vadd.f32 %v15172_v16, %v18379_v55  ;;  %v2609_v30 = vpop.f32.mrb[21].mxu0 }
 0x2f3   :  { %v18521_v42 = vadd.f32 %v18379_v55, %v2609_v30  ;;  %v15173_v46 = vpop.f32.mrb[22].mxu0  ;;  %15197 = vmatmul.mubr.msk.bf16.gmra.mrb[20].mxu1 %vm30_vm2, %v18513_v18 }
 0x2f4   :  { %21123 = vst [vmem:[#allocation14_spill] sm:$0xff] %v18516_v25  ;;  %v2749_v58 = vmax.f32 %v18516_v25, 0.0  ;;  %v18527_v14 = vadd.f32 %v15173_v46, %v18379_v55  ;;  %v2612_v23 = vpop.f32.mrb[23].mxu0  ;;  %15200 = vmatprep.mubr.msk.bf16.mxu1 %vm30_vm2, %v18518_v36 }
 0x2f5   :  { %21124 = vst [vmem:[#allocation15_spill] sm:$0xff] %v18521_v42  ;;  %v2747_v41 = vmax.f32 %v18521_v42, 0.0  ;;  %v18533_v51 = vadd.f32 %v18379_v55, %v2612_v23  ;;  %v2861_v34 = vld [vmem:[#allocation2 + $0x148] sm:$0xff] }
 0x2f6   :  { %21125 = vst [vmem:[#allocation16_spill] sm:$0xff] %v18527_v14  ;;  %2782 = vst.msk [vmem:[#allocation2 + $0x188] sm:$0xff] %vm30_vm2, %v2749_v58  ;;  %v2750_v61 = vmax.f32 %v18527_v14, 0.0  ;;  %v2859_v9 = vld [vmem:[#allocation2 + $0x128] sm:$0xff] }
 0x2f7   :  { %21126 = vst [vmem:[#allocation17_spill] sm:$0xff] %v18533_v51  ;;  %2780 = vst.msk [vmem:[#allocation2 + $0x168] sm:$0xff] %vm30_vm2, %v2747_v41  ;;  %v2748_v0 = vmax.f32 %v18533_v51, 0.0  ;;  %v2862_v6 = vld [vmem:[#allocation2 + $0x150] sm:$0xff] }
 0x2f8   :  { %2783 = vst.msk [vmem:[#allocation2 + $0x190] sm:$0xff] %vm30_vm2, %v2750_v61  ;;  %v2860_v19 = vld [vmem:[#allocation2 + $0x130] sm:$0xff]  ;;  %v18544_v59 = vpack.c.bf16 %v2862_v6, %v2861_v34 }
 0x2f9   :  { %2781 = vst.msk [vmem:[#allocation2 + $0x170] sm:$0xff] %vm30_vm2, %v2748_v0  ;;  %v15176_v32 = vpop.f32.mrb[24].mxu0  ;;  %v18541_v33 = vpack.c.bf16 %v2860_v19, %v2859_v9 }
 0x2fa   :  { %v16310_v39 = vadd.f32 %v15176_v32, %v18356_v5  ;;  %v2625_v44 = vpop.f32.mrb[25].mxu0 }
 0x2fb   :  { %v16311_v60 = vadd.f32 %v2625_v44, %v18358_v12  ;;  %v15177_v56 = vpop.f32.mrb[26].mxu0  ;;  %15201 = vmatmul.mubr.msk.bf16.gmra.mrb[24].mxu1 %vm30_vm2, %v18541_v33 }
 0x2fc   :  { %v18550_v57 = vadd.f32 %v16310_v39, %v18379_v55  ;;  %v16312_v10 = vadd.f32 %v15177_v56, %v18360_v13  ;;  %v2628_v16 = vpop.f32.mrb[27].mxu0  ;;  %15204 = vmatprep.mubr.msk.bf16.mxu1 %vm30_vm2, %v18544_v59 }
 0x2fd   :  { %v18556_v5 = vadd.f32 %v16311_v60, %v18379_v55  ;;  %v16313_v24 = vadd.f32 %v2628_v16, %v18362_v20  ;;  %v2865_v9 = vld [vmem:[#allocation2 + $0x188] sm:$0xff] }
 0x2fe   :  { %21127 = vst [vmem:[#allocation18_spill] sm:$0xff] %v18550_v57  ;;  %v2753_v12 = vmax.f32 %v18550_v57, 0.0  ;;  %v18561_v30 = vadd.f32 %v16312_v10, %v18379_v55  ;;  %v2863_v41 = vld [vmem:[#allocation2 + $0x168] sm:$0xff] }
 0x2ff   :  { %21128 = vst [vmem:[#allocation19_spill] sm:$0xff] %v18556_v5  ;;  %v2751_v46 = vmax.f32 %v18556_v5, 0.0  ;;  %v18565_v58 = vadd.f32 %v16313_v24, %v18379_v55  ;;  %v2866_v13 = vld [vmem:[#allocation2 + $0x190] sm:$0xff]  ;;  %v2816_v57 = vld [vmem:[#allocation2 + $0x187] sm:$0xff] }
 0x300   :  { %21129 = vst [vmem:[#allocation20_spill] sm:$0xff] %v18561_v30  ;;  %2786 = vst.msk [vmem:[#allocation2 + $0x1c8] sm:$0xff] %vm30_vm2, %v2753_v12  ;;  %v2754_v23 = vmax.f32 %v18561_v30, 0.0  ;;  %v2864_v61 = vld [vmem:[#allocation2 + $0x170] sm:$0xff]  ;;  %v18575_v34 = vpack.c.bf16 %v2866_v13, %v2865_v9 }
 0x301   :  { %21130 = vst [vmem:[#allocation21_spill] sm:$0xff] %v18565_v58  ;;  %2784 = vst.msk [vmem:[#allocation2 + $0x1a8] sm:$0xff] %vm30_vm2, %v2751_v46  ;;  %v2752_v20 = vmax.f32 %v18565_v58, 0.0  ;;  %v15180_v0 = vpop.f32.mrb[28].mxu0  ;;  %v18571_v6 = vpack.c.bf16 %v2864_v61, %v2863_v41  ;;  %v2793_v9 = vld [vmem:[#allocation2 + $0xf] sm:$0xff] }
 0x302   :  { %2787 = vst.msk [vmem:[#allocation2 + $0x1d0] sm:$0xff] %vm30_vm2, %v2754_v23  ;;  %v16314_v19 = vadd.f32 %v15180_v0, %v18364_v21  ;;  %v2641_v32 = vpop.f32.mrb[29].mxu0  ;;  %v2792_v0 = vld [vmem:[#allocation2 + $0x7] sm:$0xff] }
 0x303   :  { %2785 = vst.msk [vmem:[#allocation2 + $0x1b0] sm:$0xff] %vm30_vm2, %v2752_v20  ;;  %v16315_v39 = vadd.f32 %v2641_v32, %v18366_v28  ;;  %v15181_v44 = vpop.f32.mrb[30].mxu0  ;;  %15205 = vmatmul.mubr.msk.bf16.gmra.mrb[28].mxu1 %vm30_vm2, %v18571_v6 }
 0x304   :  { %v18582_v60 = vadd.f32 %v16314_v19, %v18379_v55  ;;  %v16316_v56 = vadd.f32 %v15181_v44, %v18368_v29  ;;  %v2644_v10 = vpop.f32.mrb[31].mxu0  ;;  %15208 = vmatprep.mubr.msk.bf16.mxu1 %vm30_vm2, %v18575_v34 }
 0x305   :  { %v18588_v21 = vadd.f32 %v16315_v39, %v18379_v55  ;;  %v16317_v16 = vadd.f32 %v2644_v10, %v18370_v38  ;;  %v2824_v39 = vpack.c.bf16 %v2793_v9, %v2792_v0  ;;  %v2797_v10 = vld [vmem:[#allocation2 + $0x4f] sm:$0xff]  ;;  %v2800_v0 = vld [vmem:[#allocation2 + $0x87] sm:$0xff] }
 0x306   :  { %21131 = vst [vmem:[#allocation22_spill] sm:$0xff] %v18582_v60  ;;  %v2757_v28 = vmax.f32 %v18582_v60, 0.0  ;;  %v18593_v24 = vadd.f32 %v16316_v56, %v18379_v55  ;;  %v2795_v56 = vld [vmem:[#allocation2 + $0x2f] sm:$0xff]  ;;  %v2812_v60 = vld [vmem:[#allocation2 + $0x147] sm:$0xff] }
 0x307   :  { %21132 = vst [vmem:[#allocation23_spill] sm:$0xff] %v18588_v21  ;;  %v2755_v12 = vmax.f32 %v18588_v21, 0.0  ;;  %v18597_v46 = vadd.f32 %v16317_v16, %v18379_v55  ;;  %v2869_v20 = vld [vmem:[#allocation2 + $0x1c8] sm:$0xff] }
 0x308   :  { %21133 = vst [vmem:[#allocation24_spill] sm:$0xff] %v18593_v24  ;;  %2790 = vst.msk [vmem:[#allocation2 + $0x208] sm:$0xff] %vm30_vm2, %v2757_v28  ;;  %v2758_v29 = vmax.f32 %v18593_v24, 0.0  ;;  %v2867_v38 = vld [vmem:[#allocation2 + $0x1a8] sm:$0xff] }
 0x309   :  { %21134 = vst [vmem:[#allocation25_spill] sm:$0xff] %v18597_v46  ;;  %2788 = vst.msk [vmem:[#allocation2 + $0x1e8] sm:$0xff] %vm30_vm2, %v2755_v12  ;;  %v2756_v13 = vmax.f32 %v18597_v46, 0.0  ;;  %v2870_v23 = vld [vmem:[#allocation2 + $0x1d0] sm:$0xff]  ;;  %v2794_v16 = vld [vmem:[#allocation2 + $0x27] sm:$0xff] }
 0x30a   :  { %2791 = vst.msk [vmem:[#allocation2 + $0x210] sm:$0xff] %vm30_vm2, %v2758_v29  ;;  %v2868_v41 = vld [vmem:[#allocation2 + $0x1b0] sm:$0xff]  ;;  %v18607_v55 = vpack.c.bf16 %v2870_v23, %v2869_v20  ;;  %v18618_v28 = vpack.c.bf16 %v2795_v56, %v2794_v16  ;;  %v2796_v12 = vld [vmem:[#allocation2 + $0x47] sm:$0xff]  ;;  %v3415_v29 = vsel %vm2939_vm3, %v18432_v53, 0 }
 0x30b   :  { %2789 = vst.msk [vmem:[#allocation2 + $0x1f0] sm:$0xff] %vm30_vm2, %v2756_v13  ;;  %v18605_v61 = vpack.c.bf16 %v2868_v41, %v2867_v38  ;;  %v18622_v13 = vpack.c.bf16 %v2797_v10, %v2796_v12  ;;  %v18627_v23 = vld [vmem:[%s21046_s3 + $0xc] sm:$0xf] }
 0x30c   :  { %v2799_v38 = vld [vmem:[#allocation2 + $0x6f] sm:$0xff]  ;;  %v2798_v53 = vld [vmem:[#allocation2 + $0x67] sm:$0xff]  ;;  %v3709_v14 = vsel %vm2939_vm3, %v18627_v23, 0 }
 0x30d   :  { %15209 = vmatmul.mubr.msk.bf16.gmra.mrb[32].mxu1 %vm30_vm2, %v18605_v61  ;;  %v2801_v41 = vld [vmem:[#allocation2 + $0x8f] sm:$0xff]  ;;  %v18635_v20 = vpack.c.bf16 %v2799_v38, %v2798_v53  ;;  %v2804_v10 = vld [vmem:[#allocation2 + $0xc7] sm:$0xff] }
 0x30e   :  { %15212 = vmatprep.mubr.msk.bf16.mxu1 %vm30_vm2, %v18607_v55  ;;  %v18637_v9 = vpack.c.bf16 %v2801_v41, %v2800_v0  ;;  %v2807_v12 = vld [vmem:[#allocation2 + $0xef] sm:$0xff]  ;;  %v2806_v38 = vld [vmem:[#allocation2 + $0xe7] sm:$0xff] }
 0x30f   :  { %v18651_v41 = vpack.c.bf16 %v2807_v12, %v2806_v38  ;;  %v2808_v53 = vld [vmem:[#allocation2 + $0x107] sm:$0xff]  ;;  %v2815_v12 = vld [vmem:[#allocation2 + $0x16f] sm:$0xff] }
 0x310   :  { %v2871_v19 = vld [vmem:[#allocation2 + $0x1e8] sm:$0xff] }
 0x311   :  { %v2814_v38 = vld [vmem:[#allocation2 + $0x167] sm:$0xff] }
 0x312   :  { %v2872_v32 = vld [vmem:[#allocation2 + $0x1f0] sm:$0xff]  ;;  %v2820_v46 = vld [vmem:[#allocation2 + $0x1c7] sm:$0xff] }
 0x313   :  { %v18613_v44 = vpack.c.bf16 %v2872_v32, %v2871_v19  ;;  %v2803_v19 = vld [vmem:[#allocation2 + $0xaf] sm:$0xff] }
 0x314   :  { %v2805_v32 = vld [vmem:[#allocation2 + $0xcf] sm:$0xff] }
 0x315   :  { %15213 = vmatmul.mubr.msk.bf16.gmra.mrb[36].mxu1 %vm30_vm2, %v18613_v44  ;;  %v18645_v16 = vpack.c.bf16 %v2805_v32, %v2804_v10  ;;  %v2813_v32 = vld [vmem:[#allocation2 + $0x14f] sm:$0xff] }
 0x316   :  { %15218 = vmatprep.mubr.msk.bf16.mxu1 %vm30_vm2, %v2824_v39  ;;  %v2802_v39 = vld [vmem:[#allocation2 + $0xa7] sm:$0xff]  ;;  %v18661_v21 = vpack.c.bf16 %v2813_v32, %v2812_v60  ;;  %v2819_v60 = vld [vmem:[#allocation2 + $0x1af] sm:$0xff] }
 0x317   :  { %v18643_v56 = vpack.c.bf16 %v2803_v19, %v2802_v39  ;;  %v2811_v19 = vld [vmem:[#allocation2 + $0x12f] sm:$0xff]  ;;  %v2810_v39 = vld [vmem:[#allocation2 + $0x127] sm:$0xff] }
 0x318   :  { %v18659_v10 = vpack.c.bf16 %v2811_v19, %v2810_v39  ;;  %v2821_v19 = vld [vmem:[#allocation2 + $0x1cf] sm:$0xff]  ;;  %v2818_v32 = vld [vmem:[#allocation2 + $0x1a7] sm:$0xff] }
 0x319   :  { %v18675_v39 = vpack.c.bf16 %v2819_v60, %v2818_v32  ;;  %v18677_v30 = vpack.c.bf16 %v2821_v19, %v2820_v46  ;;  %v3318_v46 = vld [vmem:[#allocation2 + $0x29] sm:$0xff]  ;;  %v3319_v60 = vld [vmem:[#allocation2 + $0x31] sm:$0xff] }
 0x31a   :  { %v3320_v19 = vld [vmem:[#allocation2 + $0x49] sm:$0xff]  ;;  %v3321_v32 = vld [vmem:[#allocation2 + $0x51] sm:$0xff]  ;;  %v18688_v58 = vpack.c.bf16 %v3319_v60, %v3318_v46 }
 0x31b   :  { %v18692_v42 = vpack.c.bf16 %v3321_v32, %v3320_v19  ;;  %v3326_v60 = vld [vmem:[#allocation2 + $0xa9] sm:$0xff]  ;;  %v3327_v19 = vld [vmem:[#allocation2 + $0xb1] sm:$0xff] }
 0x31c   :  { %v3328_v32 = vld [vmem:[#allocation2 + $0xc9] sm:$0xff]  ;;  %v18710_v22 = vpack.c.bf16 %v3327_v19, %v3326_v60  ;;  %v3335_v19 = vld [vmem:[#allocation2 + $0x131] sm:$0xff] }
 0x31d   :  { %15219 = vmatmul.mubr.msk.bf16.vlgmr.msra.gmra.mrb[8].mxu1 %vm30_vm2, %v18618_v28  ;;  %v3334_v60 = vld [vmem:[#allocation2 + $0x129] sm:$0xff] }
 0x31e   :  { %15222 = vmatprep.mubr.msk.bf16.mxu1 %vm30_vm2, %v18622_v13  ;;  %15251 = vmatpush3.bf16.msra.mxu1 %v3415_v29  ;;  %v2809_v29 = vld [vmem:[#allocation2 + $0x10f] sm:$0xff]  ;;  %v18726_v37 = vpack.c.bf16 %v3335_v19, %v3334_v60 }
 0x31f   :  { %17347 = vmatprep.subr.msk.bf16.mxu1 %vm2939_vm3, %v18627_v23  ;;  %v18653_v0 = vpack.c.bf16 %v2809_v29, %v2808_v53  ;;  %v2817_v29 = vld [vmem:[#allocation2 + $0x18f] sm:$0xff]  ;;  %v18667_v53 = vpack.c.bf16 %v2815_v12, %v2814_v38  ;;  %v2822_v38 = vld [vmem:[#allocation2 + $0x1e7] sm:$0xff] }
 0x320   :  { %v18669_v24 = vpack.c.bf16 %v2817_v29, %v2816_v57  ;;  %v3316_v57 = vld [vmem:[#allocation2 + $0x9] sm:$0xff]  ;;  %v3317_v12 = vld [vmem:[#allocation2 + $0x11] sm:$0xff] }
 0x321   :  { %v2823_v29 = vld [vmem:[#allocation2 + $0x1ef] sm:$0xff]  ;;  %v3348_v5 = vpack.c.bf16 %v3317_v12, %v3316_v57 }
 0x322   :  { %v18683_v25 = vpack.c.bf16 %v2823_v29, %v2822_v38  ;;  %v13428_v57 = vld [vmem:[%s21046_s3 + $0x10] sm:$0xf] }
 0x323   :  { %v3323_v12 = vld [vmem:[#allocation2 + $0x71] sm:$0xff]  ;;  %v3324_v29 = vld [vmem:[#allocation2 + $0x89] sm:$0xff] }
 0x324   :  { %v3325_v38 = vld [vmem:[#allocation2 + $0x91] sm:$0xff]  ;;  %v3342_v60 = vld [vmem:[#allocation2 + $0x1a9] sm:$0xff] }
 0x325   :  { %15223 = vmatmul.mubr.msk.bf16.gmra.mrb[12].mxu1 %vm30_vm2, %v18635_v20  ;;  %v18704_v46 = vpack.c.bf16 %v3325_v38, %v3324_v29  ;;  %v3332_v29 = vld [vmem:[#allocation2 + $0x109] sm:$0xff]  ;;  %v3333_v38 = vld [vmem:[#allocation2 + $0x111] sm:$0xff] }
 0x326   :  { %15226 = vmatprep.mubr.msk.bf16.mxu1 %vm30_vm2, %v18637_v9  ;;  %v18720_v50 = vpack.c.bf16 %v3333_v38, %v3332_v29  ;;  %v3340_v29 = vld [vmem:[#allocation2 + $0x189] sm:$0xff]  ;;  %v3341_v38 = vld [vmem:[#allocation2 + $0x191] sm:$0xff] }
 0x327   :  { %v18736_v4 = vpack.c.bf16 %v3341_v38, %v3340_v29  ;;  %v3343_v19 = vld [vmem:[#allocation2 + $0x1b1] sm:$0xff]  ;;  %v4003_v38 = vsel %vm2939_vm3, %v13428_v57, 0 }
 0x328   :  { %v18742_v47 = vpack.c.bf16 %v3343_v19, %v3342_v60  ;;  %v13445_v60 = vld [vmem:[%s21046_s3 + $0x14] sm:$0xf] }
 0x32d   :  { %15227 = vmatmul.mubr.msk.bf16.gmra.mrb[16].mxu1 %vm30_vm2, %v18643_v56 }
 0x32e   :  { %15230 = vmatprep.mubr.msk.bf16.mxu1 %vm30_vm2, %v18645_v16 }
 0x335   :  { %15231 = vmatmul.mubr.msk.bf16.gmra.mrb[20].mxu1 %vm30_vm2, %v18651_v41 }
 0x336   :  { %15234 = vmatprep.mubr.msk.bf16.mxu1 %vm30_vm2, %v18653_v0 }
 0x33d   :  { %15235 = vmatmul.mubr.msk.bf16.gmra.mrb[24].mxu1 %vm30_vm2, %v18659_v10 }
 0x33e   :  { %15238 = vmatprep.mubr.msk.bf16.mxu1 %vm30_vm2, %v18661_v21 }
 0x345   :  { %15239 = vmatmul.mubr.msk.bf16.gmra.mrb[28].mxu1 %vm30_vm2, %v18667_v53 }
 0x346   :  { %15242 = vmatprep.mubr.msk.bf16.mxu1 %vm30_vm2, %v18669_v24 }
 0x34d   :  { %15243 = vmatmul.mubr.msk.bf16.gmra.mrb[32].mxu1 %vm30_vm2, %v18675_v39 }
 0x34e   :  { %15246 = vmatprep.mubr.msk.bf16.mxu1 %vm30_vm2, %v18677_v30 }
 0x355   :  { %15247 = vmatmul.mubr.msk.bf16.gmra.mrb[36].mxu1 %vm30_vm2, %v18683_v25 }
 0x356   :  { %15252 = vmatprep.mubr.msk.bf16.mxu1 %vm30_vm2, %v3348_v5  ;;  %v3322_v5 = vld [vmem:[#allocation2 + $0x69] sm:$0xff] }
 0x357   :  { %v18702_v23 = vpack.c.bf16 %v3323_v12, %v3322_v5  ;;  %v3330_v5 = vld [vmem:[#allocation2 + $0xe9] sm:$0xff]  ;;  %v3331_v12 = vld [vmem:[#allocation2 + $0xf1] sm:$0xff] }
 0x358   :  { %v18718_v35 = vpack.c.bf16 %v3331_v12, %v3330_v5  ;;  %v3338_v5 = vld [vmem:[#allocation2 + $0x169] sm:$0xff]  ;;  %v3339_v12 = vld [vmem:[#allocation2 + $0x171] sm:$0xff] }
 0x359   :  { %v18734_v2 = vpack.c.bf16 %v3339_v12, %v3338_v5  ;;  %v3346_v5 = vld [vmem:[#allocation2 + $0x1e9] sm:$0xff]  ;;  %v3347_v12 = vld [vmem:[#allocation2 + $0x1f1] sm:$0xff] }
 0x35a   :  { %v18750_v29 = vpack.c.bf16 %v3347_v12, %v3346_v5  ;;  %v13496_v5 = vld [vmem:[%s21046_s3 + $0x20] sm:$0xf]  ;;  %v4796_v12 = vld [vmem:[#allocation2 + $0xd0] sm:$0xff] }
 0x35d   :  { %15253 = vmatmul.mubr.msk.bf16.vlgmr.msra.gmra.mrb[8].mxu1 %vm30_vm2, %v18688_v58 }
 0x35e   :  { %15256 = vmatprep.mubr.msk.bf16.mxu1 %vm30_vm2, %v18692_v42  ;;  %15285 = vmatpush3.bf16.msra.mxu1 %v3709_v14  ;;  %v3329_v14 = vld [vmem:[#allocation2 + $0xd1] sm:$0xff] }
 0x35f   :  { %17348 = vmatprep.subr.msk.bf16.mxu1 %vm2939_vm3, %v13428_v57  ;;  %v18712_v51 = vpack.c.bf16 %v3329_v14, %v3328_v32  ;;  %v3336_v32 = vld [vmem:[#allocation2 + $0x149] sm:$0xff]  ;;  %v3337_v14 = vld [vmem:[#allocation2 + $0x151] sm:$0xff] }
 0x360   :  { %v18728_v52 = vpack.c.bf16 %v3337_v14, %v3336_v32  ;;  %v3344_v32 = vld [vmem:[#allocation2 + $0x1c9] sm:$0xff]  ;;  %v3345_v14 = vld [vmem:[#allocation2 + $0x1d1] sm:$0xff] }
 0x361   :  { %v18744_v40 = vpack.c.bf16 %v3345_v14, %v3344_v32  ;;  %v3640_v57 = vld [vmem:[#allocation2 + $0x207] sm:$0xff]  ;;  %v4297_v32 = vsel %vm2939_vm3, %v13445_v60, 0  ;;  %v13462_v14 = vld [vmem:[%s21046_s3 + $0x18] sm:$0xf] }
 0x365   :  { %15257 = vmatmul.mubr.msk.bf16.gmra.mrb[12].mxu1 %vm30_vm2, %v18702_v23 }
 0x366   :  { %15260 = vmatprep.mubr.msk.bf16.mxu1 %vm30_vm2, %v18704_v46 }
 0x36d   :  { %15261 = vmatmul.mubr.msk.bf16.gmra.mrb[16].mxu1 %vm30_vm2, %v18710_v22 }
 0x36e   :  { %15264 = vmatprep.mubr.msk.bf16.mxu1 %vm30_vm2, %v18712_v51 }
 0x375   :  { %15265 = vmatmul.mubr.msk.bf16.gmra.mrb[20].mxu1 %vm30_vm2, %v18718_v35 }
 0x376   :  { %15268 = vmatprep.mubr.msk.bf16.mxu1 %vm30_vm2, %v18720_v50 }
 0x37d   :  { %15269 = vmatmul.mubr.msk.bf16.gmra.mrb[24].mxu1 %vm30_vm2, %v18726_v37 }
 0x37e   :  { %15272 = vmatprep.mubr.msk.bf16.mxu1 %vm30_vm2, %v18728_v52 }
 0x385   :  { %15273 = vmatmul.mubr.msk.bf16.gmra.mrb[28].mxu1 %vm30_vm2, %v18734_v2 }
 0x386   :  { %15276 = vmatprep.mubr.msk.bf16.mxu1 %vm30_vm2, %v18736_v4 }
 0x38d   :  { %15277 = vmatmul.mubr.msk.bf16.gmra.mrb[32].mxu1 %vm30_vm2, %v18742_v47 }
 0x38e   :  { %15280 = vmatprep.mubr.msk.bf16.mxu1 %vm30_vm2, %v18744_v40 }
 0x395   :  { %15281 = vmatmul.mubr.msk.bf16.gmra.mrb[36].mxu1 %vm30_vm2, %v18750_v29 }
 0x396   :  { %15286 = vmatprep.mubr.msk.bf16.mxu1 %vm30_vm2, %v18618_v28  ;;  %v3641_v28 = vld [vmem:[#allocation2 + $0x20f] sm:$0xff] }
 0x397   :  { %v18789_v19 = vpack.c.bf16 %v3641_v28, %v3640_v57  ;;  %v4795_v28 = vld [vmem:[#allocation2 + $0xc8] sm:$0xff] }
 0x398   :  { %v4823_v57 = vpack.c.bf16 %v4796_v12, %v4795_v28 }
 0x39d   :  { %15287 = vmatmul.mubr.msk.bf16.vlgmr.msra.gmra.mrb[8].mxu1 %vm30_vm2, %v18622_v13 }
 0x39e   :  { %15290 = vmatprep.mubr.msk.bf16.mxu1 %vm30_vm2, %v18635_v20  ;;  %15319 = vmatpush3.bf16.msra.mxu1 %v4003_v38  ;;  %v4793_v38 = vld [vmem:[#allocation2 + $0xa8] sm:$0xff] }
 0x39f   :  { %17349 = vmatprep.subr.msk.bf16.mxu1 %vm2939_vm3, %v13445_v60 }
 0x3a5   :  { %15291 = vmatmul.mubr.msk.bf16.gmra.mrb[12].mxu1 %vm30_vm2, %v18637_v9 }
 0x3a6   :  { %15294 = vmatprep.mubr.msk.bf16.mxu1 %vm30_vm2, %v18643_v56 }
 0x3ad   :  { %15295 = vmatmul.mubr.msk.bf16.gmra.mrb[16].mxu1 %vm30_vm2, %v18645_v16 }
 0x3ae   :  { %15298 = vmatprep.mubr.msk.bf16.mxu1 %vm30_vm2, %v18651_v41 }
 0x3b5   :  { %15299 = vmatmul.mubr.msk.bf16.gmra.mrb[20].mxu1 %vm30_vm2, %v18653_v0 }
 0x3b6   :  { %15302 = vmatprep.mubr.msk.bf16.mxu1 %vm30_vm2, %v18659_v10 }
 0x3bd   :  { %15303 = vmatmul.mubr.msk.bf16.gmra.mrb[24].mxu1 %vm30_vm2, %v18661_v21 }
 0x3be   :  { %15306 = vmatprep.mubr.msk.bf16.mxu1 %vm30_vm2, %v18667_v53 }
 0x3c5   :  { %15307 = vmatmul.mubr.msk.bf16.gmra.mrb[28].mxu1 %vm30_vm2, %v18669_v24 }
 0x3c6   :  { %15310 = vmatprep.mubr.msk.bf16.mxu1 %vm30_vm2, %v18675_v39 }
 0x3cd   :  { %15311 = vmatmul.mubr.msk.bf16.gmra.mrb[32].mxu1 %vm30_vm2, %v18677_v30 }
 0x3ce   :  { %15314 = vmatprep.mubr.msk.bf16.mxu1 %vm30_vm2, %v18683_v25 }
 0x3d5   :  { %15315 = vmatmul.mubr.msk.bf16.gmra.mrb[36].mxu1 %vm30_vm2, %v18789_v19 }
 0x3d6   :  { %15320 = vmatprep.mubr.msk.bf16.mxu1 %vm30_vm2, %v18421_v8  ;;  %v3935_v8 = vld [vmem:[#allocation2 + $0x210] sm:$0xff] }
 0x3dd   :  { %15321 = vmatmul.mubr.msk.bf16.vlgmr.msra.gmra.mrb[8].mxu1 %vm30_vm2, %v18427_v45  ;;  %v3934_v45 = vld [vmem:[#allocation2 + $0x208] sm:$0xff] }
 0x3de   :  { %15324 = vmatprep.mubr.msk.bf16.mxu1 %vm30_vm2, %v18457_v31  ;;  %15353 = vmatpush3.bf16.msra.mxu1 %v4297_v32  ;;  %v18828_v31 = vpack.c.bf16 %v3935_v8, %v3934_v45  ;;  %v4800_v32 = vld [vmem:[#allocation2 + $0x110] sm:$0xff]  ;;  %v4799_v45 = vld [vmem:[#allocation2 + $0x108] sm:$0xff] }
 0x3df   :  { %17350 = vmatprep.subr.msk.bf16.mxu1 %vm2939_vm3, %v13462_v14 }
 0x3e5   :  { %15325 = vmatmul.mubr.msk.bf16.gmra.mrb[12].mxu1 %vm30_vm2, %v18462_v63  ;;  %v4592_v63 = vsel %vm2939_vm3, %v13462_v14, 0  ;;  %v4797_v14 = vld [vmem:[#allocation2 + $0xe8] sm:$0xff] }
 0x3e6   :  { %15328 = vmatprep.mubr.msk.bf16.mxu1 %vm30_vm2, %v18485_v15  ;;  %v13479_v15 = vld [vmem:[%s21046_s3 + $0x1c] sm:$0xf] }
 0x3ed   :  { %15329 = vmatmul.mubr.msk.bf16.gmra.mrb[16].mxu1 %vm30_vm2, %v18490_v48  ;;  %v4228_v48 = vld [vmem:[#allocation2 + $0x209] sm:$0xff] }
 0x3ee   :  { %15332 = vmatprep.mubr.msk.bf16.mxu1 %vm30_vm2, %v18513_v18  ;;  %v4229_v18 = vld [vmem:[#allocation2 + $0x211] sm:$0xff] }
 0x3f5   :  { %15333 = vmatmul.mubr.msk.bf16.gmra.mrb[20].mxu1 %vm30_vm2, %v18518_v36  ;;  %v18867_v36 = vpack.c.bf16 %v4229_v18, %v4228_v48 }
 0x3f6   :  { %15336 = vmatprep.mubr.msk.bf16.mxu1 %vm30_vm2, %v18541_v33 }
 0x3fd   :  { %15337 = vmatmul.mubr.msk.bf16.gmra.mrb[24].mxu1 %vm30_vm2, %v18544_v59 }
 0x3fe   :  { %15340 = vmatprep.mubr.msk.bf16.mxu1 %vm30_vm2, %v18571_v6 }
 0x405   :  { %15341 = vmatmul.mubr.msk.bf16.gmra.mrb[28].mxu1 %vm30_vm2, %v18575_v34 }
 0x406   :  { %15344 = vmatprep.mubr.msk.bf16.mxu1 %vm30_vm2, %v18605_v61 }
 0x40d   :  { %15345 = vmatmul.mubr.msk.bf16.gmra.mrb[32].mxu1 %vm30_vm2, %v18607_v55 }
 0x40e   :  { %15348 = vmatprep.mubr.msk.bf16.mxu1 %vm30_vm2, %v18613_v44 }
 0x415   :  { %15349 = vmatmul.mubr.msk.bf16.gmra.mrb[36].mxu1 %vm30_vm2, %v18828_v31 }
 0x416   :  { %15354 = vmatprep.mubr.msk.bf16.mxu1 %vm30_vm2, %v18688_v58  ;;  %v4886_v58 = vsel %vm2939_vm3, %v13479_v15, 0 }
 0x41d   :  { %15355 = vmatmul.mubr.msk.bf16.vlgmr.msra.gmra.mrb[8].mxu1 %vm30_vm2, %v18692_v42 }
 0x41e   :  { %15358 = vmatprep.mubr.msk.bf16.mxu1 %vm30_vm2, %v18702_v23  ;;  %15387 = vmatpush3.bf16.msra.mxu1 %v4592_v63  ;;  %v4825_v63 = vpack.c.bf16 %v4800_v32, %v4799_v45 }
 0x41f   :  { %17351 = vmatprep.subr.msk.bf16.mxu1 %vm2939_vm3, %v13479_v15 }
 0x425   :  { %15359 = vmatmul.mubr.msk.bf16.gmra.mrb[12].mxu1 %vm30_vm2, %v18704_v46 }
 0x426   :  { %15362 = vmatprep.mubr.msk.bf16.mxu1 %vm30_vm2, %v18710_v22 }
 0x42d   :  { %15363 = vmatmul.mubr.msk.bf16.gmra.mrb[16].mxu1 %vm30_vm2, %v18712_v51 }
 0x42e   :  { %15366 = vmatprep.mubr.msk.bf16.mxu1 %vm30_vm2, %v18718_v35 }
 0x435   :  { %15367 = vmatmul.mubr.msk.bf16.gmra.mrb[20].mxu1 %vm30_vm2, %v18720_v50 }
 0x436   :  { %15370 = vmatprep.mubr.msk.bf16.mxu1 %vm30_vm2, %v18726_v37 }
 0x43d   :  { %15371 = vmatmul.mubr.msk.bf16.gmra.mrb[24].mxu1 %vm30_vm2, %v18728_v52 }
 0x43e   :  { %15374 = vmatprep.mubr.msk.bf16.mxu1 %vm30_vm2, %v18734_v2 }
 0x445   :  { %15375 = vmatmul.mubr.msk.bf16.gmra.mrb[28].mxu1 %vm30_vm2, %v18736_v4 }
 0x446   :  { %15378 = vmatprep.mubr.msk.bf16.mxu1 %vm30_vm2, %v18742_v47 }
 0x44d   :  { %15379 = vmatmul.mubr.msk.bf16.gmra.mrb[32].mxu1 %vm30_vm2, %v18744_v40 }
 0x44e   :  { %15382 = vmatprep.mubr.msk.bf16.mxu1 %vm30_vm2, %v18750_v29 }
 0x455   :  { %15383 = vmatmul.mubr.msk.bf16.gmra.mrb[36].mxu1 %vm30_vm2, %v18867_v36 }
 0x456   :  { %15388 = vmatprep.mubr.msk.bf16.mxu1 %vm30_vm2, %v18622_v13  ;;  %v4523_v13 = vld [vmem:[#allocation2 + $0x227] sm:$0xff] }
 0x45d   :  { %15389 = vmatmul.mubr.msk.bf16.vlgmr.msra.gmra.mrb[8].mxu1 %vm30_vm2, %v18635_v20 }
 0x45e   :  { %15392 = vmatprep.mubr.msk.bf16.mxu1 %vm30_vm2, %v18637_v9  ;;  %15421 = vmatpush3.bf16.msra.mxu1 %v4886_v58  ;;  %v4788_v9 = vld [vmem:[#allocation2 + $0x50] sm:$0xff] }
 0x45f   :  { %17352 = vmatprep.subr.msk.bf16.mxu1 %vm2939_vm3, %v13496_v5 }
 0x465   :  { %15393 = vmatmul.mubr.msk.bf16.gmra.mrb[12].mxu1 %vm30_vm2, %v18643_v56  ;;  %v4787_v56 = vld [vmem:[#allocation2 + $0x48] sm:$0xff] }
 0x466   :  { %15396 = vmatprep.mubr.msk.bf16.mxu1 %vm30_vm2, %v18645_v16  ;;  %v4819_v16 = vpack.c.bf16 %v4788_v9, %v4787_v56 }
 0x46d   :  { %15397 = vmatmul.mubr.msk.bf16.gmra.mrb[16].mxu1 %vm30_vm2, %v18651_v41  ;;  %v4792_v41 = vld [vmem:[#allocation2 + $0x90] sm:$0xff] }
 0x46e   :  { %15400 = vmatprep.mubr.msk.bf16.mxu1 %vm30_vm2, %v18653_v0  ;;  %v4789_v0 = vld [vmem:[#allocation2 + $0x68] sm:$0xff] }
 0x475   :  { %15401 = vmatmul.mubr.msk.bf16.gmra.mrb[20].mxu1 %vm30_vm2, %v18659_v10  ;;  %v4791_v10 = vld [vmem:[#allocation2 + $0x88] sm:$0xff] }
 0x476   :  { %15404 = vmatprep.mubr.msk.bf16.mxu1 %vm30_vm2, %v18661_v21  ;;  %v4524_v21 = vld [vmem:[#allocation2 + $0x22f] sm:$0xff] }
 0x477   :  { %v4540_v20 = vpack.c.bf16 %v4524_v21, %v4523_v13 }
 0x47d   :  { %15405 = vmatmul.mubr.msk.bf16.gmra.mrb[24].mxu1 %vm30_vm2, %v18667_v53  ;;  %v4821_v53 = vpack.c.bf16 %v4792_v41, %v4791_v10 }
 0x47e   :  { %15408 = vmatprep.mubr.msk.bf16.mxu1 %vm30_vm2, %v18669_v24  ;;  %v4790_v24 = vld [vmem:[#allocation2 + $0x70] sm:$0xff] }
 0x485   :  { %15409 = vmatmul.mubr.msk.bf16.gmra.mrb[28].mxu1 %vm30_vm2, %v18675_v39  ;;  %v4794_v39 = vld [vmem:[#allocation2 + $0xb0] sm:$0xff] }
 0x486   :  { %15412 = vmatprep.mubr.msk.bf16.mxu1 %vm30_vm2, %v18677_v30  ;;  %v4820_v30 = vpack.c.bf16 %v4790_v24, %v4789_v0  ;;  %v4822_v60 = vpack.c.bf16 %v4794_v39, %v4793_v38 }
 0x48d   :  { %15413 = vmatmul.mubr.msk.bf16.gmra.mrb[32].mxu1 %vm30_vm2, %v18683_v25  ;;  %v5180_v25 = vsel %vm2939_vm3, %v13496_v5, 0 }
 0x48e   :  { %15416 = vmatprep.mubr.msk.bf16.mxu1 %vm30_vm2, %v18789_v19  ;;  %v4798_v19 = vld [vmem:[#allocation2 + $0xf0] sm:$0xff] }
 0x48f   :  { %v4824_v8 = vpack.c.bf16 %v4798_v19, %v4797_v14 }
 0x495   :  { %15417 = vmatmul.mubr.msk.bf16.gmra.mrb[36].mxu1 %vm30_vm2, %v4540_v20 }
 0x496   :  { %15422 = vmatprep.mubr.msk.bf16.mxu1 %vm30_vm2, %v4819_v16 }
 0x49d   :  { %15423 = vmatmul.mubr.msk.bf16.vlgmr.msra.gmra.mrb[8].mxu1 %vm30_vm2, %v4820_v30 }
 0x49e   :  { %15426 = vmatprep.mubr.msk.bf16.mxu1 %vm30_vm2, %v4821_v53  ;;  %15455 = vmatpush3.bf16.msra.mxu1 %v5180_v25 }
 0x4a5   :  { %15427 = vmatmul.mubr.msk.bf16.gmra.mrb[12].mxu1 %vm30_vm2, %v4822_v60 }
 0x4a6   :  { %15430 = vmatprep.mubr.msk.bf16.mxu1 %vm30_vm2, %v4823_v57 }
 0x4ad   :  { %15431 = vmatmul.mubr.msk.bf16.gmra.mrb[16].mxu1 %vm30_vm2, %v4824_v8 }
 0x4ae   :  { %15434 = vmatprep.mubr.msk.bf16.mxu1 %vm30_vm2, %v4825_v63 }
 0x4b5   :  { %15435 = vmatmul.mubr.msk.bf16.gmra.mrb[20].mxu1 %vm30_vm2, %v18541_v33  ;;  %v4817_v33 = vld [vmem:[#allocation2 + $0x228] sm:$0xff] }
 0x4b6   :  { %15438 = vmatprep.mubr.msk.bf16.mxu1 %vm30_vm2, %v18544_v59  ;;  %v4818_v59 = vld [vmem:[#allocation2 + $0x230] sm:$0xff] }
 0x4b7   :  { %v4834_v15 = vpack.c.bf16 %v4818_v59, %v4817_v33  ;;  %v21135_v59 = vmov 0 }
 0x4b8   :  { %v21136_v59 = vsel %vm18996_vm7, 4294967295, %v21135_v59 }
 0x4b9   :  { %21137 = vst [vmem:[#allocation26_spill] sm:$0xff] %v21136_v59  ;;  %v13660_v59 = vld [vmem:[%s21045_s0 + $0x2c2] sm:$0xff] }
 0x4bd   :  { %15439 = vmatmul.mubr.msk.bf16.gmra.mrb[24].mxu1 %vm30_vm2, %v18571_v6 }
 0x4be   :  { %15442 = vmatprep.mubr.msk.bf16.mxu1 %vm30_vm2, %v18575_v34 }
 0x4c5   :  { %15443 = vmatmul.mubr.msk.bf16.gmra.mrb[28].mxu1 %vm30_vm2, %v18605_v61 }
 0x4c6   :  { %15446 = vmatprep.mubr.msk.bf16.mxu1 %vm30_vm2, %v18607_v55 }
 0x4cd   :  { %15447 = vmatmul.mubr.msk.bf16.gmra.mrb[32].mxu1 %vm30_vm2, %v18613_v44 }
 0x4ce   :  { %15450 = vmatprep.mubr.msk.bf16.mxu1 %vm30_vm2, %v18828_v31 }
 0x4d5   :  { %15451 = vmatmul.mubr.msk.bf16.gmra.mrb[36].mxu1 %vm30_vm2, %v4834_v15 }
 0x4d6   :  { %15456 = vmatprep.mubr.msk.bf16.mxu1 %vm30_vm2, %v18692_v42 }
 0x4dd   :  { %15457 = vmatmul.mubr.msk.bf16.vlgmr.msra.gmra.mrb[8].mxu1 %vm30_vm2, %v18702_v23 }
 0x4de   :  { %15460 = vmatprep.mubr.msk.bf16.mxu1 %vm30_vm2, %v18704_v46 }
 0x4e5   :  { %15461 = vmatmul.mubr.msk.bf16.gmra.mrb[12].mxu1 %vm30_vm2, %v18710_v22  ;;  %v5112_v22 = vld [vmem:[#allocation2 + $0x231] sm:$0xff] }
 0x4e6   :  { %15464 = vmatprep.mubr.msk.bf16.mxu1 %vm30_vm2, %v18712_v51 }
 0x4ed   :  { %15465 = vmatmul.mubr.msk.bf16.gmra.mrb[16].mxu1 %vm30_vm2, %v18718_v35 }
 0x4ee   :  { %15468 = vmatprep.mubr.msk.bf16.mxu1 %vm30_vm2, %v18720_v50 }
 0x4f5   :  { %15469 = vmatmul.mubr.msk.bf16.gmra.mrb[20].mxu1 %vm30_vm2, %v18726_v37  ;;  %v5111_v37 = vld [vmem:[#allocation2 + $0x229] sm:$0xff] }
 0x4f6   :  { %15472 = vmatprep.mubr.msk.bf16.mxu1 %vm30_vm2, %v18728_v52  ;;  %v5128_v50 = vpack.c.bf16 %v5112_v22, %v5111_v37 }
 0x4fd   :  { %15473 = vmatmul.mubr.msk.bf16.gmra.mrb[24].mxu1 %vm30_vm2, %v18734_v2 }
 0x4fe   :  { %15476 = vmatprep.mubr.msk.bf16.mxu1 %vm30_vm2, %v18736_v4  ;;  %v18966_v4 = vld [vmem:[%s21048_s7] sm:$0xff] }
 0x4ff   :  { %15506 = vmatprep.mubr.msk.f32.mxu0 %vm5578_vm4, %v18966_v4 }
 0x505   :  { %15477 = vmatmul.mubr.msk.bf16.gmra.mrb[28].mxu1 %vm30_vm2, %v18742_v47  ;;  %v18975_v47 = vld [vmem:[%s21049_s4] ss:$0 sm:$0xff] }
 0x506   :  { %15480 = vmatprep.mubr.msk.bf16.mxu1 %vm30_vm2, %v18744_v40 }
 0x50d   :  { %15481 = vmatmul.mubr.msk.bf16.gmra.mrb[32].mxu1 %vm30_vm2, %v18750_v29 }
 0x50e   :  { %15484 = vmatprep.mubr.msk.bf16.mxu1 %vm30_vm2, %v18867_v36 }
 0x515   :  { %15485 = vmatmul.mubr.msk.bf16.gmra.mrb[36].mxu1 %vm30_vm2, %v5128_v50 }
 0x516   :  { %15492 = vmatprep.mubr.msk.f32.mxu1 %vm5578_vm4, %v18966_v4 }
 0x5b0   :  { %v15458_v2 = vpop.f32.mrb[8].mxu1 }
 0x5b1   :  { %v5384_v40 = vadd.f32 %v15458_v2, %v18975_v47  ;;  %v5216_v35 = vpop.f32.mrb[9].mxu1  ;;  %v19005_v2 = vld [vmem:[%s21048_s7 + $0x8] sm:$0xff] }
 0x5b2   :  { %v5382_v52 = vadd.f32 %v18975_v47, %v5216_v35  ;;  %v15459_v42 = vpop.f32.mrb[10].mxu1 }
 0x5b3   :  { %v5416_v51 = vmax.f32 %v5384_v40, 0.0  ;;  %v5385_v6 = vadd.f32 %v15459_v42, %v18975_v47  ;;  %v5219_v34 = vpop.f32.mrb[11].mxu1 }
 0x5b4   :  { %v5414_v61 = vmax.f32 %v5382_v52, 0.0  ;;  %v5383_v55 = vadd.f32 %v18975_v47, %v5219_v34 }
 0x5b5   :  { %5448 = vst.msk [vmem:[#allocation3 + $0x10] sm:$0xff] %vm30_vm2, %v5416_v51  ;;  %v5417_v44 = vmax.f32 %v5385_v6, 0.0 }
 0x5b6   :  { %5446 = vst.msk [vmem:[#allocation3] sm:$0xff] %vm30_vm2, %v5414_v61  ;;  %v5415_v23 = vmax.f32 %v5383_v55, 0.0 }
 0x5b7   :  { %5449 = vst.msk [vmem:[#allocation3 + $0x18] sm:$0xff] %vm30_vm2, %v5417_v44 }
 0x5b8   :  { %5447 = vst.msk [vmem:[#allocation3 + $0x8] sm:$0xff] %vm30_vm2, %v5415_v23  ;;  %v15462_v46 = vpop.f32.mrb[12].mxu1 }
 0x5b9   :  { %v5388_v29 = vadd.f32 %v15462_v46, %v18975_v47  ;;  %v5232_v31 = vpop.f32.mrb[13].mxu1 }
 0x5ba   :  { %v5386_v48 = vadd.f32 %v18975_v47, %v5232_v31  ;;  %v15463_v18 = vpop.f32.mrb[14].mxu1 }
 0x5bb   :  { %v5420_v36 = vmax.f32 %v5388_v29, 0.0  ;;  %v5389_v58 = vadd.f32 %v15463_v18, %v18975_v47  ;;  %v5235_v5 = vpop.f32.mrb[15].mxu1 }
 0x5bc   :  { %v5418_v13 = vmax.f32 %v5386_v48, 0.0  ;;  %v5387_v21 = vadd.f32 %v18975_v47, %v5235_v5  ;;  %v5480_v56 = vld [vmem:[#allocation3 + $0x10] sm:$0xff] }
 0x5bd   :  { %5452 = vst.msk [vmem:[#allocation3 + $0x30] sm:$0xff] %vm30_vm2, %v5420_v36  ;;  %v5421_v20 = vmax.f32 %v5389_v58, 0.0  ;;  %v5478_v9 = vld [vmem:[#allocation3] sm:$0xff] }
 0x5be   :  { %5450 = vst.msk [vmem:[#allocation3 + $0x20] sm:$0xff] %vm30_vm2, %v5418_v13  ;;  %v5419_v16 = vmax.f32 %v5387_v21, 0.0  ;;  %v5481_v24 = vld [vmem:[#allocation3 + $0x18] sm:$0x7f] }
 0x5bf   :  { %v5512_v41 = vld [vmem:[#allocation3 + $0x11] sm:$0xff]  ;;  %v5513_v0 = vld [vmem:[#allocation3 + $0x19] sm:$0x7f]  ;;  %5453 = vst.msk [vmem:[#allocation3 + $0x38] sm:$0xff] %vm30_vm2, %v5421_v20  ;;  %v5479_v30 = vld [vmem:[#allocation3 + $0x8] sm:$0x7f] }
 0x5c0   :  { %v5510_v10 = vld [vmem:[#allocation3 + $0x1] sm:$0xff]  ;;  %v5511_v25 = vld [vmem:[#allocation3 + $0x9] sm:$0x7f]  ;;  %v5544_v53 = vmax.f32 %v5480_v56, %v5512_v41  ;;  %v5545_v39 = vmax.f32 %v5481_v24, %v5513_v0  ;;  %5451 = vst.msk [vmem:[#allocation3 + $0x28] sm:$0xff] %vm30_vm2, %v5419_v16  ;;  %v15466_v12 = vpop.f32.mrb[16].mxu1 }
 0x5c1   :  { %v5542_v38 = vmax.f32 %v5478_v9, %v5510_v10  ;;  %v5543_v60 = vmax.f32 %v5479_v30, %v5511_v25  ;;  %v5392_v28 = vadd.f32 %v15466_v12, %v18975_v47  ;;  %v5248_v57 = vpop.f32.mrb[17].mxu1 }
 0x5c2   :  { %v5390_v19 = vadd.f32 %v18975_v47, %v5248_v57  ;;  %v15467_v32 = vpop.f32.mrb[18].mxu1 }
 0x5c3   :  { %v5574_v14 = vmax.f32 %v5542_v38, %v5544_v53  ;;  %v5575_v8 = vmax.f32 %v5543_v60, %v5545_v39  ;;  %v5424_v45 = vmax.f32 %v5392_v28, 0.0  ;;  %v5393_v63 = vadd.f32 %v15467_v32, %v18975_v47  ;;  %v5251_v33 = vpop.f32.mrb[19].mxu1 }
 0x5c4   :  { %v5422_v15 = vmax.f32 %v5390_v19, 0.0  ;;  %v5391_v37 = vadd.f32 %v18975_v47, %v5251_v33  ;;  %v5484_v35 = vld [vmem:[#allocation3 + $0x30] sm:$0xff] }
 0x5c5   :  { %v16212_v22 = vpack.c.bf16 %v5575_v8, %v5574_v14  ;;  %5456 = vst.msk [vmem:[#allocation3 + $0x50] sm:$0xff] %vm30_vm2, %v5424_v45  ;;  %v5425_v50 = vmax.f32 %v5393_v63, 0.0  ;;  %v5482_v40 = vld [vmem:[#allocation3 + $0x20] sm:$0xff] }
 0x5c6   :  { %5454 = vst.msk [vmem:[#allocation3 + $0x40] sm:$0xff] %vm30_vm2, %v5422_v15  ;;  %v5423_v52 = vmax.f32 %v5391_v37, 0.0  ;;  %v5485_v42 = vld [vmem:[#allocation3 + $0x38] sm:$0x7f] }
 0x5c7   :  { %16214 = vmatprep.subr.msk.bf16.mxu1 %vm18996_vm7, %v16212_v22  ;;  %v5516_v51 = vld [vmem:[#allocation3 + $0x31] sm:$0xff]  ;;  %v5517_v6 = vld [vmem:[#allocation3 + $0x39] sm:$0x7f]  ;;  %5457 = vst.msk [vmem:[#allocation3 + $0x58] sm:$0xff] %vm30_vm2, %v5425_v50  ;;  %v5483_v34 = vld [vmem:[#allocation3 + $0x28] sm:$0x7f] }
 0x5c8   :  { %16217 = vmatpush3.bf16.msk.msra.mxu1 %vm18996_vm7, %v16212_v22  ;;  %v5514_v61 = vld [vmem:[#allocation3 + $0x21] sm:$0xff]  ;;  %v5515_v55 = vld [vmem:[#allocation3 + $0x29] sm:$0x7f]  ;;  %v5548_v44 = vmax.f32 %v5484_v35, %v5516_v51  ;;  %v5549_v23 = vmax.f32 %v5485_v42, %v5517_v6  ;;  %5455 = vst.msk [vmem:[#allocation3 + $0x48] sm:$0xff] %vm30_vm2, %v5423_v52  ;;  %v15470_v46 = vpop.f32.mrb[20].mxu1 }
 0x5c9   :  { %v5546_v29 = vmax.f32 %v5482_v40, %v5514_v61  ;;  %v5547_v31 = vmax.f32 %v5483_v34, %v5515_v55  ;;  %v5396_v48 = vadd.f32 %v15470_v46, %v18975_v47  ;;  %v5264_v18 = vpop.f32.mrb[21].mxu1 }
 0x5ca   :  { %v5394_v36 = vadd.f32 %v18975_v47, %v5264_v18  ;;  %v15471_v58 = vpop.f32.mrb[22].mxu1 }
 0x5cb   :  { %15493 = vmatmul.mubr.msk.f32.vlgmr.msra.gmra.mrb[40].mxu1 %vm5578_vm4, %v19005_v2  ;;  %v5664_v5 = vmax.f32 %v5546_v29, %v5548_v44  ;;  %v5665_v13 = vmax.f32 %v5547_v31, %v5549_v23  ;;  %v5428_v21 = vmax.f32 %v5396_v48, 0.0  ;;  %v5397_v20 = vadd.f32 %v15471_v58, %v18975_v47  ;;  %v5267_v9 = vpop.f32.mrb[23].mxu1 }
 0x5cc   :  { %15499 = vmatprep.mubr.msk.f32.mxu1 %vm5578_vm4, %v18966_v4  ;;  %v5426_v56 = vmax.f32 %v5394_v36, 0.0  ;;  %v5395_v16 = vadd.f32 %v18975_v47, %v5267_v9  ;;  %v5488_v30 = vld [vmem:[#allocation3 + $0x50] sm:$0xff] }
 0x5cd   :  { %v16218_v24 = vpack.c.bf16 %v5665_v13, %v5664_v5  ;;  %5460 = vst.msk [vmem:[#allocation3 + $0x70] sm:$0xff] %vm30_vm2, %v5428_v21  ;;  %v5429_v41 = vmax.f32 %v5397_v20, 0.0  ;;  %v5486_v0 = vld [vmem:[#allocation3 + $0x40] sm:$0xff] }
 0x5ce   :  { %5458 = vst.msk [vmem:[#allocation3 + $0x60] sm:$0xff] %vm30_vm2, %v5426_v56  ;;  %v5427_v10 = vmax.f32 %v5395_v16, 0.0  ;;  %v5489_v25 = vld [vmem:[#allocation3 + $0x58] sm:$0x7f] }
 0x5cf   :  { %16220 = vmatprep.subr.msk.bf16.mxu1 %vm18996_vm7, %v16218_v24  ;;  %v5520_v53 = vld [vmem:[#allocation3 + $0x51] sm:$0xff]  ;;  %v5521_v39 = vld [vmem:[#allocation3 + $0x59] sm:$0x7f]  ;;  %5461 = vst.msk [vmem:[#allocation3 + $0x78] sm:$0xff] %vm30_vm2, %v5429_v41  ;;  %v5487_v12 = vld [vmem:[#allocation3 + $0x48] sm:$0x7f] }
 0x5d0   :  { %16223 = vmatpush3.bf16.msk.msra.mxu1 %vm18996_vm7, %v16218_v24  ;;  %v5518_v38 = vld [vmem:[#allocation3 + $0x41] sm:$0xff]  ;;  %v5519_v60 = vld [vmem:[#allocation3 + $0x49] sm:$0x7f]  ;;  %v5552_v28 = vmax.f32 %v5488_v30, %v5520_v53  ;;  %v5553_v57 = vmax.f32 %v5489_v25, %v5521_v39  ;;  %5459 = vst.msk [vmem:[#allocation3 + $0x68] sm:$0xff] %vm30_vm2, %v5427_v10  ;;  %v15474_v19 = vpop.f32.mrb[24].mxu1 }
 0x5d1   :  { %v5550_v32 = vmax.f32 %v5486_v0, %v5518_v38  ;;  %v5551_v14 = vmax.f32 %v5487_v12, %v5519_v60  ;;  %v5400_v8 = vadd.f32 %v15474_v19, %v18975_v47  ;;  %v5280_v45 = vpop.f32.mrb[25].mxu1 }
 0x5d2   :  { %v5398_v63 = vadd.f32 %v18975_v47, %v5280_v45  ;;  %v15475_v33 = vpop.f32.mrb[26].mxu1 }
 0x5d3   :  { %15500 = vmatmul.mubr.msk.f32.vlgmr.msra.gmra.mrb[42].mxu1 %vm5578_vm4, %v19005_v2  ;;  %v5744_v15 = vmax.f32 %v5550_v32, %v5552_v28  ;;  %v5745_v37 = vmax.f32 %v5551_v14, %v5553_v57  ;;  %v5432_v22 = vmax.f32 %v5400_v8, 0.0  ;;  %v5401_v50 = vadd.f32 %v15475_v33, %v18975_v47  ;;  %v5283_v40 = vpop.f32.mrb[27].mxu1 }
 0x5d4   :  { %15513 = vmatprep.mubr.msk.f32.mxu1 %vm5578_vm4, %v18966_v4  ;;  %v5430_v35 = vmax.f32 %v5398_v63, 0.0  ;;  %v5399_v52 = vadd.f32 %v18975_v47, %v5283_v40  ;;  %v5492_v34 = vld [vmem:[#allocation3 + $0x70] sm:$0xff] }
 0x5d5   :  { %v16224_v42 = vpack.c.bf16 %v5745_v37, %v5744_v15  ;;  %5464 = vst.msk [vmem:[#allocation3 + $0x90] sm:$0xff] %vm30_vm2, %v5432_v22  ;;  %v5433_v51 = vmax.f32 %v5401_v50, 0.0  ;;  %v5490_v6 = vld [vmem:[#allocation3 + $0x60] sm:$0xff] }
 0x5d6   :  { %5462 = vst.msk [vmem:[#allocation3 + $0x80] sm:$0xff] %vm30_vm2, %v5430_v35  ;;  %v5431_v61 = vmax.f32 %v5399_v52, 0.0  ;;  %v5493_v55 = vld [vmem:[#allocation3 + $0x78] sm:$0x7f] }
 0x5d7   :  { %16226 = vmatprep.subr.msk.bf16.mxu0 %vm18996_vm7, %v16224_v42  ;;  %v5524_v44 = vld [vmem:[#allocation3 + $0x71] sm:$0xff]  ;;  %v5525_v23 = vld [vmem:[#allocation3 + $0x79] sm:$0x7f]  ;;  %5465 = vst.msk [vmem:[#allocation3 + $0x98] sm:$0xff] %vm30_vm2, %v5433_v51  ;;  %v5491_v46 = vld [vmem:[#allocation3 + $0x68] sm:$0x7f] }
 0x5d8   :  { %16229 = vmatpush3.bf16.msk.msra.mxu0 %vm18996_vm7, %v16224_v42  ;;  %v5522_v29 = vld [vmem:[#allocation3 + $0x61] sm:$0xff]  ;;  %v5523_v31 = vld [vmem:[#allocation3 + $0x69] sm:$0x7f]  ;;  %v5556_v48 = vmax.f32 %v5492_v34, %v5524_v44  ;;  %v5557_v18 = vmax.f32 %v5493_v55, %v5525_v23  ;;  %5463 = vst.msk [vmem:[#allocation3 + $0x88] sm:$0xff] %vm30_vm2, %v5431_v61  ;;  %v15478_v36 = vpop.f32.mrb[28].mxu1 }
 0x5d9   :  { %v5554_v58 = vmax.f32 %v5490_v6, %v5522_v29  ;;  %v5555_v5 = vmax.f32 %v5491_v46, %v5523_v31  ;;  %v5404_v13 = vadd.f32 %v15478_v36, %v18975_v47  ;;  %v5296_v21 = vpop.f32.mrb[29].mxu1 }
 0x5da   :  { %v5402_v20 = vadd.f32 %v18975_v47, %v5296_v21  ;;  %v15479_v9 = vpop.f32.mrb[30].mxu1 }
 0x5db   :  { %15507 = vmatmul.mubr.msk.f32.vlgmr.msra.gmra.mrb[32].mxu0 %vm5578_vm4, %v19005_v2  ;;  %v5824_v56 = vmax.f32 %v5554_v58, %v5556_v48  ;;  %v5825_v16 = vmax.f32 %v5555_v5, %v5557_v18  ;;  %v5436_v24 = vmax.f32 %v5404_v13, 0.0  ;;  %v5405_v41 = vadd.f32 %v15479_v9, %v18975_v47  ;;  %v5299_v0 = vpop.f32.mrb[31].mxu1 }
 0x5dc   :  { %15520 = vmatprep.mubr.msk.f32.mxu0 %vm5578_vm4, %v18966_v4  ;;  %v5434_v30 = vmax.f32 %v5402_v20, 0.0  ;;  %v5403_v10 = vadd.f32 %v18975_v47, %v5299_v0  ;;  %v5496_v12 = vld [vmem:[#allocation3 + $0x90] sm:$0xff] }
 0x5dd   :  { %v16230_v25 = vpack.c.bf16 %v5825_v16, %v5824_v56  ;;  %5468 = vst.msk [vmem:[#allocation3 + $0xb0] sm:$0xff] %vm30_vm2, %v5436_v24  ;;  %v5437_v53 = vmax.f32 %v5405_v41, 0.0  ;;  %v5494_v39 = vld [vmem:[#allocation3 + $0x80] sm:$0xff] }
 0x5de   :  { %5466 = vst.msk [vmem:[#allocation3 + $0xa0] sm:$0xff] %vm30_vm2, %v5434_v30  ;;  %v5435_v38 = vmax.f32 %v5403_v10, 0.0  ;;  %v5497_v60 = vld [vmem:[#allocation3 + $0x98] sm:$0x7f] }
 0x5df   :  { %16232 = vmatprep.subr.msk.bf16.mxu1 %vm18996_vm7, %v16230_v25  ;;  %v5528_v28 = vld [vmem:[#allocation3 + $0x91] sm:$0xff]  ;;  %v5529_v57 = vld [vmem:[#allocation3 + $0x99] sm:$0x7f]  ;;  %5469 = vst.msk [vmem:[#allocation3 + $0xb8] sm:$0xff] %vm30_vm2, %v5437_v53  ;;  %v5495_v19 = vld [vmem:[#allocation3 + $0x88] sm:$0x7f] }
 0x5e0   :  { %16235 = vmatpush3.bf16.msk.msra.mxu1 %vm18996_vm7, %v16230_v25  ;;  %v5526_v32 = vld [vmem:[#allocation3 + $0x81] sm:$0xff]  ;;  %v5527_v14 = vld [vmem:[#allocation3 + $0x89] sm:$0x7f]  ;;  %v5560_v8 = vmax.f32 %v5496_v12, %v5528_v28  ;;  %v5561_v45 = vmax.f32 %v5497_v60, %v5529_v57  ;;  %5467 = vst.msk [vmem:[#allocation3 + $0xa8] sm:$0xff] %vm30_vm2, %v5435_v38  ;;  %v15482_v63 = vpop.f32.mrb[32].mxu1 }
 0x5e1   :  { %v5558_v33 = vmax.f32 %v5494_v39, %v5526_v32  ;;  %v5559_v15 = vmax.f32 %v5495_v19, %v5527_v14  ;;  %v5408_v37 = vadd.f32 %v15482_v63, %v18975_v47  ;;  %v5312_v22 = vpop.f32.mrb[33].mxu1 }
 0x5e2   :  { %v5406_v50 = vadd.f32 %v18975_v47, %v5312_v22  ;;  %v15483_v40 = vpop.f32.mrb[34].mxu1 }
 0x5e3   :  { %15514 = vmatmul.mubr.msk.f32.vlgmr.msra.gmra.mrb[44].mxu1 %vm5578_vm4, %v19005_v2  ;;  %v5904_v35 = vmax.f32 %v5558_v33, %v5560_v8  ;;  %v5905_v52 = vmax.f32 %v5559_v15, %v5561_v45  ;;  %v5440_v42 = vmax.f32 %v5408_v37, 0.0  ;;  %v5409_v51 = vadd.f32 %v15483_v40, %v18975_v47  ;;  %v5315_v6 = vpop.f32.mrb[35].mxu1 }
 0x5e4   :  { %15527 = vmatprep.mubr.msk.f32.mxu1 %vm5578_vm4, %v18966_v4  ;;  %v5438_v34 = vmax.f32 %v5406_v50, 0.0  ;;  %v5407_v61 = vadd.f32 %v18975_v47, %v5315_v6  ;;  %v5500_v46 = vld [vmem:[#allocation3 + $0xb0] sm:$0xff] }
 0x5e5   :  { %v16236_v55 = vpack.c.bf16 %v5905_v52, %v5904_v35  ;;  %5472 = vst.msk [vmem:[#allocation3 + $0xd0] sm:$0xff] %vm30_vm2, %v5440_v42  ;;  %v5441_v44 = vmax.f32 %v5409_v51, 0.0  ;;  %v5498_v23 = vld [vmem:[#allocation3 + $0xa0] sm:$0xff] }
 0x5e6   :  { %5470 = vst.msk [vmem:[#allocation3 + $0xc0] sm:$0xff] %vm30_vm2, %v5438_v34  ;;  %v5439_v29 = vmax.f32 %v5407_v61, 0.0  ;;  %v5501_v31 = vld [vmem:[#allocation3 + $0xb8] sm:$0x7f] }
 0x5e7   :  { %16238 = vmatprep.subr.msk.bf16.mxu0 %vm18996_vm7, %v16236_v55  ;;  %v5532_v48 = vld [vmem:[#allocation3 + $0xb1] sm:$0xff]  ;;  %v5533_v18 = vld [vmem:[#allocation3 + $0xb9] sm:$0x7f]  ;;  %5473 = vst.msk [vmem:[#allocation3 + $0xd8] sm:$0xff] %vm30_vm2, %v5441_v44  ;;  %v5499_v36 = vld [vmem:[#allocation3 + $0xa8] sm:$0x7f] }
 0x5e8   :  { %16241 = vmatpush3.bf16.msk.msra.mxu0 %vm18996_vm7, %v16236_v55  ;;  %v5530_v58 = vld [vmem:[#allocation3 + $0xa1] sm:$0xff]  ;;  %v5531_v5 = vld [vmem:[#allocation3 + $0xa9] sm:$0x7f]  ;;  %v5564_v13 = vmax.f32 %v5500_v46, %v5532_v48  ;;  %v5565_v21 = vmax.f32 %v5501_v31, %v5533_v18  ;;  %5471 = vst.msk [vmem:[#allocation3 + $0xc8] sm:$0xff] %vm30_vm2, %v5439_v29  ;;  %v15486_v20 = vpop.f32.mrb[36].mxu1 }
 0x5e9   :  { %v5562_v9 = vmax.f32 %v5498_v23, %v5530_v58  ;;  %v5563_v56 = vmax.f32 %v5499_v36, %v5531_v5  ;;  %v5412_v16 = vadd.f32 %v15486_v20, %v18975_v47  ;;  %v5328_v24 = vpop.f32.mrb[37].mxu1  ;;  %v13572_v58 = vld [vmem:[%s21045_s0 + $0x1b1] sm:$0xff]  ;;  %v13573_v5 = vld [vmem:[%s21045_s0 + $0x1b9] sm:$0xff]  ;;  %v13574_v20 = vld [vmem:[%s21045_s0 + $0x1c9] sm:$0xff] }
 0x5ea   :  { %v5410_v41 = vadd.f32 %v18975_v47, %v5328_v24  ;;  %v15487_v0 = vpop.f32.mrb[38].mxu1  ;;  %v13577_v24 = vld [vmem:[%s21045_s0 + $0x1e9] sm:$0xff] }
 0x5eb   :  { %15521 = vmatmul.mubr.msk.f32.vlgmr.msra.gmra.mrb[34].mxu0 %vm5578_vm4, %v19005_v2  ;;  %v5984_v30 = vmax.f32 %v5562_v9, %v5564_v13  ;;  %v5985_v10 = vmax.f32 %v5563_v56, %v5565_v21  ;;  %v5444_v25 = vmax.f32 %v5412_v16, 0.0  ;;  %v5413_v53 = vadd.f32 %v15487_v0, %v18975_v47  ;;  %v5331_v39 = vpop.f32.mrb[39].mxu1  ;;  %v13604_v13 = vld [vmem:[%s21044_s1 + $0x2] sm:$0x3]  ;;  %v13575_v9 = vld [vmem:[%s21045_s0 + $0x1d1] sm:$0xff] }
 0x5ec   :  { %15534 = vmatprep.mubr.msk.f32.mxu0 %vm5578_vm4, %v18966_v4  ;;  %v5442_v12 = vmax.f32 %v5410_v41, 0.0  ;;  %v5411_v38 = vadd.f32 %v18975_v47, %v5331_v39  ;;  %v5504_v19 = vld [vmem:[#allocation3 + $0xd0] sm:$0xff]  ;;  %v6639_v21 = vpack.c.bf16 %v13573_v5, %v13572_v58  ;;  %v6705_v56 = vsel %vm251_vm0, %v13604_v13, 0  ;;  %v13576_v16 = vld [vmem:[%s21045_s0 + $0x1e1] sm:$0xff]  ;;  %v13541_v5 = vld [vmem:[%s21045_s0 + $0x1b8] sm:$0xff] }
 0x5ed   :  { %v16242_v60 = vpack.c.bf16 %v5985_v10, %v5984_v30  ;;  %5476 = vst.msk [vmem:[#allocation3 + $0xf0] sm:$0xff] %vm30_vm2, %v5444_v25  ;;  %v5445_v28 = vmax.f32 %v5413_v53, 0.0  ;;  %v5502_v57 = vld [vmem:[#allocation3 + $0xc0] sm:$0xff]  ;;  %v19136_v0 = vpack.c.bf16 %v13575_v9, %v13574_v20  ;;  %v19139_v30 = vpack.c.bf16 %v13577_v24, %v13576_v16  ;;  %v13580_v39 = vld [vmem:[%s21045_s0 + $0x211] sm:$0xff]  ;;  %v13542_v20 = vld [vmem:[%s21045_s0 + $0x1c8] sm:$0xff] }
 0x5ee   :  { %5474 = vst.msk [vmem:[#allocation3 + $0xe0] sm:$0xff] %vm30_vm2, %v5442_v12  ;;  %v5443_v32 = vmax.f32 %v5411_v38, 0.0  ;;  %v5505_v14 = vld [vmem:[#allocation3 + $0xd8] sm:$0x7f]  ;;  %v6606_v41 = vld [vmem:[%s21044_s1] sm:$0x3] }
 0x5ef   :  { %16244 = vmatprep.subr.msk.bf16.mxu1 %vm18996_vm7, %v16242_v60  ;;  %v5536_v8 = vld [vmem:[#allocation3 + $0xd1] sm:$0xff]  ;;  %v5537_v45 = vld [vmem:[#allocation3 + $0xd9] sm:$0x7f]  ;;  %5477 = vst.msk [vmem:[#allocation3 + $0xf8] sm:$0xff] %vm30_vm2, %v5445_v28  ;;  %v5503_v47 = vld [vmem:[#allocation3 + $0xc8] sm:$0x7f] }
 0x5f0   :  { %16247 = vmatpush3.bf16.msk.msra.mxu1 %vm18996_vm7, %v16242_v60  ;;  %v5534_v63 = vld [vmem:[#allocation3 + $0xc1] sm:$0xff]  ;;  %v5535_v33 = vld [vmem:[#allocation3 + $0xc9] sm:$0x7f]  ;;  %v5568_v15 = vmax.f32 %v5504_v19, %v5536_v8  ;;  %v5569_v37 = vmax.f32 %v5505_v14, %v5537_v45  ;;  %5475 = vst.msk [vmem:[#allocation3 + $0xe8] sm:$0xff] %vm30_vm2, %v5443_v32  ;;  %v6917_v10 = vsel %vm251_vm0, %v6606_v41, 0  ;;  %v13581_v12 = vld [vmem:[%s21045_s0 + $0x219] sm:$0xff] }
 0x5f1   :  { %v5566_v22 = vmax.f32 %v5502_v57, %v5534_v63  ;;  %v5567_v50 = vmax.f32 %v5503_v47, %v5535_v33  ;;  %v19146_v25 = vld [vmem:[%s21044_s1 + $0x4] sm:$0x3]  ;;  %v19168_v60 = vpack.c.bf16 %v13581_v12, %v13580_v39  ;;  %v13582_v28 = vld [vmem:[%s21045_s0 + $0x229] sm:$0xff]  ;;  %v13583_v57 = vld [vmem:[%s21045_s0 + $0x231] sm:$0xff] }
 0x5f2   :  { %v13579_v53 = vld [vmem:[%s21045_s0 + $0x201] sm:$0xff]  ;;  %v13585_v32 = vld [vmem:[%s21045_s0 + $0x249] sm:$0xff]  ;;  %v19186_v14 = vpack.c.bf16 %v13583_v57, %v13582_v28  ;;  %v13586_v45 = vld [vmem:[%s21045_s0 + $0x259] sm:$0xff] }
 0x5f3   :  { %15528 = vmatmul.mubr.msk.f32.vlgmr.msra.gmra.mrb[46].mxu1 %vm5578_vm4, %v19005_v2  ;;  %v6064_v40 = vmax.f32 %v5566_v22, %v5568_v15  ;;  %v6065_v35 = vmax.f32 %v5567_v50, %v5569_v37  ;;  %v13584_v19 = vld [vmem:[%s21045_s0 + $0x241] sm:$0xff]  ;;  %v13588_v63 = vld [vmem:[%s21045_s0 + $0x271] sm:$0xff]  ;;  %v13589_v33 = vld [vmem:[%s21045_s0 + $0x279] sm:$0xff] }
 0x5f4   :  { %15541 = vmatprep.mubr.msk.f32.mxu1 %vm5578_vm4, %v18966_v4  ;;  %v5508_v51 = vld [vmem:[#allocation3 + $0xf0] sm:$0xff]  ;;  %v19188_v8 = vpack.c.bf16 %v13585_v32, %v13584_v19  ;;  %v13587_v47 = vld [vmem:[%s21045_s0 + $0x261] sm:$0xff]  ;;  %v19208_v37 = vpack.c.bf16 %v13589_v33, %v13588_v63  ;;  %v13549_v12 = vld [vmem:[%s21045_s0 + $0x218] sm:$0xff] }
 0x5f5   :  { %v16248_v52 = vpack.c.bf16 %v6065_v35, %v6064_v40  ;;  %v5506_v42 = vld [vmem:[#allocation3 + $0xe0] sm:$0xff]  ;;  %v19206_v15 = vpack.c.bf16 %v13587_v47, %v13586_v45  ;;  %v13590_v22 = vld [vmem:[%s21045_s0 + $0x289] sm:$0xff]  ;;  %v13591_v50 = vld [vmem:[%s21045_s0 + $0x291] sm:$0xff] }
 0x5f6   :  { %v5509_v6 = vld [vmem:[#allocation3 + $0xf8] sm:$0x7f]  ;;  %v13592_v40 = vld [vmem:[%s21045_s0 + $0x2a1] sm:$0xff]  ;;  %v13593_v35 = vld [vmem:[%s21045_s0 + $0x2a9] sm:$0xff] }
 0x5f7   :  { %16250 = vmatprep.subr.msk.bf16.mxu0 %vm18996_vm7, %v16248_v52  ;;  %v5540_v34 = vld [vmem:[#allocation3 + $0xf1] sm:$0xff]  ;;  %v5541_v61 = vld [vmem:[#allocation3 + $0xf9] sm:$0x7f]  ;;  %v5507_v55 = vld [vmem:[#allocation3 + $0xe8] sm:$0x7f] }
 0x5f8   :  { %16253 = vmatpush3.bf16.msk.msra.mxu0 %vm18996_vm7, %v16248_v52  ;;  %v5538_v44 = vld [vmem:[#allocation3 + $0xe1] sm:$0xff]  ;;  %v5539_v23 = vld [vmem:[#allocation3 + $0xe9] sm:$0x7f]  ;;  %v5572_v46 = vmax.f32 %v5508_v51, %v5540_v34  ;;  %v5573_v29 = vmax.f32 %v5509_v6, %v5541_v61  ;;  %v19226_v52 = vpack.c.bf16 %v13591_v50, %v13590_v22  ;;  %v13594_v51 = vld [vmem:[%s21045_s0 + $0x2b9] sm:$0xff] }
 0x5f9   :  { %v5570_v31 = vmax.f32 %v5506_v42, %v5538_v44  ;;  %v5571_v48 = vmax.f32 %v5507_v55, %v5539_v23  ;;  %v19228_v42 = vpack.c.bf16 %v13593_v35, %v13592_v40  ;;  %v13595_v6 = vld [vmem:[%s21045_s0 + $0x2c1] sm:$0xff]  ;;  %v13596_v34 = vld [vmem:[%s21045_s0 + $0x2d1] sm:$0xff]  ;;  %v13597_v61 = vld [vmem:[%s21045_s0 + $0x2d9] sm:$0xff] }
 0x5fa   :  { %v19246_v55 = vpack.c.bf16 %v13595_v6, %v13594_v51  ;;  %v19248_v44 = vpack.c.bf16 %v13597_v61, %v13596_v34  ;;  %v13598_v23 = vld [vmem:[%s21045_s0 + $0x2e9] sm:$0xff]  ;;  %v13547_v39 = vld [vmem:[%s21045_s0 + $0x200] sm:$0xff]  ;;  %v13554_v22 = vld [vmem:[%s21045_s0 + $0x258] sm:$0xff] }
 0x5fb   :  { %15535 = vmatmul.mubr.msk.f32.vlgmr.msra.gmra.mrb[36].mxu0 %vm5578_vm4, %v19005_v2  ;;  %v6144_v4 = vmax.f32 %v5570_v31, %v5572_v46  ;;  %v6145_v18 = vmax.f32 %v5571_v48, %v5573_v29  ;;  %v13599_v46 = vld [vmem:[%s21045_s0 + $0x2f1] sm:$0xff]  ;;  %v13600_v29 = vld [vmem:[%s21045_s0 + $0x301] sm:$0xff]  ;;  %v13601_v31 = vld [vmem:[%s21045_s0 + $0x309] sm:$0xff] }
 0x5fc   :  { %v19266_v48 = vpack.c.bf16 %v13599_v46, %v13598_v23  ;;  %v13540_v58 = vld [vmem:[%s21045_s0 + $0x1b0] sm:$0xff]  ;;  %v13545_v16 = vld [vmem:[%s21045_s0 + $0x1e8] sm:$0xff]  ;;  %v13552_v45 = vld [vmem:[%s21045_s0 + $0x240] sm:$0xff] }
 0x5fd   :  { %v16254_v36 = vpack.c.bf16 %v6145_v18, %v6144_v4  ;;  %v19268_v4 = vpack.c.bf16 %v13601_v31, %v13600_v29  ;;  %v13602_v18 = vld [vmem:[%s21045_s0 + $0x319] sm:$0xff]  ;;  %v13543_v9 = vld [vmem:[%s21045_s0 + $0x1d0] sm:$0xff]  ;;  %v13550_v19 = vld [vmem:[%s21045_s0 + $0x228] sm:$0xff] }
 0x5fe   :  { %21138 = vst [vmem:[#allocation27_spill] sm:$0xff] %v19266_v48  ;;  %v19303_v24 = vpack.c.bf16 %v13543_v9, %v13542_v20  ;;  %v13551_v32 = vld [vmem:[%s21045_s0 + $0x230] sm:$0xff]  ;;  %v13553_v47 = vld [vmem:[%s21045_s0 + $0x248] sm:$0xff]  ;;  %v13555_v50 = vld [vmem:[%s21045_s0 + $0x260] sm:$0xff] }
 0x5ff   :  { %16256 = vmatprep.subr.msk.bf16.mxu1 %vm18996_vm7, %v16254_v36  ;;  %21139 = vst [vmem:[#allocation28_spill] sm:$0xff] %v19268_v4  ;;  %v19352_v63 = vpack.c.bf16 %v13551_v32, %v13550_v19  ;;  %v19354_v33 = vpack.c.bf16 %v13553_v47, %v13552_v45  ;;  %v13556_v40 = vld [vmem:[%s21045_s0 + $0x270] sm:$0xff]  ;;  %v13557_v35 = vld [vmem:[%s21045_s0 + $0x278] sm:$0xff]  ;;  %v19372_v51 = vpack.c.bf16 %v13555_v50, %v13554_v22  ;;  %v13558_v34 = vld [vmem:[%s21045_s0 + $0x288] sm:$0xff] }
 0x600   :  { %16259 = vmatpush3.bf16.msk.msra.mxu1 %vm18996_vm7, %v16254_v36  ;;  %v13603_v36 = vld [vmem:[%s21045_s0 + $0x321] sm:$0xff]  ;;  %v19374_v6 = vpack.c.bf16 %v13557_v35, %v13556_v40  ;;  %v13559_v61 = vld [vmem:[%s21045_s0 + $0x290] sm:$0xff] }
 0x601   :  { %17361 = vmatprep.subr.msk.bf16.mxu1 %vm251_vm0, %v13604_v13  ;;  %v19286_v13 = vpack.c.bf16 %v13603_v36, %v13602_v18  ;;  %v13560_v23 = vld [vmem:[%s21045_s0 + $0x2a0] sm:$0xff]  ;;  %v13561_v46 = vld [vmem:[%s21045_s0 + $0x2a8] sm:$0xff]  ;;  %v19392_v29 = vpack.c.bf16 %v13559_v61, %v13558_v34  ;;  %v13562_v18 = vld [vmem:[%s21045_s0 + $0x2b8] sm:$0xff] }
 0x602   :  { %v19394_v31 = vpack.c.bf16 %v13561_v46, %v13560_v23  ;;  %v13563_v36 = vld [vmem:[%s21045_s0 + $0x2c0] sm:$0xff]  ;;  %v13566_v9 = vld [vmem:[%s21045_s0 + $0x2e8] sm:$0xff]  ;;  %v13637_v19 = vld [vmem:[%s21045_s0 + $0x1b2] sm:$0xff] }
 0x603   :  { %15542 = vmatmul.mubr.msk.f32.vlgmr.msra.gmra.mrb[48].mxu1 %vm5578_vm4, %v19005_v2  ;;  %v13578_v2 = vld [vmem:[%s21045_s0 + $0x1f9] sm:$0xff]  ;;  %21140 = vst [vmem:[#allocation29_spill] sm:$0xff] %v19286_v13  ;;  %v13639_v22 = vld [vmem:[%s21045_s0 + $0x1ca] sm:$0xff]  ;;  %v13641_v40 = vld [vmem:[%s21045_s0 + $0x1e2] sm:$0xff] }
 0x604   :  { %15545 = vmatpush3.bf16.msra.mxu1 %v6705_v56  ;;  %15546 = vmatprep.mubr.msk.bf16.mxu1 %vm202_vm1, %v6639_v21  ;;  %v19166_v38 = vpack.c.bf16 %v13579_v53, %v13578_v2  ;;  %v6590_v21 = vpack.c.bf16 %v13541_v5, %v13540_v58  ;;  %v13544_v56 = vld [vmem:[%s21045_s0 + $0x1e0] sm:$0xff]  ;;  %v13546_v53 = vld [vmem:[%s21045_s0 + $0x1f8] sm:$0xff]  ;;  %v13564_v58 = vld [vmem:[%s21045_s0 + $0x2d0] sm:$0xff] }
 0x605   :  { %17362 = vmatprep.subr.msk.bf16.mxu1 %vm251_vm0, %v6606_v41  ;;  %v19305_v41 = vpack.c.bf16 %v13545_v16, %v13544_v56  ;;  %v19312_v2 = vld [vmem:[%s21044_s1 + $0x6] sm:$0x3]  ;;  %v19332_v28 = vpack.c.bf16 %v13547_v39, %v13546_v53  ;;  %v13565_v5 = vld [vmem:[%s21045_s0 + $0x2d8] sm:$0xff]  ;;  %v13567_v56 = vld [vmem:[%s21045_s0 + $0x2f0] sm:$0xff] }
 0x606   :  { %v19414_v20 = vpack.c.bf16 %v13565_v5, %v13564_v58  ;;  %v13568_v16 = vld [vmem:[%s21045_s0 + $0x300] sm:$0xff]  ;;  %v19432_v53 = vpack.c.bf16 %v13567_v56, %v13566_v9  ;;  %v13640_v50 = vld [vmem:[%s21045_s0 + $0x1d2] sm:$0xff]  ;;  %v13642_v35 = vld [vmem:[%s21045_s0 + $0x1ea] sm:$0xff]  ;;  %v7472_v23 = vsel %vm251_vm0, %v19312_v2, 0 }
 0x607   :  { %15547 = vmatmul.mubr.msk.bf16.vlgmr.msra.gmra.mrb[52].mxu1 %vm202_vm1, %v19136_v0  ;;  %v13638_v32 = vld [vmem:[%s21045_s0 + $0x1ba] sm:$0xff]  ;;  %v19469_v34 = vpack.c.bf16 %v13640_v50, %v13639_v22  ;;  %v19471_v61 = vpack.c.bf16 %v13642_v35, %v13641_v40  ;;  %v19478_v46 = vld [vmem:[%s21044_s1 + $0x8] sm:$0x3]  ;;  %v13647_v56 = vld [vmem:[%s21045_s0 + $0x22a] sm:$0xff] }
 0x608   :  { %15550 = vmatprep.mubr.msk.bf16.mxu1 %vm202_vm1, %v19139_v30  ;;  %15579 = vmatpush3.bf16.msra.mxu1 %v6917_v10  ;;  %v7178_v10 = vsel %vm251_vm0, %v19146_v25, 0  ;;  %v7112_v47 = vpack.c.bf16 %v13638_v32, %v13637_v19  ;;  %v13646_v58 = vld [vmem:[%s21045_s0 + $0x21a] sm:$0xff]  ;;  %v13653_v22 = vld [vmem:[%s21045_s0 + $0x272] sm:$0xff] }
 0x609   :  { %17363 = vmatprep.subr.msk.bf16.mxu1 %vm251_vm0, %v19146_v25  ;;  %v13548_v25 = vld [vmem:[%s21045_s0 + $0x210] sm:$0xff]  ;;  %21141 = vst [vmem:[#allocation30_spill] sm:$0xff] %v19469_v34  ;;  %21142 = vst [vmem:[#allocation31_spill] sm:$0xff] %v19471_v61  ;;  %v13651_v32 = vld [vmem:[%s21045_s0 + $0x25a] sm:$0xff] }
 0x60a   :  { %v19334_v57 = vpack.c.bf16 %v13549_v12, %v13548_v25  ;;  %v13570_v25 = vld [vmem:[%s21045_s0 + $0x318] sm:$0xff]  ;;  %v13571_v12 = vld [vmem:[%s21045_s0 + $0x320] sm:$0xff] }
 0x60b   :  { %v19452_v45 = vpack.c.bf16 %v13571_v12, %v13570_v25  ;;  %v13650_v25 = vld [vmem:[%s21045_s0 + $0x24a] sm:$0xff]  ;;  %v13654_v50 = vld [vmem:[%s21045_s0 + $0x27a] sm:$0xff] }
 0x60c   :  { %v19540_v35 = vpack.c.bf16 %v13654_v50, %v13653_v22  ;;  %v13659_v50 = vld [vmem:[%s21045_s0 + $0x2ba] sm:$0xff] }
 0x60e   :  { %21148 = vst [vmem:[#allocation37_spill] sm:$0xff] %v19540_v35 }
 0x60f   :  { %15551 = vmatmul.mubr.msk.bf16.gmra.mrb[56].mxu1 %vm202_vm1, %v19166_v38 }
 0x610   :  { %15554 = vmatprep.mubr.msk.bf16.mxu1 %vm202_vm1, %v19168_v60 }
 0x617   :  { %15555 = vmatmul.mubr.msk.bf16.gmra.mrb[60].mxu1 %vm202_vm1, %v19186_v14 }
 0x618   :  { %15558 = vmatprep.mubr.msk.bf16.mxu1 %vm202_vm1, %v19188_v8 }
 0x61f   :  { %15559 = vmatmul.mubr.msk.bf16.gmra.mrb[64].mxu1 %vm202_vm1, %v19206_v15 }
 0x620   :  { %15562 = vmatprep.mubr.msk.bf16.mxu1 %vm202_vm1, %v19208_v37 }
 0x627   :  { %15563 = vmatmul.mubr.msk.bf16.gmra.mrb[68].mxu1 %vm202_vm1, %v19226_v52 }
 0x628   :  { %15566 = vmatprep.mubr.msk.bf16.mxu1 %vm202_vm1, %v19228_v42 }
 0x62f   :  { %15567 = vmatmul.mubr.msk.bf16.gmra.mrb[72].mxu1 %vm202_vm1, %v19246_v55 }
 0x630   :  { %15570 = vmatprep.mubr.msk.bf16.mxu1 %vm202_vm1, %v19248_v44 }
 0x637   :  { %15571 = vmatmul.mubr.msk.bf16.gmra.mrb[76].mxu1 %vm202_vm1, %v19266_v48 }
 0x638   :  { %15574 = vmatprep.mubr.msk.bf16.mxu1 %vm202_vm1, %v19268_v4 }
 0x63f   :  { %15575 = vmatmul.mubr.msk.bf16.gmra.mrb[80].mxu1 %vm202_vm1, %v19286_v13 }
 0x640   :  { %15580 = vmatprep.mubr.msk.bf16.mxu1 %vm202_vm1, %v6590_v21  ;;  %v19412_v21 = vpack.c.bf16 %v13563_v36, %v13562_v18  ;;  %v13643_v18 = vld [vmem:[%s21045_s0 + $0x1fa] sm:$0xff]  ;;  %v13644_v36 = vld [vmem:[%s21045_s0 + $0x202] sm:$0xff] }
 0x641   :  { %v19498_v5 = vpack.c.bf16 %v13644_v36, %v13643_v18  ;;  %v13655_v36 = vld [vmem:[%s21045_s0 + $0x28a] sm:$0xff] }
 0x643   :  { %21143 = vst [vmem:[#allocation32_spill] sm:$0xff] %v19498_v5 }
 0x647   :  { %15581 = vmatmul.mubr.msk.bf16.vlgmr.msra.gmra.mrb[52].mxu1 %vm202_vm1, %v19303_v24 }
 0x648   :  { %15584 = vmatprep.mubr.msk.bf16.mxu1 %vm202_vm1, %v19305_v41  ;;  %15613 = vmatpush3.bf16.msra.mxu1 %v7178_v10  ;;  %v13569_v10 = vld [vmem:[%s21045_s0 + $0x308] sm:$0xff] }
 0x649   :  { %17364 = vmatprep.subr.msk.bf16.mxu1 %vm251_vm0, %v19312_v2  ;;  %v19434_v39 = vpack.c.bf16 %v13569_v10, %v13568_v16  ;;  %v13645_v2 = vld [vmem:[%s21045_s0 + $0x212] sm:$0xff]  ;;  %v13649_v10 = vld [vmem:[%s21045_s0 + $0x242] sm:$0xff] }
 0x64a   :  { %v19500_v9 = vpack.c.bf16 %v13646_v58, %v13645_v2  ;;  %v13648_v16 = vld [vmem:[%s21045_s0 + $0x232] sm:$0xff]  ;;  %v19520_v19 = vpack.c.bf16 %v13650_v25, %v13649_v10  ;;  %v13657_v58 = vld [vmem:[%s21045_s0 + $0x2a2] sm:$0xff] }
 0x64b   :  { %v19518_v12 = vpack.c.bf16 %v13648_v16, %v13647_v56  ;;  %v13656_v2 = vld [vmem:[%s21045_s0 + $0x292] sm:$0xff]  ;;  %v13658_v56 = vld [vmem:[%s21045_s0 + $0x2aa] sm:$0xff] }
 0x64c   :  { %21144 = vst [vmem:[#allocation33_spill] sm:$0xff] %v19500_v9  ;;  %21146 = vst [vmem:[#allocation35_spill] sm:$0xff] %v19520_v19  ;;  %v19558_v16 = vpack.c.bf16 %v13656_v2, %v13655_v36  ;;  %v19560_v10 = vpack.c.bf16 %v13658_v56, %v13657_v58 }
 0x64d   :  { %21145 = vst [vmem:[#allocation34_spill] sm:$0xff] %v19518_v12 }
 0x64e   :  { %21149 = vst [vmem:[#allocation38_spill] sm:$0xff] %v19558_v16  ;;  %21150 = vst [vmem:[#allocation39_spill] sm:$0xff] %v19560_v10 }
 0x64f   :  { %15585 = vmatmul.mubr.msk.bf16.gmra.mrb[56].mxu1 %vm202_vm1, %v19332_v28 }
 0x650   :  { %15588 = vmatprep.mubr.msk.bf16.mxu1 %vm202_vm1, %v19334_v57 }
 0x657   :  { %15589 = vmatmul.mubr.msk.bf16.gmra.mrb[60].mxu1 %vm202_vm1, %v19352_v63 }
 0x658   :  { %15592 = vmatprep.mubr.msk.bf16.mxu1 %vm202_vm1, %v19354_v33 }
 0x65f   :  { %15593 = vmatmul.mubr.msk.bf16.gmra.mrb[64].mxu1 %vm202_vm1, %v19372_v51 }
 0x660   :  { %15596 = vmatprep.mubr.msk.bf16.mxu1 %vm202_vm1, %v19374_v6 }
 0x667   :  { %15597 = vmatmul.mubr.msk.bf16.gmra.mrb[68].mxu1 %vm202_vm1, %v19392_v29 }
 0x668   :  { %15600 = vmatprep.mubr.msk.bf16.mxu1 %vm202_vm1, %v19394_v31 }
 0x66f   :  { %15601 = vmatmul.mubr.msk.bf16.gmra.mrb[72].mxu1 %vm202_vm1, %v19412_v21 }
 0x670   :  { %15604 = vmatprep.mubr.msk.bf16.mxu1 %vm202_vm1, %v19414_v20 }
 0x677   :  { %15605 = vmatmul.mubr.msk.bf16.gmra.mrb[76].mxu1 %vm202_vm1, %v19432_v53 }
 0x678   :  { %15608 = vmatprep.mubr.msk.bf16.mxu1 %vm202_vm1, %v19434_v39 }
 0x67f   :  { %15609 = vmatmul.mubr.msk.bf16.gmra.mrb[80].mxu1 %vm202_vm1, %v19452_v45 }
 0x680   :  { %15614 = vmatprep.mubr.msk.bf16.mxu1 %vm202_vm1, %v7112_v47  ;;  %v13652_v47 = vld [vmem:[%s21045_s0 + $0x262] sm:$0xff] }
 0x681   :  { %v19538_v40 = vpack.c.bf16 %v13652_v47, %v13651_v32 }
 0x683   :  { %21147 = vst [vmem:[#allocation36_spill] sm:$0xff] %v19538_v40 }
 0x687   :  { %15615 = vmatmul.mubr.msk.bf16.vlgmr.msra.gmra.mrb[52].mxu1 %vm202_vm1, %v19469_v34  ;;  %v13662_v34 = vld [vmem:[%s21045_s0 + $0x2da] sm:$0xff] }
 0x688   :  { %15618 = vmatprep.mubr.msk.bf16.mxu1 %vm202_vm1, %v19471_v61  ;;  %15647 = vmatpush3.bf16.msra.mxu1 %v7472_v23  ;;  %v13661_v61 = vld [vmem:[%s21045_s0 + $0x2d2] sm:$0xff] }
 0x689   :  { %17365 = vmatprep.subr.msk.bf16.mxu1 %vm251_vm0, %v19478_v46 }
 0x68f   :  { %15619 = vmatmul.mubr.msk.bf16.gmra.mrb[56].mxu1 %vm202_vm1, %v19498_v5 }
 0x690   :  { %15622 = vmatprep.mubr.msk.bf16.mxu1 %vm202_vm1, %v19500_v9 }
 0x697   :  { %15623 = vmatmul.mubr.msk.bf16.gmra.mrb[60].mxu1 %vm202_vm1, %v19518_v12 }
 0x698   :  { %15626 = vmatprep.mubr.msk.bf16.mxu1 %vm202_vm1, %v19520_v19 }
 0x69e   :  { %v15494_v23 = vpop.f32.mrb[40].mxu1 }
 0x69f   :  { %15627 = vmatmul.mubr.msk.bf16.gmra.mrb[64].mxu1 %vm202_vm1, %v19538_v40  ;;  %v5655_v18 = vpop.f32.mrb[41].mxu1  ;;  %v6233_v25 = vmul.f32 0.53333336, %v15494_v23  ;;  %v6243_v32 = vmul.f32 0.06666667, %v15494_v23 }
 0x6a0   :  { %15630 = vmatprep.mubr.msk.bf16.mxu1 %vm202_vm1, %v19540_v35  ;;  %v6232_v47 = vmul.f32 0.53333336, %v5655_v18  ;;  %v6242_v36 = vmul.f32 0.06666667, %v5655_v18 }
 0x6a6   :  { %v15501_v22 = vpop.f32.mrb[42].mxu1 }
 0x6a7   :  { %v6225_v35 = vmul.f32 0.0, %v15501_v22  ;;  %v6235_v40 = vmul.f32 0.46666667, %v15501_v22  ;;  %v6245_v19 = vmul.f32 0.93333334, %v15501_v22  ;;  %v5735_v12 = vpop.f32.mrb[43].mxu1  ;;  %15631 = vmatmul.mubr.msk.bf16.gmra.mrb[68].mxu1 %vm202_vm1, %v19558_v16  ;;  %v19578_v16 = vpack.c.bf16 %v13660_v59, %v13659_v50 }
 0x6a8   :  { %v6224_v2 = vmul.f32 0.0, %v5735_v12  ;;  %15634 = vmatprep.mubr.msk.bf16.mxu1 %vm202_vm1, %v19560_v10  ;;  %v6234_v5 = vmul.f32 0.46666667, %v5735_v12  ;;  %v6244_v4 = vmul.f32 0.93333334, %v5735_v12 }
 0x6a9   :  { %v6227_v58 = vadd.f32 %v15494_v23, %v6225_v35  ;;  %v6237_v56 = vadd.f32 %v6235_v40, %v6233_v25  ;;  %v6247_v9 = vadd.f32 %v6245_v19, %v6243_v32  ;;  %v19584_v25 = vpack.c.bf16 %v13662_v34, %v13661_v61  ;;  %v13665_v32 = vld [vmem:[%s21045_s0 + $0x302] sm:$0xff] }
 0x6aa   :  { %v6226_v13 = vadd.f32 %v6224_v2, %v5655_v18  ;;  %v6236_v19 = vadd.f32 %v6234_v5, %v6232_v47  ;;  %v6246_v23 = vadd.f32 %v6244_v4, %v6242_v36  ;;  %v6253_v59 = vmul.f32 0.6, %v15501_v22 }
 0x6ab   :  { %v6229_v48 = vadd.f32 %v6227_v58, %v18393_v43  ;;  %v6239_v10 = vadd.f32 %v6237_v56, %v18389_v26  ;;  %v6249_v40 = vadd.f32 %v6247_v9, %v18413_v27  ;;  %v6263_v18 = vmul.f32 0.13333334, %v15501_v22 }
 0x6ac   :  { %v6228_v35 = vadd.f32 %v6226_v13, %v18385_v11  ;;  %v6238_v43 = vadd.f32 %v6236_v19, %v18382_v1  ;;  %v6248_v26 = vadd.f32 %v6246_v23, %v18405_v7  ;;  %v6252_v27 = vmul.f32 0.6, %v5735_v12  ;;  %v13663_v11 = vld [vmem:[%s21045_s0 + $0x2ea] sm:$0xff] }
 0x6ad   :  { %6231 = vst.msk [vmem:[#allocation4 + $0x8] sm:$0xff] %vm30_vm2, %v6229_v48  ;;  %6241 = vst.msk [vmem:[#allocation4 + $0x18] sm:$0xff] %vm30_vm2, %v6239_v10  ;;  %v13664_v48 = vld [vmem:[%s21045_s0 + $0x2f2] sm:$0xff]  ;;  %v6262_v4 = vmul.f32 0.13333334, %v5735_v12  ;;  %v13666_v12 = vld [vmem:[%s21045_s0 + $0x30a] sm:$0xff] }
 0x6ae   :  { %6251 = vst.msk [vmem:[#allocation4 + $0x28] sm:$0xff] %vm30_vm2, %v6249_v40  ;;  %6230 = vst.msk [vmem:[#allocation4] sm:$0xff] %vm30_vm2, %v6228_v35  ;;  %v15508_v5 = vpop.f32.mrb[32].mxu0  ;;  %v19610_v47 = vpack.c.bf16 %v13664_v48, %v13663_v11  ;;  %v19614_v58 = vpack.c.bf16 %v13666_v12, %v13665_v32  ;;  %v21153_v12 = vld [vmem:[#allocation7_spill] sm:$0xff] }
 0x6af   :  { %6240 = vst.msk [vmem:[#allocation4 + $0x10] sm:$0xff] %vm30_vm2, %v6238_v43  ;;  %v6255_v13 = vmul.f32 0.4, %v15508_v5  ;;  %v6265_v34 = vmul.f32 0.8666667, %v15508_v5  ;;  %15635 = vmatmul.mubr.msk.bf16.gmra.mrb[72].mxu1 %vm202_vm1, %v19578_v16  ;;  %6250 = vst.msk [vmem:[#allocation4 + $0x20] sm:$0xff] %vm30_vm2, %v6248_v26 }
 0x6b0   :  { %v5815_v1 = vpop.f32.mrb[33].mxu0  ;;  %15638 = vmatprep.mubr.msk.bf16.mxu1 %vm202_vm1, %v19584_v25  ;;  %v6273_v56 = vmul.f32 0.6666667, %v15508_v5  ;;  %v6283_v40 = vmul.f32 0.2, %v15508_v5 }
 0x6b1   :  { %v6257_v7 = vadd.f32 %v6255_v13, %v6253_v59  ;;  %v6267_v61 = vadd.f32 %v6265_v34, %v6263_v18  ;;  %v6254_v9 = vmul.f32 0.4, %v5815_v1  ;;  %v6264_v10 = vmul.f32 0.8666667, %v5815_v1  ;;  %v21151_v13 = vld [vmem:[#allocation9_spill] sm:$0xff] }
 0x6b2   :  { %v6272_v23 = vmul.f32 0.6666667, %v5815_v1  ;;  %v6282_v18 = vmul.f32 0.2, %v5815_v1 }
 0x6b3   :  { %v6259_v22 = vadd.f32 %v6257_v7, %v18409_v17  ;;  %v6269_v50 = vadd.f32 %v6267_v61, %v18447_v62  ;;  %v6256_v36 = vadd.f32 %v6254_v9, %v6252_v27  ;;  %v6266_v2 = vadd.f32 %v6264_v10, %v6262_v4  ;;  %v13667_v17 = vld [vmem:[%s21045_s0 + $0x31a] sm:$0xff]  ;;  %v13668_v62 = vld [vmem:[%s21045_s0 + $0x322] sm:$0xff] }
 0x6b4   :  { %v19632_v48 = vpack.c.bf16 %v13668_v62, %v13667_v17  ;;  %v21152_v10 = vld [vmem:[#allocation5_spill] sm:$0xff]  ;;  %v21154_v17 = vld [vmem:[#allocation8_spill] sm:$0xff] }
 0x6b5   :  { %6261 = vst.msk [vmem:[#allocation4 + $0x38] sm:$0xff] %vm30_vm2, %v6259_v22  ;;  %6271 = vst.msk [vmem:[#allocation4 + $0x48] sm:$0xff] %vm30_vm2, %v6269_v50  ;;  %v6258_v19 = vadd.f32 %v6256_v36, %v18402_v3  ;;  %v6268_v35 = vadd.f32 %v6266_v2, %v18435_v54 }
 0x6b6   :  { %v15515_v59 = vpop.f32.mrb[44].mxu1 }
 0x6b7   :  { %6260 = vst.msk [vmem:[#allocation4 + $0x30] sm:$0xff] %vm30_vm2, %v6258_v19  ;;  %6270 = vst.msk [vmem:[#allocation4 + $0x40] sm:$0xff] %vm30_vm2, %v6268_v35  ;;  %v6275_v43 = vmul.f32 0.33333334, %v15515_v59  ;;  %v6285_v26 = vmul.f32 0.8, %v15515_v59  ;;  %15639 = vmatmul.mubr.msk.bf16.gmra.mrb[76].mxu1 %vm202_vm1, %v19610_v47 }
 0x6b8   :  { %v5895_v3 = vpop.f32.mrb[45].mxu1  ;;  %15642 = vmatprep.mubr.msk.bf16.mxu1 %vm202_vm1, %v19614_v58  ;;  %v6293_v61 = vmul.f32 0.73333335, %v15515_v59  ;;  %v6303_v9 = vmul.f32 0.26666668, %v15515_v59 }
 0x6b9   :  { %v6277_v54 = vadd.f32 %v6275_v43, %v6273_v56  ;;  %v6287_v27 = vadd.f32 %v6285_v26, %v6283_v40  ;;  %v6274_v5 = vmul.f32 0.33333334, %v5895_v3  ;;  %v6284_v11 = vmul.f32 0.8, %v5895_v3 }
 0x6ba   :  { %v6292_v50 = vmul.f32 0.73333335, %v5895_v3 }
 0x6bb   :  { %v6279_v4 = vadd.f32 %v6277_v54, %v18441_v49  ;;  %v6289_v34 = vadd.f32 %v6287_v27, %v21151_v13  ;;  %v6276_v1 = vadd.f32 %v6274_v5, %v6272_v23  ;;  %v6286_v7 = vadd.f32 %v6284_v11, %v6282_v18  ;;  %v21155_v18 = vld [vmem:[#allocation13_spill] sm:$0xff] }
 0x6bc   :  { %v6302_v49 = vmul.f32 0.26666668, %v5895_v3  ;;  %v7765_v3 = vsel %vm251_vm0, %v19478_v46, 0 }
 0x6bd   :  { %6281 = vst.msk [vmem:[#allocation4 + $0x58] sm:$0xff] %vm30_vm2, %v6279_v4  ;;  %6291 = vst.msk [vmem:[#allocation4 + $0x68] sm:$0xff] %vm30_vm2, %v6289_v34  ;;  %v6278_v32 = vadd.f32 %v6276_v1, %v21152_v10  ;;  %v6288_v22 = vadd.f32 %v6286_v7, %v21153_v12  ;;  %v21157_v4 = vld [vmem:[#allocation11_spill] sm:$0xff]  ;;  %v19657_v7 = vld [vmem:[%s21044_s1 + $0xa] sm:$0x3] }
 0x6be   :  { %v15522_v36 = vpop.f32.mrb[34].mxu0 }
 0x6bf   :  { %6280 = vst.msk [vmem:[#allocation4 + $0x50] sm:$0xff] %vm30_vm2, %v6278_v32  ;;  %6290 = vst.msk [vmem:[#allocation4 + $0x60] sm:$0xff] %vm30_vm2, %v6288_v22  ;;  %v6295_v2 = vmul.f32 0.26666668, %v15522_v36  ;;  %v6305_v56 = vmul.f32 0.73333335, %v15522_v36  ;;  %15643 = vmatmul.mubr.msk.bf16.gmra.mrb[80].mxu1 %vm202_vm1, %v19632_v48 }
 0x6c0   :  { %v5975_v40 = vpop.f32.mrb[35].mxu0  ;;  %15648 = vmatprep.mubr.msk.bf16.mxu1 %vm202_vm1, %v19303_v24  ;;  %v6313_v27 = vmul.f32 0.8, %v15522_v36  ;;  %v6323_v5 = vmul.f32 0.33333334, %v15522_v36  ;;  %v21156_v24 = vld [vmem:[#allocation6_spill] sm:$0xff] }
 0x6c1   :  { %v6297_v19 = vadd.f32 %v6295_v2, %v6293_v61  ;;  %v6307_v35 = vadd.f32 %v6305_v56, %v6303_v9  ;;  %v6294_v23 = vmul.f32 0.26666668, %v5975_v40  ;;  %v6304_v59 = vmul.f32 0.73333335, %v5975_v40  ;;  %v6382_v36 = vld [vmem:[#allocation4] sm:$0xff]  ;;  %v21158_v2 = vld [vmem:[#allocation12_spill] sm:$0xff] }
 0x6c2   :  { %v6312_v34 = vmul.f32 0.8, %v5975_v40  ;;  %v6322_v46 = vmul.f32 0.33333334, %v5975_v40  ;;  %v21159_v40 = vld [vmem:[#allocation17_spill] sm:$0xff] }
 0x6c3   :  { %v6299_v62 = vadd.f32 %v6297_v19, %v21154_v17  ;;  %v6309_v43 = vadd.f32 %v6307_v35, %v21155_v18  ;;  %v6296_v26 = vadd.f32 %v6294_v23, %v6292_v50  ;;  %v6306_v54 = vadd.f32 %v6304_v59, %v6302_v49  ;;  %v6383_v49 = vld [vmem:[#allocation4 + $0x8] sm:$0xff] }
 0x6c4   :  { %v6414_v59 = vpack.c.bf16 %v6383_v49, %v6382_v36 }
 0x6c5   :  { %6301 = vst.msk [vmem:[#allocation4 + $0x78] sm:$0xff] %vm30_vm2, %v6299_v62  ;;  %6311 = vst.msk [vmem:[#allocation4 + $0x88] sm:$0xff] %vm30_vm2, %v6309_v43  ;;  %v6298_v11 = vadd.f32 %v6296_v26, %v21156_v24  ;;  %v6308_v13 = vadd.f32 %v6306_v54, %v21157_v4  ;;  %v21160_v62 = vld [vmem:[#allocation10_spill] sm:$0xff]  ;;  %v21161_v43 = vld [vmem:[#allocation15_spill] sm:$0xff] }
 0x6c6   :  { %v15529_v1 = vpop.f32.mrb[46].mxu1 }
 0x6c7   :  { %6300 = vst.msk [vmem:[#allocation4 + $0x70] sm:$0xff] %vm30_vm2, %v6298_v11  ;;  %6310 = vst.msk [vmem:[#allocation4 + $0x80] sm:$0xff] %vm30_vm2, %v6308_v13  ;;  %v6315_v61 = vmul.f32 0.2, %v15529_v1  ;;  %v6325_v9 = vmul.f32 0.6666667, %v15529_v1  ;;  %15649 = vmatmul.mubr.msk.bf16.vlgmr.msra.gmra.mrb[52].mxu1 %vm202_vm1, %v19305_v41 }
 0x6c8   :  { %v6055_v10 = vpop.f32.mrb[47].mxu1  ;;  %15652 = vmatprep.mubr.msk.bf16.mxu1 %vm202_vm1, %v19332_v28  ;;  %15681 = vmatpush3.bf16.msra.mxu1 %v7765_v3  ;;  %v6333_v28 = vmul.f32 0.8666667, %v15529_v1  ;;  %v6343_v17 = vmul.f32 0.4, %v15529_v1 }
 0x6c9   :  { %v6317_v32 = vadd.f32 %v6315_v61, %v6313_v27  ;;  %v6327_v12 = vadd.f32 %v6325_v9, %v6323_v5  ;;  %v6314_v22 = vmul.f32 0.2, %v6055_v10  ;;  %v6324_v50 = vmul.f32 0.6666667, %v6055_v10  ;;  %17366 = vmatprep.subr.msk.bf16.mxu1 %vm251_vm0, %v19657_v7 }
 0x6ca   :  { %v6332_v54 = vmul.f32 0.8666667, %v6055_v10  ;;  %v6342_v5 = vmul.f32 0.4, %v6055_v10  ;;  %v6385_v10 = vld [vmem:[#allocation4 + $0x18] sm:$0xff] }
 0x6cb   :  { %v6319_v56 = vadd.f32 %v6317_v32, %v21158_v2  ;;  %v6329_v19 = vadd.f32 %v6327_v12, %v21159_v40  ;;  %v6316_v35 = vadd.f32 %v6314_v22, %v6312_v34  ;;  %v6326_v41 = vadd.f32 %v6324_v50, %v6322_v46  ;;  %v6384_v32 = vld [vmem:[#allocation4 + $0x10] sm:$0xff]  ;;  %v21162_v12 = vld [vmem:[#allocation16_spill] sm:$0xff]  ;;  %v21163_v50 = vld [vmem:[#allocation21_spill] sm:$0xff] }
 0x6cc   :  { %v6399_v23 = vld [vmem:[#allocation4 + $0x88] sm:$0xff]  ;;  %v6451_v34 = vsel %vm30_vm2, %v6414_v59, 0  ;;  %v6415_v40 = vpack.c.bf16 %v6385_v10, %v6384_v32 }
 0x6cd   :  { %6321 = vst.msk [vmem:[#allocation4 + $0x98] sm:$0xff] %vm30_vm2, %v6319_v56  ;;  %6331 = vst.msk [vmem:[#allocation4 + $0xa8] sm:$0xff] %vm30_vm2, %v6329_v19  ;;  %v6318_v18 = vadd.f32 %v6316_v35, %v21160_v62  ;;  %v6328_v26 = vadd.f32 %v6326_v41, %v21161_v43  ;;  %v21164_v19 = vld [vmem:[#allocation14_spill] sm:$0xff]  ;;  %v21165_v41 = vld [vmem:[#allocation19_spill] sm:$0xff] }
 0x6ce   :  { %v15536_v3 = vpop.f32.mrb[36].mxu0  ;;  %v6398_v27 = vld [vmem:[#allocation4 + $0x80] sm:$0xff] }
 0x6cf   :  { %6320 = vst.msk [vmem:[#allocation4 + $0x90] sm:$0xff] %vm30_vm2, %v6318_v18  ;;  %6330 = vst.msk [vmem:[#allocation4 + $0xa0] sm:$0xff] %vm30_vm2, %v6328_v26  ;;  %v6335_v24 = vmul.f32 0.13333334, %v15536_v3  ;;  %v6345_v11 = vmul.f32 0.6, %v15536_v3  ;;  %15653 = vmatmul.mubr.msk.bf16.gmra.mrb[56].mxu1 %vm202_vm1, %v19334_v57  ;;  %v6422_v4 = vpack.c.bf16 %v6399_v23, %v6398_v27 }
 0x6d0   :  { %v6135_v13 = vpop.f32.mrb[37].mxu0  ;;  %15656 = vmatprep.mubr.msk.bf16.mxu1 %vm202_vm1, %v19352_v63  ;;  %v6353_v2 = vmul.f32 0.93333334, %v15536_v3  ;;  %v6363_v63 = vmul.f32 0.46666667, %v15536_v3 }
 0x6d1   :  { %v6337_v1 = vadd.f32 %v6335_v24, %v6333_v28  ;;  %v6347_v46 = vadd.f32 %v6345_v11, %v6343_v17  ;;  %v6334_v61 = vmul.f32 0.13333334, %v6135_v13  ;;  %v6344_v9 = vmul.f32 0.6, %v6135_v13  ;;  %17353 = vmatprep.subr.msk.bf16.mxu0 %vm30_vm2, %v6422_v4 }
 0x6d2   :  { %14503 = vmatpush3.bf16.xpose.msra.mxu0 %v6451_v34  ;;  %v6352_v59 = vmul.f32 0.93333334, %v6135_v13  ;;  %v6362_v28 = vmul.f32 0.46666667, %v6135_v13  ;;  %v6454_v13 = vsel %vm30_vm2, %v6415_v40, 0  ;;  %v21170_v40 = vld [vmem:[#allocation23_spill] sm:$0xff] }
 0x6d3   :  { %v6339_v22 = vadd.f32 %v6337_v1, %v21162_v12  ;;  %v6349_v57 = vadd.f32 %v6347_v46, %v21163_v50  ;;  %v6336_v36 = vadd.f32 %v6334_v61, %v6332_v54  ;;  %v6346_v49 = vadd.f32 %v6344_v9, %v6342_v5  ;;  %v6387_v12 = vld [vmem:[#allocation4 + $0x28] sm:$0xff] }
 0x6d4   :  { %v6401_v56 = vld [vmem:[#allocation4 + $0x98] sm:$0xff]  ;;  %v6403_v43 = vld [vmem:[#allocation4 + $0xa8] sm:$0xff] }
 0x6d5   :  { %6341 = vst.msk [vmem:[#allocation4 + $0xb8] sm:$0xff] %vm30_vm2, %v6339_v22  ;;  %6351 = vst.msk [vmem:[#allocation4 + $0xc8] sm:$0xff] %vm30_vm2, %v6349_v57  ;;  %v6338_v35 = vadd.f32 %v6336_v36, %v21164_v19  ;;  %v6348_v23 = vadd.f32 %v6346_v49, %v21165_v41  ;;  %v21166_v22 = vld [vmem:[#allocation20_spill] sm:$0xff]  ;;  %v21167_v57 = vld [vmem:[#allocation25_spill] sm:$0xff] }
 0x6d6   :  { %v15543_v17 = vpop.f32.mrb[48].mxu1  ;;  %v6400_v62 = vld [vmem:[#allocation4 + $0x90] sm:$0xff]  ;;  %v6402_v18 = vld [vmem:[#allocation4 + $0xa0] sm:$0xff]  ;;  %v21168_v49 = vld [vmem:[#allocation24_spill] sm:$0xff] }
 0x6d7   :  { %6340 = vst.msk [vmem:[#allocation4 + $0xb0] sm:$0xff] %vm30_vm2, %v6338_v35  ;;  %6350 = vst.msk [vmem:[#allocation4 + $0xc0] sm:$0xff] %vm30_vm2, %v6348_v23  ;;  %v6355_v26 = vmul.f32 0.06666667, %v15543_v17  ;;  %v6365_v54 = vmul.f32 0.53333336, %v15543_v17  ;;  %15657 = vmatmul.mubr.msk.bf16.gmra.mrb[60].mxu1 %vm202_vm1, %v19354_v33  ;;  %v6423_v3 = vpack.c.bf16 %v6401_v56, %v6400_v62  ;;  %v6424_v61 = vpack.c.bf16 %v6403_v43, %v6402_v18 }
 0x6d8   :  { %v6373_v27 = vmul.f32 0.0, %v15543_v17  ;;  %v6215_v5 = vpop.f32.mrb[49].mxu1  ;;  %15660 = vmatprep.mubr.msk.bf16.mxu1 %vm202_vm1, %v19372_v51  ;;  %v6386_v33 = vld [vmem:[#allocation4 + $0x20] sm:$0xff]  ;;  %v21169_v51 = vld [vmem:[#allocation18_spill] sm:$0xff]  ;;  %v6388_v62 = vld [vmem:[#allocation4 + $0x30] sm:$0xff] }
 0x6d9   :  { %v6354_v24 = vmul.f32 0.06666667, %v6215_v5  ;;  %v6364_v11 = vmul.f32 0.53333336, %v6215_v5  ;;  %v6372_v4 = vmul.f32 0.0, %v6215_v5  ;;  %v6357_v34 = vadd.f32 %v6355_v26, %v6353_v2  ;;  %17354 = vmatprep.subr.msk.bf16.mxu0 %vm30_vm2, %v6423_v3  ;;  %v21171_v19 = vld [vmem:[#allocation22_spill] sm:$0xff] }
 0x6da   :  { %v6367_v1 = vadd.f32 %v6365_v54, %v6363_v63  ;;  %v6375_v46 = vadd.f32 %v15543_v17, %v6373_v27  ;;  %14505 = vmatpush3.bf16.xpose.msra.mxu0 %v6454_v13  ;;  %v6416_v41 = vpack.c.bf16 %v6387_v12, %v6386_v33  ;;  %v6389_v18 = vld [vmem:[#allocation4 + $0x38] sm:$0xff]  ;;  %v6390_v27 = vld [vmem:[#allocation4 + $0x40] sm:$0xff] }
 0x6db   :  { %v6356_v9 = vadd.f32 %v6354_v24, %v6352_v59  ;;  %v6366_v32 = vadd.f32 %v6364_v11, %v6362_v28  ;;  %v6374_v10 = vadd.f32 %v6372_v4, %v6215_v5  ;;  %v6359_v50 = vadd.f32 %v6357_v34, %v21166_v22  ;;  %17355 = vmatprep.subr.msk.bf16.mxu0 %vm30_vm2, %v6424_v61  ;;  %v6391_v5 = vld [vmem:[#allocation4 + $0x48] sm:$0xff]  ;;  %v6392_v4 = vld [vmem:[#allocation4 + $0x50] sm:$0xff]  ;;  %v6393_v13 = vld [vmem:[#allocation4 + $0x58] sm:$0xff] }
 0x6dc   :  { %v6369_v36 = vadd.f32 %v6367_v1, %v21167_v57  ;;  %v6377_v56 = vadd.f32 %v6375_v46, %v21168_v49  ;;  %v6405_v59 = vld [vmem:[#allocation4 + $0xb8] sm:$0xff]  ;;  %v6457_v28 = vsel %vm30_vm2, %v6416_v41, 0  ;;  %v6417_v43 = vpack.c.bf16 %v6389_v18, %v6388_v62  ;;  %v6407_v54 = vld [vmem:[#allocation4 + $0xc8] sm:$0xff]  ;;  %v6396_v57 = vld [vmem:[#allocation4 + $0x70] sm:$0xff] }
 0x6dd   :  { %v6358_v2 = vadd.f32 %v6356_v9, %v21169_v51  ;;  %v6368_v63 = vadd.f32 %v6366_v32, %v21170_v40  ;;  %v6376_v35 = vadd.f32 %v6374_v10, %v21171_v19  ;;  %6361 = vst.msk [vmem:[#allocation4 + $0xd8] sm:$0xff] %vm30_vm2, %v6359_v50  ;;  %v6418_v3 = vpack.c.bf16 %v6391_v5, %v6390_v27  ;;  %v6394_v32 = vld [vmem:[#allocation4 + $0x60] sm:$0xff]  ;;  %v6395_v10 = vld [vmem:[#allocation4 + $0x68] sm:$0xff]  ;;  %v21180_v40 = vld [vmem:[#allocation35_spill] sm:$0xff] }
 0x6de   :  { %6371 = vst.msk [vmem:[#allocation4 + $0xe8] sm:$0xff] %vm30_vm2, %v6369_v36  ;;  %6379 = vst.msk [vmem:[#allocation4 + $0xf8] sm:$0xff] %vm30_vm2, %v6377_v56  ;;  %v6404_v23 = vld [vmem:[#allocation4 + $0xb0] sm:$0xff]  ;;  %v6406_v26 = vld [vmem:[#allocation4 + $0xc0] sm:$0xff]  ;;  %v6419_v34 = vpack.c.bf16 %v6393_v13, %v6392_v4  ;;  %v6420_v33 = vpack.c.bf16 %v6395_v10, %v6394_v32  ;;  %v8058_v56 = vsel %vm251_vm0, %v19657_v7, 0 }
 0x6df   :  { %6360 = vst.msk [vmem:[#allocation4 + $0xd0] sm:$0xff] %vm30_vm2, %v6358_v2  ;;  %6370 = vst.msk [vmem:[#allocation4 + $0xe0] sm:$0xff] %vm30_vm2, %v6368_v63  ;;  %15661 = vmatmul.mubr.msk.bf16.gmra.mrb[64].mxu1 %vm202_vm1, %v19374_v6  ;;  %v6425_v17 = vpack.c.bf16 %v6405_v59, %v6404_v23  ;;  %v6460_v6 = vsel %vm30_vm2, %v6417_v43, 0  ;;  %v6397_v36 = vld [vmem:[#allocation4 + $0x78] sm:$0xff]  ;;  %v13865_v51 = vld [vmem:[%s21044_s1 + $0xc] sm:$0x3] }
 0x6e0   :  { %6378 = vst.msk [vmem:[#allocation4 + $0xf0] sm:$0xff] %vm30_vm2, %v6376_v35  ;;  %15664 = vmatprep.mubr.msk.bf16.mxu1 %vm202_vm1, %v19392_v29  ;;  %v6426_v29 = vpack.c.bf16 %v6407_v54, %v6406_v26  ;;  %v6466_v61 = vsel %vm30_vm2, %v6419_v34, 0  ;;  %v6469_v22 = vsel %vm30_vm2, %v6420_v33, 0  ;;  %v6421_v49 = vpack.c.bf16 %v6397_v36, %v6396_v57  ;;  %v21178_v7 = vld [vmem:[#allocation33_spill] sm:$0xff]  ;;  %v21179_v2 = vld [vmem:[#allocation34_spill] sm:$0xff]  ;;  %v21181_v63 = vld [vmem:[#allocation36_spill] sm:$0xff] }
 0x6e1   :  { %v21182_v19 = vld [vmem:[#allocation37_spill] sm:$0xff]  ;;  %v21183_v35 = vld [vmem:[#allocation38_spill] sm:$0xff]  ;;  %v21184_v41 = vld [vmem:[#allocation39_spill] sm:$0xff] }
 0x6e2   :  { %14507 = vmatpush3.bf16.xpose.msra.mxu0 %v6457_v28  ;;  %v13814_v23 = vld [vmem:[%s21045_s0 + $0x332] sm:$0xff]  ;;  %v13836_v28 = vld [vmem:[%s21045_s0 + $0x200] sm:$0xff]  ;;  %v19859_v54 = vld [vmem:[%s21044_s1 + $0x10] sm:$0x3] }
 0x6e3   :  { %17356 = vmatprep.subr.msk.bf16.mxu0 %vm30_vm2, %v6425_v17  ;;  %v13837_v17 = vld [vmem:[%s21045_s0 + $0x210] sm:$0xff]  ;;  %v13838_v62 = vld [vmem:[%s21045_s0 + $0x218] sm:$0xff]  ;;  %v13841_v27 = vld [vmem:[%s21045_s0 + $0x240] sm:$0xff] }
 0x6e4   :  { %v6409_v11 = vld [vmem:[#allocation4 + $0xd8] sm:$0xff]  ;;  %v8288_v43 = vpack.c.bf16 %v13838_v62, %v13837_v17  ;;  %v13842_v5 = vld [vmem:[%s21045_s0 + $0x248] sm:$0xff]  ;;  %v13852_v10 = vld [vmem:[%s21045_s0 + $0x2c0] sm:$0xff] }
 0x6e5   :  { %v6411_v46 = vld [vmem:[#allocation4 + $0xe8] sm:$0xff]  ;;  %v6413_v12 = vld [vmem:[#allocation4 + $0xf8] sm:$0xff]  ;;  %v13853_v33 = vld [vmem:[%s21045_s0 + $0x2d0] sm:$0xff] }
 0x6e6   :  { %v6408_v24 = vld [vmem:[#allocation4 + $0xd0] sm:$0xff]  ;;  %v6410_v1 = vld [vmem:[#allocation4 + $0xe0] sm:$0xff]  ;;  %v13846_v4 = vld [vmem:[%s21045_s0 + $0x278] sm:$0xff] }
 0x6e7   :  { %15665 = vmatmul.mubr.msk.bf16.gmra.mrb[68].mxu1 %vm202_vm1, %v19394_v31  ;;  %v6463_v31 = vsel %vm30_vm2, %v6418_v3, 0  ;;  %v6428_v9 = vpack.c.bf16 %v6411_v46, %v6410_v1  ;;  %v13847_v1 = vld [vmem:[%s21045_s0 + $0x288] sm:$0xff]  ;;  %v13848_v46 = vld [vmem:[%s21045_s0 + $0x290] sm:$0xff]  ;;  %v13851_v32 = vld [vmem:[%s21045_s0 + $0x2b8] sm:$0xff] }
 0x6e8   :  { %15668 = vmatprep.mubr.msk.bf16.mxu1 %vm202_vm1, %v19412_v21  ;;  %v6427_v21 = vpack.c.bf16 %v6409_v11, %v6408_v24  ;;  %v8290_v24 = vpack.c.bf16 %v13842_v5, %v13841_v27  ;;  %v13843_v11 = vld [vmem:[%s21045_s0 + $0x258] sm:$0xff]  ;;  %v13856_v57 = vld [vmem:[%s21045_s0 + $0x2f0] sm:$0xff]  ;;  %v13857_v36 = vld [vmem:[%s21045_s0 + $0x300] sm:$0xff] }
 0x6e9   :  { %v13900_v27 = vld [vmem:[%s21045_s0 + $0x2b9] sm:$0xff]  ;;  %v13901_v5 = vld [vmem:[%s21045_s0 + $0x2c1] sm:$0xff] }
 0x6ea   :  { %14509 = vmatpush3.bf16.xpose.msra.mxu0 %v6460_v6  ;;  %v13839_v6 = vld [vmem:[%s21045_s0 + $0x228] sm:$0xff] }
 0x6eb   :  { %17357 = vmatprep.subr.msk.bf16.mxu0 %vm30_vm2, %v6426_v29  ;;  %v13840_v29 = vld [vmem:[%s21045_s0 + $0x230] sm:$0xff] }
 0x6ec   :  { %v8289_v3 = vpack.c.bf16 %v13840_v29, %v13839_v6 }
 0x6ef   :  { %15669 = vmatmul.mubr.msk.bf16.gmra.mrb[72].mxu1 %vm202_vm1, %v19414_v20  ;;  %v13716_v20 = vld [vmem:[%s21045_s0 + $0x330] sm:$0xff] }
 0x6f0   :  { %15672 = vmatprep.mubr.msk.bf16.mxu1 %vm202_vm1, %v19432_v53  ;;  %v13717_v53 = vld [vmem:[%s21045_s0 + $0x338] sm:$0xff] }
 0x6f2   :  { %14511 = vmatpush3.bf16.xpose.msra.mxu0 %v6463_v31  ;;  %v13844_v31 = vld [vmem:[%s21045_s0 + $0x260] sm:$0xff] }
 0x6f3   :  { %17358 = vmatprep.subr.msk.bf16.mxu0 %vm30_vm2, %v6427_v21  ;;  %v13845_v21 = vld [vmem:[%s21045_s0 + $0x270] sm:$0xff]  ;;  %v8291_v13 = vpack.c.bf16 %v13844_v31, %v13843_v11  ;;  %v8588_v11 = vpack.c.bf16 %v13901_v5, %v13900_v27  ;;  %v17392_v27 = vld [vmem:[%s21050_s5] sm:$0x1f]  }
 0x6f4   :  { %v8292_v34 = vpack.c.bf16 %v13846_v4, %v13845_v21  ;;  %v13904_v21 = vld [vmem:[%s21045_s0 + $0x2e9] sm:$0xff]  ;;  %v13905_v4 = vld [vmem:[%s21045_s0 + $0x2f1] sm:$0xff]  ;;  %14518 = vmatprep.mubr.msk.bf16.mxu0 %vm30_vm2, %v17392_v27 }
 0x6f7   :  { %15673 = vmatmul.mubr.msk.bf16.gmra.mrb[76].mxu1 %vm202_vm1, %v19434_v39  ;;  %v19738_v39 = vpack.c.bf16 %v13717_v53, %v13716_v20  ;;  %v13849_v20 = vld [vmem:[%s21045_s0 + $0x2a0] sm:$0xff]  ;;  %v13850_v53 = vld [vmem:[%s21045_s0 + $0x2a8] sm:$0xff] }
 0x6f8   :  { %15676 = vmatprep.mubr.msk.bf16.mxu1 %vm202_vm1, %v19452_v45  ;;  %v6412_v45 = vld [vmem:[#allocation4 + $0xf0] sm:$0xff] }
 0x6f9   :  { %v6429_v50 = vpack.c.bf16 %v6413_v12, %v6412_v45  ;;  %v13854_v45 = vld [vmem:[%s21045_s0 + $0x2d8] sm:$0xff]  ;;  %v8295_v12 = vpack.c.bf16 %v13852_v10, %v13851_v32  ;;  %v13931_v10 = vld [vmem:[%s21045_s0 + $0x1e2] sm:$0xff] }
 0x6fa   :  { %14513 = vmatpush3.bf16.xpose.msra.mxu0 %v6466_v61  ;;  %v8293_v61 = vpack.c.bf16 %v13848_v46, %v13847_v1  ;;  %v8590_v1 = vpack.c.bf16 %v13905_v4, %v13904_v21  ;;  %v13913_v32 = vld [vmem:[%s21045_s0 + $0x351] sm:$0xff]  ;;  %v17400_v21 = vmov 0   ;;  %v6431_v4 = vld [vmem:[%s21051_s6 + $0x8] sm:$0x3] }
 0x6fb   :  { %17359 = vmatprep.subr.msk.bf16.mxu0 %vm30_vm2, %v6428_v9  ;;  %v8294_v9 = vpack.c.bf16 %v13850_v53, %v13849_v20  ;;  %v13908_v20 = vld [vmem:[%s21045_s0 + $0x319] sm:$0xff]  ;;  %v13909_v53 = vld [vmem:[%s21045_s0 + $0x321] sm:$0xff]  ;;  %17391 = vset.pattern.permute.xlu1 %v17400_v21 }
 0x6fc   :  { %17390 = vset.pattern.permute.xlu0 %v17400_v21 }
 0x6fd   :  { %6439 = vperm.xlu0 %17390, %v6431_v4  }
 0x6ff   :  { %15677 = vmatmul.mubr.msk.bf16.gmra.mrb[80].mxu1 %vm202_vm1, %v19738_v39 }
 0x700   :  { %15682 = vmatprep.mubr.msk.bf16.mxu1 %vm202_vm1, %v19136_v0  ;;  %v6472_v0 = vsel %vm30_vm2, %v6421_v49, 0  ;;  %v13858_v49 = vld [vmem:[%s21045_s0 + $0x308] sm:$0xff] }
 0x702   :  { %14515 = vmatpush3.bf16.xpose.msra.mxu0 %v6469_v22  ;;  %v8296_v22 = vpack.c.bf16 %v13854_v45, %v13853_v33  ;;  %v13932_v33 = vld [vmem:[%s21045_s0 + $0x1ea] sm:$0xff] }
 0x703   :  { %17360 = vmatprep.subr.msk.bf16.mxu0 %vm30_vm2, %v6429_v50  ;;  %v13855_v50 = vld [vmem:[%s21045_s0 + $0x2e8] sm:$0xff] }
 0x707   :  { %15683 = vmatmul.mubr.msk.bf16.vlgmr.msra.gmra.mrb[52].mxu1 %vm202_vm1, %v19139_v30  ;;  %v21172_v30 = vld [vmem:[#allocation27_spill] sm:$0xff] }
 0x708   :  { %15686 = vmatprep.mubr.msk.bf16.mxu1 %vm202_vm1, %v19166_v38  ;;  %15715 = vmatpush3.bf16.msra.mxu1 %v8058_v56  ;;  %v21173_v38 = vld [vmem:[#allocation28_spill] sm:$0xff]  ;;  %v8297_v56 = vpack.c.bf16 %v13856_v57, %v13855_v50 }
 0x709   :  { %17367 = vmatprep.subr.msk.bf16.mxu1 %vm251_vm0, %v13865_v51  ;;  %v13935_v50 = vld [vmem:[%s21045_s0 + $0x212] sm:$0xff]  ;;  %v13936_v57 = vld [vmem:[%s21045_s0 + $0x21a] sm:$0xff] }
 0x70a   :  { %14517 = vmatpush3.bf16.xpose.msra.mxu0 %v6472_v0  ;;  %v13859_v0 = vld [vmem:[%s21045_s0 + $0x318] sm:$0xff] }
 0x70f   :  { %15687 = vmatmul.mubr.msk.bf16.gmra.mrb[56].mxu1 %vm202_vm1, %v19168_v60  ;;  %v21174_v60 = vld [vmem:[#allocation29_spill] sm:$0xff] }
 0x710   :  { %15690 = vmatprep.mubr.msk.bf16.mxu1 %vm202_vm1, %v19186_v14  ;;  %v13765_v14 = vld [vmem:[%s21045_s0 + $0x331] sm:$0xff] }
 0x711   :  { %14519 = vmatmul.mubr.msk.bf16.vlgmr.msra.gmra.mrb[40].mxu0 %vm30_vm2, %v17392_v27 }
 0x717   :  { %15691 = vmatmul.mubr.msk.bf16.gmra.mrb[60].mxu1 %vm202_vm1, %v19188_v8  ;;  %v13766_v8 = vld [vmem:[%s21045_s0 + $0x339] sm:$0xff] }
 0x718   :  { %15694 = vmatprep.mubr.msk.bf16.mxu1 %vm202_vm1, %v19206_v15  ;;  %v19787_v15 = vpack.c.bf16 %v13766_v8, %v13765_v14  ;;  %v13864_v14 = vld [vmem:[%s21045_s0 + $0x350] sm:$0xff]  ;;  %v13882_v8 = vld [vmem:[%s21045_s0 + $0x1e1] sm:$0xff] }
 0x71f   :  { %15695 = vmatmul.mubr.msk.bf16.gmra.mrb[64].mxu1 %vm202_vm1, %v19208_v37  ;;  %v21175_v37 = vld [vmem:[#allocation30_spill] sm:$0xff] }
 0x720   :  { %15698 = vmatprep.mubr.msk.bf16.mxu1 %vm202_vm1, %v19226_v52  ;;  %v8352_v52 = vsel %vm251_vm0, %v13865_v51, 0  ;;  %v8298_v51 = vpack.c.bf16 %v13858_v49, %v13857_v36  ;;  %v8874_v49 = vpack.c.bf16 %v13936_v57, %v13935_v50 }
 0x727   :  { %15699 = vmatmul.mubr.msk.bf16.gmra.mrb[68].mxu1 %vm202_vm1, %v19228_v42  ;;  %v13914_v42 = vld [vmem:[%s21044_s1 + $0xe] sm:$0x3] }
 0x728   :  { %15702 = vmatprep.mubr.msk.bf16.mxu1 %vm202_vm1, %v19246_v55  ;;  %v21176_v55 = vld [vmem:[#allocation31_spill] sm:$0xff]  ;;  %v8645_v26 = vsel %vm251_vm0, %v13914_v42, 0 }
 0x72f   :  { %15703 = vmatmul.mubr.msk.bf16.gmra.mrb[72].mxu1 %vm202_vm1, %v19248_v44  ;;  %v21177_v44 = vld [vmem:[#allocation32_spill] sm:$0xff] }
 0x730   :  { %15706 = vmatprep.mubr.msk.bf16.mxu1 %vm202_vm1, %v21172_v30  ;;  %v13860_v30 = vld [vmem:[%s21045_s0 + $0x320] sm:$0xff] }
 0x737   :  { %15707 = vmatmul.mubr.msk.bf16.gmra.mrb[76].mxu1 %vm202_vm1, %v21173_v38  ;;  %v8299_v38 = vpack.c.bf16 %v13860_v30, %v13859_v0  ;;  %v13939_v0 = vld [vmem:[%s21045_s0 + $0x242] sm:$0xff]  ;;  %v13940_v30 = vld [vmem:[%s21045_s0 + $0x24a] sm:$0xff] }
 0x738   :  { %15710 = vmatprep.mubr.msk.bf16.mxu1 %vm202_vm1, %v21174_v60  ;;  %v13863_v60 = vld [vmem:[%s21045_s0 + $0x348] sm:$0xff] }
 0x73f   :  { %15711 = vmatmul.mubr.msk.bf16.gmra.mrb[80].mxu1 %vm202_vm1, %v19787_v15 }
 0x740   :  { %15716 = vmatprep.mubr.msk.bf16.mxu1 %vm202_vm1, %v21175_v37  ;;  %v13883_v37 = vld [vmem:[%s21045_s0 + $0x1e9] sm:$0xff] }
 0x747   :  { %15717 = vmatmul.mubr.msk.bf16.vlgmr.msra.gmra.mrb[52].mxu1 %vm202_vm1, %v21176_v55  ;;  %v13885_v55 = vld [vmem:[%s21045_s0 + $0x201] sm:$0xff] }
 0x748   :  { %15720 = vmatprep.mubr.msk.bf16.mxu1 %vm202_vm1, %v21177_v44  ;;  %15749 = vmatpush3.bf16.msra.mxu1 %v8352_v52  ;;  %v8301_v52 = vpack.c.bf16 %v13864_v14, %v13863_v60  ;;  %v13886_v44 = vld [vmem:[%s21045_s0 + $0x211] sm:$0xff]  ;;  %v8876_v60 = vpack.c.bf16 %v13940_v30, %v13939_v0  ;;  %v13941_v14 = vld [vmem:[%s21045_s0 + $0x25a] sm:$0xff] }
 0x749   :  { %17368 = vmatprep.subr.msk.bf16.mxu1 %vm251_vm0, %v13914_v42  ;;  %v8579_v42 = vpack.c.bf16 %v13883_v37, %v13882_v8  ;;  %v13942_v8 = vld [vmem:[%s21045_s0 + $0x262] sm:$0xff]  ;;  %v13943_v37 = vld [vmem:[%s21045_s0 + $0x272] sm:$0xff] }
 0x74f   :  { %15721 = vmatmul.mubr.msk.bf16.gmra.mrb[56].mxu1 %vm202_vm1, %v21178_v7  ;;  %v13887_v7 = vld [vmem:[%s21045_s0 + $0x219] sm:$0xff] }
 0x750   :  { %15724 = vmatprep.mubr.msk.bf16.mxu1 %vm202_vm1, %v21179_v2 }
 0x757   :  { %15725 = vmatmul.mubr.msk.bf16.gmra.mrb[60].mxu1 %vm202_vm1, %v21180_v40  ;;  %v8581_v40 = vpack.c.bf16 %v13887_v7, %v13886_v44  ;;  %v13946_v44 = vld [vmem:[%s21045_s0 + $0x292] sm:$0xff]  ;;  %v13947_v7 = vld [vmem:[%s21045_s0 + $0x2a2] sm:$0xff] }
 0x758   :  { %15728 = vmatprep.mubr.msk.bf16.mxu1 %vm202_vm1, %v21181_v63  ;;  %v8938_v63 = vsel %vm251_vm0, %v19859_v54, 0 }
 0x75f   :  { %15729 = vmatmul.mubr.msk.bf16.gmra.mrb[64].mxu1 %vm202_vm1, %v21182_v19  ;;  %v13888_v19 = vld [vmem:[%s21045_s0 + $0x229] sm:$0xff] }
 0x760   :  { %15732 = vmatprep.mubr.msk.bf16.mxu1 %vm202_vm1, %v21183_v35  ;;  %v13889_v35 = vld [vmem:[%s21045_s0 + $0x231] sm:$0xff] }
 0x767   :  { %15733 = vmatmul.mubr.msk.bf16.gmra.mrb[68].mxu1 %vm202_vm1, %v21184_v41  ;;  %v13890_v41 = vld [vmem:[%s21045_s0 + $0x241] sm:$0xff] }
 0x768   :  { %15736 = vmatprep.mubr.msk.bf16.mxu1 %vm202_vm1, %v19578_v16  ;;  %v13815_v16 = vld [vmem:[%s21045_s0 + $0x33a] sm:$0xff] }
 0x76f   :  { %15737 = vmatmul.mubr.msk.bf16.gmra.mrb[72].mxu1 %vm202_vm1, %v19584_v25  ;;  %v13833_v25 = vld [vmem:[%s21045_s0 + $0x1e0] sm:$0xff] }
 0x770   :  { %15740 = vmatprep.mubr.msk.bf16.mxu1 %vm202_vm1, %v19610_v47  ;;  %v13834_v47 = vld [vmem:[%s21045_s0 + $0x1e8] sm:$0xff] }
 0x771   :  { %v8286_v59 = vpack.c.bf16 %v13834_v47, %v13833_v25  ;;  %v13892_v47 = vld [vmem:[%s21045_s0 + $0x259] sm:$0xff] }
 0x777   :  { %15741 = vmatmul.mubr.msk.bf16.gmra.mrb[76].mxu1 %vm202_vm1, %v19614_v58  ;;  %v19838_v58 = vpack.c.bf16 %v13815_v16, %v13814_v23  ;;  %v13891_v23 = vld [vmem:[%s21045_s0 + $0x249] sm:$0xff]  ;;  %v8582_v16 = vpack.c.bf16 %v13889_v35, %v13888_v19  ;;  %v13949_v19 = vld [vmem:[%s21045_s0 + $0x2ba] sm:$0xff] }
 0x778   :  { %15744 = vmatprep.mubr.msk.bf16.mxu1 %vm202_vm1, %v19632_v48  ;;  %v13835_v48 = vld [vmem:[%s21045_s0 + $0x1f8] sm:$0xff]  ;;  %v8583_v25 = vpack.c.bf16 %v13891_v23, %v13890_v41  ;;  %v13950_v35 = vld [vmem:[%s21045_s0 + $0x2c2] sm:$0xff] }
 0x779   :  { %v8287_v18 = vpack.c.bf16 %v13836_v28, %v13835_v48  ;;  %v13894_v48 = vld [vmem:[%s21045_s0 + $0x271] sm:$0xff]  ;;  %v13895_v28 = vld [vmem:[%s21045_s0 + $0x279] sm:$0xff] }
 0x77a   :  { %v8585_v62 = vpack.c.bf16 %v13895_v28, %v13894_v48  ;;  %v13951_v41 = vld [vmem:[%s21045_s0 + $0x2d2] sm:$0xff]  ;;  %v13952_v23 = vld [vmem:[%s21045_s0 + $0x2da] sm:$0xff]  ;;  %v13955_v48 = vld [vmem:[%s21045_s0 + $0x302] sm:$0xff] }
 0x77b   :  { %v13956_v28 = vld [vmem:[%s21045_s0 + $0x30a] sm:$0xff] }
 0x77f   :  { %15745 = vmatmul.mubr.msk.bf16.gmra.mrb[80].mxu1 %vm202_vm1, %v19838_v58 }
 0x780   :  { %15750 = vmatprep.mubr.msk.bf16.mxu1 %vm202_vm1, %v8286_v59  ;;  %v13893_v59 = vld [vmem:[%s21045_s0 + $0x261] sm:$0xff] }
 0x781   :  { %v8584_v17 = vpack.c.bf16 %v13893_v59, %v13892_v47  ;;  %v13953_v47 = vld [vmem:[%s21045_s0 + $0x2ea] sm:$0xff]  ;;  %v13954_v59 = vld [vmem:[%s21045_s0 + $0x2f2] sm:$0xff] }
 0x787   :  { %15751 = vmatmul.mubr.msk.bf16.vlgmr.msra.gmra.mrb[52].mxu1 %vm202_vm1, %v8287_v18  ;;  %v13896_v18 = vld [vmem:[%s21045_s0 + $0x289] sm:$0xff] }
 0x788   :  { %15754 = vmatprep.mubr.msk.bf16.mxu1 %vm202_vm1, %v8288_v43  ;;  %15783 = vmatpush3.bf16.msra.mxu1 %v8645_v26  ;;  %v13897_v43 = vld [vmem:[%s21045_s0 + $0x291] sm:$0xff]  ;;  %v13898_v26 = vld [vmem:[%s21045_s0 + $0x2a1] sm:$0xff] }
 0x789   :  { %17369 = vmatprep.subr.msk.bf16.mxu1 %vm251_vm0, %v19859_v54  ;;  %v13899_v54 = vld [vmem:[%s21045_s0 + $0x2a9] sm:$0xff]  ;;  %v8586_v6 = vpack.c.bf16 %v13897_v43, %v13896_v18  ;;  %v13957_v18 = vld [vmem:[%s21045_s0 + $0x31a] sm:$0xff] }
 0x78a   :  { %v8587_v29 = vpack.c.bf16 %v13899_v54, %v13898_v26  ;;  %v13958_v43 = vld [vmem:[%s21045_s0 + $0x322] sm:$0xff]  ;;  %v13961_v54 = vld [vmem:[%s21045_s0 + $0x34a] sm:$0xff] }
 0x78b   :  { %v8885_v26 = vpack.c.bf16 %v13958_v43, %v13957_v18 }
 0x78f   :  { %15755 = vmatmul.mubr.msk.bf16.gmra.mrb[56].mxu1 %vm202_vm1, %v8289_v3  ;;  %v13902_v3 = vld [vmem:[%s21045_s0 + $0x2d1] sm:$0xff] }
 0x790   :  { %15758 = vmatprep.mubr.msk.bf16.mxu1 %vm202_vm1, %v8290_v24  ;;  %v13903_v24 = vld [vmem:[%s21045_s0 + $0x2d9] sm:$0xff] }
 0x791   :  { %v8589_v31 = vpack.c.bf16 %v13903_v24, %v13902_v3  ;;  %v9285_v3 = vld [vmem:[#allocation2 + $0x8] sm:$0xff]  ;;  %v9286_v24 = vld [vmem:[#allocation2 + $0x10] sm:$0xff] }
 0x797   :  { %15759 = vmatmul.mubr.msk.bf16.gmra.mrb[60].mxu1 %vm202_vm1, %v8291_v13  ;;  %v13906_v13 = vld [vmem:[%s21045_s0 + $0x301] sm:$0xff] }
 0x798   :  { %15762 = vmatprep.mubr.msk.bf16.mxu1 %vm202_vm1, %v8292_v34  ;;  %v13907_v34 = vld [vmem:[%s21045_s0 + $0x309] sm:$0xff] }
 0x799   :  { %v8591_v46 = vpack.c.bf16 %v13907_v34, %v13906_v13  ;;  %v6430_v13 = vld [vmem:[%s21051_s6] sm:$0xff] }
 0x79a   :  { %6434 = vperm.xlu1 %17391, %v6430_v13   ;;  %v20191_v34 = vld [vmem:[%s21047_s2] ss:$0 sm:$0xff] }
 0x79e   :  { %12866 = vperm.xlu1 %17391, %v6430_v13  }
 0x79f   :  { %15763 = vmatmul.mubr.msk.bf16.gmra.mrb[64].mxu1 %vm202_vm1, %v8293_v61  ;;  %v8592_v61 = vpack.c.bf16 %v13909_v53, %v13908_v20 }
 0x7a0   :  { %15766 = vmatprep.mubr.msk.bf16.mxu1 %vm202_vm1, %v8294_v9  ;;  %v13912_v9 = vld [vmem:[%s21045_s0 + $0x349] sm:$0xff] }
 0x7a1   :  { %v8594_v45 = vpack.c.bf16 %v13913_v32, %v13912_v9 }
 0x7a7   :  { %15767 = vmatmul.mubr.msk.bf16.gmra.mrb[68].mxu1 %vm202_vm1, %v8295_v12  ;;  %v8872_v12 = vpack.c.bf16 %v13932_v33, %v13931_v10 }
 0x7a8   :  { %15770 = vmatprep.mubr.msk.bf16.mxu1 %vm202_vm1, %v8296_v22  ;;  %v13934_v22 = vld [vmem:[%s21045_s0 + $0x202] sm:$0xff] }
 0x7af   :  { %15771 = vmatmul.mubr.msk.bf16.gmra.mrb[72].mxu1 %vm202_vm1, %v8297_v56  ;;  %v13937_v56 = vld [vmem:[%s21045_s0 + $0x22a] sm:$0xff] }
 0x7b0   :  { %15774 = vmatprep.mubr.msk.bf16.mxu1 %vm202_vm1, %v8298_v51  ;;  %v13938_v51 = vld [vmem:[%s21045_s0 + $0x232] sm:$0xff] }
 0x7b7   :  { %15775 = vmatmul.mubr.msk.bf16.gmra.mrb[76].mxu1 %vm202_vm1, %v8299_v38  ;;  %v8875_v38 = vpack.c.bf16 %v13938_v51, %v13937_v56 }
 0x7b8   :  { %15778 = vmatprep.mubr.msk.bf16.mxu1 %vm202_vm1, %v19738_v39  ;;  %v13884_v39 = vld [vmem:[%s21045_s0 + $0x1f9] sm:$0xff] }
 0x7b9   :  { %v8580_v2 = vpack.c.bf16 %v13885_v55, %v13884_v39  ;;  %v13945_v55 = vld [vmem:[%s21045_s0 + $0x28a] sm:$0xff] }
 0x7bf   :  { %15779 = vmatmul.mubr.msk.bf16.gmra.mrb[80].mxu1 %vm202_vm1, %v8301_v52  ;;  %v13944_v52 = vld [vmem:[%s21045_s0 + $0x27a] sm:$0xff] }
 0x7c0   :  { %15784 = vmatprep.mubr.msk.bf16.mxu1 %vm202_vm1, %v8579_v42  ;;  %v8877_v42 = vpack.c.bf16 %v13942_v8, %v13941_v14  ;;  %v8878_v39 = vpack.c.bf16 %v13944_v52, %v13943_v37 }
 0x7c7   :  { %15785 = vmatmul.mubr.msk.bf16.vlgmr.msra.gmra.mrb[52].mxu1 %vm202_vm1, %v8580_v2  ;;  %v13948_v2 = vld [vmem:[%s21045_s0 + $0x2aa] sm:$0xff] }
 0x7c8   :  { %15788 = vmatprep.mubr.msk.bf16.mxu1 %vm202_vm1, %v8581_v40  ;;  %15817 = vmatpush3.bf16.msra.mxu1 %v8938_v63  ;;  %v8879_v40 = vpack.c.bf16 %v13946_v44, %v13945_v55  ;;  %v8880_v63 = vpack.c.bf16 %v13948_v2, %v13947_v7 }
 0x7cf   :  { %15789 = vmatmul.mubr.msk.bf16.gmra.mrb[56].mxu1 %vm202_vm1, %v8582_v16  ;;  %v8881_v16 = vpack.c.bf16 %v13950_v35, %v13949_v19 }
 0x7d0   :  { %15792 = vmatprep.mubr.msk.bf16.mxu1 %vm202_vm1, %v8583_v25  ;;  %v8882_v25 = vpack.c.bf16 %v13952_v23, %v13951_v41 }
 0x7d7   :  { %15793 = vmatmul.mubr.msk.bf16.gmra.mrb[60].mxu1 %vm202_vm1, %v8584_v17  ;;  %v8883_v17 = vpack.c.bf16 %v13954_v59, %v13953_v47 }
 0x7d8   :  { %15796 = vmatprep.mubr.msk.bf16.mxu1 %vm202_vm1, %v8585_v62  ;;  %v8884_v62 = vpack.c.bf16 %v13956_v28, %v13955_v48 }
 0x7df   :  { %15797 = vmatmul.mubr.msk.bf16.gmra.mrb[64].mxu1 %vm202_vm1, %v8586_v6  ;;  %v13962_v6 = vld [vmem:[%s21045_s0 + $0x352] sm:$0xff] }
 0x7e0   :  { %15800 = vmatprep.mubr.msk.bf16.mxu1 %vm202_vm1, %v8587_v29  ;;  %v8887_v29 = vpack.c.bf16 %v13962_v6, %v13961_v54 }
 0x7e7   :  { %15801 = vmatmul.mubr.msk.bf16.gmra.mrb[68].mxu1 %vm202_vm1, %v8588_v11  ;;  %v9317_v11 = vpack.c.bf16 %v9286_v24, %v9285_v3 }
 0x7e8   :  { %15804 = vmatprep.mubr.msk.bf16.mxu1 %vm202_vm1, %v8589_v31  ;;  %v9284_v31 = vld [vmem:[%s21046_s3] sm:$0xf] }
 0x7e9   :  { %15852 = vmatprep.mubr.msk.bf16.mxu0 %vm30_vm2, %v9317_v11  ;;  %v9595_v44 = vsel %vm2939_vm3, %v9284_v31, 0 }
 0x7ef   :  { %15805 = vmatmul.mubr.msk.bf16.gmra.mrb[72].mxu1 %vm202_vm1, %v8590_v1 }
 0x7f0   :  { %15808 = vmatprep.mubr.msk.bf16.mxu1 %vm202_vm1, %v8591_v46 }
 0x7f7   :  { %15809 = vmatmul.mubr.msk.bf16.gmra.mrb[76].mxu1 %vm202_vm1, %v8592_v61 }
 0x7f8   :  { %15812 = vmatprep.mubr.msk.bf16.mxu1 %vm202_vm1, %v19787_v15  ;;  %v13933_v15 = vld [vmem:[%s21045_s0 + $0x1fa] sm:$0xff] }
 0x7f9   :  { %v8873_v36 = vpack.c.bf16 %v13934_v22, %v13933_v15 }
 0x7ff   :  { %15813 = vmatmul.mubr.msk.bf16.gmra.mrb[80].mxu1 %vm202_vm1, %v8594_v45 }
 0x800   :  { %15818 = vmatprep.mubr.msk.bf16.mxu1 %vm202_vm1, %v8872_v12 }
 0x807   :  { %15819 = vmatmul.mubr.msk.bf16.vlgmr.msra.gmra.mrb[52].mxu1 %vm202_vm1, %v8873_v36 }
 0x808   :  { %15822 = vmatprep.mubr.msk.bf16.mxu1 %vm202_vm1, %v8874_v49 }
 0x80f   :  { %15823 = vmatmul.mubr.msk.bf16.gmra.mrb[56].mxu1 %vm202_vm1, %v8875_v38 }
 0x810   :  { %15826 = vmatprep.mubr.msk.bf16.mxu1 %vm202_vm1, %v8876_v60 }
 0x817   :  { %15827 = vmatmul.mubr.msk.bf16.gmra.mrb[60].mxu1 %vm202_vm1, %v8877_v42 }
 0x818   :  { %15830 = vmatprep.mubr.msk.bf16.mxu1 %vm202_vm1, %v8878_v39 }
 0x81f   :  { %15831 = vmatmul.mubr.msk.bf16.gmra.mrb[64].mxu1 %vm202_vm1, %v8879_v40 }
 0x820   :  { %15834 = vmatprep.mubr.msk.bf16.mxu1 %vm202_vm1, %v8880_v63  ;;  %v20244_v63 = vld [vmem:[%s21046_s3 + $0x8] sm:$0xf] }
 0x827   :  { %15835 = vmatmul.mubr.msk.bf16.gmra.mrb[68].mxu1 %vm202_vm1, %v8881_v16 }
 0x828   :  { %15838 = vmatprep.mubr.msk.bf16.mxu1 %vm202_vm1, %v8882_v25 }
 0x82f   :  { %15839 = vmatmul.mubr.msk.bf16.gmra.mrb[72].mxu1 %vm202_vm1, %v8883_v17 }
 0x830   :  { %15842 = vmatprep.mubr.msk.bf16.mxu1 %vm202_vm1, %v8884_v62 }
 0x837   :  { %15843 = vmatmul.mubr.msk.bf16.gmra.mrb[76].mxu1 %vm202_vm1, %v8885_v26 }
 0x838   :  { %15846 = vmatprep.mubr.msk.bf16.mxu1 %vm202_vm1, %v19838_v58  ;;  %v13981_v58 = vld [vmem:[%s21046_s3 + $0x4] sm:$0xf] }
 0x839   :  { %17370 = vmatprep.subr.msk.bf16.mxu0 %vm2939_vm3, %v13981_v58  ;;  %v9383_v5 = vsel %vm2939_vm3, %v13981_v58, 0 }
 0x83a   :  { %15851 = vmatpush3.bf16.msra.mxu0 %v9383_v5 }
 0x83b   :  { %17371 = vmatprep.subr.msk.bf16.mxu0 %vm2939_vm3, %v9284_v31 }
 0x83f   :  { %15847 = vmatmul.mubr.msk.bf16.gmra.mrb[80].mxu1 %vm202_vm1, %v8887_v29 }
 0x8da   :  { %v15820_v1 = vpop.f32.mrb[52].mxu1 }
 0x8db   :  { %v20194_v46 = vadd.f32 %v15820_v1, %v20191_v34  ;;  %v8974_v20 = vpop.f32.mrb[53].mxu1 }
 0x8dc   :  { %v20197_v53 = vadd.f32 %v20191_v34, %v8974_v20  ;;  %v15821_v61 = vpop.f32.mrb[54].mxu1 }
 0x8dd   :  { %v9174_v9 = vmax.f32 %v20194_v46, 0.0  ;;  %v20201_v32 = vadd.f32 %v15821_v61, %v20191_v34  ;;  %v8977_v10 = vpop.f32.mrb[55].mxu1 }
 0x8de   :  { %v9172_v33 = vmax.f32 %v20197_v53, 0.0  ;;  %v20205_v45 = vadd.f32 %v20191_v34, %v8977_v10 }
 0x8df   :  { %9206 = vst.msk [vmem:[#allocation2 + $0x48] sm:$0xff] %vm30_vm2, %v9174_v9  ;;  %v9175_v12 = vmax.f32 %v20201_v32, 0.0 }
 0x8e0   :  { %9204 = vst.msk [vmem:[#allocation2 + $0x28] sm:$0xff] %vm30_vm2, %v9172_v33  ;;  %v9173_v15 = vmax.f32 %v20205_v45, 0.0 }
 0x8e1   :  { %9207 = vst.msk [vmem:[#allocation2 + $0x50] sm:$0xff] %vm30_vm2, %v9175_v12 }
 0x8e2   :  { %9205 = vst.msk [vmem:[#allocation2 + $0x30] sm:$0xff] %vm30_vm2, %v9173_v15  ;;  %v15824_v22 = vpop.f32.mrb[56].mxu1 }
 0x8e3   :  { %v20214_v50 = vadd.f32 %v15824_v22, %v20191_v34  ;;  %v8990_v57 = vpop.f32.mrb[57].mxu1 }
 0x8e4   :  { %v20217_v36 = vadd.f32 %v20191_v34, %v8990_v57  ;;  %v15825_v49 = vpop.f32.mrb[58].mxu1 }
 0x8e5   :  { %v9178_v56 = vmax.f32 %v20214_v50, 0.0  ;;  %v20221_v51 = vadd.f32 %v15825_v49, %v20191_v34  ;;  %v8993_v0 = vpop.f32.mrb[59].mxu1 }
 0x8e6   :  { %v9176_v30 = vmax.f32 %v20217_v36, 0.0  ;;  %v20225_v38 = vadd.f32 %v20191_v34, %v8993_v0  ;;  %v9289_v55 = vld [vmem:[#allocation2 + $0x48] sm:$0xff] }
 0x8e7   :  { %9210 = vst.msk [vmem:[#allocation2 + $0x88] sm:$0xff] %vm30_vm2, %v9178_v56  ;;  %v9179_v60 = vmax.f32 %v20221_v51, 0.0  ;;  %v9287_v37 = vld [vmem:[#allocation2 + $0x28] sm:$0xff] }
 0x8e8   :  { %9208 = vst.msk [vmem:[#allocation2 + $0x68] sm:$0xff] %vm30_vm2, %v9176_v30  ;;  %v9177_v14 = vmax.f32 %v20225_v38, 0.0  ;;  %v9290_v8 = vld [vmem:[#allocation2 + $0x50] sm:$0xff] }
 0x8e9   :  { %9211 = vst.msk [vmem:[#allocation2 + $0x90] sm:$0xff] %vm30_vm2, %v9179_v60  ;;  %v9288_v52 = vld [vmem:[#allocation2 + $0x30] sm:$0xff]  ;;  %v20239_v40 = vpack.c.bf16 %v9290_v8, %v9289_v55 }
 0x8ea   :  { %9209 = vst.msk [vmem:[#allocation2 + $0x70] sm:$0xff] %vm30_vm2, %v9177_v14  ;;  %v15828_v42 = vpop.f32.mrb[60].mxu1  ;;  %v20233_v39 = vpack.c.bf16 %v9288_v52, %v9287_v37 }
 0x8eb   :  { %v20237_v7 = vadd.f32 %v15828_v42, %v20191_v34  ;;  %v9006_v2 = vpop.f32.mrb[61].mxu1 }
 0x8ec   :  { %v20247_v19 = vadd.f32 %v20191_v34, %v9006_v2  ;;  %v15829_v35 = vpop.f32.mrb[62].mxu1  ;;  %15853 = vmatmul.mubr.msk.bf16.vlgmr.msra.gmra.mrb[44].mxu0 %vm30_vm2, %v20233_v39 }
 0x8ed   :  { %21185 = vst [vmem:[#allocation9_spill] sm:$0xff] %v20237_v7  ;;  %v9182_v41 = vmax.f32 %v20237_v7, 0.0  ;;  %v20253_v23 = vadd.f32 %v15829_v35, %v20191_v34  ;;  %v9009_v16 = vpop.f32.mrb[63].mxu1  ;;  %15856 = vmatprep.mubr.msk.bf16.mxu0 %vm30_vm2, %v20239_v40  ;;  %15885 = vmatpush3.bf16.msra.mxu0 %v9595_v44 }
 0x8ee   :  { %v9180_v25 = vmax.f32 %v20247_v19, 0.0  ;;  %v20259_v47 = vadd.f32 %v20191_v34, %v9009_v16  ;;  %17372 = vmatprep.subr.msk.bf16.mxu0 %vm2939_vm3, %v20244_v63  ;;  %v9293_v26 = vld [vmem:[#allocation2 + $0x88] sm:$0xff] }
 0x8ef   :  { %9214 = vst.msk [vmem:[#allocation2 + $0xc8] sm:$0xff] %vm30_vm2, %v9182_v41  ;;  %v9183_v59 = vmax.f32 %v20253_v23, 0.0  ;;  %v9291_v17 = vld [vmem:[#allocation2 + $0x68] sm:$0xff] }
 0x8f0   :  { %9212 = vst.msk [vmem:[#allocation2 + $0xa8] sm:$0xff] %vm30_vm2, %v9180_v25  ;;  %v9181_v48 = vmax.f32 %v20259_v47, 0.0  ;;  %v9294_v28 = vld [vmem:[#allocation2 + $0x90] sm:$0xff] }
 0x8f1   :  { %9215 = vst.msk [vmem:[#allocation2 + $0xd0] sm:$0xff] %vm30_vm2, %v9183_v59  ;;  %v9292_v62 = vld [vmem:[#allocation2 + $0x70] sm:$0xff]  ;;  %v20274_v29 = vpack.c.bf16 %v9294_v28, %v9293_v26 }
 0x8f2   :  { %9213 = vst.msk [vmem:[#allocation2 + $0xb0] sm:$0xff] %vm30_vm2, %v9181_v48  ;;  %v15832_v18 = vpop.f32.mrb[64].mxu1  ;;  %v20269_v43 = vpack.c.bf16 %v9292_v62, %v9291_v17 }
 0x8f3   :  { %v20272_v54 = vadd.f32 %v15832_v18, %v20191_v34  ;;  %v9022_v6 = vpop.f32.mrb[65].mxu1 }
 0x8f4   :  { %v20277_v27 = vadd.f32 %v20191_v34, %v9022_v6  ;;  %v15833_v58 = vpop.f32.mrb[66].mxu1  ;;  %15857 = vmatmul.mubr.msk.bf16.gmra.mrb[48].mxu0 %vm30_vm2, %v20269_v43 }
 0x8f5   :  { %21186 = vst [vmem:[#allocation5_spill] sm:$0xff] %v20272_v54  ;;  %v9186_v5 = vmax.f32 %v20272_v54, 0.0  ;;  %v20283_v3 = vadd.f32 %v15833_v58, %v20191_v34  ;;  %v9025_v24 = vpop.f32.mrb[67].mxu1  ;;  %15860 = vmatprep.mubr.msk.bf16.mxu0 %vm30_vm2, %v20274_v29 }
 0x8f6   :  { %21187 = vst [vmem:[#allocation7_spill] sm:$0xff] %v20277_v27  ;;  %v9184_v11 = vmax.f32 %v20277_v27, 0.0  ;;  %v20289_v31 = vadd.f32 %v20191_v34, %v9025_v24  ;;  %v9297_v10 = vld [vmem:[#allocation2 + $0xc8] sm:$0xff] }
 0x8f7   :  { %21188 = vst [vmem:[#allocation8_spill] sm:$0xff] %v20283_v3  ;;  %9218 = vst.msk [vmem:[#allocation2 + $0x108] sm:$0xff] %vm30_vm2, %v9186_v5  ;;  %v9187_v21 = vmax.f32 %v20283_v3, 0.0  ;;  %v9295_v1 = vld [vmem:[#allocation2 + $0xa8] sm:$0xff] }
 0x8f8   :  { %21189 = vst [vmem:[#allocation13_spill] sm:$0xff] %v20289_v31  ;;  %9216 = vst.msk [vmem:[#allocation2 + $0xe8] sm:$0xff] %vm30_vm2, %v9184_v11  ;;  %v9185_v4 = vmax.f32 %v20289_v31, 0.0  ;;  %v9298_v13 = vld [vmem:[#allocation2 + $0xd0] sm:$0xff] }
 0x8f9   :  { %9219 = vst.msk [vmem:[#allocation2 + $0x110] sm:$0xff] %vm30_vm2, %v9187_v21  ;;  %v9296_v20 = vld [vmem:[#allocation2 + $0xb0] sm:$0xff]  ;;  %v20302_v15 = vpack.c.bf16 %v9298_v13, %v9297_v10 }
 0x8fa   :  { %9217 = vst.msk [vmem:[#allocation2 + $0xf0] sm:$0xff] %vm30_vm2, %v9185_v4  ;;  %v15836_v61 = vpop.f32.mrb[68].mxu1  ;;  %v20297_v9 = vpack.c.bf16 %v9296_v20, %v9295_v1 }
 0x8fb   :  { %v20300_v33 = vadd.f32 %v15836_v61, %v20191_v34  ;;  %v9038_v12 = vpop.f32.mrb[69].mxu1 }
 0x8fc   :  { %v20305_v22 = vadd.f32 %v20191_v34, %v9038_v12  ;;  %v15837_v57 = vpop.f32.mrb[70].mxu1  ;;  %15861 = vmatmul.mubr.msk.bf16.gmra.mrb[52].mxu0 %vm30_vm2, %v20297_v9 }
 0x8fd   :  { %21190 = vst [vmem:[#allocation6_spill] sm:$0xff] %v20300_v33  ;;  %v9190_v49 = vmax.f32 %v20300_v33, 0.0  ;;  %v20311_v56 = vadd.f32 %v15837_v57, %v20191_v34  ;;  %v9041_v0 = vpop.f32.mrb[71].mxu1  ;;  %15864 = vmatprep.mubr.msk.bf16.mxu0 %vm30_vm2, %v20302_v15 }
 0x8fe   :  { %21191 = vst [vmem:[#allocation11_spill] sm:$0xff] %v20305_v22  ;;  %v9188_v30 = vmax.f32 %v20305_v22, 0.0  ;;  %v20317_v60 = vadd.f32 %v20191_v34, %v9041_v0  ;;  %v9301_v2 = vld [vmem:[#allocation2 + $0x108] sm:$0xff] }
 0x8ff   :  { %21192 = vst [vmem:[#allocation12_spill] sm:$0xff] %v20311_v56  ;;  %9222 = vst.msk [vmem:[#allocation2 + $0x148] sm:$0xff] %vm30_vm2, %v9190_v49  ;;  %v9191_v14 = vmax.f32 %v20311_v56, 0.0  ;;  %v9299_v52 = vld [vmem:[#allocation2 + $0xe8] sm:$0xff] }
 0x900   :  { %21193 = vst [vmem:[#allocation17_spill] sm:$0xff] %v20317_v60  ;;  %9220 = vst.msk [vmem:[#allocation2 + $0x128] sm:$0xff] %vm30_vm2, %v9188_v30  ;;  %v9189_v8 = vmax.f32 %v20317_v60, 0.0  ;;  %v9302_v37 = vld [vmem:[#allocation2 + $0x110] sm:$0xff] }
 0x901   :  { %9223 = vst.msk [vmem:[#allocation2 + $0x150] sm:$0xff] %vm30_vm2, %v9191_v14  ;;  %v9300_v42 = vld [vmem:[#allocation2 + $0xf0] sm:$0xff]  ;;  %v20330_v16 = vpack.c.bf16 %v9302_v37, %v9301_v2 }
 0x902   :  { %9221 = vst.msk [vmem:[#allocation2 + $0x130] sm:$0xff] %vm30_vm2, %v9189_v8  ;;  %v15840_v55 = vpop.f32.mrb[72].mxu1  ;;  %v20325_v44 = vpack.c.bf16 %v9300_v42, %v9299_v52 }
 0x903   :  { %v20328_v35 = vadd.f32 %v15840_v55, %v20191_v34  ;;  %v9054_v41 = vpop.f32.mrb[73].mxu1 }
 0x904   :  { %v20333_v25 = vadd.f32 %v20191_v34, %v9054_v41  ;;  %v15841_v59 = vpop.f32.mrb[74].mxu1  ;;  %15865 = vmatmul.mubr.msk.bf16.gmra.mrb[56].mxu0 %vm30_vm2, %v20325_v44 }
 0x905   :  { %21194 = vst [vmem:[#allocation10_spill] sm:$0xff] %v20328_v35  ;;  %v9194_v48 = vmax.f32 %v20328_v35, 0.0  ;;  %v20339_v28 = vadd.f32 %v15841_v59, %v20191_v34  ;;  %v9057_v17 = vpop.f32.mrb[75].mxu1  ;;  %15868 = vmatprep.mubr.msk.bf16.mxu0 %vm30_vm2, %v20330_v16 }
 0x906   :  { %21195 = vst [vmem:[#allocation15_spill] sm:$0xff] %v20333_v25  ;;  %v9192_v62 = vmax.f32 %v20333_v25, 0.0  ;;  %v20345_v18 = vadd.f32 %v20191_v34, %v9057_v17  ;;  %v9305_v4 = vld [vmem:[#allocation2 + $0x148] sm:$0xff] }
 0x907   :  { %21196 = vst [vmem:[#allocation16_spill] sm:$0xff] %v20339_v28  ;;  %9226 = vst.msk [vmem:[#allocation2 + $0x188] sm:$0xff] %vm30_vm2, %v9194_v48  ;;  %v9195_v26 = vmax.f32 %v20339_v28, 0.0  ;;  %v9303_v5 = vld [vmem:[#allocation2 + $0x128] sm:$0xff] }
 0x908   :  { %21197 = vst [vmem:[#allocation21_spill] sm:$0xff] %v20345_v18  ;;  %9224 = vst.msk [vmem:[#allocation2 + $0x168] sm:$0xff] %vm30_vm2, %v9192_v62  ;;  %v9193_v6 = vmax.f32 %v20345_v18, 0.0  ;;  %v9306_v58 = vld [vmem:[#allocation2 + $0x150] sm:$0xff] }
 0x909   :  { %9227 = vst.msk [vmem:[#allocation2 + $0x190] sm:$0xff] %vm30_vm2, %v9195_v26  ;;  %v9304_v24 = vld [vmem:[#allocation2 + $0x130] sm:$0xff]  ;;  %v20358_v20 = vpack.c.bf16 %v9306_v58, %v9305_v4 }
 0x90a   :  { %9225 = vst.msk [vmem:[#allocation2 + $0x170] sm:$0xff] %vm30_vm2, %v9193_v6  ;;  %v15844_v11 = vpop.f32.mrb[76].mxu1  ;;  %v20353_v21 = vpack.c.bf16 %v9304_v24, %v9303_v5 }
 0x90b   :  { %v20356_v13 = vadd.f32 %v15844_v11, %v20191_v34  ;;  %v9070_v1 = vpop.f32.mrb[77].mxu1 }
 0x90c   :  { %v20361_v61 = vadd.f32 %v20191_v34, %v9070_v1  ;;  %v15845_v10 = vpop.f32.mrb[78].mxu1  ;;  %15869 = vmatmul.mubr.msk.bf16.gmra.mrb[60].mxu0 %vm30_vm2, %v20353_v21 }
 0x90d   :  { %21198 = vst [vmem:[#allocation14_spill] sm:$0xff] %v20356_v13  ;;  %v9198_v12 = vmax.f32 %v20356_v13, 0.0  ;;  %v20367_v57 = vadd.f32 %v15845_v10, %v20191_v34  ;;  %v9073_v49 = vpop.f32.mrb[79].mxu1  ;;  %15872 = vmatprep.mubr.msk.bf16.mxu0 %vm30_vm2, %v20358_v20 }
 0x90e   :  { %21199 = vst [vmem:[#allocation19_spill] sm:$0xff] %v20361_v61  ;;  %v9196_v0 = vmax.f32 %v20361_v61, 0.0  ;;  %v20373_v30 = vadd.f32 %v20191_v34, %v9073_v49  ;;  %v9309_v41 = vld [vmem:[#allocation2 + $0x188] sm:$0xff] }
 0x90f   :  { %21200 = vst [vmem:[#allocation20_spill] sm:$0xff] %v20367_v57  ;;  %9230 = vst.msk [vmem:[#allocation2 + $0x1c8] sm:$0xff] %vm30_vm2, %v9198_v12  ;;  %v9199_v14 = vmax.f32 %v20367_v57, 0.0  ;;  %v9307_v52 = vld [vmem:[#allocation2 + $0x168] sm:$0xff] }
 0x910   :  { %21201 = vst [vmem:[#allocation25_spill] sm:$0xff] %v20373_v30  ;;  %9228 = vst.msk [vmem:[#allocation2 + $0x1a8] sm:$0xff] %vm30_vm2, %v9196_v0  ;;  %v9197_v8 = vmax.f32 %v20373_v30, 0.0  ;;  %v9310_v37 = vld [vmem:[#allocation2 + $0x190] sm:$0xff] }
 0x911   :  { %9231 = vst.msk [vmem:[#allocation2 + $0x1d0] sm:$0xff] %vm30_vm2, %v9199_v14  ;;  %v9308_v42 = vld [vmem:[#allocation2 + $0x170] sm:$0xff]  ;;  %v20386_v17 = vpack.c.bf16 %v9310_v37, %v9309_v41  ;;  %v9236_v37 = vld [vmem:[#allocation2 + $0x7] sm:$0xff] }
 0x912   :  { %9229 = vst.msk [vmem:[#allocation2 + $0x1b0] sm:$0xff] %vm30_vm2, %v9197_v8  ;;  %v15848_v55 = vpop.f32.mrb[80].mxu1  ;;  %v20381_v2 = vpack.c.bf16 %v9308_v42, %v9307_v52  ;;  %v12863_v8 = vld [vmem:[%s21051_s6 + $0x8] sm:$0x3]  ;;  %v9237_v52 = vld [vmem:[#allocation2 + $0xf] sm:$0xff] }
 0x913   :  { %v20384_v59 = vadd.f32 %v15848_v55, %v20191_v34  ;;  %v9086_v48 = vpop.f32.mrb[81].mxu1  ;;  %12871 = vperm.xlu0 %17390, %v12863_v8   ;;  %v9268_v41 = vpack.c.bf16 %v9237_v52, %v9236_v37  ;;  %v9244_v37 = vld [vmem:[#allocation2 + $0x87] sm:$0xff] }
 0x914   :  { %v20389_v62 = vadd.f32 %v20191_v34, %v9086_v48  ;;  %v15849_v26 = vpop.f32.mrb[82].mxu1  ;;  %15873 = vmatmul.mubr.msk.bf16.gmra.mrb[64].mxu0 %vm30_vm2, %v20381_v2 }
 0x915   :  { %21202 = vst [vmem:[#allocation24_spill] sm:$0xff] %v20384_v59  ;;  %v9202_v6 = vmax.f32 %v20384_v59, 0.0  ;;  %v20395_v58 = vadd.f32 %v15849_v26, %v20191_v34  ;;  %v9089_v5 = vpop.f32.mrb[83].mxu1  ;;  %15876 = vmatprep.mubr.msk.bf16.mxu0 %vm30_vm2, %v20386_v17  ;;  %v9239_v26 = vld [vmem:[#allocation2 + $0x2f] sm:$0xff] }
 0x916   :  { %21203 = vst [vmem:[#allocation18_spill] sm:$0xff] %v20389_v62  ;;  %v9200_v24 = vmax.f32 %v20389_v62, 0.0  ;;  %v20401_v11 = vadd.f32 %v20191_v34, %v9089_v5  ;;  %v9313_v14 = vld [vmem:[#allocation2 + $0x1c8] sm:$0xff] }
 0x917   :  { %21204 = vst [vmem:[#allocation23_spill] sm:$0xff] %v20395_v58  ;;  %9234 = vst.msk [vmem:[#allocation2 + $0x208] sm:$0xff] %vm30_vm2, %v9202_v6  ;;  %v9203_v4 = vmax.f32 %v20395_v58, 0.0  ;;  %v9311_v12 = vld [vmem:[#allocation2 + $0x1a8] sm:$0xff] }
 0x918   :  { %21205 = vst [vmem:[#allocation22_spill] sm:$0xff] %v20401_v11  ;;  %9232 = vst.msk [vmem:[#allocation2 + $0x1e8] sm:$0xff] %vm30_vm2, %v9200_v24  ;;  %v9201_v1 = vmax.f32 %v20401_v11, 0.0  ;;  %v9314_v10 = vld [vmem:[#allocation2 + $0x1d0] sm:$0xff]  ;;  %v9238_v5 = vld [vmem:[#allocation2 + $0x27] sm:$0xff] }
 0x919   :  { %9235 = vst.msk [vmem:[#allocation2 + $0x210] sm:$0xff] %vm30_vm2, %v9203_v4  ;;  %v9312_v49 = vld [vmem:[#allocation2 + $0x1b0] sm:$0xff]  ;;  %v20411_v34 = vpack.c.bf16 %v9314_v10, %v9313_v14  ;;  %v20425_v24 = vpack.c.bf16 %v9239_v26, %v9238_v5  ;;  %v9240_v4 = vld [vmem:[#allocation2 + $0x47] sm:$0xff]  ;;  %v6440_v26 = vpop.permute.xlu0 %6439 }
 0x91a   :  { %9233 = vst.msk [vmem:[#allocation2 + $0x1f0] sm:$0xff] %vm30_vm2, %v9201_v1  ;;  %v20409_v0 = vpack.c.bf16 %v9312_v49, %v9311_v12  ;;  %v9241_v6 = vld [vmem:[#allocation2 + $0x4f] sm:$0xff]  ;;  %v9856_v1 = vsel %vm2939_vm3, %v20244_v63, 0  ;;  %v9242_v63 = vld [vmem:[#allocation2 + $0x67] sm:$0xff] }
 0x91b   :  { %v20429_v10 = vpack.c.bf16 %v9241_v6, %v9240_v4  ;;  %v20434_v12 = vld [vmem:[%s21046_s3 + $0xc] sm:$0xf] }
 0x91c   :  { %15877 = vmatmul.mubr.msk.bf16.gmra.mrb[68].mxu0 %vm30_vm2, %v20409_v0  ;;  %v9243_v49 = vld [vmem:[#allocation2 + $0x6f] sm:$0xff]  ;;  %v9246_v4 = vld [vmem:[#allocation2 + $0xa7] sm:$0xff]  ;;  %v10149_v28 = vsel %vm2939_vm3, %v20434_v12, 0 }
 0x91d   :  { %15880 = vmatprep.mubr.msk.bf16.mxu0 %vm30_vm2, %v20411_v34  ;;  %v9245_v14 = vld [vmem:[#allocation2 + $0x8f] sm:$0xff]  ;;  %v20442_v8 = vpack.c.bf16 %v9243_v49, %v9242_v63  ;;  %v9264_v11 = vld [vmem:[#allocation2 + $0x1c7] sm:$0xff] }
 0x91e   :  { %v20444_v52 = vpack.c.bf16 %v9245_v14, %v9244_v37  ;;  %v9249_v6 = vld [vmem:[#allocation2 + $0xcf] sm:$0xff]  ;;  %v9248_v14 = vld [vmem:[#allocation2 + $0xc7] sm:$0xff] }
 0x91f   :  { %v9315_v42 = vld [vmem:[#allocation2 + $0x1e8] sm:$0xff]  ;;  %v20452_v13 = vpack.c.bf16 %v9249_v6, %v9248_v14 }
 0x920   :  { %v9251_v6 = vld [vmem:[#allocation2 + $0xef] sm:$0xff] }
 0x921   :  { %v9316_v55 = vld [vmem:[#allocation2 + $0x1f0] sm:$0xff] }
 0x922   :  { %v20420_v48 = vpack.c.bf16 %v9316_v55, %v9315_v42  ;;  %v6435_v42 = vpop.permute.xlu1 %6434  ;;  %v9247_v55 = vld [vmem:[#allocation2 + $0xaf] sm:$0xff] }
 0x923   :  { %v20450_v63 = vpack.c.bf16 %v9247_v55, %v9246_v4 }
 0x924   :  { %15881 = vmatmul.mubr.msk.bf16.gmra.mrb[72].mxu0 %vm30_vm2, %v20420_v48 }
 0x925   :  { %15886 = vmatprep.mubr.msk.bf16.mxu0 %vm30_vm2, %v9268_v41  ;;  %v6532_v41 = vpop.f32.mrb[40].mxu0 }
 0x926   :  { %v6534_v5 = vpop.f32.mrb[41].mxu0  ;;  %v6533_v59 = vadd.f32 %v6532_v41, %v6435_v42 }
 0x927   :  { %v6535_v49 = vadd.f32 %v6534_v5, %v6435_v42 }
 0x928   :  { %vm6541_vm10 = vcmp.gt.f32.partialorder %v6533_v59, 0.6 }
 0x929   :  { %vm6542_vm11 = vcmp.gt.f32.partialorder %v6535_v49, 0.6  ;;  %v20460_v42 = vsel %vm6541_vm10, %v6533_v59, 0.0 }
 0x92a   :  { %21207 = vst [vmem:[#allocation28_spill] sm:$0xff] %v20460_v42  ;;  %v20462_v55 = vsel %vm6542_vm11, %v6535_v49, 0.0  ;;  %v9252_v49 = vld [vmem:[#allocation2 + $0x107] sm:$0xff] }
 0x92b   :  { %21208 = vst [vmem:[#allocation29_spill] sm:$0xff] %v20462_v55 }
 0x92c   :  { %15887 = vmatmul.mubr.msk.bf16.vlgmr.msra.gmra.mrb[44].mxu0 %vm30_vm2, %v20425_v24 }
 0x92d   :  { %15890 = vmatprep.mubr.msk.bf16.mxu0 %vm30_vm2, %v20429_v10  ;;  %15919 = vmatpush3.bf16.msra.mxu0 %v9856_v1  ;;  %v6536_v1 = vpop.f32.mrb[42].mxu0 }
 0x92e   :  { %17373 = vmatprep.subr.msk.bf16.mxu0 %vm2939_vm3, %v20434_v12  ;;  %v6537_v37 = vadd.f32 %v6536_v1, %v6440_v26  ;;  %v6538_v62 = vpop.f32.mrb[43].mxu0  ;;  %v9253_v1 = vld [vmem:[#allocation2 + $0x10f] sm:$0xff] }
 0x92f   :  { %v6539_v58 = vadd.f32 %v6538_v62, %v6440_v26  ;;  %v6549_v62 = vmax.f32 %v20460_v42, %v20462_v55  ;;  %v9257_v55 = vld [vmem:[#allocation2 + $0x14f] sm:$0xff]  ;;  %v9254_v42 = vld [vmem:[#allocation2 + $0x127] sm:$0xff] }
 0x930   :  { %vm6543_vm8 = vcmp.gt.f32.partialorder %v6537_v37, 0.6 }
 0x931   :  { %vm6544_vm9 = vcmp.gt.f32.partialorder %v6539_v58, 0.6  ;;  %v20464_v5 = vsel %vm6543_vm8, %v6537_v37, 0.0  ;;  %v20474_v37 = vpack.c.bf16 %v9253_v1, %v9252_v49  ;;  %v9258_v1 = vld [vmem:[#allocation2 + $0x167] sm:$0xff] }
 0x932   :  { %v20458_v41 = vsel %vm6544_vm9, %v6539_v58, 0.0  ;;  %21209 = vst [vmem:[#allocation30_spill] sm:$0xff] %v20464_v5  ;;  %v6552_v26 = vsel %vm251_vm0, %v20464_v5, -inf  ;;  %v9250_v58 = vld [vmem:[#allocation2 + $0xe7] sm:$0xff]  ;;  %6550 = vmax.xlane.f32.xlu0 %v6549_v62  ;;  %v9255_v5 = vld [vmem:[#allocation2 + $0x12f] sm:$0xff] }
 0x933   :  { %21206 = vst [vmem:[#allocation27_spill] sm:$0xff] %v20458_v41  ;;  %v6553_v4 = vsel %vm251_vm0, %v20458_v41, -inf  ;;  %v20472_v59 = vpack.c.bf16 %v9251_v6, %v9250_v58  ;;  %v20480_v41 = vpack.c.bf16 %v9255_v5, %v9254_v42  ;;  %v9259_v6 = vld [vmem:[#allocation2 + $0x16f] sm:$0xff]  ;;  %v9260_v58 = vld [vmem:[#allocation2 + $0x187] sm:$0xff] }
 0x934   :  { %15891 = vmatmul.mubr.msk.bf16.gmra.mrb[48].mxu0 %vm30_vm2, %v20442_v8  ;;  %v6554_v14 = vmax.f32 %v6552_v26, %v6553_v4  ;;  %v9256_v26 = vld [vmem:[#allocation2 + $0x147] sm:$0xff]  ;;  %v9261_v62 = vld [vmem:[#allocation2 + $0x18f] sm:$0xff] }
 0x935   :  { %15894 = vmatprep.mubr.msk.bf16.mxu0 %vm30_vm2, %v20444_v52  ;;  %v20482_v4 = vpack.c.bf16 %v9257_v55, %v9256_v26  ;;  %v20490_v49 = vpack.c.bf16 %v9261_v62, %v9260_v58  ;;  %v9263_v42 = vld [vmem:[#allocation2 + $0x1af] sm:$0xff]  ;;  %v9262_v5 = vld [vmem:[#allocation2 + $0x1a7] sm:$0xff] }
 0x936   :  { %6555 = vmax.xlane.f32.xlu1 %v6554_v14  ;;  %v20488_v14 = vpack.c.bf16 %v9259_v6, %v9258_v1  ;;  %v9265_v55 = vld [vmem:[#allocation2 + $0x1cf] sm:$0xff]  ;;  %v20496_v26 = vpack.c.bf16 %v9263_v42, %v9262_v5  ;;  %v9266_v58 = vld [vmem:[#allocation2 + $0x1e7] sm:$0xff] }
 0x937   :  { %v20498_v57 = vpack.c.bf16 %v9265_v55, %v9264_v11  ;;  %v9758_v6 = vld [vmem:[#allocation2 + $0x9] sm:$0xff]  ;;  %v9759_v62 = vld [vmem:[#allocation2 + $0x11] sm:$0xff] }
 0x938   :  { %v9267_v1 = vld [vmem:[#allocation2 + $0x1ef] sm:$0xff]  ;;  %v9790_v61 = vpack.c.bf16 %v9759_v62, %v9758_v6 }
 0x939   :  { %v20504_v35 = vpack.c.bf16 %v9267_v1, %v9266_v58  ;;  %v9760_v11 = vld [vmem:[#allocation2 + $0x29] sm:$0xff]  ;;  %v9761_v42 = vld [vmem:[#allocation2 + $0x31] sm:$0xff] }
 0x93a   :  { %v9762_v55 = vld [vmem:[#allocation2 + $0x49] sm:$0xff]  ;;  %v9763_v5 = vld [vmem:[#allocation2 + $0x51] sm:$0xff]  ;;  %v20509_v30 = vpack.c.bf16 %v9761_v42, %v9760_v11 }
 0x93b   :  { %v20513_v25 = vpack.c.bf16 %v9763_v5, %v9762_v55  ;;  %v14048_v6 = vld [vmem:[%s21046_s3 + $0x10] sm:$0xf] }
 0x93c   :  { %15895 = vmatmul.mubr.msk.bf16.gmra.mrb[52].mxu0 %vm30_vm2, %v20450_v63  ;;  %v9765_v62 = vld [vmem:[#allocation2 + $0x71] sm:$0xff]  ;;  %v9766_v1 = vld [vmem:[#allocation2 + $0x89] sm:$0xff] }
 0x93d   :  { %15898 = vmatprep.mubr.msk.bf16.mxu0 %vm30_vm2, %v20452_v13  ;;  %v9767_v58 = vld [vmem:[#allocation2 + $0x91] sm:$0xff]  ;;  %v9768_v42 = vld [vmem:[#allocation2 + $0xa9] sm:$0xff] }
 0x93e   :  { %v20525_v11 = vpack.c.bf16 %v9767_v58, %v9766_v1  ;;  %v9769_v55 = vld [vmem:[#allocation2 + $0xb1] sm:$0xff]  ;;  %v9770_v5 = vld [vmem:[#allocation2 + $0xc9] sm:$0xff] }
 0x93f   :  { %v20531_v33 = vpack.c.bf16 %v9769_v55, %v9768_v42  ;;  %v9774_v1 = vld [vmem:[#allocation2 + $0x109] sm:$0xff]  ;;  %v9775_v58 = vld [vmem:[#allocation2 + $0x111] sm:$0xff] }
 0x940   :  { %v20541_v22 = vpack.c.bf16 %v9775_v58, %v9774_v1  ;;  %v9776_v42 = vld [vmem:[#allocation2 + $0x129] sm:$0xff]  ;;  %v9777_v55 = vld [vmem:[#allocation2 + $0x131] sm:$0xff] }
 0x941   :  { %v20547_v54 = vpack.c.bf16 %v9777_v55, %v9776_v42  ;;  %v9782_v1 = vld [vmem:[#allocation2 + $0x189] sm:$0xff]  ;;  %v9783_v58 = vld [vmem:[#allocation2 + $0x191] sm:$0xff] }
 0x942   :  { %v20557_v27 = vpack.c.bf16 %v9783_v58, %v9782_v1  ;;  %v9784_v42 = vld [vmem:[#allocation2 + $0x1a9] sm:$0xff]  ;;  %v9785_v55 = vld [vmem:[#allocation2 + $0x1b1] sm:$0xff]  ;;  %v10442_v58 = vsel %vm2939_vm3, %v14048_v6, 0 }
 0x943   :  { %v20563_v7 = vpack.c.bf16 %v9785_v55, %v9784_v42  ;;  %v14065_v42 = vld [vmem:[%s21046_s3 + $0x14] sm:$0xf] }
 0x944   :  { %15899 = vmatmul.mubr.msk.bf16.gmra.mrb[56].mxu0 %vm30_vm2, %v20472_v59 }
 0x945   :  { %15902 = vmatprep.mubr.msk.bf16.mxu0 %vm30_vm2, %v20474_v37 }
 0x94c   :  { %15903 = vmatmul.mubr.msk.bf16.gmra.mrb[60].mxu0 %vm30_vm2, %v20480_v41 }
 0x94d   :  { %15906 = vmatprep.mubr.msk.bf16.mxu0 %vm30_vm2, %v20482_v4 }
 0x954   :  { %15907 = vmatmul.mubr.msk.bf16.gmra.mrb[64].mxu0 %vm30_vm2, %v20488_v14 }
 0x955   :  { %15910 = vmatprep.mubr.msk.bf16.mxu0 %vm30_vm2, %v20490_v49 }
 0x95c   :  { %15911 = vmatmul.mubr.msk.bf16.gmra.mrb[68].mxu0 %vm30_vm2, %v20496_v26 }
 0x95d   :  { %15914 = vmatprep.mubr.msk.bf16.mxu0 %vm30_vm2, %v20498_v57 }
 0x964   :  { %15915 = vmatmul.mubr.msk.bf16.gmra.mrb[72].mxu0 %vm30_vm2, %v20504_v35 }
 0x965   :  { %15920 = vmatprep.mubr.msk.bf16.mxu0 %vm30_vm2, %v9790_v61  ;;  %v9764_v61 = vld [vmem:[#allocation2 + $0x69] sm:$0xff] }
 0x966   :  { %v20523_v12 = vpack.c.bf16 %v9765_v62, %v9764_v61  ;;  %v9772_v61 = vld [vmem:[#allocation2 + $0xe9] sm:$0xff]  ;;  %v9773_v62 = vld [vmem:[#allocation2 + $0xf1] sm:$0xff] }
 0x967   :  { %v20539_v56 = vpack.c.bf16 %v9773_v62, %v9772_v61  ;;  %v9780_v61 = vld [vmem:[#allocation2 + $0x169] sm:$0xff]  ;;  %v9781_v62 = vld [vmem:[#allocation2 + $0x171] sm:$0xff] }
 0x968   :  { %v20555_v3 = vpack.c.bf16 %v9781_v62, %v9780_v61  ;;  %v9788_v61 = vld [vmem:[#allocation2 + $0x1e9] sm:$0xff]  ;;  %v9789_v62 = vld [vmem:[#allocation2 + $0x1f1] sm:$0xff] }
 0x969   :  { %v20571_v1 = vpack.c.bf16 %v9789_v62, %v9788_v61  ;;  %v11229_v61 = vld [vmem:[#allocation2 + $0xa8] sm:$0xff] }
 0x96c   :  { %15921 = vmatmul.mubr.msk.bf16.vlgmr.msra.gmra.mrb[44].mxu0 %vm30_vm2, %v20509_v30 }
 0x96d   :  { %15924 = vmatprep.mubr.msk.bf16.mxu0 %vm30_vm2, %v20513_v25  ;;  %15953 = vmatpush3.bf16.msra.mxu0 %v10149_v28  ;;  %v9771_v28 = vld [vmem:[#allocation2 + $0xd1] sm:$0xff] }
 0x96e   :  { %17374 = vmatprep.subr.msk.bf16.mxu0 %vm2939_vm3, %v14048_v6  ;;  %v20533_v18 = vpack.c.bf16 %v9771_v28, %v9770_v5  ;;  %v9778_v5 = vld [vmem:[#allocation2 + $0x149] sm:$0xff]  ;;  %v9779_v28 = vld [vmem:[#allocation2 + $0x151] sm:$0xff] }
 0x96f   :  { %v20549_v60 = vpack.c.bf16 %v9779_v28, %v9778_v5  ;;  %v9786_v5 = vld [vmem:[#allocation2 + $0x1c9] sm:$0xff]  ;;  %v9787_v28 = vld [vmem:[#allocation2 + $0x1d1] sm:$0xff] }
 0x970   :  { %v20565_v31 = vpack.c.bf16 %v9787_v28, %v9786_v5  ;;  %v10081_v6 = vld [vmem:[#allocation2 + $0x207] sm:$0xff]  ;;  %v10735_v5 = vsel %vm2939_vm3, %v14065_v42, 0  ;;  %v14082_v28 = vld [vmem:[%s21046_s3 + $0x18] sm:$0xf] }
 0x974   :  { %15925 = vmatmul.mubr.msk.bf16.gmra.mrb[48].mxu0 %vm30_vm2, %v20523_v12 }
 0x975   :  { %15928 = vmatprep.mubr.msk.bf16.mxu0 %vm30_vm2, %v20525_v11 }
 0x97c   :  { %15929 = vmatmul.mubr.msk.bf16.gmra.mrb[52].mxu0 %vm30_vm2, %v20531_v33 }
 0x97d   :  { %15932 = vmatprep.mubr.msk.bf16.mxu0 %vm30_vm2, %v20533_v18 }
 0x984   :  { %15933 = vmatmul.mubr.msk.bf16.gmra.mrb[56].mxu0 %vm30_vm2, %v20539_v56 }
 0x985   :  { %15936 = vmatprep.mubr.msk.bf16.mxu0 %vm30_vm2, %v20541_v22 }
 0x98c   :  { %15937 = vmatmul.mubr.msk.bf16.gmra.mrb[60].mxu0 %vm30_vm2, %v20547_v54 }
 0x98d   :  { %15940 = vmatprep.mubr.msk.bf16.mxu0 %vm30_vm2, %v20549_v60 }
 0x994   :  { %15941 = vmatmul.mubr.msk.bf16.gmra.mrb[64].mxu0 %vm30_vm2, %v20555_v3 }
 0x995   :  { %15944 = vmatprep.mubr.msk.bf16.mxu0 %vm30_vm2, %v20557_v27 }
 0x99c   :  { %15945 = vmatmul.mubr.msk.bf16.gmra.mrb[68].mxu0 %vm30_vm2, %v20563_v7 }
 0x99d   :  { %15948 = vmatprep.mubr.msk.bf16.mxu0 %vm30_vm2, %v20565_v31 }
 0x9a4   :  { %15949 = vmatmul.mubr.msk.bf16.gmra.mrb[72].mxu0 %vm30_vm2, %v20571_v1 }
 0x9a5   :  { %15954 = vmatprep.mubr.msk.bf16.mxu0 %vm30_vm2, %v20425_v24  ;;  %v10082_v24 = vld [vmem:[#allocation2 + $0x20f] sm:$0xff] }
 0x9a6   :  { %v20610_v55 = vpack.c.bf16 %v10082_v24, %v10081_v6  ;;  %v11234_v24 = vld [vmem:[#allocation2 + $0xf0] sm:$0xff] }
 0x9a7   :  { %v11236_v6 = vld [vmem:[#allocation2 + $0x110] sm:$0xff] }
 0x9ac   :  { %15955 = vmatmul.mubr.msk.bf16.vlgmr.msra.gmra.mrb[44].mxu0 %vm30_vm2, %v20429_v10 }
 0x9ad   :  { %15958 = vmatprep.mubr.msk.bf16.mxu0 %vm30_vm2, %v20442_v8  ;;  %15987 = vmatpush3.bf16.msra.mxu0 %v10442_v58  ;;  %v11231_v58 = vld [vmem:[#allocation2 + $0xc8] sm:$0xff] }
 0x9ae   :  { %17375 = vmatprep.subr.msk.bf16.mxu0 %vm2939_vm3, %v14065_v42 }
 0x9b4   :  { %15959 = vmatmul.mubr.msk.bf16.gmra.mrb[48].mxu0 %vm30_vm2, %v20444_v52 }
 0x9b5   :  { %15962 = vmatprep.mubr.msk.bf16.mxu0 %vm30_vm2, %v20450_v63 }
 0x9bc   :  { %15963 = vmatmul.mubr.msk.bf16.gmra.mrb[52].mxu0 %vm30_vm2, %v20452_v13 }
 0x9bd   :  { %15966 = vmatprep.mubr.msk.bf16.mxu0 %vm30_vm2, %v20472_v59 }
 0x9c4   :  { %15967 = vmatmul.mubr.msk.bf16.gmra.mrb[56].mxu0 %vm30_vm2, %v20474_v37 }
 0x9c5   :  { %15970 = vmatprep.mubr.msk.bf16.mxu0 %vm30_vm2, %v20480_v41 }
 0x9cc   :  { %15971 = vmatmul.mubr.msk.bf16.gmra.mrb[60].mxu0 %vm30_vm2, %v20482_v4 }
 0x9cd   :  { %15974 = vmatprep.mubr.msk.bf16.mxu0 %vm30_vm2, %v20488_v14 }
 0x9d4   :  { %15975 = vmatmul.mubr.msk.bf16.gmra.mrb[64].mxu0 %vm30_vm2, %v20490_v49 }
 0x9d5   :  { %15978 = vmatprep.mubr.msk.bf16.mxu0 %vm30_vm2, %v20496_v26 }
 0x9dc   :  { %15979 = vmatmul.mubr.msk.bf16.gmra.mrb[68].mxu0 %vm30_vm2, %v20498_v57 }
 0x9dd   :  { %15982 = vmatprep.mubr.msk.bf16.mxu0 %vm30_vm2, %v20504_v35 }
 0x9e4   :  { %15983 = vmatmul.mubr.msk.bf16.gmra.mrb[72].mxu0 %vm30_vm2, %v20610_v55 }
 0x9e5   :  { %15988 = vmatprep.mubr.msk.bf16.mxu0 %vm30_vm2, %v20233_v39  ;;  %v10375_v39 = vld [vmem:[#allocation2 + $0x210] sm:$0xff] }
 0x9ec   :  { %15989 = vmatmul.mubr.msk.bf16.vlgmr.msra.gmra.mrb[44].mxu0 %vm30_vm2, %v20239_v40  ;;  %v10374_v40 = vld [vmem:[#allocation2 + $0x208] sm:$0xff] }
 0x9ed   :  { %15992 = vmatprep.mubr.msk.bf16.mxu0 %vm30_vm2, %v20269_v43  ;;  %16021 = vmatpush3.bf16.msra.mxu0 %v10735_v5  ;;  %v20649_v43 = vpack.c.bf16 %v10375_v39, %v10374_v40  ;;  %v11238_v40 = vld [vmem:[#allocation2 + $0x130] sm:$0xff] }
 0x9ee   :  { %17376 = vmatprep.subr.msk.bf16.mxu0 %vm2939_vm3, %v14082_v28 }
 0x9f4   :  { %15993 = vmatmul.mubr.msk.bf16.gmra.mrb[48].mxu0 %vm30_vm2, %v20274_v29  ;;  %v11028_v29 = vsel %vm2939_vm3, %v14082_v28, 0  ;;  %v11235_v28 = vld [vmem:[#allocation2 + $0x108] sm:$0xff] }
 0x9f5   :  { %15996 = vmatprep.mubr.msk.bf16.mxu0 %vm30_vm2, %v20297_v9  ;;  %v14099_v9 = vld [vmem:[%s21046_s3 + $0x1c] sm:$0xf]  ;;  %v11261_v39 = vpack.c.bf16 %v11236_v6, %v11235_v28 }
 0x9fc   :  { %15997 = vmatmul.mubr.msk.bf16.gmra.mrb[52].mxu0 %vm30_vm2, %v20302_v15  ;;  %v10667_v15 = vld [vmem:[#allocation2 + $0x209] sm:$0xff] }
 0x9fd   :  { %16000 = vmatprep.mubr.msk.bf16.mxu0 %vm30_vm2, %v20325_v44  ;;  %v10668_v44 = vld [vmem:[#allocation2 + $0x211] sm:$0xff] }
 0xa04   :  { %16001 = vmatmul.mubr.msk.bf16.gmra.mrb[56].mxu0 %vm30_vm2, %v20330_v16  ;;  %v20688_v16 = vpack.c.bf16 %v10668_v44, %v10667_v15  ;;  %v11239_v44 = vld [vmem:[#allocation2 + $0x148] sm:$0xff] }
 0xa05   :  { %16004 = vmatprep.mubr.msk.bf16.mxu0 %vm30_vm2, %v20353_v21  ;;  %v11321_v21 = vsel %vm2939_vm3, %v14099_v9, 0 }
 0xa0c   :  { %16005 = vmatmul.mubr.msk.bf16.gmra.mrb[60].mxu0 %vm30_vm2, %v20358_v20  ;;  %v14116_v20 = vld [vmem:[%s21046_s3 + $0x20] sm:$0xf] }
 0xa0d   :  { %16008 = vmatprep.mubr.msk.bf16.mxu0 %vm30_vm2, %v20381_v2 }
 0xa14   :  { %16009 = vmatmul.mubr.msk.bf16.gmra.mrb[64].mxu0 %vm30_vm2, %v20386_v17 }
 0xa15   :  { %16012 = vmatprep.mubr.msk.bf16.mxu0 %vm30_vm2, %v20409_v0 }
 0xa1c   :  { %16013 = vmatmul.mubr.msk.bf16.gmra.mrb[68].mxu0 %vm30_vm2, %v20411_v34 }
 0xa1d   :  { %16016 = vmatprep.mubr.msk.bf16.mxu0 %vm30_vm2, %v20420_v48 }
 0xa24   :  { %16017 = vmatmul.mubr.msk.bf16.gmra.mrb[72].mxu0 %vm30_vm2, %v20649_v43 }
 0xa25   :  { %16022 = vmatprep.mubr.msk.bf16.mxu0 %vm30_vm2, %v20509_v30  ;;  %v10961_v30 = vld [vmem:[#allocation2 + $0x22f] sm:$0xff] }
 0xa2c   :  { %16023 = vmatmul.mubr.msk.bf16.vlgmr.msra.gmra.mrb[44].mxu0 %vm30_vm2, %v20513_v25 }
 0xa2d   :  { %16026 = vmatprep.mubr.msk.bf16.mxu0 %vm30_vm2, %v20523_v12  ;;  %16055 = vmatpush3.bf16.msra.mxu0 %v11028_v29  ;;  %v11240_v29 = vld [vmem:[#allocation2 + $0x150] sm:$0xff] }
 0xa2e   :  { %17377 = vmatprep.subr.msk.bf16.mxu0 %vm2939_vm3, %v14099_v9  ;;  %v11237_v9 = vld [vmem:[#allocation2 + $0x128] sm:$0xff] }
 0xa2f   :  { %v11262_v15 = vpack.c.bf16 %v11238_v40, %v11237_v9 }
 0xa34   :  { %16027 = vmatmul.mubr.msk.bf16.gmra.mrb[48].mxu0 %vm30_vm2, %v20525_v11 }
 0xa35   :  { %16030 = vmatprep.mubr.msk.bf16.mxu0 %vm30_vm2, %v20531_v33 }
 0xa3c   :  { %16031 = vmatmul.mubr.msk.bf16.gmra.mrb[52].mxu0 %vm30_vm2, %v20533_v18 }
 0xa3d   :  { %16034 = vmatprep.mubr.msk.bf16.mxu0 %vm30_vm2, %v20539_v56 }
 0xa44   :  { %16035 = vmatmul.mubr.msk.bf16.gmra.mrb[56].mxu0 %vm30_vm2, %v20541_v22 }
 0xa45   :  { %16038 = vmatprep.mubr.msk.bf16.mxu0 %vm30_vm2, %v20547_v54 }
 0xa4c   :  { %16039 = vmatmul.mubr.msk.bf16.gmra.mrb[60].mxu0 %vm30_vm2, %v20549_v60 }
 0xa4d   :  { %16042 = vmatprep.mubr.msk.bf16.mxu0 %vm30_vm2, %v20555_v3 }
 0xa54   :  { %16043 = vmatmul.mubr.msk.bf16.gmra.mrb[64].mxu0 %vm30_vm2, %v20557_v27 }
 0xa55   :  { %16046 = vmatprep.mubr.msk.bf16.mxu0 %vm30_vm2, %v20563_v7 }
 0xa5c   :  { %16047 = vmatmul.mubr.msk.bf16.gmra.mrb[68].mxu0 %vm30_vm2, %v20565_v31 }
 0xa5d   :  { %16050 = vmatprep.mubr.msk.bf16.mxu0 %vm30_vm2, %v20571_v1 }
 0xa64   :  { %16051 = vmatmul.mubr.msk.bf16.gmra.mrb[72].mxu0 %vm30_vm2, %v20688_v16 }
 0xa65   :  { %16056 = vmatprep.mubr.msk.bf16.mxu0 %vm30_vm2, %v20429_v10 }
 0xa6c   :  { %16057 = vmatmul.mubr.msk.bf16.vlgmr.msra.gmra.mrb[44].mxu0 %vm30_vm2, %v20442_v8  ;;  %v11224_v8 = vld [vmem:[#allocation2 + $0x50] sm:$0xff] }
 0xa6d   :  { %16060 = vmatprep.mubr.msk.bf16.mxu0 %vm30_vm2, %v20444_v52  ;;  %16089 = vmatpush3.bf16.msra.mxu0 %v11321_v21  ;;  %v11223_v52 = vld [vmem:[#allocation2 + $0x48] sm:$0xff]  ;;  %v11263_v21 = vpack.c.bf16 %v11240_v29, %v11239_v44 }
 0xa6e   :  { %17378 = vmatprep.subr.msk.bf16.mxu0 %vm2939_vm3, %v14116_v20 }
 0xa74   :  { %16061 = vmatmul.mubr.msk.bf16.gmra.mrb[48].mxu0 %vm30_vm2, %v20450_v63  ;;  %v11255_v63 = vpack.c.bf16 %v11224_v8, %v11223_v52 }
 0xa75   :  { %16064 = vmatprep.mubr.msk.bf16.mxu0 %vm30_vm2, %v20452_v13  ;;  %v10960_v13 = vld [vmem:[#allocation2 + $0x227] sm:$0xff] }
 0xa76   :  { %v10977_v10 = vpack.c.bf16 %v10961_v30, %v10960_v13  ;;  %v11254_v13 = vld [vmem:[#allocation2 + $0x230] sm:$0xff] }
 0xa7c   :  { %16065 = vmatmul.mubr.msk.bf16.gmra.mrb[52].mxu0 %vm30_vm2, %v20472_v59  ;;  %v11228_v59 = vld [vmem:[#allocation2 + $0x90] sm:$0xff] }
 0xa7d   :  { %16068 = vmatprep.mubr.msk.bf16.mxu0 %vm30_vm2, %v20474_v37  ;;  %v11225_v37 = vld [vmem:[#allocation2 + $0x68] sm:$0xff] }
 0xa84   :  { %16069 = vmatmul.mubr.msk.bf16.gmra.mrb[56].mxu0 %vm30_vm2, %v20480_v41  ;;  %v11226_v41 = vld [vmem:[#allocation2 + $0x70] sm:$0xff] }
 0xa85   :  { %16072 = vmatprep.mubr.msk.bf16.mxu0 %vm30_vm2, %v20482_v4  ;;  %v11227_v4 = vld [vmem:[#allocation2 + $0x88] sm:$0xff] }
 0xa8c   :  { %16073 = vmatmul.mubr.msk.bf16.gmra.mrb[60].mxu0 %vm30_vm2, %v20488_v14  ;;  %v11257_v14 = vpack.c.bf16 %v11228_v59, %v11227_v4 }
 0xa8d   :  { %16076 = vmatprep.mubr.msk.bf16.mxu0 %vm30_vm2, %v20490_v49  ;;  %v11230_v49 = vld [vmem:[#allocation2 + $0xb0] sm:$0xff] }
 0xa8e   :  { %v11258_v62 = vpack.c.bf16 %v11230_v49, %v11229_v61 }
 0xa94   :  { %16077 = vmatmul.mubr.msk.bf16.gmra.mrb[64].mxu0 %vm30_vm2, %v20496_v26  ;;  %v11232_v26 = vld [vmem:[#allocation2 + $0xd0] sm:$0xff] }
 0xa95   :  { %16080 = vmatprep.mubr.msk.bf16.mxu0 %vm30_vm2, %v20498_v57  ;;  %v11256_v57 = vpack.c.bf16 %v11226_v41, %v11225_v37  ;;  %v11259_v42 = vpack.c.bf16 %v11232_v26, %v11231_v58 }
 0xa9c   :  { %16081 = vmatmul.mubr.msk.bf16.gmra.mrb[68].mxu0 %vm30_vm2, %v20504_v35  ;;  %v11614_v35 = vsel %vm2939_vm3, %v14116_v20, 0  ;;  %v11253_v20 = vld [vmem:[#allocation2 + $0x228] sm:$0xff] }
 0xa9d   :  { %16084 = vmatprep.mubr.msk.bf16.mxu0 %vm30_vm2, %v20610_v55  ;;  %v11233_v55 = vld [vmem:[#allocation2 + $0xe8] sm:$0xff]  ;;  %v11270_v30 = vpack.c.bf16 %v11254_v13, %v11253_v20 }
 0xa9e   :  { %v11260_v5 = vpack.c.bf16 %v11234_v24, %v11233_v55 }
 0xaa4   :  { %16085 = vmatmul.mubr.msk.bf16.gmra.mrb[72].mxu0 %vm30_vm2, %v10977_v10 }
 0xaa5   :  { %16090 = vmatprep.mubr.msk.bf16.mxu0 %vm30_vm2, %v11255_v63 }
 0xaac   :  { %16091 = vmatmul.mubr.msk.bf16.vlgmr.msra.gmra.mrb[44].mxu0 %vm30_vm2, %v11256_v57 }
 0xaad   :  { %16094 = vmatprep.mubr.msk.bf16.mxu0 %vm30_vm2, %v11257_v14  ;;  %16123 = vmatpush3.bf16.msra.mxu0 %v11614_v35 }
 0xab4   :  { %16095 = vmatmul.mubr.msk.bf16.gmra.mrb[48].mxu0 %vm30_vm2, %v11258_v62 }
 0xab5   :  { %16098 = vmatprep.mubr.msk.bf16.mxu0 %vm30_vm2, %v11259_v42 }
 0xabc   :  { %16099 = vmatmul.mubr.msk.bf16.gmra.mrb[52].mxu0 %vm30_vm2, %v11260_v5 }
 0xabd   :  { %16102 = vmatprep.mubr.msk.bf16.mxu0 %vm30_vm2, %v11261_v39 }
 0xac4   :  { %16103 = vmatmul.mubr.msk.bf16.gmra.mrb[56].mxu0 %vm30_vm2, %v11262_v15 }
 0xac5   :  { %16106 = vmatprep.mubr.msk.bf16.mxu0 %vm30_vm2, %v11263_v21 }
 0xacc   :  { %16107 = vmatmul.mubr.msk.bf16.gmra.mrb[60].mxu0 %vm30_vm2, %v20381_v2 }
 0xacd   :  { %16110 = vmatprep.mubr.msk.bf16.mxu0 %vm30_vm2, %v20386_v17 }
 0xad4   :  { %16111 = vmatmul.mubr.msk.bf16.gmra.mrb[64].mxu0 %vm30_vm2, %v20409_v0 }
 0xad5   :  { %16114 = vmatprep.mubr.msk.bf16.mxu0 %vm30_vm2, %v20411_v34 }
 0xadc   :  { %16115 = vmatmul.mubr.msk.bf16.gmra.mrb[68].mxu0 %vm30_vm2, %v20420_v48 }
 0xadd   :  { %16118 = vmatprep.mubr.msk.bf16.mxu0 %vm30_vm2, %v20649_v43 }
 0xae4   :  { %16119 = vmatmul.mubr.msk.bf16.gmra.mrb[72].mxu0 %vm30_vm2, %v11270_v30 }
 0xae5   :  { %16124 = vmatprep.mubr.msk.bf16.mxu0 %vm30_vm2, %v20513_v25 }
 0xaec   :  { %16125 = vmatmul.mubr.msk.bf16.vlgmr.msra.gmra.mrb[44].mxu0 %vm30_vm2, %v20523_v12 }
 0xaed   :  { %16128 = vmatprep.mubr.msk.bf16.mxu0 %vm30_vm2, %v20525_v11 }
 0xaf4   :  { %16129 = vmatmul.mubr.msk.bf16.gmra.mrb[48].mxu0 %vm30_vm2, %v20531_v33  ;;  %v11547_v33 = vld [vmem:[#allocation2 + $0x231] sm:$0xff] }
 0xaf5   :  { %16132 = vmatprep.mubr.msk.bf16.mxu0 %vm30_vm2, %v20533_v18 }
 0xafc   :  { %16133 = vmatmul.mubr.msk.bf16.gmra.mrb[52].mxu0 %vm30_vm2, %v20539_v56 }
 0xafd   :  { %16136 = vmatprep.mubr.msk.bf16.mxu0 %vm30_vm2, %v20541_v22 }
 0xb04   :  { %16137 = vmatmul.mubr.msk.bf16.gmra.mrb[56].mxu0 %vm30_vm2, %v20547_v54  ;;  %v11546_v54 = vld [vmem:[#allocation2 + $0x229] sm:$0xff] }
 0xb05   :  { %16140 = vmatprep.mubr.msk.bf16.mxu0 %vm30_vm2, %v20549_v60  ;;  %v11563_v22 = vpack.c.bf16 %v11547_v33, %v11546_v54 }
 0xb0c   :  { %16141 = vmatmul.mubr.msk.bf16.gmra.mrb[60].mxu0 %vm30_vm2, %v20555_v3 }
 0xb0d   :  { %16144 = vmatprep.mubr.msk.bf16.mxu0 %vm30_vm2, %v20557_v27  ;;  %v20785_v27 = vld [vmem:[%s21048_s7] sm:$0xff] }
 0xb0e   :  { %16160 = vmatprep.mubr.msk.f32.mxu1 %vm5578_vm4, %v20785_v27 }
 0xb14   :  { %16145 = vmatmul.mubr.msk.bf16.gmra.mrb[64].mxu0 %vm30_vm2, %v20563_v7  ;;  %v20792_v7 = vld [vmem:[%s21049_s4] ss:$0 sm:$0xff] }
 0xb15   :  { %16148 = vmatprep.mubr.msk.bf16.mxu0 %vm30_vm2, %v20565_v31 }
 0xb1c   :  { %16149 = vmatmul.mubr.msk.bf16.gmra.mrb[68].mxu0 %vm30_vm2, %v20571_v1 }
 0xb1d   :  { %16152 = vmatprep.mubr.msk.bf16.mxu0 %vm30_vm2, %v20688_v16 }
 0xb24   :  { %16153 = vmatmul.mubr.msk.bf16.gmra.mrb[72].mxu0 %vm30_vm2, %v11563_v22  ;;  %v20818_v22 = vld [vmem:[%s21048_s7 + $0x8] sm:$0xff] }
 0xbbf   :  { %v16126_v3 = vpop.f32.mrb[44].mxu0 }
 0xbc0   :  { %v11818_v31 = vadd.f32 %v16126_v3, %v20792_v7  ;;  %v11650_v56 = vpop.f32.mrb[45].mxu0 }
 0xbc1   :  { %v11816_v60 = vadd.f32 %v20792_v7, %v11650_v56  ;;  %v16127_v25 = vpop.f32.mrb[46].mxu0 }
 0xbc2   :  { %v11850_v18 = vmax.f32 %v11818_v31, 0.0  ;;  %v11819_v2 = vadd.f32 %v16127_v25, %v20792_v7  ;;  %v11653_v17 = vpop.f32.mrb[47].mxu0 }
 0xbc3   :  { %v11848_v0 = vmax.f32 %v11816_v60, 0.0  ;;  %v11817_v34 = vadd.f32 %v20792_v7, %v11653_v17 }
 0xbc4   :  { %11882 = vst.msk [vmem:[#allocation3 + $0x10] sm:$0xff] %vm30_vm2, %v11850_v18  ;;  %v11851_v48 = vmax.f32 %v11819_v2, 0.0 }
 0xbc5   :  { %11880 = vst.msk [vmem:[#allocation3] sm:$0xff] %vm30_vm2, %v11848_v0  ;;  %v11849_v12 = vmax.f32 %v11817_v34, 0.0 }
 0xbc6   :  { %11883 = vst.msk [vmem:[#allocation3 + $0x18] sm:$0xff] %vm30_vm2, %v11851_v48 }
 0xbc7   :  { %11881 = vst.msk [vmem:[#allocation3 + $0x8] sm:$0xff] %vm30_vm2, %v11849_v12  ;;  %v16130_v11 = vpop.f32.mrb[48].mxu0 }
 0xbc8   :  { %v11822_v1 = vadd.f32 %v16130_v11, %v20792_v7  ;;  %v11666_v43 = vpop.f32.mrb[49].mxu0 }
 0xbc9   :  { %v11820_v16 = vadd.f32 %v20792_v7, %v11666_v43  ;;  %v16131_v10 = vpop.f32.mrb[50].mxu0 }
 0xbca   :  { %v11854_v8 = vmax.f32 %v11822_v1, 0.0  ;;  %v11823_v52 = vadd.f32 %v16131_v10, %v20792_v7  ;;  %v11669_v63 = vpop.f32.mrb[51].mxu0 }
 0xbcb   :  { %v11852_v41 = vmax.f32 %v11820_v16, 0.0  ;;  %v11821_v59 = vadd.f32 %v20792_v7, %v11669_v63  ;;  %v11914_v4 = vld [vmem:[#allocation3 + $0x10] sm:$0xff] }
 0xbcc   :  { %11886 = vst.msk [vmem:[#allocation3 + $0x30] sm:$0xff] %vm30_vm2, %v11854_v8  ;;  %v11855_v37 = vmax.f32 %v11823_v52, 0.0  ;;  %v11912_v57 = vld [vmem:[#allocation3] sm:$0xff] }
 0xbcd   :  { %11884 = vst.msk [vmem:[#allocation3 + $0x20] sm:$0xff] %vm30_vm2, %v11852_v41  ;;  %v11853_v35 = vmax.f32 %v11821_v59, 0.0  ;;  %v11915_v14 = vld [vmem:[#allocation3 + $0x18] sm:$0x7f] }
 0xbce   :  { %v11946_v49 = vld [vmem:[#allocation3 + $0x11] sm:$0xff]  ;;  %v11947_v26 = vld [vmem:[#allocation3 + $0x19] sm:$0x7f]  ;;  %11887 = vst.msk [vmem:[#allocation3 + $0x38] sm:$0xff] %vm30_vm2, %v11855_v37  ;;  %v11913_v61 = vld [vmem:[#allocation3 + $0x8] sm:$0x7f] }
 0xbcf   :  { %v11944_v62 = vld [vmem:[#allocation3 + $0x1] sm:$0xff]  ;;  %v11945_v58 = vld [vmem:[#allocation3 + $0x9] sm:$0x7f]  ;;  %v11978_v42 = vmax.f32 %v11914_v4, %v11946_v49  ;;  %v11979_v24 = vmax.f32 %v11915_v14, %v11947_v26  ;;  %11885 = vst.msk [vmem:[#allocation3 + $0x28] sm:$0xff] %vm30_vm2, %v11853_v35  ;;  %v16134_v6 = vpop.f32.mrb[52].mxu0 }
 0xbd0   :  { %v11976_v55 = vmax.f32 %v11912_v57, %v11944_v62  ;;  %v11977_v5 = vmax.f32 %v11913_v61, %v11945_v58  ;;  %v11826_v28 = vadd.f32 %v16134_v6, %v20792_v7  ;;  %v11682_v39 = vpop.f32.mrb[53].mxu0 }
 0xbd1   :  { %v11824_v40 = vadd.f32 %v20792_v7, %v11682_v39  ;;  %v16135_v29 = vpop.f32.mrb[54].mxu0 }
 0xbd2   :  { %v12008_v9 = vmax.f32 %v11976_v55, %v11978_v42  ;;  %v12009_v15 = vmax.f32 %v11977_v5, %v11979_v24  ;;  %v11858_v44 = vmax.f32 %v11826_v28, 0.0  ;;  %v11827_v21 = vadd.f32 %v16135_v29, %v20792_v7  ;;  %v11685_v20 = vpop.f32.mrb[55].mxu0 }
 0xbd3   :  { %v11856_v13 = vmax.f32 %v11824_v40, 0.0  ;;  %v11825_v30 = vadd.f32 %v20792_v7, %v11685_v20  ;;  %v11918_v31 = vld [vmem:[#allocation3 + $0x30] sm:$0xff] }
 0xbd4   :  { %v16260_v54 = vpack.c.bf16 %v12009_v15, %v12008_v9  ;;  %11890 = vst.msk [vmem:[#allocation3 + $0x50] sm:$0xff] %vm30_vm2, %v11858_v44  ;;  %v11859_v33 = vmax.f32 %v11827_v21, 0.0  ;;  %v11916_v3 = vld [vmem:[#allocation3 + $0x20] sm:$0xff] }
 0xbd5   :  { %11888 = vst.msk [vmem:[#allocation3 + $0x40] sm:$0xff] %vm30_vm2, %v11856_v13  ;;  %v11857_v56 = vmax.f32 %v11825_v30, 0.0  ;;  %v11919_v25 = vld [vmem:[#allocation3 + $0x38] sm:$0x7f] }
 0xbd6   :  { %16262 = vmatprep.subr.msk.bf16.mxu1 %vm18996_vm7, %v16260_v54  ;;  %v11950_v18 = vld [vmem:[#allocation3 + $0x31] sm:$0xff]  ;;  %v11951_v2 = vld [vmem:[#allocation3 + $0x39] sm:$0x7f]  ;;  %11891 = vst.msk [vmem:[#allocation3 + $0x58] sm:$0xff] %vm30_vm2, %v11859_v33  ;;  %v11917_v17 = vld [vmem:[#allocation3 + $0x28] sm:$0x7f] }
 0xbd7   :  { %16265 = vmatpush3.bf16.msk.msra.mxu1 %vm18996_vm7, %v16260_v54  ;;  %v11948_v0 = vld [vmem:[#allocation3 + $0x21] sm:$0xff]  ;;  %v11949_v34 = vld [vmem:[#allocation3 + $0x29] sm:$0x7f]  ;;  %v11982_v48 = vmax.f32 %v11918_v31, %v11950_v18  ;;  %v11983_v12 = vmax.f32 %v11919_v25, %v11951_v2  ;;  %11889 = vst.msk [vmem:[#allocation3 + $0x48] sm:$0xff] %vm30_vm2, %v11857_v56  ;;  %v16138_v11 = vpop.f32.mrb[56].mxu0 }
 0xbd8   :  { %v11980_v1 = vmax.f32 %v11916_v3, %v11948_v0  ;;  %v11981_v43 = vmax.f32 %v11917_v17, %v11949_v34  ;;  %v11830_v16 = vadd.f32 %v16138_v11, %v20792_v7  ;;  %v11698_v10 = vpop.f32.mrb[57].mxu0 }
 0xbd9   :  { %v11828_v8 = vadd.f32 %v20792_v7, %v11698_v10  ;;  %v16139_v52 = vpop.f32.mrb[58].mxu0 }
 0xbda   :  { %16161 = vmatmul.mubr.msk.f32.vlgmr.msra.gmra.mrb[50].mxu1 %vm5578_vm4, %v20818_v22  ;;  %v12096_v63 = vmax.f32 %v11980_v1, %v11982_v48  ;;  %v12097_v41 = vmax.f32 %v11981_v43, %v11983_v12  ;;  %v11862_v59 = vmax.f32 %v11830_v16, 0.0  ;;  %v11831_v37 = vadd.f32 %v16139_v52, %v20792_v7  ;;  %v11701_v57 = vpop.f32.mrb[59].mxu0 }
 0xbdb   :  { %16167 = vmatprep.mubr.msk.f32.mxu1 %vm5578_vm4, %v20785_v27  ;;  %v11860_v4 = vmax.f32 %v11828_v8, 0.0  ;;  %v11829_v35 = vadd.f32 %v20792_v7, %v11701_v57  ;;  %v11922_v61 = vld [vmem:[#allocation3 + $0x50] sm:$0xff] }
 0xbdc   :  { %v16266_v14 = vpack.c.bf16 %v12097_v41, %v12096_v63  ;;  %11894 = vst.msk [vmem:[#allocation3 + $0x70] sm:$0xff] %vm30_vm2, %v11862_v59  ;;  %v11863_v49 = vmax.f32 %v11831_v37, 0.0  ;;  %v11920_v26 = vld [vmem:[#allocation3 + $0x40] sm:$0xff] }
 0xbdd   :  { %11892 = vst.msk [vmem:[#allocation3 + $0x60] sm:$0xff] %vm30_vm2, %v11860_v4  ;;  %v11861_v62 = vmax.f32 %v11829_v35, 0.0  ;;  %v11923_v58 = vld [vmem:[#allocation3 + $0x58] sm:$0x7f] }
 0xbde   :  { %16268 = vmatprep.subr.msk.bf16.mxu1 %vm18996_vm7, %v16266_v14  ;;  %v11954_v42 = vld [vmem:[#allocation3 + $0x51] sm:$0xff]  ;;  %v11955_v24 = vld [vmem:[#allocation3 + $0x59] sm:$0x7f]  ;;  %11895 = vst.msk [vmem:[#allocation3 + $0x78] sm:$0xff] %vm30_vm2, %v11863_v49  ;;  %v11921_v6 = vld [vmem:[#allocation3 + $0x48] sm:$0x7f] }
 0xbdf   :  { %16271 = vmatpush3.bf16.msk.msra.mxu1 %vm18996_vm7, %v16266_v14  ;;  %v11952_v55 = vld [vmem:[#allocation3 + $0x41] sm:$0xff]  ;;  %v11953_v5 = vld [vmem:[#allocation3 + $0x49] sm:$0x7f]  ;;  %v11986_v28 = vmax.f32 %v11922_v61, %v11954_v42  ;;  %v11987_v39 = vmax.f32 %v11923_v58, %v11955_v24  ;;  %11893 = vst.msk [vmem:[#allocation3 + $0x68] sm:$0xff] %vm30_vm2, %v11861_v62  ;;  %v16142_v40 = vpop.f32.mrb[60].mxu0 }
 0xbe0   :  { %v11984_v29 = vmax.f32 %v11920_v26, %v11952_v55  ;;  %v11985_v9 = vmax.f32 %v11921_v6, %v11953_v5  ;;  %v11834_v15 = vadd.f32 %v16142_v40, %v20792_v7  ;;  %v11714_v44 = vpop.f32.mrb[61].mxu0 }
 0xbe1   :  { %v11832_v21 = vadd.f32 %v20792_v7, %v11714_v44  ;;  %v16143_v20 = vpop.f32.mrb[62].mxu0 }
 0xbe2   :  { %16168 = vmatmul.mubr.msk.f32.vlgmr.msra.gmra.mrb[84].mxu1 %vm5578_vm4, %v20818_v22  ;;  %v12176_v13 = vmax.f32 %v11984_v29, %v11986_v28  ;;  %v12177_v30 = vmax.f32 %v11985_v9, %v11987_v39  ;;  %v11866_v54 = vmax.f32 %v11834_v15, 0.0  ;;  %v11835_v33 = vadd.f32 %v16143_v20, %v20792_v7  ;;  %v11717_v3 = vpop.f32.mrb[63].mxu0 }
 0xbe3   :  { %16174 = vmatprep.mubr.msk.f32.mxu1 %vm5578_vm4, %v20785_v27  ;;  %v11864_v31 = vmax.f32 %v11832_v21, 0.0  ;;  %v11833_v56 = vadd.f32 %v20792_v7, %v11717_v3  ;;  %v11926_v17 = vld [vmem:[#allocation3 + $0x70] sm:$0xff] }
 0xbe4   :  { %v16272_v25 = vpack.c.bf16 %v12177_v30, %v12176_v13  ;;  %11898 = vst.msk [vmem:[#allocation3 + $0x90] sm:$0xff] %vm30_vm2, %v11866_v54  ;;  %v11867_v18 = vmax.f32 %v11835_v33, 0.0  ;;  %v11924_v2 = vld [vmem:[#allocation3 + $0x60] sm:$0xff] }
 0xbe5   :  { %11896 = vst.msk [vmem:[#allocation3 + $0x80] sm:$0xff] %vm30_vm2, %v11864_v31  ;;  %v11865_v0 = vmax.f32 %v11833_v56, 0.0  ;;  %v11927_v34 = vld [vmem:[#allocation3 + $0x78] sm:$0x7f] }
 0xbe6   :  { %16274 = vmatprep.subr.msk.bf16.mxu1 %vm18996_vm7, %v16272_v25  ;;  %v11958_v48 = vld [vmem:[#allocation3 + $0x71] sm:$0xff]  ;;  %v11959_v12 = vld [vmem:[#allocation3 + $0x79] sm:$0x7f]  ;;  %11899 = vst.msk [vmem:[#allocation3 + $0x98] sm:$0xff] %vm30_vm2, %v11867_v18  ;;  %v11925_v11 = vld [vmem:[#allocation3 + $0x68] sm:$0x7f] }
 0xbe7   :  { %16277 = vmatpush3.bf16.msk.msra.mxu1 %vm18996_vm7, %v16272_v25  ;;  %v11956_v1 = vld [vmem:[#allocation3 + $0x61] sm:$0xff]  ;;  %v11957_v43 = vld [vmem:[#allocation3 + $0x69] sm:$0x7f]  ;;  %v11990_v16 = vmax.f32 %v11926_v17, %v11958_v48  ;;  %v11991_v10 = vmax.f32 %v11927_v34, %v11959_v12  ;;  %11897 = vst.msk [vmem:[#allocation3 + $0x88] sm:$0xff] %vm30_vm2, %v11865_v0  ;;  %v16146_v8 = vpop.f32.mrb[64].mxu0 }
 0xbe8   :  { %v11988_v52 = vmax.f32 %v11924_v2, %v11956_v1  ;;  %v11989_v63 = vmax.f32 %v11925_v11, %v11957_v43  ;;  %v11838_v41 = vadd.f32 %v16146_v8, %v20792_v7  ;;  %v11730_v59 = vpop.f32.mrb[65].mxu0 }
 0xbe9   :  { %v11836_v37 = vadd.f32 %v20792_v7, %v11730_v59  ;;  %v16147_v57 = vpop.f32.mrb[66].mxu0 }
 0xbea   :  { %16175 = vmatmul.mubr.msk.f32.vlgmr.msra.gmra.mrb[86].mxu1 %vm5578_vm4, %v20818_v22  ;;  %v12256_v4 = vmax.f32 %v11988_v52, %v11990_v16  ;;  %v12257_v35 = vmax.f32 %v11989_v63, %v11991_v10  ;;  %v11870_v14 = vmax.f32 %v11838_v41, 0.0  ;;  %v11839_v49 = vadd.f32 %v16147_v57, %v20792_v7  ;;  %v11733_v26 = vpop.f32.mrb[67].mxu0 }
 0xbeb   :  { %16181 = vmatprep.mubr.msk.f32.mxu1 %vm5578_vm4, %v20785_v27  ;;  %v11868_v61 = vmax.f32 %v11836_v37, 0.0  ;;  %v11837_v62 = vadd.f32 %v20792_v7, %v11733_v26  ;;  %v11930_v6 = vld [vmem:[#allocation3 + $0x90] sm:$0xff] }
 0xbec   :  { %v16278_v58 = vpack.c.bf16 %v12257_v35, %v12256_v4  ;;  %11902 = vst.msk [vmem:[#allocation3 + $0xb0] sm:$0xff] %vm30_vm2, %v11870_v14  ;;  %v11871_v42 = vmax.f32 %v11839_v49, 0.0  ;;  %v11928_v24 = vld [vmem:[#allocation3 + $0x80] sm:$0xff] }
 0xbed   :  { %11900 = vst.msk [vmem:[#allocation3 + $0xa0] sm:$0xff] %vm30_vm2, %v11868_v61  ;;  %v11869_v55 = vmax.f32 %v11837_v62, 0.0  ;;  %v11931_v5 = vld [vmem:[#allocation3 + $0x98] sm:$0x7f] }
 0xbee   :  { %16280 = vmatprep.subr.msk.bf16.mxu1 %vm18996_vm7, %v16278_v58  ;;  %v11962_v28 = vld [vmem:[#allocation3 + $0x91] sm:$0xff]  ;;  %v11963_v39 = vld [vmem:[#allocation3 + $0x99] sm:$0x7f]  ;;  %11903 = vst.msk [vmem:[#allocation3 + $0xb8] sm:$0xff] %vm30_vm2, %v11871_v42  ;;  %v11929_v40 = vld [vmem:[#allocation3 + $0x88] sm:$0x7f] }
 0xbef   :  { %16283 = vmatpush3.bf16.msk.msra.mxu1 %vm18996_vm7, %v16278_v58  ;;  %v11960_v29 = vld [vmem:[#allocation3 + $0x81] sm:$0xff]  ;;  %v11961_v9 = vld [vmem:[#allocation3 + $0x89] sm:$0x7f]  ;;  %v11994_v15 = vmax.f32 %v11930_v6, %v11962_v28  ;;  %v11995_v44 = vmax.f32 %v11931_v5, %v11963_v39  ;;  %11901 = vst.msk [vmem:[#allocation3 + $0xa8] sm:$0xff] %vm30_vm2, %v11869_v55  ;;  %v16150_v21 = vpop.f32.mrb[68].mxu0 }
 0xbf0   :  { %v11992_v20 = vmax.f32 %v11928_v24, %v11960_v29  ;;  %v11993_v13 = vmax.f32 %v11929_v40, %v11961_v9  ;;  %v11842_v30 = vadd.f32 %v16150_v21, %v20792_v7  ;;  %v11746_v54 = vpop.f32.mrb[69].mxu0 }
 0xbf1   :  { %v11840_v33 = vadd.f32 %v20792_v7, %v11746_v54  ;;  %v16151_v3 = vpop.f32.mrb[70].mxu0 }
 0xbf2   :  { %16182 = vmatmul.mubr.msk.f32.vlgmr.msra.gmra.mrb[88].mxu1 %vm5578_vm4, %v20818_v22  ;;  %v12336_v31 = vmax.f32 %v11992_v20, %v11994_v15  ;;  %v12337_v56 = vmax.f32 %v11993_v13, %v11995_v44  ;;  %v11874_v25 = vmax.f32 %v11842_v30, 0.0  ;;  %v11843_v18 = vadd.f32 %v16151_v3, %v20792_v7  ;;  %v11749_v2 = vpop.f32.mrb[71].mxu0 }
 0xbf3   :  { %16188 = vmatprep.mubr.msk.f32.mxu1 %vm5578_vm4, %v20785_v27  ;;  %v11872_v17 = vmax.f32 %v11840_v33, 0.0  ;;  %v11841_v0 = vadd.f32 %v20792_v7, %v11749_v2  ;;  %v11934_v11 = vld [vmem:[#allocation3 + $0xb0] sm:$0xff] }
 0xbf4   :  { %v16284_v34 = vpack.c.bf16 %v12337_v56, %v12336_v31  ;;  %11906 = vst.msk [vmem:[#allocation3 + $0xd0] sm:$0xff] %vm30_vm2, %v11874_v25  ;;  %v11875_v48 = vmax.f32 %v11843_v18, 0.0  ;;  %v11932_v12 = vld [vmem:[#allocation3 + $0xa0] sm:$0xff] }
 0xbf5   :  { %11904 = vst.msk [vmem:[#allocation3 + $0xc0] sm:$0xff] %vm30_vm2, %v11872_v17  ;;  %v11873_v1 = vmax.f32 %v11841_v0, 0.0  ;;  %v11935_v43 = vld [vmem:[#allocation3 + $0xb8] sm:$0x7f] }
 0xbf6   :  { %16286 = vmatprep.subr.msk.bf16.mxu1 %vm18996_vm7, %v16284_v34  ;;  %v11966_v16 = vld [vmem:[#allocation3 + $0xb1] sm:$0xff]  ;;  %v11967_v10 = vld [vmem:[#allocation3 + $0xb9] sm:$0x7f]  ;;  %11907 = vst.msk [vmem:[#allocation3 + $0xd8] sm:$0xff] %vm30_vm2, %v11875_v48  ;;  %v11933_v8 = vld [vmem:[#allocation3 + $0xa8] sm:$0x7f] }
 0xbf7   :  { %16289 = vmatpush3.bf16.msk.msra.mxu1 %vm18996_vm7, %v16284_v34  ;;  %v11964_v52 = vld [vmem:[#allocation3 + $0xa1] sm:$0xff]  ;;  %v11965_v63 = vld [vmem:[#allocation3 + $0xa9] sm:$0x7f]  ;;  %v11998_v41 = vmax.f32 %v11934_v11, %v11966_v16  ;;  %v11999_v59 = vmax.f32 %v11935_v43, %v11967_v10  ;;  %11905 = vst.msk [vmem:[#allocation3 + $0xc8] sm:$0xff] %vm30_vm2, %v11873_v1  ;;  %v16154_v37 = vpop.f32.mrb[72].mxu0 }
 0xbf8   :  { %v11996_v57 = vmax.f32 %v11932_v12, %v11964_v52  ;;  %v11997_v4 = vmax.f32 %v11933_v8, %v11965_v63  ;;  %v11846_v35 = vadd.f32 %v16154_v37, %v20792_v7  ;;  %v11762_v14 = vpop.f32.mrb[73].mxu0  ;;  %v20928_v63 = vld [vmem:[%s21050_s5] sm:$0x1f]  }
 0xbf9   :  { %v11844_v49 = vadd.f32 %v20792_v7, %v11762_v14  ;;  %v16155_v26 = vpop.f32.mrb[74].mxu0  ;;  %14874 = vmatprep.mubr.msk.bf16.mxu0 %vm30_vm2, %v20928_v63 }
 0xbfa   :  { %16189 = vmatmul.mubr.msk.f32.vlgmr.msra.gmra.mrb[90].mxu1 %vm5578_vm4, %v20818_v22  ;;  %v12416_v61 = vmax.f32 %v11996_v57, %v11998_v41  ;;  %v12417_v62 = vmax.f32 %v11997_v4, %v11999_v59  ;;  %v11878_v58 = vmax.f32 %v11846_v35, 0.0  ;;  %v11847_v42 = vadd.f32 %v16155_v26, %v20792_v7  ;;  %v11765_v24 = vpop.f32.mrb[75].mxu0 }
 0xbfb   :  { %16195 = vmatprep.mubr.msk.f32.mxu1 %vm5578_vm4, %v20785_v27  ;;  %v11876_v6 = vmax.f32 %v11844_v49, 0.0  ;;  %v11845_v55 = vadd.f32 %v20792_v7, %v11765_v24  ;;  %v11938_v40 = vld [vmem:[#allocation3 + $0xd0] sm:$0xff] }
 0xbfc   :  { %v16290_v5 = vpack.c.bf16 %v12417_v62, %v12416_v61  ;;  %11910 = vst.msk [vmem:[#allocation3 + $0xf0] sm:$0xff] %vm30_vm2, %v11878_v58  ;;  %v11879_v28 = vmax.f32 %v11847_v42, 0.0  ;;  %v11936_v39 = vld [vmem:[#allocation3 + $0xc0] sm:$0xff] }
 0xbfd   :  { %11908 = vst.msk [vmem:[#allocation3 + $0xe0] sm:$0xff] %vm30_vm2, %v11876_v6  ;;  %v11877_v29 = vmax.f32 %v11845_v55, 0.0  ;;  %v11939_v9 = vld [vmem:[#allocation3 + $0xd8] sm:$0x7f] }
 0xbfe   :  { %16292 = vmatprep.subr.msk.bf16.mxu1 %vm18996_vm7, %v16290_v5  ;;  %v11970_v15 = vld [vmem:[#allocation3 + $0xd1] sm:$0xff]  ;;  %v11971_v44 = vld [vmem:[#allocation3 + $0xd9] sm:$0x7f]  ;;  %11911 = vst.msk [vmem:[#allocation3 + $0xf8] sm:$0xff] %vm30_vm2, %v11879_v28  ;;  %v11937_v7 = vld [vmem:[#allocation3 + $0xc8] sm:$0x7f] }
 0xbff   :  { %16295 = vmatpush3.bf16.msk.msra.mxu1 %vm18996_vm7, %v16290_v5  ;;  %v11968_v21 = vld [vmem:[#allocation3 + $0xc1] sm:$0xff]  ;;  %v11969_v20 = vld [vmem:[#allocation3 + $0xc9] sm:$0x7f]  ;;  %v12002_v13 = vmax.f32 %v11938_v40, %v11970_v15  ;;  %v12003_v30 = vmax.f32 %v11939_v9, %v11971_v44  ;;  %11909 = vst.msk [vmem:[#allocation3 + $0xe8] sm:$0xff] %vm30_vm2, %v11877_v29 }
 0xc00   :  { %v12000_v54 = vmax.f32 %v11936_v39, %v11968_v21  ;;  %v12001_v33 = vmax.f32 %v11937_v7, %v11969_v20 }
 0xc02   :  { %16196 = vmatmul.mubr.msk.f32.vlgmr.msra.gmra.mrb[92].mxu1 %vm5578_vm4, %v20818_v22  ;;  %v12496_v3 = vmax.f32 %v12000_v54, %v12002_v13  ;;  %v12497_v31 = vmax.f32 %v12001_v33, %v12003_v30 }
 0xc03   :  { %16202 = vmatprep.mubr.msk.f32.mxu1 %vm5578_vm4, %v20785_v27  ;;  %v11942_v18 = vld [vmem:[#allocation3 + $0xf0] sm:$0xff] }
 0xc04   :  { %v16296_v56 = vpack.c.bf16 %v12497_v31, %v12496_v3  ;;  %v11940_v25 = vld [vmem:[#allocation3 + $0xe0] sm:$0xff] }
 0xc05   :  { %v11943_v2 = vld [vmem:[#allocation3 + $0xf8] sm:$0x7f] }
 0xc06   :  { %16298 = vmatprep.subr.msk.bf16.mxu1 %vm18996_vm7, %v16296_v56  ;;  %v11974_v17 = vld [vmem:[#allocation3 + $0xf1] sm:$0xff]  ;;  %v11975_v0 = vld [vmem:[#allocation3 + $0xf9] sm:$0x7f]  ;;  %v11941_v34 = vld [vmem:[#allocation3 + $0xe8] sm:$0x7f] }
 0xc07   :  { %16301 = vmatpush3.bf16.msk.msra.mxu1 %vm18996_vm7, %v16296_v56  ;;  %v11972_v48 = vld [vmem:[#allocation3 + $0xe1] sm:$0xff]  ;;  %v11973_v12 = vld [vmem:[#allocation3 + $0xe9] sm:$0x7f]  ;;  %v12006_v11 = vmax.f32 %v11942_v18, %v11974_v17  ;;  %v12007_v1 = vmax.f32 %v11943_v2, %v11975_v0 }
 0xc08   :  { %v12004_v43 = vmax.f32 %v11940_v25, %v11972_v48  ;;  %v12005_v16 = vmax.f32 %v11941_v34, %v11973_v12 }
 0xc0a   :  { %16203 = vmatmul.mubr.msk.f32.vlgmr.msra.gmra.mrb[94].mxu1 %vm5578_vm4, %v20818_v22  ;;  %v12576_v10 = vmax.f32 %v12004_v43, %v12006_v11  ;;  %v12577_v8 = vmax.f32 %v12005_v16, %v12007_v1 }
 0xc0b   :  { %16209 = vmatprep.mubr.msk.f32.mxu1 %vm5578_vm4, %v20785_v27 }
 0xc0c   :  { %v16302_v52 = vpack.c.bf16 %v12577_v8, %v12576_v10  ;;  %v21211_v10 = vld [vmem:[#allocation13_spill] sm:$0xff] }
 0xc0e   :  { %16304 = vmatprep.subr.msk.bf16.mxu1 %vm18996_vm7, %v16302_v52 }
 0xc0f   :  { %16307 = vmatpush3.bf16.msk.msra.mxu1 %vm18996_vm7, %v16302_v52  ;;  %v21212_v52 = vld [vmem:[#allocation9_spill] sm:$0xff] }
 0xc12   :  { %16210 = vmatmul.mubr.msk.f32.vlgmr.msra.gmra.mrb[96].mxu1 %vm5578_vm4, %v20818_v22 }
 0xcad   :  { %v16162_v41 = vpop.f32.mrb[50].mxu1 }
 0xcae   :  { %v12087_v27 = vpop.f32.mrb[51].mxu1  ;;  %v12665_v59 = vmul.f32 0.53333336, %v16162_v41  ;;  %v12675_v37 = vmul.f32 0.06666667, %v16162_v41 }
 0xcaf   :  { %v12664_v57 = vmul.f32 0.53333336, %v12087_v27  ;;  %v12674_v26 = vmul.f32 0.06666667, %v12087_v27 }
 0xcb5   :  { %v16169_v4 = vpop.f32.mrb[84].mxu1 }
 0xcb6   :  { %v12657_v35 = vmul.f32 0.0, %v16169_v4  ;;  %v12667_v60 = vmul.f32 0.46666667, %v16169_v4  ;;  %v12677_v14 = vmul.f32 0.93333334, %v16169_v4  ;;  %v12167_v49 = vpop.f32.mrb[85].mxu1 }
 0xcb7   :  { %v12656_v22 = vmul.f32 0.0, %v12167_v49  ;;  %v12666_v42 = vmul.f32 0.46666667, %v12167_v49  ;;  %v12676_v6 = vmul.f32 0.93333334, %v12167_v49 }
 0xcb8   :  { %v12659_v61 = vadd.f32 %v16162_v41, %v12657_v35  ;;  %v12669_v62 = vadd.f32 %v12667_v60, %v12665_v59  ;;  %v12679_v58 = vadd.f32 %v12677_v14, %v12675_v37  ;;  %v12685_v9 = vmul.f32 0.6, %v16169_v4 }
 0xcb9   :  { %v12658_v24 = vadd.f32 %v12656_v22, %v12087_v27  ;;  %v12668_v39 = vadd.f32 %v12666_v42, %v12664_v57  ;;  %v12678_v29 = vadd.f32 %v12676_v6, %v12674_v26  ;;  %v12695_v15 = vmul.f32 0.13333334, %v16169_v4  ;;  %v21213_v27 = vld [vmem:[#allocation7_spill] sm:$0xff] }
 0xcba   :  { %v12661_v55 = vadd.f32 %v12659_v61, %v20205_v45  ;;  %v12671_v5 = vadd.f32 %v12669_v62, %v20201_v32  ;;  %v12681_v28 = vadd.f32 %v12679_v58, %v20225_v38  ;;  %v12684_v45 = vmul.f32 0.6, %v12167_v49  ;;  %v21214_v58 = vld [vmem:[#allocation8_spill] sm:$0xff] }
 0xcbb   :  { %v12660_v40 = vadd.f32 %v12658_v24, %v20197_v53  ;;  %v12670_v44 = vadd.f32 %v12668_v39, %v20194_v46  ;;  %v12680_v32 = vadd.f32 %v12678_v29, %v20217_v36  ;;  %v12694_v53 = vmul.f32 0.13333334, %v12167_v49  ;;  %v21215_v24 = vld [vmem:[#allocation17_spill] sm:$0xff] }
 0xcbc   :  { %12663 = vst.msk [vmem:[#allocation4 + $0x8] sm:$0xff] %vm30_vm2, %v12661_v55  ;;  %12673 = vst.msk [vmem:[#allocation4 + $0x18] sm:$0xff] %vm30_vm2, %v12671_v5 }
 0xcbd   :  { %12683 = vst.msk [vmem:[#allocation4 + $0x28] sm:$0xff] %vm30_vm2, %v12681_v28  ;;  %12662 = vst.msk [vmem:[#allocation4] sm:$0xff] %vm30_vm2, %v12660_v40  ;;  %v16176_v38 = vpop.f32.mrb[86].mxu1  ;;  %v21216_v28 = vld [vmem:[#allocation5_spill] sm:$0xff]  ;;  %v21217_v40 = vld [vmem:[#allocation11_spill] sm:$0xff] }
 0xcbe   :  { %12672 = vst.msk [vmem:[#allocation4 + $0x10] sm:$0xff] %vm30_vm2, %v12670_v44  ;;  %v12687_v7 = vmul.f32 0.4, %v16176_v38  ;;  %v12697_v21 = vmul.f32 0.8666667, %v16176_v38  ;;  %12682 = vst.msk [vmem:[#allocation4 + $0x20] sm:$0xff] %vm30_vm2, %v12680_v32 }
 0xcbf   :  { %v12247_v20 = vpop.f32.mrb[87].mxu1  ;;  %v12705_v56 = vmul.f32 0.6666667, %v16176_v38  ;;  %v12715_v25 = vmul.f32 0.2, %v16176_v38 }
 0xcc0   :  { %v12689_v13 = vadd.f32 %v12687_v7, %v12685_v9  ;;  %v12699_v30 = vadd.f32 %v12697_v21, %v12695_v15  ;;  %v12686_v54 = vmul.f32 0.4, %v12247_v20  ;;  %v12696_v33 = vmul.f32 0.8666667, %v12247_v20 }
 0xcc1   :  { %v12704_v17 = vmul.f32 0.6666667, %v12247_v20 }
 0xcc2   :  { %v12691_v46 = vadd.f32 %v12689_v13, %v20221_v51  ;;  %v12701_v3 = vadd.f32 %v12699_v30, %v20259_v47  ;;  %v12688_v31 = vadd.f32 %v12686_v54, %v12684_v45  ;;  %v12698_v36 = vadd.f32 %v12696_v33, %v12694_v53 }
 0xcc3   :  { %v12714_v51 = vmul.f32 0.2, %v12247_v20  ;;  %v12815_v33 = vld [vmem:[#allocation4 + $0x8] sm:$0xff] }
 0xcc4   :  { %12693 = vst.msk [vmem:[#allocation4 + $0x38] sm:$0xff] %vm30_vm2, %v12691_v46  ;;  %12703 = vst.msk [vmem:[#allocation4 + $0x48] sm:$0xff] %vm30_vm2, %v12701_v3  ;;  %v12690_v18 = vadd.f32 %v12688_v31, %v20214_v50  ;;  %v12700_v2 = vadd.f32 %v12698_v36, %v20247_v19  ;;  %v12814_v54 = vld [vmem:[#allocation4] sm:$0xff]  ;;  %v21218_v46 = vld [vmem:[#allocation12_spill] sm:$0xff] }
 0xcc5   :  { %v16183_v0 = vpop.f32.mrb[88].mxu1  ;;  %v21219_v31 = vld [vmem:[#allocation21_spill] sm:$0xff] }
 0xcc6   :  { %12692 = vst.msk [vmem:[#allocation4 + $0x30] sm:$0xff] %vm30_vm2, %v12690_v18  ;;  %12702 = vst.msk [vmem:[#allocation4 + $0x40] sm:$0xff] %vm30_vm2, %v12700_v2  ;;  %v12707_v47 = vmul.f32 0.33333334, %v16183_v0  ;;  %v12717_v34 = vmul.f32 0.8, %v16183_v0  ;;  %v12846_v2 = vpack.c.bf16 %v12815_v33, %v12814_v54 }
 0xcc7   :  { %v12327_v48 = vpop.f32.mrb[89].mxu1  ;;  %v12725_v37 = vmul.f32 0.73333335, %v16183_v0  ;;  %v12735_v4 = vmul.f32 0.26666668, %v16183_v0 }
 0xcc8   :  { %v12709_v12 = vadd.f32 %v12707_v47, %v12705_v56  ;;  %v12719_v11 = vadd.f32 %v12717_v34, %v12715_v25  ;;  %v12706_v1 = vmul.f32 0.33333334, %v12327_v48  ;;  %v12716_v43 = vmul.f32 0.8, %v12327_v48 }
 0xcc9   :  { %v12724_v60 = vmul.f32 0.73333335, %v12327_v48  ;;  %v12734_v14 = vmul.f32 0.26666668, %v12327_v48 }
 0xcca   :  { %v12711_v16 = vadd.f32 %v12709_v12, %v20253_v23  ;;  %v12721_v50 = vadd.f32 %v12719_v11, %v21211_v10  ;;  %v12708_v8 = vadd.f32 %v12706_v1, %v12704_v17  ;;  %v12718_v19 = vadd.f32 %v12716_v43, %v12714_v51  ;;  %v21220_v17 = vld [vmem:[#allocation6_spill] sm:$0xff]  ;;  %v21221_v51 = vld [vmem:[#allocation15_spill] sm:$0xff] }
 0xccc   :  { %12713 = vst.msk [vmem:[#allocation4 + $0x58] sm:$0xff] %vm30_vm2, %v12711_v16  ;;  %12723 = vst.msk [vmem:[#allocation4 + $0x68] sm:$0xff] %vm30_vm2, %v12721_v50  ;;  %v12710_v41 = vadd.f32 %v12708_v8, %v21212_v52  ;;  %v12720_v59 = vadd.f32 %v12718_v19, %v21213_v27  ;;  %v12883_v19 = vsel %vm30_vm2, %v12846_v2, 0 }
 0xccd   :  { %v16190_v57 = vpop.f32.mrb[90].mxu1 }
 0xcce   :  { %12712 = vst.msk [vmem:[#allocation4 + $0x50] sm:$0xff] %vm30_vm2, %v12710_v41  ;;  %12722 = vst.msk [vmem:[#allocation4 + $0x60] sm:$0xff] %vm30_vm2, %v12720_v59  ;;  %v12727_v23 = vmul.f32 0.26666668, %v16190_v57  ;;  %v12737_v35 = vmul.f32 0.73333335, %v16190_v57 }
 0xccf   :  { %v12407_v49 = vpop.f32.mrb[91].mxu1  ;;  %v12745_v9 = vmul.f32 0.8, %v16190_v57  ;;  %v12755_v44 = vmul.f32 0.33333334, %v16190_v57  ;;  %v12817_v57 = vld [vmem:[#allocation4 + $0x18] sm:$0xff] }
 0xcd0   :  { %v12729_v26 = vadd.f32 %v12727_v23, %v12725_v37  ;;  %v12739_v22 = vadd.f32 %v12737_v35, %v12735_v4  ;;  %v12726_v61 = vmul.f32 0.26666668, %v12407_v49  ;;  %v12736_v62 = vmul.f32 0.73333335, %v12407_v49  ;;  %v12816_v37 = vld [vmem:[#allocation4 + $0x10] sm:$0xff]  ;;  %v21222_v4 = vld [vmem:[#allocation16_spill] sm:$0xff] }
 0xcd1   :  { %v12744_v38 = vmul.f32 0.8, %v12407_v49  ;;  %v12754_v53 = vmul.f32 0.33333334, %v12407_v49  ;;  %v21223_v35 = vld [vmem:[#allocation25_spill] sm:$0xff] }
 0xcd2   :  { %v12731_v42 = vadd.f32 %v12729_v26, %v21214_v58  ;;  %v12741_v6 = vadd.f32 %v12739_v22, %v21215_v24  ;;  %v12728_v55 = vadd.f32 %v12726_v61, %v12724_v60  ;;  %v12738_v5 = vadd.f32 %v12736_v62, %v12734_v14  ;;  %v21224_v58 = vld [vmem:[#allocation10_spill] sm:$0xff]  ;;  %v21225_v24 = vld [vmem:[#allocation19_spill] sm:$0xff] }
 0xcd3   :  { %v12847_v61 = vpack.c.bf16 %v12817_v57, %v12816_v37  ;;  %v12822_v57 = vld [vmem:[#allocation4 + $0x40] sm:$0xff] }
 0xcd4   :  { %12733 = vst.msk [vmem:[#allocation4 + $0x78] sm:$0xff] %vm30_vm2, %v12731_v42  ;;  %12743 = vst.msk [vmem:[#allocation4 + $0x88] sm:$0xff] %vm30_vm2, %v12741_v6  ;;  %v12730_v39 = vadd.f32 %v12728_v55, %v21216_v28  ;;  %v12740_v29 = vadd.f32 %v12738_v5, %v21217_v40 }
 0xcd5   :  { %v16197_v15 = vpop.f32.mrb[92].mxu1 }
 0xcd6   :  { %12732 = vst.msk [vmem:[#allocation4 + $0x70] sm:$0xff] %vm30_vm2, %v12730_v39  ;;  %12742 = vst.msk [vmem:[#allocation4 + $0x80] sm:$0xff] %vm30_vm2, %v12740_v29  ;;  %v12747_v32 = vmul.f32 0.2, %v16197_v15  ;;  %v12757_v45 = vmul.f32 0.6666667, %v16197_v15 }
 0xcd7   :  { %v12487_v7 = vpop.f32.mrb[93].mxu1  ;;  %v12765_v34 = vmul.f32 0.8666667, %v16197_v15  ;;  %v12775_v11 = vmul.f32 0.4, %v16197_v15 }
 0xcd8   :  { %v12749_v21 = vadd.f32 %v12747_v32, %v12745_v9  ;;  %v12759_v20 = vadd.f32 %v12757_v45, %v12755_v44  ;;  %v12746_v13 = vmul.f32 0.2, %v12487_v7  ;;  %v12756_v30 = vmul.f32 0.6666667, %v12487_v7 }
 0xcd9   :  { %v12764_v10 = vmul.f32 0.8666667, %v12487_v7  ;;  %v12774_v50 = vmul.f32 0.4, %v12487_v7 }
 0xcda   :  { %v12751_v3 = vadd.f32 %v12749_v21, %v21218_v46  ;;  %v12761_v36 = vadd.f32 %v12759_v20, %v21219_v31  ;;  %v12748_v56 = vadd.f32 %v12746_v13, %v12744_v38  ;;  %v12758_v25 = vadd.f32 %v12756_v30, %v12754_v53  ;;  %v12818_v31 = vld [vmem:[#allocation4 + $0x20] sm:$0xff] }
 0xcdb   :  { %v12831_v18 = vld [vmem:[#allocation4 + $0x88] sm:$0xff]  ;;  %v12886_v21 = vsel %vm30_vm2, %v12847_v61, 0 }
 0xcdc   :  { %12753 = vst.msk [vmem:[#allocation4 + $0x98] sm:$0xff] %vm30_vm2, %v12751_v3  ;;  %12763 = vst.msk [vmem:[#allocation4 + $0xa8] sm:$0xff] %vm30_vm2, %v12761_v36  ;;  %v12750_v0 = vadd.f32 %v12748_v56, %v21220_v17  ;;  %v12760_v47 = vadd.f32 %v12758_v25, %v21221_v51  ;;  %v12819_v36 = vld [vmem:[#allocation4 + $0x28] sm:$0xff]  ;;  %v21226_v56 = vld [vmem:[#allocation20_spill] sm:$0xff] }
 0xcdd   :  { %v16204_v48 = vpop.f32.mrb[94].mxu1  ;;  %v12830_v12 = vld [vmem:[#allocation4 + $0x80] sm:$0xff]  ;;  %v21228_v17 = vld [vmem:[#allocation23_spill] sm:$0xff]  ;;  %v21229_v51 = vld [vmem:[#allocation14_spill] sm:$0xff] }
 0xcde   :  { %12752 = vst.msk [vmem:[#allocation4 + $0x90] sm:$0xff] %vm30_vm2, %v12750_v0  ;;  %12762 = vst.msk [vmem:[#allocation4 + $0xa0] sm:$0xff] %vm30_vm2, %v12760_v47  ;;  %v12767_v1 = vmul.f32 0.13333334, %v16204_v48  ;;  %v12777_v43 = vmul.f32 0.6, %v16204_v48  ;;  %v12854_v16 = vpack.c.bf16 %v12831_v18, %v12830_v12 }
 0xcdf   :  { %v12567_v8 = vpop.f32.mrb[95].mxu1  ;;  %v12785_v26 = vmul.f32 0.93333334, %v16204_v48  ;;  %v12795_v62 = vmul.f32 0.46666667, %v16204_v48  ;;  %v21227_v18 = vld [vmem:[#allocation22_spill] sm:$0xff] }
 0xce0   :  { %v12769_v52 = vadd.f32 %v12767_v1, %v12765_v34  ;;  %v12779_v41 = vadd.f32 %v12777_v43, %v12775_v11  ;;  %v12766_v27 = vmul.f32 0.13333334, %v12567_v8  ;;  %v12776_v59 = vmul.f32 0.6, %v12567_v8  ;;  %17379 = vmatprep.subr.msk.bf16.mxu0 %vm30_vm2, %v12854_v16  ;;  %v21230_v34 = vld [vmem:[#allocation18_spill] sm:$0xff]  ;;  %v21231_v12 = vld [vmem:[#allocation24_spill] sm:$0xff] }
 0xce1   :  { %14859 = vmatpush3.bf16.xpose.msra.mxu0 %v12883_v19  ;;  %v12784_v55 = vmul.f32 0.93333334, %v12567_v8  ;;  %v12794_v5 = vmul.f32 0.46666667, %v12567_v8  ;;  %v12848_v1 = vpack.c.bf16 %v12819_v36, %v12818_v31  ;;  %v12820_v8 = vld [vmem:[#allocation4 + $0x30] sm:$0xff]  ;;  %v12821_v19 = vld [vmem:[#allocation4 + $0x38] sm:$0xff] }
 0xce2   :  { %v12771_v23 = vadd.f32 %v12769_v52, %v21222_v4  ;;  %v12781_v60 = vadd.f32 %v12779_v41, %v21223_v35  ;;  %v12768_v14 = vadd.f32 %v12766_v27, %v12764_v10  ;;  %v12778_v49 = vadd.f32 %v12776_v59, %v12774_v50  ;;  %v12823_v4 = vld [vmem:[#allocation4 + $0x48] sm:$0xff] }
 0xce3   :  { %v12833_v22 = vld [vmem:[#allocation4 + $0x98] sm:$0xff]  ;;  %v12835_v29 = vld [vmem:[#allocation4 + $0xa8] sm:$0xff]  ;;  %v12889_v10 = vsel %vm30_vm2, %v12848_v1, 0  ;;  %v12849_v52 = vpack.c.bf16 %v12821_v19, %v12820_v8 }
 0xce4   :  { %12773 = vst.msk [vmem:[#allocation4 + $0xb8] sm:$0xff] %vm30_vm2, %v12771_v23  ;;  %12783 = vst.msk [vmem:[#allocation4 + $0xc8] sm:$0xff] %vm30_vm2, %v12781_v60  ;;  %v12770_v42 = vadd.f32 %v12768_v14, %v21224_v58  ;;  %v12780_v6 = vadd.f32 %v12778_v49, %v21225_v24  ;;  %v12850_v23 = vpack.c.bf16 %v12823_v4, %v12822_v57  ;;  %v21232_v1 = vld [vmem:[#allocation28_spill] sm:$0xff] }
 0xce5   :  { %v16211_v28 = vpop.f32.mrb[96].mxu1  ;;  %v12832_v39 = vld [vmem:[#allocation4 + $0x90] sm:$0xff]  ;;  %v12834_v40 = vld [vmem:[#allocation4 + $0xa0] sm:$0xff]  ;;  %v12892_v59 = vsel %vm30_vm2, %v12849_v52, 0  ;;  %v21234_v52 = vld [vmem:[#allocation30_spill] sm:$0xff] }
 0xce6   :  { %12772 = vst.msk [vmem:[#allocation4 + $0xb0] sm:$0xff] %vm30_vm2, %v12770_v42  ;;  %12782 = vst.msk [vmem:[#allocation4 + $0xc0] sm:$0xff] %vm30_vm2, %v12780_v6  ;;  %v12787_v9 = vmul.f32 0.06666667, %v16211_v28  ;;  %v12797_v15 = vmul.f32 0.53333336, %v16211_v28  ;;  %v12855_v45 = vpack.c.bf16 %v12833_v22, %v12832_v39  ;;  %v12856_v54 = vpack.c.bf16 %v12835_v29, %v12834_v40 }
 0xce7   :  { %v12805_v44 = vmul.f32 0.0, %v16211_v28  ;;  %v12647_v32 = vpop.f32.mrb[97].mxu1  ;;  %v12895_v14 = vsel %vm30_vm2, %v12850_v23, 0  ;;  %v12825_v22 = vld [vmem:[#allocation4 + $0x58] sm:$0xff]  ;;  %v12826_v6 = vld [vmem:[#allocation4 + $0x60] sm:$0xff] }
 0xce8   :  { %v12786_v38 = vmul.f32 0.06666667, %v12647_v32  ;;  %v12796_v53 = vmul.f32 0.53333336, %v12647_v32  ;;  %v12804_v7 = vmul.f32 0.0, %v12647_v32  ;;  %v12789_v20 = vadd.f32 %v12787_v9, %v12785_v26  ;;  %17380 = vmatprep.subr.msk.bf16.mxu0 %vm30_vm2, %v12855_v45  ;;  %v12824_v26 = vld [vmem:[#allocation4 + $0x50] sm:$0xff]  ;;  %v12867_v45 = vpop.permute.xlu1 %12866 }
 0xce9   :  { %v12799_v13 = vadd.f32 %v12797_v15, %v12795_v62  ;;  %v12807_v30 = vadd.f32 %v16211_v28, %v12805_v44  ;;  %14861 = vmatpush3.bf16.xpose.msra.mxu0 %v12886_v21  ;;  %v12851_v61 = vpack.c.bf16 %v12825_v22, %v12824_v26  ;;  %v12828_v9 = vld [vmem:[#allocation4 + $0x70] sm:$0xff]  ;;  %v12829_v15 = vld [vmem:[#allocation4 + $0x78] sm:$0xff]  ;;  %v12872_v21 = vpop.permute.xlu0 %12871 }
 0xcea   :  { %v12788_v33 = vadd.f32 %v12786_v38, %v12784_v55  ;;  %v12798_v46 = vadd.f32 %v12796_v53, %v12794_v5  ;;  %v12806_v3 = vadd.f32 %v12804_v7, %v12647_v32  ;;  %v12791_v25 = vadd.f32 %v12789_v20, %v21226_v56  ;;  %17381 = vmatprep.subr.msk.bf16.mxu0 %vm30_vm2, %v12856_v54  ;;  %v12827_v55 = vld [vmem:[#allocation4 + $0x68] sm:$0xff] }
 0xceb   :  { %v12801_v2 = vadd.f32 %v12799_v13, %v21227_v18  ;;  %v12809_v0 = vadd.f32 %v12807_v30, %v21228_v17  ;;  %v12837_v16 = vld [vmem:[#allocation4 + $0xb8] sm:$0xff]  ;;  %v12839_v27 = vld [vmem:[#allocation4 + $0xc8] sm:$0xff]  ;;  %v12898_v42 = vsel %vm30_vm2, %v12851_v61, 0  ;;  %v12852_v5 = vpack.c.bf16 %v12827_v55, %v12826_v6 }
 0xcec   :  { %v12790_v47 = vadd.f32 %v12788_v33, %v21229_v51  ;;  %v12800_v48 = vadd.f32 %v12798_v46, %v21230_v34  ;;  %v12808_v11 = vadd.f32 %v12806_v3, %v21231_v12  ;;  %12793 = vst.msk [vmem:[#allocation4 + $0xd8] sm:$0xff] %vm30_vm2, %v12791_v25  ;;  %v12853_v44 = vpack.c.bf16 %v12829_v15, %v12828_v9 }
 0xced   :  { %12803 = vst.msk [vmem:[#allocation4 + $0xe8] sm:$0xff] %vm30_vm2, %v12801_v2  ;;  %12811 = vst.msk [vmem:[#allocation4 + $0xf8] sm:$0xff] %vm30_vm2, %v12809_v0  ;;  %v12836_v43 = vld [vmem:[#allocation4 + $0xb0] sm:$0xff]  ;;  %v12838_v41 = vld [vmem:[#allocation4 + $0xc0] sm:$0xff]  ;;  %v12901_v40 = vsel %vm30_vm2, %v12852_v5, 0  ;;  %v6551_v2 = vpop.xlane.xlu0 %6550 }
 0xcee   :  { %12792 = vst.msk [vmem:[#allocation4 + $0xd0] sm:$0xff] %vm30_vm2, %v12790_v47  ;;  %12802 = vst.msk [vmem:[#allocation4 + $0xe0] sm:$0xff] %vm30_vm2, %v12800_v48  ;;  %v12857_v50 = vpack.c.bf16 %v12837_v16, %v12836_v43  ;;  %v12858_v37 = vpack.c.bf16 %v12839_v27, %v12838_v41  ;;  %v12904_v32 = vsel %vm30_vm2, %v12853_v44, 0  ;;  %v6556_v47 = vpop.xlane.xlu1 %6555  ;;  %v21233_v16 = vld [vmem:[#allocation29_spill] sm:$0xff]  ;;  %v21235_v27 = vld [vmem:[#allocation27_spill] sm:$0xff] }
 0xcef   :  { %12810 = vst.msk [vmem:[#allocation4 + $0xf0] sm:$0xff] %vm30_vm2, %v12808_v11 }
 0xcf1   :  { %14863 = vmatpush3.bf16.xpose.msra.mxu0 %v12889_v10 }
 0xcf2   :  { %17382 = vmatprep.subr.msk.bf16.mxu0 %vm30_vm2, %v12857_v50 }
 0xcf3   :  { %v12841_v60 = vld [vmem:[#allocation4 + $0xd8] sm:$0xff] }
 0xcf4   :  { %v12843_v58 = vld [vmem:[#allocation4 + $0xe8] sm:$0xff]  ;;  %v12845_v39 = vld [vmem:[#allocation4 + $0xf8] sm:$0xff] }
 0xcf5   :  { %v12840_v35 = vld [vmem:[#allocation4 + $0xd0] sm:$0xff]  ;;  %v12842_v62 = vld [vmem:[#allocation4 + $0xe0] sm:$0xff] }
 0xcf6   :  { %v12859_v49 = vpack.c.bf16 %v12841_v60, %v12840_v35  ;;  %v12860_v24 = vpack.c.bf16 %v12843_v58, %v12842_v62  ;;  %v12844_v28 = vld [vmem:[#allocation4 + $0xf0] sm:$0xff] }
 0xcf7   :  { %v12861_v29 = vpack.c.bf16 %v12845_v39, %v12844_v28 }
 0xcf9   :  { %14865 = vmatpush3.bf16.xpose.msra.mxu0 %v12892_v59 }
 0xcfa   :  { %17383 = vmatprep.subr.msk.bf16.mxu0 %vm30_vm2, %v12858_v37 }
 0xd01   :  { %14867 = vmatpush3.bf16.xpose.msra.mxu0 %v12895_v14 }
 0xd02   :  { %17384 = vmatprep.subr.msk.bf16.mxu0 %vm30_vm2, %v12859_v49 }
 0xd09   :  { %14869 = vmatpush3.bf16.xpose.msra.mxu0 %v12898_v42 }
 0xd0a   :  { %17385 = vmatprep.subr.msk.bf16.mxu0 %vm30_vm2, %v12860_v24 }
 0xd11   :  { %14871 = vmatpush3.bf16.xpose.msra.mxu0 %v12901_v40 }
 0xd12   :  { %17386 = vmatprep.subr.msk.bf16.mxu0 %vm30_vm2, %v12861_v29 }
 0xd19   :  { %14873 = vmatpush3.bf16.xpose.msra.mxu0 %v12904_v32 }
 0xd20   :  { %14875 = vmatmul.mubr.msk.bf16.vlgmr.msra.gmra.mrb[76].mxu0 %vm30_vm2, %v20928_v63 }
 0xdf3   :  { %v12964_v38 = vpop.f32.mrb[76].mxu0 }
 0xdf4   :  { %v12965_v53 = vadd.f32 %v12964_v38, %v12867_v45  ;;  %v12966_v7 = vpop.f32.mrb[77].mxu0 }
 0xdf5   :  { %v12967_v20 = vadd.f32 %v12966_v7, %v12867_v45  ;;  %v12968_v13 = vpop.f32.mrb[78].mxu0 }
 0xdf6   :  { %vm12973_vm12 = vcmp.gt.f32.partialorder %v12965_v53, 0.6  ;;  %v12969_v30 = vadd.f32 %v12968_v13, %v12872_v21  ;;  %v12970_v54 = vpop.f32.mrb[79].mxu0 }
 0xdf7   :  { %vm12974_vm13 = vcmp.gt.f32.partialorder %v12967_v20, 0.6  ;;  %v12971_v33 = vadd.f32 %v12970_v54, %v12872_v21  ;;  %v12977_v46 = vsel %vm12973_vm12, %v12965_v53, 0.0 }
 0xdf8   :  { %vm12975_vm14 = vcmp.gt.f32.partialorder %v12969_v30, 0.6  ;;  %v12978_v3 = vsel %vm12974_vm13, %v12967_v20, 0.0 }
 0xdf9   :  { %v12979_v31 = vsel %vm12975_vm14, %v12969_v30, 0.0  ;;  %vm12976_vm15 = vcmp.gt.f32.partialorder %v12971_v33, 0.6  ;;  %v12981_v36 = vmax.f32 %v12977_v46, %v12978_v3 }
 0xdfa   :  { %v12980_v56 = vsel %vm12976_vm15, %v12971_v33, 0.0  ;;  %v12984_v63 = vsel %vm251_vm0, %v12979_v31, -inf }
 0xdfb   :  { %12982 = vmax.xlane.f32.xlu0 %v12981_v36  ;;  %v12985_v25 = vsel %vm251_vm0, %v12980_v56, -inf }
 0xdfc   :  { %v12986_v18 = vmax.f32 %v12984_v63, %v12985_v25 }
 0xdff   :  { %12987 = vmax.xlane.f32.xlu0 %v12986_v18 }
 0xe88   :  { %v12983_v17 = vpop.xlane.xlu0 %12982 }
 0xe89   :  { %v12989_v0 = vmax.f32 %v6551_v2, %v12983_v17 }
 0xe8b   :  { %v12991_v51 = vadd.f32 1e-09, %v12989_v0 }
 0xe8c   :  { %v12988_v34 = vpop.xlane.xlu0 %12987 }
 0xe8d   :  { %17394 = vrcp.f32 %v12991_v51  ;;  %v12990_v48 = vmax.f32 %v6556_v47, %v12988_v34 }
 0xe8f   :  { %v12992_v12 = vadd.f32 1e-09, %v12990_v48 }
 0xe91   :  { %17396 = vrcp.f32 %v12992_v12 }
 0xe97   :  { %v17395_v11 = vpop.eup %17394 }
 0xe98   :  { %v12995_v43 = vmul.f32 %v17395_v11, %v21232_v1  ;;  %v12996_v10 = vmul.f32 %v17395_v11, %v21233_v16  ;;  %v13003_v50 = vmul.f32 %v17395_v11, %v12977_v46  ;;  %v13004_v8 = vmul.f32 %v17395_v11, %v12978_v3 }
 0xe9a   :  { %12999 = vst [vmem:[%s21052_s8] sm:$0xff] %v12995_v43  ;;  %13000 = vst [vmem:[%s21052_s8 + $0x8] sm:$0xff] %v12996_v10 }
 0xe9b   :  { %14160 = vst [vmem:[%s21052_s8 + $0x20] sm:$0xff] %v13003_v50  ;;  %14161 = vst [vmem:[%s21052_s8 + $0x28] sm:$0xff] %v13004_v8  ;;  %v17397_v19 = vpop.eup %17396 }
 0xe9c   :  { %v12997_v41 = vmul.f32 %v17397_v19, %v21234_v52  ;;  %v12998_v59 = vmul.f32 %v17397_v19, %v21235_v27  ;;  %v13005_v37 = vmul.f32 %v17397_v19, %v12979_v31  ;;  %v13006_v57 = vmul.f32 %v17397_v19, %v12980_v56 }
 0xe9e   :  { %13001 = vst [vmem:[%s21052_s8 + $0x10] sm:$0x3] %v12997_v41  ;;  %13002 = vst [vmem:[%s21052_s8 + $0x18] sm:$0x3] %v12998_v59 }
 0xe9f   :  { %14162 = vst [vmem:[%s21052_s8 + $0x30] sm:$0x3] %v13005_v37  ;;  %14163 = vst [vmem:[%s21052_s8 + $0x38] sm:$0x3] %v13006_v57 }

</bundles_post_ra>
